<compile_context>
chip_gen: v7x
topology: tpu7x:2x2x1
jax: 0.10.0
libtpu: 0.0.40
codegen_flags: <defaults>
</compile_context>

<pallas_src>
from functools import partial

import jax
import jax.numpy as jnp
from jax.experimental import pallas as pl
from jax.experimental.pallas import tpu as pltpu


# ----------------------------------------------------------------------------
# Fused Pallas kernel: 1x1 expand + BN + ReLU6  ->  3x3 dw + BN + ReLU6
#                      -> 1x1 project + BN [+ residual]
# ----------------------------------------------------------------------------

def _bottleneck_kernel(x_ref, w1_ref, b1_ref, w2_ref, b2_ref, w3_ref, b3_ref,
                       o_ref, h1f_ref, hp_ref, h2s_ref, h2f_ref,
                       *, H, W, Ho, Wo, stride, residual):
    """One batch image per grid step; everything stays in VMEM.

    x_ref : (1, Cin, H*W)      w1_ref: (Cmid, Cin)    b1_ref: (Cmid, 1)
    w2_ref: (9, Cmid, 1, 1)    b2_ref: (Cmid, 1, 1)
    w3_ref: (Cout, Cmid)       b3_ref: (Cout, 1)
    o_ref : (1, Cout, Ho*Wo)
    scratch: h1f (Cmid,H*W), hp (Cmid,H+2,W+2), h2s (Cmid,Ho,Wo), h2f (Cmid,Ho*Wo)
    """
    # ---- 1x1 expand + BN1 + ReLU6 (MXU; lane axis = H*W, dense) -------------
    x = x_ref[0]                                              # (Cin, H*W)
    h1 = jnp.dot(w1_ref[...], x, preferred_element_type=jnp.float32)
    h1f_ref[...] = jnp.clip(h1 + b1_ref[...], 0.0, 6.0)       # (Cmid, H*W)

    # ---- relayout rows into the zero-padded VMEM buffer (replaces jnp.pad) --
    hp_ref[...] = jnp.zeros_like(hp_ref)
    for r in range(H):
        hp_ref[:, r + 1, 1:W + 1] = h1f_ref[:, r * W:(r + 1) * W]

    # ---- 3x3 depthwise conv + BN2 + ReLU6 (VPU) -----------------------------
    Cmid = hp_ref.shape[0]
    acc = jnp.zeros((Cmid, Ho, Wo), jnp.float32)
    for ki in range(3):
        for kj in range(3):
            if stride == 1:
                tap = hp_ref[:, ki:ki + Ho, kj:kj + Wo]
            else:
                tap = hp_ref[:, pl.ds(ki, Ho, stride=stride),
                             pl.ds(kj, Wo, stride=stride)]
            acc = acc + tap * w2_ref[ki * 3 + kj]              # (Cmid,1,1) bcast
    h2s_ref[...] = jnp.clip(acc + b2_ref[...], 0.0, 6.0)       # (Cmid, Ho, Wo)

    # ---- flatten back to (Cmid, Ho*Wo) for a lane-dense projection ----------
    for r in range(Ho):
        h2f_ref[:, r * Wo:(r + 1) * Wo] = h2s_ref[:, r, :]

    # ---- 1x1 project + BN3 [+ residual] (MXU; lane-dense output) ------------
    out = jnp.dot(w3_ref[...], h2f_ref[...], preferred_element_type=jnp.float32)
    out = out + b3_ref[...]
    if residual:
        out = out + x                                          # Cin==Cout, H*W==Ho*Wo
    o_ref[0] = out.astype(o_ref.dtype)


# ----------------------------------------------------------------------------
# Wrapper: fold BN into weights, set up BlockSpecs, call the fused kernel.
# ----------------------------------------------------------------------------

def linear_bottleneck_forward(x_nchw, params, *, stride, eps=1e-5):
    N, Cin, H, W = x_nchw.shape
    Cmid = params["conv1_w"].shape[0]
    Cout = params["conv3_w"].shape[0]
    assert stride in (1, 2)

    # Fold eval-mode BN (running_mean=0, running_var=1) into the conv weights.
    s1 = params["bn1_g"] / jnp.sqrt(1.0 + eps)
    s2 = params["bn2_g"] / jnp.sqrt(1.0 + eps)
    s3 = params["bn3_g"] / jnp.sqrt(1.0 + eps)
    w1f = params["conv1_w"] * s1[:, None]                      # (Cmid, Cin)
    b1 = params["bn1_b"].reshape(Cmid, 1)
    w2_scaled = params["conv2_w"] * s2[:, None, None]          # (Cmid, 3, 3)
    w2f = jnp.transpose(w2_scaled.reshape(Cmid, 9), (1, 0)).reshape(9, Cmid, 1, 1)
    b2 = params["bn2_b"].reshape(Cmid, 1, 1)
    w3f = params["conv3_w"] * s3[:, None]                      # (Cout, Cmid)
    b3 = params["bn3_b"].reshape(Cout, 1)

    Ho = (H - 1) // stride + 1
    Wo = (W - 1) // stride + 1
    residual = (stride == 1 and Cin == Cout)

    x_flat = x_nchw.reshape(N, Cin, H * W)                     # free XLA reshape

    kernel = partial(_bottleneck_kernel, H=H, W=W, Ho=Ho, Wo=Wo,
                     stride=stride, residual=residual)

    out_flat = pl.pallas_call(
        kernel,
        out_shape=jax.ShapeDtypeStruct((N, Cout, Ho * Wo), x_nchw.dtype),
        grid=(N,),
        in_specs=[
            pl.BlockSpec((1, Cin, H * W), lambda n: (n, 0, 0)),
            pl.BlockSpec((Cmid, Cin), lambda n: (0, 0)),
            pl.BlockSpec((Cmid, 1), lambda n: (0, 0)),
            pl.BlockSpec((9, Cmid, 1, 1), lambda n: (0, 0, 0, 0)),
            pl.BlockSpec((Cmid, 1, 1), lambda n: (0, 0, 0)),
            pl.BlockSpec((Cout, Cmid), lambda n: (0, 0)),
            pl.BlockSpec((Cout, 1), lambda n: (0, 0)),
        ],
        out_specs=pl.BlockSpec((1, Cout, Ho * Wo), lambda n: (n, 0, 0)),
        scratch_shapes=[
            pltpu.VMEM((Cmid, H * W), jnp.float32),            # h1 (flat, lane-dense)
            pltpu.VMEM((Cmid, H + 2, W + 2), jnp.float32),     # zero-padded h1
            pltpu.VMEM((Cmid, Ho, Wo), jnp.float32),           # depthwise output
            pltpu.VMEM((Cmid, Ho * Wo), jnp.float32),          # flat dw output
        ],
        compiler_params=pltpu.CompilerParams(
            dimension_semantics=("parallel",),
            vmem_limit_bytes=32 * 1024 * 1024,
        ),
    )(x_flat, w1f, b1, w2f, b2, w3f, b3)

    return out_flat.reshape(N, Cout, Ho, Wo)


# ----------------------------------------------------------------------------
# Deterministic (PyTorch-like) parameters + pure-JAX reference
# ----------------------------------------------------------------------------

def make_params(key, inplanes, outplanes, t):
    Cmid = inplanes * t
    ks = jax.random.split(key, 9)
    return dict(
        conv1_w=jax.random.normal(ks[0], (Cmid, inplanes), jnp.float32) * 0.1,
        bn1_g=jax.random.uniform(ks[1], (Cmid,), jnp.float32, 0.5, 1.5),
        bn1_b=jax.random.uniform(ks[2], (Cmid,), jnp.float32, -0.5, 0.5),
        conv2_w=jax.random.normal(ks[3], (Cmid, 3, 3), jnp.float32) * 0.1,
        bn2_g=jax.random.uniform(ks[4], (Cmid,), jnp.float32, 0.5, 1.5),
        bn2_b=jax.random.uniform(ks[5], (Cmid,), jnp.float32, -0.5, 0.5),
        conv3_w=jax.random.normal(ks[6], (outplanes, Cmid), jnp.float32) * 0.1,
        bn3_g=jax.random.uniform(ks[7], (outplanes,), jnp.float32, 0.5, 1.5),
        bn3_b=jax.random.uniform(ks[8], (outplanes,), jnp.float32, -0.5, 0.5),
    )


def ref_linear_bottleneck(x, p, *, stride, eps=1e-5):
    xf = x.astype(jnp.float32)

    def bn(v, g, b):
        s = g / jnp.sqrt(1.0 + eps)
        return v * s[None, :, None, None] + b[None, :, None, None]

    hi = jnp.einsum("mc,nchw->nmhw", p["conv1_w"], xf,
                    precision=jax.lax.Precision.HIGHEST)
    h1 = jnp.clip(bn(hi, p["bn1_g"], p["bn1_b"]), 0.0, 6.0)
    N, Cm, H, W = h1.shape
    Ho = (H - 1) // stride + 1
    Wo = (W - 1) // stride + 1
    hp = jnp.pad(h1, ((0, 0), (0, 0), (1, 1), (1, 1)))
    acc = jnp.zeros((N, Cm, Ho, Wo), jnp.float32)
    for ki in range(3):
        for kj in range(3):
            tap = hp[:, :, ki:ki + (Ho - 1) * stride + 1:stride,
                     kj:kj + (Wo - 1) * stride + 1:stride]
            acc = acc + tap * p["conv2_w"][None, :, ki, kj, None, None]
    h2 = jnp.clip(bn(acc, p["bn2_g"], p["bn2_b"]), 0.0, 6.0)
    out = jnp.einsum("om,nmhw->nohw", p["conv3_w"], h2,
                     precision=jax.lax.Precision.HIGHEST)
    out = bn(out, p["bn3_g"], p["bn3_b"])
    if stride == 1 and x.shape[1] == out.shape[1]:
        out = out + xf
    return out


# ----------------------------------------------------------------------------
# Main
# ----------------------------------------------------------------------------

if __name__ == "__main__":
    inplanes, outplanes, stride, t = 4, 4, 1, 6
    N, H, W = 2, 16, 16

    key = jax.random.PRNGKey(0)
    kx, kp = jax.random.split(key)
    x = jax.random.normal(kx, (N, inplanes, H, W), jnp.float32)
    params = make_params(kp, inplanes, outplanes, t)

    out = linear_bottleneck_forward(x, params, stride=stride)
    out = jax.block_until_ready(out)

    ref = ref_linear_bottleneck(x, params, stride=stride)
    Ho = (H - 1) // stride + 1
    Wo = (W - 1) // stride + 1
    assert out.shape == (N, outplanes, Ho, Wo)
    err = float(jnp.max(jnp.abs(out - ref)))
    assert jnp.allclose(out, ref, atol=1e-3, rtol=1e-3), f"max abs err {err}"

    print("KERNEL_OK")
</pallas_src>

<mosaic_0001>
module attributes {stable_mosaic.version = 11 : i64} {
  func.func @_bottleneck_kernel(%arg0: i32, %arg1: memref<1x4x256xf32, #tpu.memory_space<vmem>>, %arg2: memref<24x4xf32, #tpu.memory_space<vmem>>, %arg3: memref<24x1xf32, #tpu.memory_space<vmem>>, %arg4: memref<9x24x1x1xf32, #tpu.memory_space<vmem>>, %arg5: memref<24x1x1xf32, #tpu.memory_space<vmem>>, %arg6: memref<4x24xf32, #tpu.memory_space<vmem>>, %arg7: memref<4x1xf32, #tpu.memory_space<vmem>>, %arg8: memref<1x4x256xf32, #tpu.memory_space<vmem>>, %arg9: memref<24x256xf32, #tpu.memory_space<vmem>>, %arg10: memref<24x18x18xf32, #tpu.memory_space<vmem>>, %arg11: memref<24x16x16xf32, #tpu.memory_space<vmem>>, %arg12: memref<24x256xf32, #tpu.memory_space<vmem>>) attributes {dimension_semantics = [#tpu.dimension_semantics<parallel>], iteration_bounds = array<i64: 2>, scalar_prefetch = 0 : i64, scratch_operands = 4 : i64, tpu.core_type = #tpu.core_type<tc>, window_params = [{transform_indices = @transform_0, window_bounds = array<i64: 1, 4, 256>}, {pipeline_mode = #tpu.pipeline_mode<synchronous>, transform_indices = @transform_1, window_bounds = array<i64: 24, 4>}, {pipeline_mode = #tpu.pipeline_mode<synchronous>, transform_indices = @transform_2, window_bounds = array<i64: 24, 1>}, {pipeline_mode = #tpu.pipeline_mode<synchronous>, transform_indices = @transform_3, window_bounds = array<i64: 9, 24, 1, 1>}, {pipeline_mode = #tpu.pipeline_mode<synchronous>, transform_indices = @transform_4, window_bounds = array<i64: 24, 1, 1>}, {pipeline_mode = #tpu.pipeline_mode<synchronous>, transform_indices = @transform_5, window_bounds = array<i64: 4, 24>}, {pipeline_mode = #tpu.pipeline_mode<synchronous>, transform_indices = @transform_6, window_bounds = array<i64: 4, 1>}, {transform_indices = @transform_7, window_bounds = array<i64: 1, 4, 256>}]} {
    %c0 = arith.constant 0 : index
    %c0_0 = arith.constant 0 : index
    %c0_1 = arith.constant 0 : index
    %0 = vector.load %arg1[%c0, %c0_0, %c0_1] : memref<1x4x256xf32, #tpu.memory_space<vmem>>, vector<1x4x256xf32>
    %1 = vector.shape_cast %0 : vector<1x4x256xf32> to vector<4x256xf32>
    %c0_2 = arith.constant 0 : index
    %c0_3 = arith.constant 0 : index
    %2 = vector.load %arg2[%c0_2, %c0_3] : memref<24x4xf32, #tpu.memory_space<vmem>>, vector<24x4xf32>
    %cst = arith.constant dense<0.000000e+00> : vector<24x256xf32>
    %3 = tpu.matmul %2, %1, %cst {dimension_numbers = #tpu.dot_dimension_numbers<[1], [0], [0], [1], [0, 0, 1, 1], [], []>} : vector<24x4xf32>, vector<4x256xf32>, vector<24x256xf32> -> vector<24x256xf32>
    %c0_4 = arith.constant 0 : index
    %c0_5 = arith.constant 0 : index
    %4 = vector.load %arg3[%c0_4, %c0_5] : memref<24x1xf32, #tpu.memory_space<vmem>>, vector<24x1xf32>
    %5 = vector.broadcast %4 : vector<24x1xf32> to vector<24x256xf32>
    %6 = arith.addf %3, %5 : vector<24x256xf32>
    %cst_6 = arith.constant 0.000000e+00 : f32
    %cst_7 = arith.constant 6.000000e+00 : f32
    %7 = vector.broadcast %cst_6 : f32 to vector<24x256xf32>
    %8 = arith.maximumf %7, %6 : vector<24x256xf32>
    %9 = vector.broadcast %cst_7 : f32 to vector<24x256xf32>
    %10 = arith.minimumf %9, %8 : vector<24x256xf32>
    %c0_8 = arith.constant 0 : index
    %c0_9 = arith.constant 0 : index
    %11 = vector.load %arg9[%c0_8, %c0_9] : memref<24x256xf32, #tpu.memory_space<vmem>>, vector<24x256xf32>
    tpu.vector_store %arg9[%c0_8, %c0_9], %10 {strides = array<i32>} : memref<24x256xf32, #tpu.memory_space<vmem>>, vector<24x256xf32>,
    %cst_10 = arith.constant 0.000000e+00 : f32
    %12 = vector.broadcast %cst_10 : f32 to vector<24x18x18xf32>
    %c0_11 = arith.constant 0 : index
    %c0_12 = arith.constant 0 : index
    %c0_13 = arith.constant 0 : index
    %13 = vector.load %arg10[%c0_11, %c0_12, %c0_13] : memref<24x18x18xf32, #tpu.memory_space<vmem>>, vector<24x18x18xf32>
    tpu.vector_store %arg10[%c0_11, %c0_12, %c0_13], %12 {strides = array<i32>} : memref<24x18x18xf32, #tpu.memory_space<vmem>>, vector<24x18x18xf32>,
    %c0_14 = arith.constant 0 : index
    %c0_15 = arith.constant 0 : index
    %14 = vector.load %arg9[%c0_14, %c0_15] : memref<24x256xf32, #tpu.memory_space<vmem>>, vector<24x16xf32>
    %c0_16 = arith.constant 0 : index
    %c1 = arith.constant 1 : index
    %c1_17 = arith.constant 1 : index
    %15 = vector.load %arg10[%c0_16, %c1, %c1_17] : memref<24x18x18xf32, #tpu.memory_space<vmem>>, vector<24x1x16xf32>
    %16 = vector.shape_cast %15 : vector<24x1x16xf32> to vector<24x16xf32>
    %17 = vector.shape_cast %14 : vector<24x16xf32> to vector<24x1x16xf32>
    tpu.vector_store %arg10[%c0_16, %c1, %c1_17], %17 {strides = array<i32>} : memref<24x18x18xf32, #tpu.memory_space<vmem>>, vector<24x1x16xf32>,
    %c0_18 = arith.constant 0 : index
    %c16 = arith.constant 16 : index
    %18 = vector.load %arg9[%c0_18, %c16] : memref<24x256xf32, #tpu.memory_space<vmem>>, vector<24x16xf32>
    %c0_19 = arith.constant 0 : index
    %c2 = arith.constant 2 : index
    %c1_20 = arith.constant 1 : index
    %19 = vector.load %arg10[%c0_19, %c2, %c1_20] : memref<24x18x18xf32, #tpu.memory_space<vmem>>, vector<24x1x16xf32>
    %20 = vector.shape_cast %19 : vector<24x1x16xf32> to vector<24x16xf32>
    %21 = vector.shape_cast %18 : vector<24x16xf32> to vector<24x1x16xf32>
    tpu.vector_store %arg10[%c0_19, %c2, %c1_20], %21 {strides = array<i32>} : memref<24x18x18xf32, #tpu.memory_space<vmem>>, vector<24x1x16xf32>,
    %c0_21 = arith.constant 0 : index
    %c32 = arith.constant 32 : index
    %22 = vector.load %arg9[%c0_21, %c32] : memref<24x256xf32, #tpu.memory_space<vmem>>, vector<24x16xf32>
    %c0_22 = arith.constant 0 : index
    %c3 = arith.constant 3 : index
    %c1_23 = arith.constant 1 : index
    %23 = vector.load %arg10[%c0_22, %c3, %c1_23] : memref<24x18x18xf32, #tpu.memory_space<vmem>>, vector<24x1x16xf32>
    %24 = vector.shape_cast %23 : vector<24x1x16xf32> to vector<24x16xf32>
    %25 = vector.shape_cast %22 : vector<24x16xf32> to vector<24x1x16xf32>
    tpu.vector_store %arg10[%c0_22, %c3, %c1_23], %25 {strides = array<i32>} : memref<24x18x18xf32, #tpu.memory_space<vmem>>, vector<24x1x16xf32>,
    %c0_24 = arith.constant 0 : index
    %c48 = arith.constant 48 : index
    %26 = vector.load %arg9[%c0_24, %c48] : memref<24x256xf32, #tpu.memory_space<vmem>>, vector<24x16xf32>
    %c0_25 = arith.constant 0 : index
    %c4 = arith.constant 4 : index
    %c1_26 = arith.constant 1 : index
    %27 = vector.load %arg10[%c0_25, %c4, %c1_26] : memref<24x18x18xf32, #tpu.memory_space<vmem>>, vector<24x1x16xf32>
    %28 = vector.shape_cast %27 : vector<24x1x16xf32> to vector<24x16xf32>
    %29 = vector.shape_cast %26 : vector<24x16xf32> to vector<24x1x16xf32>
    tpu.vector_store %arg10[%c0_25, %c4, %c1_26], %29 {strides = array<i32>} : memref<24x18x18xf32, #tpu.memory_space<vmem>>, vector<24x1x16xf32>,
    %c0_27 = arith.constant 0 : index
    %c64 = arith.constant 64 : index
    %30 = vector.load %arg9[%c0_27, %c64] : memref<24x256xf32, #tpu.memory_space<vmem>>, vector<24x16xf32>
    %c0_28 = arith.constant 0 : index
    %c5 = arith.constant 5 : index
    %c1_29 = arith.constant 1 : index
    %31 = vector.load %arg10[%c0_28, %c5, %c1_29] : memref<24x18x18xf32, #tpu.memory_space<vmem>>, vector<24x1x16xf32>
    %32 = vector.shape_cast %31 : vector<24x1x16xf32> to vector<24x16xf32>
    %33 = vector.shape_cast %30 : vector<24x16xf32> to vector<24x1x16xf32>
    tpu.vector_store %arg10[%c0_28, %c5, %c1_29], %33 {strides = array<i32>} : memref<24x18x18xf32, #tpu.memory_space<vmem>>, vector<24x1x16xf32>,
    %c0_30 = arith.constant 0 : index
    %c80 = arith.constant 80 : index
    %34 = vector.load %arg9[%c0_30, %c80] : memref<24x256xf32, #tpu.memory_space<vmem>>, vector<24x16xf32>
    %c0_31 = arith.constant 0 : index
    %c6 = arith.constant 6 : index
    %c1_32 = arith.constant 1 : index
    %35 = vector.load %arg10[%c0_31, %c6, %c1_32] : memref<24x18x18xf32, #tpu.memory_space<vmem>>, vector<24x1x16xf32>
    %36 = vector.shape_cast %35 : vector<24x1x16xf32> to vector<24x16xf32>
    %37 = vector.shape_cast %34 : vector<24x16xf32> to vector<24x1x16xf32>
    tpu.vector_store %arg10[%c0_31, %c6, %c1_32], %37 {strides = array<i32>} : memref<24x18x18xf32, #tpu.memory_space<vmem>>, vector<24x1x16xf32>,
    %c0_33 = arith.constant 0 : index
    %c96 = arith.constant 96 : index
    %38 = vector.load %arg9[%c0_33, %c96] : memref<24x256xf32, #tpu.memory_space<vmem>>, vector<24x16xf32>
    %c0_34 = arith.constant 0 : index
    %c7 = arith.constant 7 : index
    %c1_35 = arith.constant 1 : index
    %39 = vector.load %arg10[%c0_34, %c7, %c1_35] : memref<24x18x18xf32, #tpu.memory_space<vmem>>, vector<24x1x16xf32>
    %40 = vector.shape_cast %39 : vector<24x1x16xf32> to vector<24x16xf32>
    %41 = vector.shape_cast %38 : vector<24x16xf32> to vector<24x1x16xf32>
    tpu.vector_store %arg10[%c0_34, %c7, %c1_35], %41 {strides = array<i32>} : memref<24x18x18xf32, #tpu.memory_space<vmem>>, vector<24x1x16xf32>,
    %c0_36 = arith.constant 0 : index
    %c112 = arith.constant 112 : index
    %42 = vector.load %arg9[%c0_36, %c112] : memref<24x256xf32, #tpu.memory_space<vmem>>, vector<24x16xf32>
    %c0_37 = arith.constant 0 : index
    %c8 = arith.constant 8 : index
    %c1_38 = arith.constant 1 : index
    %43 = vector.load %arg10[%c0_37, %c8, %c1_38] : memref<24x18x18xf32, #tpu.memory_space<vmem>>, vector<24x1x16xf32>
    %44 = vector.shape_cast %43 : vector<24x1x16xf32> to vector<24x16xf32>
    %45 = vector.shape_cast %42 : vector<24x16xf32> to vector<24x1x16xf32>
    tpu.vector_store %arg10[%c0_37, %c8, %c1_38], %45 {strides = array<i32>} : memref<24x18x18xf32, #tpu.memory_space<vmem>>, vector<24x1x16xf32>,
    %c0_39 = arith.constant 0 : index
    %c128 = arith.constant 128 : index
    %46 = vector.load %arg9[%c0_39, %c128] : memref<24x256xf32, #tpu.memory_space<vmem>>, vector<24x16xf32>
    %c0_40 = arith.constant 0 : index
    %c9 = arith.constant 9 : index
    %c1_41 = arith.constant 1 : index
    %47 = vector.load %arg10[%c0_40, %c9, %c1_41] : memref<24x18x18xf32, #tpu.memory_space<vmem>>, vector<24x1x16xf32>
    %48 = vector.shape_cast %47 : vector<24x1x16xf32> to vector<24x16xf32>
    %49 = vector.shape_cast %46 : vector<24x16xf32> to vector<24x1x16xf32>
    tpu.vector_store %arg10[%c0_40, %c9, %c1_41], %49 {strides = array<i32>} : memref<24x18x18xf32, #tpu.memory_space<vmem>>, vector<24x1x16xf32>,
    %c0_42 = arith.constant 0 : index
    %c144 = arith.constant 144 : index
    %50 = vector.load %arg9[%c0_42, %c144] : memref<24x256xf32, #tpu.memory_space<vmem>>, vector<24x16xf32>
    %c0_43 = arith.constant 0 : index
    %c10 = arith.constant 10 : index
    %c1_44 = arith.constant 1 : index
    %51 = vector.load %arg10[%c0_43, %c10, %c1_44] : memref<24x18x18xf32, #tpu.memory_space<vmem>>, vector<24x1x16xf32>
    %52 = vector.shape_cast %51 : vector<24x1x16xf32> to vector<24x16xf32>
    %53 = vector.shape_cast %50 : vector<24x16xf32> to vector<24x1x16xf32>
    tpu.vector_store %arg10[%c0_43, %c10, %c1_44], %53 {strides = array<i32>} : memref<24x18x18xf32, #tpu.memory_space<vmem>>, vector<24x1x16xf32>,
    %c0_45 = arith.constant 0 : index
    %c160 = arith.constant 160 : index
    %54 = vector.load %arg9[%c0_45, %c160] : memref<24x256xf32, #tpu.memory_space<vmem>>, vector<24x16xf32>
    %c0_46 = arith.constant 0 : index
    %c11 = arith.constant 11 : index
    %c1_47 = arith.constant 1 : index
    %55 = vector.load %arg10[%c0_46, %c11, %c1_47] : memref<24x18x18xf32, #tpu.memory_space<vmem>>, vector<24x1x16xf32>
    %56 = vector.shape_cast %55 : vector<24x1x16xf32> to vector<24x16xf32>
    %57 = vector.shape_cast %54 : vector<24x16xf32> to vector<24x1x16xf32>
    tpu.vector_store %arg10[%c0_46, %c11, %c1_47], %57 {strides = array<i32>} : memref<24x18x18xf32, #tpu.memory_space<vmem>>, vector<24x1x16xf32>,
    %c0_48 = arith.constant 0 : index
    %c176 = arith.constant 176 : index
    %58 = vector.load %arg9[%c0_48, %c176] : memref<24x256xf32, #tpu.memory_space<vmem>>, vector<24x16xf32>
    %c0_49 = arith.constant 0 : index
    %c12 = arith.constant 12 : index
    %c1_50 = arith.constant 1 : index
    %59 = vector.load %arg10[%c0_49, %c12, %c1_50] : memref<24x18x18xf32, #tpu.memory_space<vmem>>, vector<24x1x16xf32>
    %60 = vector.shape_cast %59 : vector<24x1x16xf32> to vector<24x16xf32>
    %61 = vector.shape_cast %58 : vector<24x16xf32> to vector<24x1x16xf32>
    tpu.vector_store %arg10[%c0_49, %c12, %c1_50], %61 {strides = array<i32>} : memref<24x18x18xf32, #tpu.memory_space<vmem>>, vector<24x1x16xf32>,
    %c0_51 = arith.constant 0 : index
    %c192 = arith.constant 192 : index
    %62 = vector.load %arg9[%c0_51, %c192] : memref<24x256xf32, #tpu.memory_space<vmem>>, vector<24x16xf32>
    %c0_52 = arith.constant 0 : index
    %c13 = arith.constant 13 : index
    %c1_53 = arith.constant 1 : index
    %63 = vector.load %arg10[%c0_52, %c13, %c1_53] : memref<24x18x18xf32, #tpu.memory_space<vmem>>, vector<24x1x16xf32>
    %64 = vector.shape_cast %63 : vector<24x1x16xf32> to vector<24x16xf32>
    %65 = vector.shape_cast %62 : vector<24x16xf32> to vector<24x1x16xf32>
    tpu.vector_store %arg10[%c0_52, %c13, %c1_53], %65 {strides = array<i32>} : memref<24x18x18xf32, #tpu.memory_space<vmem>>, vector<24x1x16xf32>,
    %c0_54 = arith.constant 0 : index
    %c208 = arith.constant 208 : index
    %66 = vector.load %arg9[%c0_54, %c208] : memref<24x256xf32, #tpu.memory_space<vmem>>, vector<24x16xf32>
    %c0_55 = arith.constant 0 : index
    %c14 = arith.constant 14 : index
    %c1_56 = arith.constant 1 : index
    %67 = vector.load %arg10[%c0_55, %c14, %c1_56] : memref<24x18x18xf32, #tpu.memory_space<vmem>>, vector<24x1x16xf32>
    %68 = vector.shape_cast %67 : vector<24x1x16xf32> to vector<24x16xf32>
    %69 = vector.shape_cast %66 : vector<24x16xf32> to vector<24x1x16xf32>
    tpu.vector_store %arg10[%c0_55, %c14, %c1_56], %69 {strides = array<i32>} : memref<24x18x18xf32, #tpu.memory_space<vmem>>, vector<24x1x16xf32>,
    %c0_57 = arith.constant 0 : index
    %c224 = arith.constant 224 : index
    %70 = vector.load %arg9[%c0_57, %c224] : memref<24x256xf32, #tpu.memory_space<vmem>>, vector<24x16xf32>
    %c0_58 = arith.constant 0 : index
    %c15 = arith.constant 15 : index
    %c1_59 = arith.constant 1 : index
    %71 = vector.load %arg10[%c0_58, %c15, %c1_59] : memref<24x18x18xf32, #tpu.memory_space<vmem>>, vector<24x1x16xf32>
    %72 = vector.shape_cast %71 : vector<24x1x16xf32> to vector<24x16xf32>
    %73 = vector.shape_cast %70 : vector<24x16xf32> to vector<24x1x16xf32>
    tpu.vector_store %arg10[%c0_58, %c15, %c1_59], %73 {strides = array<i32>} : memref<24x18x18xf32, #tpu.memory_space<vmem>>, vector<24x1x16xf32>,
    %c0_60 = arith.constant 0 : index
    %c240 = arith.constant 240 : index
    %74 = vector.load %arg9[%c0_60, %c240] : memref<24x256xf32, #tpu.memory_space<vmem>>, vector<24x16xf32>
    %c0_61 = arith.constant 0 : index
    %c16_62 = arith.constant 16 : index
    %c1_63 = arith.constant 1 : index
    %75 = vector.load %arg10[%c0_61, %c16_62, %c1_63] : memref<24x18x18xf32, #tpu.memory_space<vmem>>, vector<24x1x16xf32>
    %76 = vector.shape_cast %75 : vector<24x1x16xf32> to vector<24x16xf32>
    %77 = vector.shape_cast %74 : vector<24x16xf32> to vector<24x1x16xf32>
    tpu.vector_store %arg10[%c0_61, %c16_62, %c1_63], %77 {strides = array<i32>} : memref<24x18x18xf32, #tpu.memory_space<vmem>>, vector<24x1x16xf32>,
    %cst_64 = arith.constant 0.000000e+00 : f32
    %78 = vector.broadcast %cst_64 : f32 to vector<24x16x16xf32>
    %c0_65 = arith.constant 0 : index
    %c0_66 = arith.constant 0 : index
    %c0_67 = arith.constant 0 : index
    %79 = vector.load %arg10[%c0_65, %c0_66, %c0_67] : memref<24x18x18xf32, #tpu.memory_space<vmem>>, vector<24x16x16xf32>
    %c0_68 = arith.constant 0 : index
    %c0_69 = arith.constant 0 : index
    %c0_70 = arith.constant 0 : index
    %c0_71 = arith.constant 0 : index
    %80 = vector.load %arg4[%c0_68, %c0_69, %c0_70, %c0_71] : memref<9x24x1x1xf32, #tpu.memory_space<vmem>>, vector<1x24x1x1xf32>
    %81 = vector.shape_cast %80 : vector<1x24x1x1xf32> to vector<24x1x1xf32>
    %82 = vector.broadcast %81 : vector<24x1x1xf32> to vector<24x16x16xf32>
    %83 = arith.mulf %79, %82 : vector<24x16x16xf32>
    %84 = arith.addf %78, %83 : vector<24x16x16xf32>
    %c0_72 = arith.constant 0 : index
    %c0_73 = arith.constant 0 : index
    %c1_74 = arith.constant 1 : index
    %85 = vector.load %arg10[%c0_72, %c0_73, %c1_74] : memref<24x18x18xf32, #tpu.memory_space<vmem>>, vector<24x16x16xf32>
    %c1_75 = arith.constant 1 : index
    %c0_76 = arith.constant 0 : index
    %c0_77 = arith.constant 0 : index
    %c0_78 = arith.constant 0 : index
    %86 = vector.load %arg4[%c1_75, %c0_76, %c0_77, %c0_78] : memref<9x24x1x1xf32, #tpu.memory_space<vmem>>, vector<1x24x1x1xf32>
    %87 = vector.shape_cast %86 : vector<1x24x1x1xf32> to vector<24x1x1xf32>
    %88 = vector.broadcast %87 : vector<24x1x1xf32> to vector<24x16x16xf32>
    %89 = arith.mulf %85, %88 : vector<24x16x16xf32>
    %90 = arith.addf %84, %89 : vector<24x16x16xf32>
    %c0_79 = arith.constant 0 : index
    %c0_80 = arith.constant 0 : index
    %c2_81 = arith.constant 2 : index
    %91 = vector.load %arg10[%c0_79, %c0_80, %c2_81] : memref<24x18x18xf32, #tpu.memory_space<vmem>>, vector<24x16x16xf32>
    %c2_82 = arith.constant 2 : index
    %c0_83 = arith.constant 0 : index
    %c0_84 = arith.constant 0 : index
    %c0_85 = arith.constant 0 : index
    %92 = vector.load %arg4[%c2_82, %c0_83, %c0_84, %c0_85] : memref<9x24x1x1xf32, #tpu.memory_space<vmem>>, vector<1x24x1x1xf32>
    %93 = vector.shape_cast %92 : vector<1x24x1x1xf32> to vector<24x1x1xf32>
    %94 = vector.broadcast %93 : vector<24x1x1xf32> to vector<24x16x16xf32>
    %95 = arith.mulf %91, %94 : vector<24x16x16xf32>
    %96 = arith.addf %90, %95 : vector<24x16x16xf32>
    %c0_86 = arith.constant 0 : index
    %c1_87 = arith.constant 1 : index
    %c0_88 = arith.constant 0 : index
    %97 = vector.load %arg10[%c0_86, %c1_87, %c0_88] : memref<24x18x18xf32, #tpu.memory_space<vmem>>, vector<24x16x16xf32>
    %c3_89 = arith.constant 3 : index
    %c0_90 = arith.constant 0 : index
    %c0_91 = arith.constant 0 : index
    %c0_92 = arith.constant 0 : index
    %98 = vector.load %arg4[%c3_89, %c0_90, %c0_91, %c0_92] : memref<9x24x1x1xf32, #tpu.memory_space<vmem>>, vector<1x24x1x1xf32>
    %99 = vector.shape_cast %98 : vector<1x24x1x1xf32> to vector<24x1x1xf32>
    %100 = vector.broadcast %99 : vector<24x1x1xf32> to vector<24x16x16xf32>
    %101 = arith.mulf %97, %100 : vector<24x16x16xf32>
    %102 = arith.addf %96, %101 : vector<24x16x16xf32>
    %c0_93 = arith.constant 0 : index
    %c1_94 = arith.constant 1 : index
    %c1_95 = arith.constant 1 : index
    %103 = vector.load %arg10[%c0_93, %c1_94, %c1_95] : memref<24x18x18xf32, #tpu.memory_space<vmem>>, vector<24x16x16xf32>
    %c4_96 = arith.constant 4 : index
    %c0_97 = arith.constant 0 : index
    %c0_98 = arith.constant 0 : index
    %c0_99 = arith.constant 0 : index
    %104 = vector.load %arg4[%c4_96, %c0_97, %c0_98, %c0_99] : memref<9x24x1x1xf32, #tpu.memory_space<vmem>>, vector<1x24x1x1xf32>
    %105 = vector.shape_cast %104 : vector<1x24x1x1xf32> to vector<24x1x1xf32>
    %106 = vector.broadcast %105 : vector<24x1x1xf32> to vector<24x16x16xf32>
    %107 = arith.mulf %103, %106 : vector<24x16x16xf32>
    %108 = arith.addf %102, %107 : vector<24x16x16xf32>
    %c0_100 = arith.constant 0 : index
    %c1_101 = arith.constant 1 : index
    %c2_102 = arith.constant 2 : index
    %109 = vector.load %arg10[%c0_100, %c1_101, %c2_102] : memref<24x18x18xf32, #tpu.memory_space<vmem>>, vector<24x16x16xf32>
    %c5_103 = arith.constant 5 : index
    %c0_104 = arith.constant 0 : index
    %c0_105 = arith.constant 0 : index
    %c0_106 = arith.constant 0 : index
    %110 = vector.load %arg4[%c5_103, %c0_104, %c0_105, %c0_106] : memref<9x24x1x1xf32, #tpu.memory_space<vmem>>, vector<1x24x1x1xf32>
    %111 = vector.shape_cast %110 : vector<1x24x1x1xf32> to vector<24x1x1xf32>
    %112 = vector.broadcast %111 : vector<24x1x1xf32> to vector<24x16x16xf32>
    %113 = arith.mulf %109, %112 : vector<24x16x16xf32>
    %114 = arith.addf %108, %113 : vector<24x16x16xf32>
    %c0_107 = arith.constant 0 : index
    %c2_108 = arith.constant 2 : index
    %c0_109 = arith.constant 0 : index
    %115 = vector.load %arg10[%c0_107, %c2_108, %c0_109] : memref<24x18x18xf32, #tpu.memory_space<vmem>>, vector<24x16x16xf32>
    %c6_110 = arith.constant 6 : index
    %c0_111 = arith.constant 0 : index
    %c0_112 = arith.constant 0 : index
    %c0_113 = arith.constant 0 : index
    %116 = vector.load %arg4[%c6_110, %c0_111, %c0_112, %c0_113] : memref<9x24x1x1xf32, #tpu.memory_space<vmem>>, vector<1x24x1x1xf32>
    %117 = vector.shape_cast %116 : vector<1x24x1x1xf32> to vector<24x1x1xf32>
    %118 = vector.broadcast %117 : vector<24x1x1xf32> to vector<24x16x16xf32>
    %119 = arith.mulf %115, %118 : vector<24x16x16xf32>
    %120 = arith.addf %114, %119 : vector<24x16x16xf32>
    %c0_114 = arith.constant 0 : index
    %c2_115 = arith.constant 2 : index
    %c1_116 = arith.constant 1 : index
    %121 = vector.load %arg10[%c0_114, %c2_115, %c1_116] : memref<24x18x18xf32, #tpu.memory_space<vmem>>, vector<24x16x16xf32>
    %c7_117 = arith.constant 7 : index
    %c0_118 = arith.constant 0 : index
    %c0_119 = arith.constant 0 : index
    %c0_120 = arith.constant 0 : index
    %122 = vector.load %arg4[%c7_117, %c0_118, %c0_119, %c0_120] : memref<9x24x1x1xf32, #tpu.memory_space<vmem>>, vector<1x24x1x1xf32>
    %123 = vector.shape_cast %122 : vector<1x24x1x1xf32> to vector<24x1x1xf32>
    %124 = vector.broadcast %123 : vector<24x1x1xf32> to vector<24x16x16xf32>
    %125 = arith.mulf %121, %124 : vector<24x16x16xf32>
    %126 = arith.addf %120, %125 : vector<24x16x16xf32>
    %c0_121 = arith.constant 0 : index
    %c2_122 = arith.constant 2 : index
    %c2_123 = arith.constant 2 : index
    %127 = vector.load %arg10[%c0_121, %c2_122, %c2_123] : memref<24x18x18xf32, #tpu.memory_space<vmem>>, vector<24x16x16xf32>
    %c8_124 = arith.constant 8 : index
    %c0_125 = arith.constant 0 : index
    %c0_126 = arith.constant 0 : index
    %c0_127 = arith.constant 0 : index
    %128 = vector.load %arg4[%c8_124, %c0_125, %c0_126, %c0_127] : memref<9x24x1x1xf32, #tpu.memory_space<vmem>>, vector<1x24x1x1xf32>
    %129 = vector.shape_cast %128 : vector<1x24x1x1xf32> to vector<24x1x1xf32>
    %130 = vector.broadcast %129 : vector<24x1x1xf32> to vector<24x16x16xf32>
    %131 = arith.mulf %127, %130 : vector<24x16x16xf32>
    %132 = arith.addf %126, %131 : vector<24x16x16xf32>
    %c0_128 = arith.constant 0 : index
    %c0_129 = arith.constant 0 : index
    %c0_130 = arith.constant 0 : index
    %133 = vector.load %arg5[%c0_128, %c0_129, %c0_130] : memref<24x1x1xf32, #tpu.memory_space<vmem>>, vector<24x1x1xf32>
    %134 = vector.broadcast %133 : vector<24x1x1xf32> to vector<24x16x16xf32>
    %135 = arith.addf %132, %134 : vector<24x16x16xf32>
    %cst_131 = arith.constant 0.000000e+00 : f32
    %cst_132 = arith.constant 6.000000e+00 : f32
    %136 = vector.broadcast %cst_131 : f32 to vector<24x16x16xf32>
    %137 = arith.maximumf %136, %135 : vector<24x16x16xf32>
    %138 = vector.broadcast %cst_132 : f32 to vector<24x16x16xf32>
    %139 = arith.minimumf %138, %137 : vector<24x16x16xf32>
    %c0_133 = arith.constant 0 : index
    %c0_134 = arith.constant 0 : index
    %c0_135 = arith.constant 0 : index
    %140 = vector.load %arg11[%c0_133, %c0_134, %c0_135] : memref<24x16x16xf32, #tpu.memory_space<vmem>>, vector<24x16x16xf32>
    tpu.vector_store %arg11[%c0_133, %c0_134, %c0_135], %139 {strides = array<i32>} : memref<24x16x16xf32, #tpu.memory_space<vmem>>, vector<24x16x16xf32>,
    %c0_136 = arith.constant 0 : index
    %c0_137 = arith.constant 0 : index
    %c0_138 = arith.constant 0 : index
    %141 = vector.load %arg11[%c0_136, %c0_137, %c0_138] : memref<24x16x16xf32, #tpu.memory_space<vmem>>, vector<24x1x16xf32>
    %142 = vector.shape_cast %141 : vector<24x1x16xf32> to vector<24x16xf32>
    %c0_139 = arith.constant 0 : index
    %c0_140 = arith.constant 0 : index
    %143 = vector.load %arg12[%c0_139, %c0_140] : memref<24x256xf32, #tpu.memory_space<vmem>>, vector<24x16xf32>
    tpu.vector_store %arg12[%c0_139, %c0_140], %142 {strides = array<i32>} : memref<24x256xf32, #tpu.memory_space<vmem>>, vector<24x16xf32>,
    %c0_141 = arith.constant 0 : index
    %c1_142 = arith.constant 1 : index
    %c0_143 = arith.constant 0 : index
    %144 = vector.load %arg11[%c0_141, %c1_142, %c0_143] : memref<24x16x16xf32, #tpu.memory_space<vmem>>, vector<24x1x16xf32>
    %145 = vector.shape_cast %144 : vector<24x1x16xf32> to vector<24x16xf32>
    %c0_144 = arith.constant 0 : index
    %c16_145 = arith.constant 16 : index
    %146 = vector.load %arg12[%c0_144, %c16_145] : memref<24x256xf32, #tpu.memory_space<vmem>>, vector<24x16xf32>
    tpu.vector_store %arg12[%c0_144, %c16_145], %145 {strides = array<i32>} : memref<24x256xf32, #tpu.memory_space<vmem>>, vector<24x16xf32>,
    %c0_146 = arith.constant 0 : index
    %c2_147 = arith.constant 2 : index
    %c0_148 = arith.constant 0 : index
    %147 = vector.load %arg11[%c0_146, %c2_147, %c0_148] : memref<24x16x16xf32, #tpu.memory_space<vmem>>, vector<24x1x16xf32>
    %148 = vector.shape_cast %147 : vector<24x1x16xf32> to vector<24x16xf32>
    %c0_149 = arith.constant 0 : index
    %c32_150 = arith.constant 32 : index
    %149 = vector.load %arg12[%c0_149, %c32_150] : memref<24x256xf32, #tpu.memory_space<vmem>>, vector<24x16xf32>
    tpu.vector_store %arg12[%c0_149, %c32_150], %148 {strides = array<i32>} : memref<24x256xf32, #tpu.memory_space<vmem>>, vector<24x16xf32>,
    %c0_151 = arith.constant 0 : index
    %c3_152 = arith.constant 3 : index
    %c0_153 = arith.constant 0 : index
    %150 = vector.load %arg11[%c0_151, %c3_152, %c0_153] : memref<24x16x16xf32, #tpu.memory_space<vmem>>, vector<24x1x16xf32>
    %151 = vector.shape_cast %150 : vector<24x1x16xf32> to vector<24x16xf32>
    %c0_154 = arith.constant 0 : index
    %c48_155 = arith.constant 48 : index
    %152 = vector.load %arg12[%c0_154, %c48_155] : memref<24x256xf32, #tpu.memory_space<vmem>>, vector<24x16xf32>
    tpu.vector_store %arg12[%c0_154, %c48_155], %151 {strides = array<i32>} : memref<24x256xf32, #tpu.memory_space<vmem>>, vector<24x16xf32>,
    %c0_156 = arith.constant 0 : index
    %c4_157 = arith.constant 4 : index
    %c0_158 = arith.constant 0 : index
    %153 = vector.load %arg11[%c0_156, %c4_157, %c0_158] : memref<24x16x16xf32, #tpu.memory_space<vmem>>, vector<24x1x16xf32>
    %154 = vector.shape_cast %153 : vector<24x1x16xf32> to vector<24x16xf32>
    %c0_159 = arith.constant 0 : index
    %c64_160 = arith.constant 64 : index
    %155 = vector.load %arg12[%c0_159, %c64_160] : memref<24x256xf32, #tpu.memory_space<vmem>>, vector<24x16xf32>
    tpu.vector_store %arg12[%c0_159, %c64_160], %154 {strides = array<i32>} : memref<24x256xf32, #tpu.memory_space<vmem>>, vector<24x16xf32>,
    %c0_161 = arith.constant 0 : index
    %c5_162 = arith.constant 5 : index
    %c0_163 = arith.constant 0 : index
    %156 = vector.load %arg11[%c0_161, %c5_162, %c0_163] : memref<24x16x16xf32, #tpu.memory_space<vmem>>, vector<24x1x16xf32>
    %157 = vector.shape_cast %156 : vector<24x1x16xf32> to vector<24x16xf32>
    %c0_164 = arith.constant 0 : index
    %c80_165 = arith.constant 80 : index
    %158 = vector.load %arg12[%c0_164, %c80_165] : memref<24x256xf32, #tpu.memory_space<vmem>>, vector<24x16xf32>
    tpu.vector_store %arg12[%c0_164, %c80_165], %157 {strides = array<i32>} : memref<24x256xf32, #tpu.memory_space<vmem>>, vector<24x16xf32>,
    %c0_166 = arith.constant 0 : index
    %c6_167 = arith.constant 6 : index
    %c0_168 = arith.constant 0 : index
    %159 = vector.load %arg11[%c0_166, %c6_167, %c0_168] : memref<24x16x16xf32, #tpu.memory_space<vmem>>, vector<24x1x16xf32>
    %160 = vector.shape_cast %159 : vector<24x1x16xf32> to vector<24x16xf32>
    %c0_169 = arith.constant 0 : index
    %c96_170 = arith.constant 96 : index
    %161 = vector.load %arg12[%c0_169, %c96_170] : memref<24x256xf32, #tpu.memory_space<vmem>>, vector<24x16xf32>
    tpu.vector_store %arg12[%c0_169, %c96_170], %160 {strides = array<i32>} : memref<24x256xf32, #tpu.memory_space<vmem>>, vector<24x16xf32>,
    %c0_171 = arith.constant 0 : index
    %c7_172 = arith.constant 7 : index
    %c0_173 = arith.constant 0 : index
    %162 = vector.load %arg11[%c0_171, %c7_172, %c0_173] : memref<24x16x16xf32, #tpu.memory_space<vmem>>, vector<24x1x16xf32>
    %163 = vector.shape_cast %162 : vector<24x1x16xf32> to vector<24x16xf32>
    %c0_174 = arith.constant 0 : index
    %c112_175 = arith.constant 112 : index
    %164 = vector.load %arg12[%c0_174, %c112_175] : memref<24x256xf32, #tpu.memory_space<vmem>>, vector<24x16xf32>
    tpu.vector_store %arg12[%c0_174, %c112_175], %163 {strides = array<i32>} : memref<24x256xf32, #tpu.memory_space<vmem>>, vector<24x16xf32>,
    %c0_176 = arith.constant 0 : index
    %c8_177 = arith.constant 8 : index
    %c0_178 = arith.constant 0 : index
    %165 = vector.load %arg11[%c0_176, %c8_177, %c0_178] : memref<24x16x16xf32, #tpu.memory_space<vmem>>, vector<24x1x16xf32>
    %166 = vector.shape_cast %165 : vector<24x1x16xf32> to vector<24x16xf32>
    %c0_179 = arith.constant 0 : index
    %c128_180 = arith.constant 128 : index
    %167 = vector.load %arg12[%c0_179, %c128_180] : memref<24x256xf32, #tpu.memory_space<vmem>>, vector<24x16xf32>
    tpu.vector_store %arg12[%c0_179, %c128_180], %166 {strides = array<i32>} : memref<24x256xf32, #tpu.memory_space<vmem>>, vector<24x16xf32>,
    %c0_181 = arith.constant 0 : index
    %c9_182 = arith.constant 9 : index
    %c0_183 = arith.constant 0 : index
    %168 = vector.load %arg11[%c0_181, %c9_182, %c0_183] : memref<24x16x16xf32, #tpu.memory_space<vmem>>, vector<24x1x16xf32>
    %169 = vector.shape_cast %168 : vector<24x1x16xf32> to vector<24x16xf32>
    %c0_184 = arith.constant 0 : index
    %c144_185 = arith.constant 144 : index
    %170 = vector.load %arg12[%c0_184, %c144_185] : memref<24x256xf32, #tpu.memory_space<vmem>>, vector<24x16xf32>
    tpu.vector_store %arg12[%c0_184, %c144_185], %169 {strides = array<i32>} : memref<24x256xf32, #tpu.memory_space<vmem>>, vector<24x16xf32>,
    %c0_186 = arith.constant 0 : index
    %c10_187 = arith.constant 10 : index
    %c0_188 = arith.constant 0 : index
    %171 = vector.load %arg11[%c0_186, %c10_187, %c0_188] : memref<24x16x16xf32, #tpu.memory_space<vmem>>, vector<24x1x16xf32>
    %172 = vector.shape_cast %171 : vector<24x1x16xf32> to vector<24x16xf32>
    %c0_189 = arith.constant 0 : index
    %c160_190 = arith.constant 160 : index
    %173 = vector.load %arg12[%c0_189, %c160_190] : memref<24x256xf32, #tpu.memory_space<vmem>>, vector<24x16xf32>
    tpu.vector_store %arg12[%c0_189, %c160_190], %172 {strides = array<i32>} : memref<24x256xf32, #tpu.memory_space<vmem>>, vector<24x16xf32>,
    %c0_191 = arith.constant 0 : index
    %c11_192 = arith.constant 11 : index
    %c0_193 = arith.constant 0 : index
    %174 = vector.load %arg11[%c0_191, %c11_192, %c0_193] : memref<24x16x16xf32, #tpu.memory_space<vmem>>, vector<24x1x16xf32>
    %175 = vector.shape_cast %174 : vector<24x1x16xf32> to vector<24x16xf32>
    %c0_194 = arith.constant 0 : index
    %c176_195 = arith.constant 176 : index
    %176 = vector.load %arg12[%c0_194, %c176_195] : memref<24x256xf32, #tpu.memory_space<vmem>>, vector<24x16xf32>
    tpu.vector_store %arg12[%c0_194, %c176_195], %175 {strides = array<i32>} : memref<24x256xf32, #tpu.memory_space<vmem>>, vector<24x16xf32>,
    %c0_196 = arith.constant 0 : index
    %c12_197 = arith.constant 12 : index
    %c0_198 = arith.constant 0 : index
    %177 = vector.load %arg11[%c0_196, %c12_197, %c0_198] : memref<24x16x16xf32, #tpu.memory_space<vmem>>, vector<24x1x16xf32>
    %178 = vector.shape_cast %177 : vector<24x1x16xf32> to vector<24x16xf32>
    %c0_199 = arith.constant 0 : index
    %c192_200 = arith.constant 192 : index
    %179 = vector.load %arg12[%c0_199, %c192_200] : memref<24x256xf32, #tpu.memory_space<vmem>>, vector<24x16xf32>
    tpu.vector_store %arg12[%c0_199, %c192_200], %178 {strides = array<i32>} : memref<24x256xf32, #tpu.memory_space<vmem>>, vector<24x16xf32>,
    %c0_201 = arith.constant 0 : index
    %c13_202 = arith.constant 13 : index
    %c0_203 = arith.constant 0 : index
    %180 = vector.load %arg11[%c0_201, %c13_202, %c0_203] : memref<24x16x16xf32, #tpu.memory_space<vmem>>, vector<24x1x16xf32>
    %181 = vector.shape_cast %180 : vector<24x1x16xf32> to vector<24x16xf32>
    %c0_204 = arith.constant 0 : index
    %c208_205 = arith.constant 208 : index
    %182 = vector.load %arg12[%c0_204, %c208_205] : memref<24x256xf32, #tpu.memory_space<vmem>>, vector<24x16xf32>
    tpu.vector_store %arg12[%c0_204, %c208_205], %181 {strides = array<i32>} : memref<24x256xf32, #tpu.memory_space<vmem>>, vector<24x16xf32>,
    %c0_206 = arith.constant 0 : index
    %c14_207 = arith.constant 14 : index
    %c0_208 = arith.constant 0 : index
    %183 = vector.load %arg11[%c0_206, %c14_207, %c0_208] : memref<24x16x16xf32, #tpu.memory_space<vmem>>, vector<24x1x16xf32>
    %184 = vector.shape_cast %183 : vector<24x1x16xf32> to vector<24x16xf32>
    %c0_209 = arith.constant 0 : index
    %c224_210 = arith.constant 224 : index
    %185 = vector.load %arg12[%c0_209, %c224_210] : memref<24x256xf32, #tpu.memory_space<vmem>>, vector<24x16xf32>
    tpu.vector_store %arg12[%c0_209, %c224_210], %184 {strides = array<i32>} : memref<24x256xf32, #tpu.memory_space<vmem>>, vector<24x16xf32>,
    %c0_211 = arith.constant 0 : index
    %c15_212 = arith.constant 15 : index
    %c0_213 = arith.constant 0 : index
    %186 = vector.load %arg11[%c0_211, %c15_212, %c0_213] : memref<24x16x16xf32, #tpu.memory_space<vmem>>, vector<24x1x16xf32>
    %187 = vector.shape_cast %186 : vector<24x1x16xf32> to vector<24x16xf32>
    %c0_214 = arith.constant 0 : index
    %c240_215 = arith.constant 240 : index
    %188 = vector.load %arg12[%c0_214, %c240_215] : memref<24x256xf32, #tpu.memory_space<vmem>>, vector<24x16xf32>
    tpu.vector_store %arg12[%c0_214, %c240_215], %187 {strides = array<i32>} : memref<24x256xf32, #tpu.memory_space<vmem>>, vector<24x16xf32>,
    %c0_216 = arith.constant 0 : index
    %c0_217 = arith.constant 0 : index
    %189 = vector.load %arg6[%c0_216, %c0_217] : memref<4x24xf32, #tpu.memory_space<vmem>>, vector<4x24xf32>
    %c0_218 = arith.constant 0 : index
    %c0_219 = arith.constant 0 : index
    %190 = vector.load %arg12[%c0_218, %c0_219] : memref<24x256xf32, #tpu.memory_space<vmem>>, vector<24x256xf32>
    %cst_220 = arith.constant dense<0.000000e+00> : vector<4x256xf32>
    %191 = tpu.matmul %189, %190, %cst_220 {dimension_numbers = #tpu.dot_dimension_numbers<[1], [0], [0], [1], [0, 0, 1, 1], [], []>} : vector<4x24xf32>, vector<24x256xf32>, vector<4x256xf32> -> vector<4x256xf32>
    %c0_221 = arith.constant 0 : index
    %c0_222 = arith.constant 0 : index
    %192 = vector.load %arg7[%c0_221, %c0_222] : memref<4x1xf32, #tpu.memory_space<vmem>>, vector<4x1xf32>
    %193 = vector.broadcast %192 : vector<4x1xf32> to vector<4x256xf32>
    %194 = arith.addf %191, %193 : vector<4x256xf32>
    %195 = arith.addf %194, %1 : vector<4x256xf32>
    %c0_223 = arith.constant 0 : index
    %c0_224 = arith.constant 0 : index
    %c0_225 = arith.constant 0 : index
    %196 = vector.load %arg8[%c0_223, %c0_224, %c0_225] : memref<1x4x256xf32, #tpu.memory_space<vmem>>, vector<1x4x256xf32>
    %197 = vector.shape_cast %196 : vector<1x4x256xf32> to vector<4x256xf32>
    %198 = vector.shape_cast %195 : vector<4x256xf32> to vector<1x4x256xf32>
    tpu.vector_store %arg8[%c0_223, %c0_224, %c0_225], %198 {strides = array<i32>} : memref<1x4x256xf32, #tpu.memory_space<vmem>>, vector<1x4x256xf32>,
    return
  }
  func.func @transform_0(%arg0: i32) -> (i32, i32, i32) {
    %c0_i32 = arith.constant 0 : i32
    %c0_i32_0 = arith.constant 0 : i32
    %c0_i32_1 = arith.constant 0 : i32
    return %arg0, %c0_i32, %c0_i32_0 : i32, i32, i32
  }
  func.func @transform_1(%arg0: i32) -> (i32, i32) {
    %c0_i32 = arith.constant 0 : i32
    %c0_i32_0 = arith.constant 0 : i32
    %c0_i32_1 = arith.constant 0 : i32
    return %c0_i32, %c0_i32_0 : i32, i32
  }
  func.func @transform_2(%arg0: i32) -> (i32, i32) {
    %c0_i32 = arith.constant 0 : i32
    %c0_i32_0 = arith.constant 0 : i32
    %c0_i32_1 = arith.constant 0 : i32
    return %c0_i32, %c0_i32_0 : i32, i32
  }
  func.func @transform_3(%arg0: i32) -> (i32, i32, i32, i32) {
    %c0_i32 = arith.constant 0 : i32
    %c0_i32_0 = arith.constant 0 : i32
    %c0_i32_1 = arith.constant 0 : i32
    %c0_i32_2 = arith.constant 0 : i32
    %c0_i32_3 = arith.constant 0 : i32
    return %c0_i32, %c0_i32_0, %c0_i32_1, %c0_i32_2 : i32, i32, i32, i32
  }
  func.func @transform_4(%arg0: i32) -> (i32, i32, i32) {
    %c0_i32 = arith.constant 0 : i32
    %c0_i32_0 = arith.constant 0 : i32
    %c0_i32_1 = arith.constant 0 : i32
    %c0_i32_2 = arith.constant 0 : i32
    return %c0_i32, %c0_i32_0, %c0_i32_1 : i32, i32, i32
  }
  func.func @transform_5(%arg0: i32) -> (i32, i32) {
    %c0_i32 = arith.constant 0 : i32
    %c0_i32_0 = arith.constant 0 : i32
    %c0_i32_1 = arith.constant 0 : i32
    return %c0_i32, %c0_i32_0 : i32, i32
  }
  func.func @transform_6(%arg0: i32) -> (i32, i32) {
    %c0_i32 = arith.constant 0 : i32
    %c0_i32_0 = arith.constant 0 : i32
    %c0_i32_1 = arith.constant 0 : i32
    return %c0_i32, %c0_i32_0 : i32, i32
  }
  func.func @transform_7(%arg0: i32) -> (i32, i32, i32) {
    %c0_i32 = arith.constant 0 : i32
    %c0_i32_0 = arith.constant 0 : i32
    %c0_i32_1 = arith.constant 0 : i32
    return %arg0, %c0_i32, %c0_i32_0 : i32, i32, i32
  }
}

</mosaic_0001>

<bundles_post_ra>
// kernel: tpu_custom_call.1
= control target key start
LH: loop header
LB: loop body
LE: loop exit
PB: predicated region body
PF: predicated region fallthrough
CT: control target
= control target key end

     0   :  { %12 = vsyncpa [#allocation7], 0  ;;  %s20015_s0 = inlined_call_operand.vmem [shape: f32[2,4,256], index: 0, kind: input, shape index: {}]   ;;  %s20016_s1 = inlined_call_operand.vmem [shape: f32[24,4], index: 1, kind: input, shape index: {}]   ;;  %s20017_s2 = inlined_call_operand.vmem [shape: f32[24,1], index: 2, kind: input, shape index: {}]   ;;  %s20018_s3 = inlined_call_operand.vmem [shape: f32[9,24,1,1], index: 3, kind: input, shape index: {}]   ;;  %s20019_s4 = inlined_call_operand.vmem [shape: f32[24,1,1], index: 4, kind: input, shape index: {}]   ;;  %s20020_s5 = inlined_call_operand.vmem [shape: f32[4,24], index: 5, kind: input, shape index: {}]   ;;  %s20021_s6 = inlined_call_operand.vmem [shape: f32[4,1], index: 6, kind: input, shape index: {}]   ;;  %s20022_s7 = inlined_call_operand.hbm [shape: f32[2,4,256], index: 7, kind: output, shape index: {}]  }
   0x1   :  { %14 = vsyncpa [#allocation7 + $0x1], 0  ;;  %s13337_s24 = smov 0   ;;  %s13339_s25 = smov 0  }
   0x2   :  { %s13341_s26 = smov 0   ;;  %s13343_s27 = smov 0  }
   0x3 LB: > { %s13358_s28 = sadd.s32 4294967295, %s13274_s27   ;;  %s12577_s29 = sadd.s32 4294967294, %s13274_s27   ;;  %s13274_s27 = sphi %s13343_s27, %s21174_s27   ;;  %s13270_s26 = sphi %s13341_s26, %s21173_s26   ;;  %s13266_s25 = sphi %s13339_s25, %s21172_s25   ;;  %s13262_s24 = sphi %s13337_s24, %s21171_s24  }
   0x4   : > { %s13362_s30 = sadd.s32 1, %s13274_s27   ;;  %s179_s8 = sadd.s32 1, %s13270_s26 }
   0x5   : > { %s176_s9 = ssub.s32 %s13274_s27, %s13362_s30  ;;  %p189_p0 = scmp.ne.s32.totalorder %s13270_s26, %s13266_s25 }
   0x6   : > { %p177_p1 = scmp.eq.s32.totalorder %s176_s9, 0  ;;  %p190_p2 = scmp.eq.s32.totalorder %s13358_s28, 1 }
   0x7   : > { %p195_p3 = scmp.ne.s32.totalorder %s13266_s25, %s13262_s24  ;;  %p196_p4 = scmp.eq.s32.totalorder %s12577_s29, 1 }
   0x8   : > { %s13373_s10 = scalar_select %p177_p1, %s13270_s26, %s179_s8  }
   0x9   : > { %p13375_p5 = por %p190_p2, %p189_p0  ;;  %p13379_p6 = por %p196_p4, %p195_p3 }
   0xa   : > { %p12580_p7 = scmp.ge.s32.totalorder %s13274_s27, 1  ;;  %p240_p8 = scmp.lt.s32.totalorder %s13274_s27, 3 }
   0xc   : > { %p241_p9 = pnand %p12580_p7, %p240_p8 }
   0xe   : > { %244 = sbr.rel (%p241_p9) target bundleno = 3133 (0xc3d), region = 48 }
  0x15   : > { %p272_p10 = scmp.lt.s32.totalorder %s13358_s28, 1  ;;  %v13276_v0 = vmov 0.0   ;;  %v281_v1 = vld [vmem:[%s20017_s2] sm:$0xff]  ;;  %v13277_v2 = vmov 0   ;;  %v283_v3 = vld [vmem:[%s20017_s2 + $0x10] sm:$0xff]  ;;  %v282_v4 = vld [vmem:[%s20017_s2 + $0x8] sm:$0xff]  ;;  %v501_v12 = vlaneseq }
  0x16   : > { %380 = vmatprep.mubr.f32.mxu0 %v13276_v0  ;;  %12488 = vmatprep.mubr.f32.mxu1 %v13276_v0  ;;  %vm311_vm0 = vcmask 1043456   ;;  %v278_v7 = vld [vmem:[%s20016_s1] sm:$0xff]  ;;  %vm301_vm1 = vcmask 31744   ;;  %v279_v8 = vld [vmem:[%s20016_s1 + $0x8] sm:$0xff]  ;;  %v280_v9 = vld [vmem:[%s20016_s1 + $0x10] sm:$0xff]  ;;  %vm417_vm2 = vcmask 146432  }
  0x17   : > { %s273_s15 = scalar_select %p272_p10, %s13358_s28, 1  ;;  %13092 = vset.pattern.permute.xlu0 %v13277_v2  ;;  %13093 = vset.pattern.permute.xlu1 %v13277_v2  ;;  %v13278_v10 = vmov 1966171168   ;;  %v13418_v15 = vshrl.u32 %v501_v12, 7  ;;  %418 = vst.msk [vmem:[#allocation3] sm:$0xff] %vm417_vm2, %v13276_v0  ;;  %419 = vst.msk [vmem:[#allocation3 + $0x8] sm:$0xff] %vm417_vm2, %v13276_v0 }
  0x18   : > { %286 = vperm.xlu0 %13092, %v281_v1   ;;  %296 = vperm.xlu1 %13093, %v283_v3   ;;  %v499_v11 = vunpack.c.l.s4 %v13278_v10  ;;  %422 = vst.msk [vmem:[#allocation3 + $0x18] sm:$0xff] %vm417_vm2, %v13276_v0  ;;  %423 = vst.msk [vmem:[#allocation3 + $0x20] sm:$0xff] %vm417_vm2, %v13276_v0  ;;  %s13279_s16 = smov 1   ;;  %s13280_s17 = smov 113   ;;  %vm812_vm3 = vcmask 131080   ;;  %vm420_vm4 = vcmask 140288  }
  0x19   : > { %s13027_s18 = sshll.u32 %s273_s15, 3  ;;  %425 = vst.msk [vmem:[#allocation3 + $0x30] sm:$0xff] %vm417_vm2, %v13276_v0  ;;  %426 = vst.msk [vmem:[#allocation3 + $0x38] sm:$0xff] %vm417_vm2, %v13276_v0  ;;  %v13521_v32 = vsub.s32 0, %v13418_v15  ;;  %s13282_s19 = smov 81   ;;  %vm10724_vm5 = vcmask 130048  }
  0x1a   : > { %s13401_s23 = scalar_lea.vmem %s20015_s0, %s13027_s18  ;;  %v500_v14 = vunpack.c.0.s8 %v499_v11  ;;  %428 = vst.msk [vmem:[#allocation3 + $0x48] sm:$0xff] %vm417_vm2, %v13276_v0  ;;  %429 = vst.msk [vmem:[#allocation3 + $0x50] sm:$0xff] %vm417_vm2, %v13276_v0  ;;  %s13281_s18 = smov 97   ;;  %vm10822_vm6 = vcmask 1041409   ;;  %vm10825_vm7 = vcmask 1042434   ;;  %vm10828_vm8 = vcmask 1043459  }
  0x1b   : > { %v277_v5 = vld [vmem:[%s13401_s23] sm:$0xff]  ;;  %431 = vst.msk [vmem:[#allocation3 + $0x60] sm:$0xff] %vm417_vm2, %v13276_v0  ;;  %432 = vst.msk [vmem:[#allocation3 + $0x68] sm:$0xff] %vm417_vm2, %v13276_v0  ;;  %s13283_s20 = smov 65   ;;  %s13284_s21 = smov 49   ;;  %vm10831_vm9 = vcmask 1044484  }
  0x1c   : > { %v13404_v6 = vcombine.high %v277_v5, %v277_v5  ;;  %291 = vperm.xlu0 %13092, %v282_v4   ;;  %434 = vst.msk [vmem:[#allocation3 + $0x78] sm:$0xff] %vm417_vm2, %v13276_v0  ;;  %435 = vst.msk [vmem:[#allocation3 + $0x80] sm:$0xff] %vm417_vm2, %v13276_v0  ;;  %v13517_v21 = vsub.s32 %v500_v14, %v13418_v15  ;;  %s13285_s22 = smov 33   ;;  %s13286_s29 = smov 17   ;;  %vm10834_vm10 = vcmask 1045509   ;;  %vm10837_vm11 = vcmask 1046534  }
  0x1d   : > { %437 = vst.msk [vmem:[#allocation3 + $0x90] sm:$0xff] %vm417_vm2, %v13276_v0  ;;  %438 = vst.msk [vmem:[#allocation3 + $0x98] sm:$0xff] %vm417_vm2, %v13276_v0  ;;  %vm10840_vm12 = vcmask 1047559   ;;  %s13291_s8 = smov 48   ;;  %s13292_s9 = smov 64   ;;  %vm10975_vm13 = vcmask 261248  }
  0x1e   : > { %20212 = vst [vmem:[#allocation9_spill] sm:$0xff] %v13404_v6  ;;  %12584 = vmatprep.subr.msk.mxu0 %vm311_vm0, %v13404_v6  ;;  %440 = vst.msk [vmem:[#allocation3 + $0xa8] sm:$0xff] %vm417_vm2, %v13276_v0  ;;  %s13293_s13 = smov 80   ;;  %s13294_s14 = smov 96   ;;  %vm11078_vm14 = vcmask 392448   ;;  %vm11181_vm15 = vcmask 523648  }
  0x1f   : > { %12585 = vmatpush1.msk.msra.mxu0 %vm311_vm0, %v277_v5  ;;  %441 = vst.msk [vmem:[#allocation3 + $0xb0] sm:$0xff] %vm417_vm2, %v13276_v0  ;;  %443 = vst.msk [vmem:[#allocation3 + $0xc0] sm:$0xff] %vm417_vm2, %v13276_v0  ;;  %s13295_s15 = smov 112   ;;  %vm11284_vm0 = vcmask 654848  }
  0x20   : > { %12586 = vmatmul.mubr.msk.f32.vlgmr.msra.gmra.mrb[0].mxu0 %vm301_vm1, %v278_v7  ;;  %444 = vst.msk [vmem:[#allocation3 + $0xc8] sm:$0xff] %vm417_vm2, %v13276_v0  ;;  %446 = vst.msk [vmem:[#allocation3 + $0xd8] sm:$0xff] %vm417_vm2, %v13276_v0 }
  0x21   : > { %386 = vmatprep.mubr.f32.mxu0 %v13276_v0  ;;  %447 = vst.msk [vmem:[#allocation3 + $0xe0] sm:$0xff] %vm417_vm2, %v13276_v0  ;;  %449 = vst.msk [vmem:[#allocation3 + $0xf0] sm:$0xff] %vm417_vm2, %v13276_v0 }
  0x22   : > { %450 = vst.msk [vmem:[#allocation3 + $0xf8] sm:$0xff] %vm417_vm2, %v13276_v0  ;;  %452 = vst.msk [vmem:[#allocation3 + $0x108] sm:$0xff] %vm417_vm2, %v13276_v0 }
  0x23   : > { %453 = vst.msk [vmem:[#allocation3 + $0x110] sm:$0xff] %vm417_vm2, %v13276_v0  ;;  %455 = vst.msk [vmem:[#allocation3 + $0x120] sm:$0xff] %vm417_vm2, %v13276_v0 }
  0x24   : > { %12587 = vmatmul.mubr.msk.f32.gmra.mrb[2].mxu0 %vm301_vm1, %v279_v8  ;;  %456 = vst.msk [vmem:[#allocation3 + $0x128] sm:$0xff] %vm417_vm2, %v13276_v0  ;;  %458 = vst.msk [vmem:[#allocation3 + $0x138] sm:$0xff] %vm417_vm2, %v13276_v0 }
  0x25   : > { %392 = vmatprep.mubr.f32.mxu0 %v13276_v0  ;;  %459 = vst.msk [vmem:[#allocation3 + $0x140] sm:$0xff] %vm417_vm2, %v13276_v0  ;;  %461 = vst.msk [vmem:[#allocation3 + $0x150] sm:$0xff] %vm417_vm2, %v13276_v0 }
  0x26   : > { %462 = vst.msk [vmem:[#allocation3 + $0x158] sm:$0xff] %vm417_vm2, %v13276_v0  ;;  %464 = vst.msk [vmem:[#allocation3 + $0x168] sm:$0xff] %vm417_vm2, %v13276_v0 }
  0x27   : > { %465 = vst.msk [vmem:[#allocation3 + $0x170] sm:$0xff] %vm417_vm2, %v13276_v0  ;;  %467 = vst.msk [vmem:[#allocation3 + $0x180] sm:$0xff] %vm417_vm2, %v13276_v0 }
  0x28   : > { %12588 = vmatmul.mubr.msk.f32.gmra.mrb[4].mxu0 %vm301_vm1, %v280_v9  ;;  %468 = vst.msk [vmem:[#allocation3 + $0x188] sm:$0xff] %vm417_vm2, %v13276_v0  ;;  %470 = vst.msk [vmem:[#allocation3 + $0x198] sm:$0xff] %vm417_vm2, %v13276_v0  ;;  %vm11387_vm1 = vcmask 786048  }
  0x29   : > { %471 = vst.msk [vmem:[#allocation3 + $0x1a0] sm:$0xff] %vm417_vm2, %v13276_v0  ;;  %473 = vst.msk [vmem:[#allocation3 + $0x1b0] sm:$0xff] %vm417_vm2, %v13276_v0 }
  0x2a   : > { %474 = vst.msk [vmem:[#allocation3 + $0x1b8] sm:$0xff] %vm417_vm2, %v13276_v0  ;;  %476 = vst.msk [vmem:[#allocation3 + $0x1c8] sm:$0xff] %vm417_vm2, %v13276_v0 }
  0x2b   : > { %477 = vst.msk [vmem:[#allocation3 + $0x1d0] sm:$0xff] %vm417_vm2, %v13276_v0  ;;  %479 = vst.msk [vmem:[#allocation3 + $0x1e0] sm:$0xff] %vm417_vm2, %v13276_v0 }
  0x2c   : > { %480 = vst.msk [vmem:[#allocation3 + $0x1e8] sm:$0xff] %vm417_vm2, %v13276_v0  ;;  %482 = vst.msk [vmem:[#allocation3 + $0x1f8] sm:$0xff] %vm417_vm2, %v13276_v0 }
  0x2d   : > { %483 = vst.msk [vmem:[#allocation3 + $0x200] sm:$0xff] %vm417_vm2, %v13276_v0  ;;  %485 = vst.msk [vmem:[#allocation3 + $0x210] sm:$0xff] %vm417_vm2, %v13276_v0 }
  0x2e   : > { %486 = vst.msk [vmem:[#allocation3 + $0x218] sm:$0xff] %vm417_vm2, %v13276_v0  ;;  %488 = vst.msk [vmem:[#allocation3 + $0x228] sm:$0xff] %vm417_vm2, %v13276_v0 }
  0x2f   : > { %489 = vst.msk [vmem:[#allocation3 + $0x230] sm:$0xff] %vm417_vm2, %v13276_v0  ;;  %vm11490_vm2 = vcmask 917248  }
  0x30   : > { %421 = vst.msk [vmem:[#allocation3 + $0x10] sm:$0x3] %vm420_vm4, %v13276_v0  ;;  %424 = vst.msk [vmem:[#allocation3 + $0x28] sm:$0x3] %vm420_vm4, %v13276_v0 }
  0x31   : > { %427 = vst.msk [vmem:[#allocation3 + $0x40] sm:$0x3] %vm420_vm4, %v13276_v0  ;;  %430 = vst.msk [vmem:[#allocation3 + $0x58] sm:$0x3] %vm420_vm4, %v13276_v0 }
  0x32   : > { %433 = vst.msk [vmem:[#allocation3 + $0x70] sm:$0x3] %vm420_vm4, %v13276_v0  ;;  %436 = vst.msk [vmem:[#allocation3 + $0x88] sm:$0x3] %vm420_vm4, %v13276_v0 }
  0x33   : > { %439 = vst.msk [vmem:[#allocation3 + $0xa0] sm:$0x3] %vm420_vm4, %v13276_v0  ;;  %442 = vst.msk [vmem:[#allocation3 + $0xb8] sm:$0x3] %vm420_vm4, %v13276_v0 }
  0x34   : > { %445 = vst.msk [vmem:[#allocation3 + $0xd0] sm:$0x3] %vm420_vm4, %v13276_v0  ;;  %448 = vst.msk [vmem:[#allocation3 + $0xe8] sm:$0x3] %vm420_vm4, %v13276_v0 }
  0x35   : > { %451 = vst.msk [vmem:[#allocation3 + $0x100] sm:$0x3] %vm420_vm4, %v13276_v0  ;;  %454 = vst.msk [vmem:[#allocation3 + $0x118] sm:$0x3] %vm420_vm4, %v13276_v0 }
  0x36   : > { %457 = vst.msk [vmem:[#allocation3 + $0x130] sm:$0x3] %vm420_vm4, %v13276_v0  ;;  %460 = vst.msk [vmem:[#allocation3 + $0x148] sm:$0x3] %vm420_vm4, %v13276_v0 }
  0x37   : > { %463 = vst.msk [vmem:[#allocation3 + $0x160] sm:$0x3] %vm420_vm4, %v13276_v0  ;;  %466 = vst.msk [vmem:[#allocation3 + $0x178] sm:$0x3] %vm420_vm4, %v13276_v0 }
  0x38   : > { %469 = vst.msk [vmem:[#allocation3 + $0x190] sm:$0x3] %vm420_vm4, %v13276_v0  ;;  %472 = vst.msk [vmem:[#allocation3 + $0x1a8] sm:$0x3] %vm420_vm4, %v13276_v0 }
  0x39   : > { %475 = vst.msk [vmem:[#allocation3 + $0x1c0] sm:$0x3] %vm420_vm4, %v13276_v0  ;;  %478 = vst.msk [vmem:[#allocation3 + $0x1d8] sm:$0x3] %vm420_vm4, %v13276_v0 }
  0x3a   : > { %481 = vst.msk [vmem:[#allocation3 + $0x1f0] sm:$0x3] %vm420_vm4, %v13276_v0  ;;  %484 = vst.msk [vmem:[#allocation3 + $0x208] sm:$0x3] %vm420_vm4, %v13276_v0 }
  0x3b   : > { %487 = vst.msk [vmem:[#allocation3 + $0x220] sm:$0x3] %vm420_vm4, %v13276_v0  ;;  %490 = vst.msk [vmem:[#allocation3 + $0x238] sm:$0x3] %vm420_vm4, %v13276_v0  ;;  %vm12420_vm4 = vcmask 195584  }
  0x97   : > { %v287_v13 = vpop.permute.xlu0 %286  ;;  %v297_v15 = vpop.permute.xlu1 %296 }
  0x9b   : > { %v292_v24 = vpop.permute.xlu0 %291 }
  0xf3   : > { %v382_v16 = vpop.f32.mrb[0].mxu0 }
  0xf4   : > { %v383_v17 = vadd.f32 %v382_v16, %v287_v13  ;;  %v384_v18 = vpop.f32.mrb[1].mxu0 }
  0xf5   : > { %v385_v19 = vadd.f32 %v384_v18, %v287_v13 }
  0xf6   : > { %v399_v20 = vmax.f32 %v383_v17, 0.0 }
  0xf7   : > { %v400_v22 = vmax.f32 %v385_v19, 0.0  ;;  %v388_v23 = vpop.f32.mrb[2].mxu0 }
  0xf8   : > { %v405_v25 = vmin.f32 %v399_v20, 6.0  ;;  %v390_v26 = vpop.f32.mrb[3].mxu0  ;;  %v389_v28 = vadd.f32 %v388_v23, %v292_v24 }
  0xf9   : > { %v406_v27 = vmin.f32 %v400_v22, 6.0  ;;  %v391_v31 = vadd.f32 %v390_v26, %v292_v24 }
  0xfa   : > { %v497_v29 = vcombine.high %v405_v25, %v405_v25  ;;  %v504_v30 = vrot.slane %v405_v25, %v13517_v21  ;;  %v401_v43 = vmax.f32 %v389_v28, 0.0 }
  0xfb   : > { %v3258_v33 = vcombine.high %v406_v27, %v406_v27  ;;  %v3265_v34 = vrot.slane %v406_v27, %v13517_v21  ;;  %v394_v35 = vpop.f32.mrb[4].mxu0  ;;  %v402_v47 = vmax.f32 %v391_v31, 0.0 }
  0xfc   : > { %v511_v36 = vrot.slane %v497_v29, %v13517_v21  ;;  %v512_v37 = vcombine.high %v504_v30, %v504_v30  ;;  %v13526_v38 = vrot.slane %v504_v30, %v13517_v21  ;;  %v396_v39 = vpop.f32.mrb[5].mxu0  ;;  %v407_v59 = vmin.f32 %v401_v43, 6.0 }
  0xfd   : > { %v3272_v40 = vrot.slane %v3258_v33, %v13517_v21  ;;  %v3273_v41 = vcombine.high %v3265_v34, %v3265_v34  ;;  %v3281_v42 = vrot.slane %v3265_v34, %v13517_v21  ;;  %v408_v60 = vmin.f32 %v402_v47, 6.0 }
  0xfe   : > { %v513_v44 = vcombine.high %v511_v36, %v511_v36  ;;  %v13531_v45 = vrot.slane %v511_v36, %v13517_v21  ;;  %v13534_v46 = vrot.slane %v512_v37, %v13517_v21  ;;  %v13538_v48 = vrot.slane %v13526_v38, %v13521_v32 }
  0xff   : > { %v3274_v49 = vcombine.high %v3272_v40, %v3272_v40  ;;  %v3288_v50 = vrot.slane %v3272_v40, %v13517_v21  ;;  %v3295_v51 = vrot.slane %v3273_v41, %v13517_v21  ;;  %v3303_v56 = vcombine.high %v3281_v42, %v3281_v42 }
 0x100   : > { %v13543_v52 = vrot.slane %v513_v44, %v13517_v21  ;;  %v543_v53 = vcombine.high %v13531_v45, %v13531_v45  ;;  %v13549_v54 = vrot.slane %v13534_v46, %v13521_v32  ;;  %740 = vrot.lane.b32.xlu1 %v13538_v48, %s13279_s16  ;;  %v13562_v1 = vrot.slane %v3281_v42, %v13521_v32 }
 0x101   : > { %v3302_v55 = vrot.slane %v3274_v49, %v13517_v21  ;;  %v3304_v61 = vcombine.high %v3288_v50, %v3288_v50  ;;  %v3305_v62 = vcombine.high %v3295_v51, %v3295_v51  ;;  %v13568_v3 = vrot.slane %v3295_v51, %v13521_v32 }
 0x102   : > { %v545_v57 = vcombine.high %v13543_v52, %v13543_v52  ;;  %v13557_v58 = vrot.slane %v543_v53, %v13521_v32  ;;  %742 = vrot.lane.b32.xlu0 %v13549_v54, %s13279_s16  ;;  %v13571_v4 = vrot.slane %v3303_v56, %v13521_v32  ;;  %v13574_v5 = vrot.slane %v3288_v50, %v13521_v32 }
 0x103   : > { %v3306_v63 = vcombine.high %v3302_v55, %v3302_v55  ;;  %v13577_v7 = vrot.slane %v3305_v62, %v13521_v32  ;;  %v13580_v8 = vrot.slane %v3302_v55, %v13521_v32  ;;  %v13583_v9 = vrot.slane %v3304_v61, %v13521_v32 }
 0x104   : > { %v13565_v2 = vrot.slane %v545_v57, %v13521_v32  ;;  %1086 = vrot.lane.b32.xlu1 %v13538_v48, %s13280_s17  ;;  %v546_v11 = vcombine.high %v407_v59, %v407_v59  ;;  %v553_v12 = vrot.slane %v407_v59, %v13517_v21  ;;  %v3307_v13 = vcombine.high %v408_v60, %v408_v60 }
 0x105   : > { %v13586_v10 = vrot.slane %v3306_v63, %v13521_v32  ;;  %v3314_v14 = vrot.slane %v408_v60, %v13517_v21  ;;  %v542_v16 = vcombine.high %v13526_v38, %v13526_v38  ;;  %v395_v17 = vadd.f32 %v394_v35, %v297_v15 }
 0x106   : > { %1088 = vrot.lane.b32.xlu0 %v13549_v54, %s13280_s17  ;;  %v397_v18 = vadd.f32 %v396_v39, %v297_v15  ;;  %v560_v19 = vrot.slane %v546_v11, %v13517_v21  ;;  %v561_v20 = vcombine.high %v553_v12, %v553_v12  ;;  %v569_v22 = vrot.slane %v553_v12, %v13517_v21 }
 0x107   : > { %v3321_v23 = vrot.slane %v3307_v13, %v13517_v21  ;;  %v3322_v24 = vcombine.high %v3314_v14, %v3314_v14  ;;  %v3330_v25 = vrot.slane %v3314_v14, %v13517_v21  ;;  %v403_v26 = vmax.f32 %v395_v17, 0.0 }
 0x108   : > { %1431 = vrot.lane.b32.xlu1 %v13538_v48, %s13281_s18  ;;  %v404_v27 = vmax.f32 %v397_v18, 0.0  ;;  %v562_v28 = vcombine.high %v560_v19, %v560_v19  ;;  %v576_v29 = vrot.slane %v560_v19, %v13517_v21  ;;  %v583_v30 = vrot.slane %v561_v20, %v13517_v21 }
 0x109   : > { %v591_v31 = vcombine.high %v569_v22, %v569_v22  ;;  %v13607_v33 = vrot.slane %v569_v22, %v13521_v32  ;;  %v3323_v34 = vcombine.high %v3321_v23, %v3321_v23  ;;  %v3337_v35 = vrot.slane %v3321_v23, %v13517_v21 }
 0x10a   : > { %1433 = vrot.lane.b32.xlu0 %v13549_v54, %s13281_s18  ;;  %v3344_v36 = vrot.slane %v3322_v24, %v13517_v21  ;;  %v590_v37 = vrot.slane %v562_v28, %v13517_v21  ;;  %v592_v38 = vcombine.high %v576_v29, %v576_v29  ;;  %v593_v39 = vcombine.high %v583_v30, %v583_v30 }
 0x10b   : > { %v13613_v40 = vrot.slane %v583_v30, %v13521_v32  ;;  %v13616_v41 = vrot.slane %v591_v31, %v13521_v32  ;;  %v13619_v42 = vrot.slane %v576_v29, %v13521_v32  ;;  %v3351_v43 = vrot.slane %v3323_v34, %v13517_v21 }
 0x10c   : > { %v3352_v44 = vcombine.high %v3330_v25, %v3330_v25  ;;  %1776 = vrot.lane.b32.xlu1 %v13538_v48, %s13282_s19  ;;  %v594_v47 = vcombine.high %v590_v37, %v590_v37  ;;  %v13625_v49 = vrot.slane %v593_v39, %v13521_v32  ;;  %v13628_v50 = vrot.slane %v590_v37, %v13521_v32 }
 0x10d   : > { %v13631_v51 = vrot.slane %v592_v38, %v13521_v32  ;;  %v3353_v53 = vcombine.high %v3337_v35, %v3337_v35  ;;  %v3354_v55 = vcombine.high %v3344_v36, %v3344_v36  ;;  %v3355_v56 = vcombine.high %v3351_v43, %v3351_v43 }
 0x10e   : > { %1778 = vrot.lane.b32.xlu0 %v13549_v54, %s13282_s19  ;;  %v13636_v57 = vrot.slane %v3330_v25, %v13521_v32  ;;  %v13639_v59 = vrot.slane %v594_v47, %v13521_v32  ;;  %v13642_v60 = vrot.slane %v3344_v36, %v13521_v32  ;;  %v13645_v61 = vrot.slane %v3352_v44, %v13521_v32 }
 0x10f   : > { %v13648_v62 = vrot.slane %v3337_v35, %v13521_v32  ;;  %v13651_v63 = vrot.slane %v3354_v55, %v13521_v32  ;;  %v13654_v11 = vrot.slane %v3351_v43, %v13521_v32  ;;  %v13657_v12 = vrot.slane %v3353_v53, %v13521_v32 }
 0x110   : > { %v13660_v13 = vrot.slane %v3355_v56, %v13521_v32  ;;  %2121 = vrot.lane.b32.xlu1 %v13538_v48, %s13283_s20  ;;  %v409_v14 = vmin.f32 %v403_v26, 6.0  ;;  %v410_v15 = vmin.f32 %v404_v27, 6.0  ;;  %v544_v17 = vcombine.high %v13534_v46, %v13534_v46 }
 0x111   : > { %v13671_v23 = vrot.slane %v542_v16, %v13521_v32  ;;  %v13675_v24 = vrot.slane %v13531_v45, %v13521_v32  ;;  %v13689_v45 = vrot.slane %v13543_v52, %v13521_v32 }
 0x112   : > { %2123 = vrot.lane.b32.xlu0 %v13549_v54, %s13283_s20  ;;  %v595_v18 = vcombine.high %v409_v14, %v409_v14  ;;  %v602_v19 = vrot.slane %v409_v14, %v13517_v21  ;;  %v3356_v20 = vcombine.high %v410_v15, %v410_v15  ;;  %v3363_v22 = vrot.slane %v410_v15, %v13517_v21 }
 0x113   : > { %v13685_v16 = vrot.slane %v544_v17, %v13521_v32 }
 0x114   : > { %2466 = vrot.lane.b32.xlu1 %v13538_v48, %s13284_s21  ;;  %v609_v46 = vrot.slane %v595_v18, %v13517_v21  ;;  %v610_v25 = vcombine.high %v602_v19, %v602_v19  ;;  %v618_v26 = vrot.slane %v602_v19, %v13517_v21  ;;  %v3370_v27 = vrot.slane %v3356_v20, %v13517_v21 }
 0x115   : > { %v3371_v28 = vcombine.high %v3363_v22, %v3363_v22  ;;  %v3379_v29 = vrot.slane %v3363_v22, %v13517_v21 }
 0x116   : > { %2468 = vrot.lane.b32.xlu0 %v13549_v54, %s13284_s21  ;;  %v611_v30 = vcombine.high %v609_v46, %v609_v46  ;;  %v625_v31 = vrot.slane %v609_v46, %v13517_v21  ;;  %v632_v34 = vrot.slane %v610_v25, %v13517_v21  ;;  %v640_v35 = vcombine.high %v618_v26, %v618_v26 }
 0x117   : > { %v13697_v36 = vrot.slane %v618_v26, %v13521_v32  ;;  %v3372_v37 = vcombine.high %v3370_v27, %v3370_v27  ;;  %v3386_v38 = vrot.slane %v3370_v27, %v13517_v21  ;;  %v3393_v52 = vrot.slane %v3371_v28, %v13517_v21 }
 0x118   : > { %744 = vrot.lane.b32.xlu1 %v13671_v23, %s13279_s16  ;;  %v639_v39 = vrot.slane %v611_v30, %v13517_v21  ;;  %v641_v43 = vcombine.high %v625_v31, %v625_v31  ;;  %v642_v44 = vcombine.high %v632_v34, %v632_v34  ;;  %v13705_v47 = vrot.slane %v632_v34, %v13521_v32 }
 0x119   : > { %v13708_v53 = vrot.slane %v640_v35, %v13521_v32  ;;  %v13711_v55 = vrot.slane %v625_v31, %v13521_v32  ;;  %v3400_v56 = vrot.slane %v3372_v37, %v13517_v21  ;;  %v3401_v14 = vcombine.high %v3379_v29, %v3379_v29 }
 0x11a   : > { %746 = vrot.lane.b32.xlu0 %v13685_v16, %s13279_s16  ;;  %v643_v15 = vcombine.high %v639_v39, %v639_v39  ;;  %v13715_v17 = vrot.slane %v642_v44, %v13521_v32  ;;  %v13718_v18 = vrot.slane %v639_v39, %v13521_v32  ;;  %v13721_v19 = vrot.slane %v641_v43, %v13521_v32 }
 0x11b   : > { %v3402_v20 = vcombine.high %v3386_v38, %v3386_v38  ;;  %v3403_v22 = vcombine.high %v3393_v52, %v3393_v52  ;;  %v3404_v46 = vcombine.high %v3400_v56, %v3400_v56  ;;  %v13726_v25 = vrot.slane %v3379_v29, %v13521_v32 }
 0x11c   : > { %748 = vrot.lane.b32.xlu1 %v13675_v24, %s13279_s16  ;;  %v13731_v21 = vrot.slane %v643_v15, %v13521_v32  ;;  %v13734_v26 = vrot.slane %v3393_v52, %v13521_v32  ;;  %v13737_v27 = vrot.slane %v3401_v14, %v13521_v32  ;;  %v13740_v28 = vrot.slane %v3386_v38, %v13521_v32 }
 0x11d   : > { %v13743_v30 = vrot.slane %v3403_v22, %v13521_v32  ;;  %v13746_v29 = vrot.slane %v3400_v56, %v13521_v32  ;;  %v13749_v31 = vrot.slane %v3402_v20, %v13521_v32  ;;  %v13752_v34 = vrot.slane %v3404_v46, %v13521_v32 }
 0x11e   : > { %750 = vrot.lane.b32.xlu0 %v13689_v45, %s13279_s16 }
 0x120   : > { %1090 = vrot.lane.b32.xlu1 %v13671_v23, %s13280_s17 }
 0x122   : > { %1092 = vrot.lane.b32.xlu0 %v13685_v16, %s13280_s17 }
 0x124   : > { %1094 = vrot.lane.b32.xlu1 %v13675_v24, %s13280_s17 }
 0x126   : > { %1096 = vrot.lane.b32.xlu0 %v13689_v45, %s13280_s17 }
 0x128   : > { %1435 = vrot.lane.b32.xlu1 %v13671_v23, %s13281_s18 }
 0x12a   : > { %1437 = vrot.lane.b32.xlu0 %v13685_v16, %s13281_s18 }
 0x12c   : > { %1439 = vrot.lane.b32.xlu1 %v13675_v24, %s13281_s18 }
 0x12e   : > { %1441 = vrot.lane.b32.xlu0 %v13689_v45, %s13281_s18 }
 0x130   : > { %1780 = vrot.lane.b32.xlu1 %v13671_v23, %s13282_s19 }
 0x132   : > { %1782 = vrot.lane.b32.xlu0 %v13685_v16, %s13282_s19 }
 0x134   : > { %1784 = vrot.lane.b32.xlu1 %v13675_v24, %s13282_s19 }
 0x136   : > { %1786 = vrot.lane.b32.xlu0 %v13689_v45, %s13282_s19 }
 0x138   : > { %2125 = vrot.lane.b32.xlu1 %v13671_v23, %s13283_s20 }
 0x13a   : > { %2127 = vrot.lane.b32.xlu0 %v13685_v16, %s13283_s20 }
 0x13c   : > { %2129 = vrot.lane.b32.xlu1 %v13675_v24, %s13283_s20 }
 0x13e   : > { %2131 = vrot.lane.b32.xlu0 %v13689_v45, %s13283_s20 }
 0x140   : > { %752 = vrot.lane.b32.xlu1 %v13557_v58, %s13279_s16 }
 0x142   : > { %754 = vrot.lane.b32.xlu0 %v13565_v2, %s13279_s16 }
 0x144   : > { %756 = vrot.lane.b32.xlu1 %v13607_v33, %s13279_s16 }
 0x146   : > { %758 = vrot.lane.b32.xlu0 %v13613_v40, %s13279_s16 }
 0x148   : > { %1098 = vrot.lane.b32.xlu1 %v13557_v58, %s13280_s17 }
 0x14a   : > { %1100 = vrot.lane.b32.xlu0 %v13565_v2, %s13280_s17 }
 0x14c   : > { %1102 = vrot.lane.b32.xlu1 %v13607_v33, %s13280_s17 }
 0x14e   : > { %1104 = vrot.lane.b32.xlu0 %v13613_v40, %s13280_s17 }
 0x150   : > { %1443 = vrot.lane.b32.xlu1 %v13557_v58, %s13281_s18 }
 0x152   : > { %1445 = vrot.lane.b32.xlu0 %v13565_v2, %s13281_s18 }
 0x154   : > { %1447 = vrot.lane.b32.xlu1 %v13607_v33, %s13281_s18 }
 0x156   : > { %1449 = vrot.lane.b32.xlu0 %v13613_v40, %s13281_s18 }
 0x158   : > { %1788 = vrot.lane.b32.xlu1 %v13557_v58, %s13282_s19 }
 0x15a   : > { %1790 = vrot.lane.b32.xlu0 %v13565_v2, %s13282_s19 }
 0x15c   : > { %1792 = vrot.lane.b32.xlu1 %v13607_v33, %s13282_s19 }
 0x15e   : > { %1794 = vrot.lane.b32.xlu0 %v13613_v40, %s13282_s19 }
 0x160   : > { %2133 = vrot.lane.b32.xlu1 %v13557_v58, %s13283_s20 }
 0x162   : > { %2135 = vrot.lane.b32.xlu0 %v13565_v2, %s13283_s20 }
 0x164   : > { %2137 = vrot.lane.b32.xlu1 %v13607_v33, %s13283_s20 }
 0x166   : > { %2139 = vrot.lane.b32.xlu0 %v13613_v40, %s13283_s20 }
 0x168   : > { %760 = vrot.lane.b32.xlu1 %v13616_v41, %s13279_s16 }
 0x16a   : > { %762 = vrot.lane.b32.xlu0 %v13625_v49, %s13279_s16 }
 0x16c   : > { %764 = vrot.lane.b32.xlu1 %v13619_v42, %s13279_s16 }
 0x16e   : > { %766 = vrot.lane.b32.xlu0 %v13628_v50, %s13279_s16 }
 0x170   : > { %1106 = vrot.lane.b32.xlu1 %v13616_v41, %s13280_s17 }
 0x172   : > { %1108 = vrot.lane.b32.xlu0 %v13625_v49, %s13280_s17  ;;  %v741_v32 = vpop.permute.xlu1 %740 }
 0x173   : > { %813 = vst.msk [vmem:[#allocation3 + $0x1] sm:$0x1] %vm812_vm3, %v741_v32 }
 0x174   : > { %v743_v35 = vpop.permute.xlu0 %742  ;;  %1110 = vrot.lane.b32.xlu1 %v13619_v42, %s13280_s17 }
 0x175   : > { %814 = vst.msk [vmem:[#allocation3 + $0x19] sm:$0x1] %vm812_vm3, %v743_v35 }
 0x176   : > { %1112 = vrot.lane.b32.xlu0 %v13628_v50, %s13280_s17  ;;  %v1087_v37 = vpop.permute.xlu1 %1086 }
 0x177   : > { %1158 = vst.msk [vmem:[#allocation3 + $0x2] sm:$0x1] %vm812_vm3, %v1087_v37 }
 0x178   : > { %v1089_v38 = vpop.permute.xlu0 %1088  ;;  %1451 = vrot.lane.b32.xlu1 %v13616_v41, %s13281_s18 }
 0x179   : > { %1159 = vst.msk [vmem:[#allocation3 + $0x1a] sm:$0x1] %vm812_vm3, %v1089_v38 }
 0x17a   : > { %1453 = vrot.lane.b32.xlu0 %v13625_v49, %s13281_s18  ;;  %v1432_v52 = vpop.permute.xlu1 %1431 }
 0x17b   : > { %1503 = vst.msk [vmem:[#allocation3 + $0x3] sm:$0x1] %vm812_vm3, %v1432_v52 }
 0x17c   : > { %v1434_v39 = vpop.permute.xlu0 %1433  ;;  %1455 = vrot.lane.b32.xlu1 %v13619_v42, %s13281_s18 }
 0x17d   : > { %1504 = vst.msk [vmem:[#allocation3 + $0x1b] sm:$0x1] %vm812_vm3, %v1434_v39 }
 0x17e   : > { %1457 = vrot.lane.b32.xlu0 %v13628_v50, %s13281_s18  ;;  %v1777_v43 = vpop.permute.xlu1 %1776 }
 0x17f   : > { %1848 = vst.msk [vmem:[#allocation3 + $0x4] sm:$0x1] %vm812_vm3, %v1777_v43 }
 0x180   : > { %v1779_v44 = vpop.permute.xlu0 %1778  ;;  %1796 = vrot.lane.b32.xlu1 %v13616_v41, %s13282_s19 }
 0x181   : > { %1849 = vst.msk [vmem:[#allocation3 + $0x1c] sm:$0x1] %vm812_vm3, %v1779_v44 }
 0x182   : > { %1798 = vrot.lane.b32.xlu0 %v13625_v49, %s13282_s19  ;;  %v2122_v56 = vpop.permute.xlu1 %2121 }
 0x183   : > { %2193 = vst.msk [vmem:[#allocation3 + $0x5] sm:$0x1] %vm812_vm3, %v2122_v56 }
 0x184   : > { %v2124_v14 = vpop.permute.xlu0 %2123  ;;  %1800 = vrot.lane.b32.xlu1 %v13619_v42, %s13282_s19 }
 0x185   : > { %2194 = vst.msk [vmem:[#allocation3 + $0x1d] sm:$0x1] %vm812_vm3, %v2124_v14 }
 0x186   : > { %1802 = vrot.lane.b32.xlu0 %v13628_v50, %s13282_s19  ;;  %v2467_v15 = vpop.permute.xlu1 %2466 }
 0x187   : > { %2538 = vst.msk [vmem:[#allocation3 + $0x6] sm:$0x1] %vm812_vm3, %v2467_v15 }
 0x188   : > { %v2469_v20 = vpop.permute.xlu0 %2468  ;;  %2141 = vrot.lane.b32.xlu1 %v13616_v41, %s13283_s20 }
 0x189   : > { %2539 = vst.msk [vmem:[#allocation3 + $0x1e] sm:$0x1] %vm812_vm3, %v2469_v20 }
 0x18a   : > { %2143 = vrot.lane.b32.xlu0 %v13625_v49, %s13283_s20  ;;  %v745_v22 = vpop.permute.xlu1 %744 }
 0x18b   : > { %815 = vst.msk [vmem:[#allocation3 + $0x31] sm:$0x1] %vm812_vm3, %v745_v22 }
 0x18c   : > { %v747_v46 = vpop.permute.xlu0 %746  ;;  %2145 = vrot.lane.b32.xlu1 %v13619_v42, %s13283_s20 }
 0x18d   : > { %816 = vst.msk [vmem:[#allocation3 + $0x49] sm:$0x1] %vm812_vm3, %v747_v46 }
 0x18e   : > { %2147 = vrot.lane.b32.xlu0 %v13628_v50, %s13283_s20  ;;  %v749_v32 = vpop.permute.xlu1 %748 }
 0x18f   : > { %817 = vst.msk [vmem:[#allocation3 + $0x61] sm:$0x1] %vm812_vm3, %v749_v32 }
 0x190   : > { %v751_v35 = vpop.permute.xlu0 %750  ;;  %768 = vrot.lane.b32.xlu1 %v13631_v51, %s13279_s16 }
 0x191   : > { %818 = vst.msk [vmem:[#allocation3 + $0x79] sm:$0x1] %vm812_vm3, %v751_v35 }
 0x192   : > { %770 = vrot.lane.b32.xlu0 %v13639_v59, %s13279_s16  ;;  %v1091_v37 = vpop.permute.xlu1 %1090 }
 0x193   : > { %1160 = vst.msk [vmem:[#allocation3 + $0x32] sm:$0x1] %vm812_vm3, %v1091_v37 }
 0x194   : > { %v1093_v38 = vpop.permute.xlu0 %1092  ;;  %772 = vrot.lane.b32.xlu1 %v13697_v36, %s13279_s16 }
 0x195   : > { %1161 = vst.msk [vmem:[#allocation3 + $0x4a] sm:$0x1] %vm812_vm3, %v1093_v38 }
 0x196   : > { %774 = vrot.lane.b32.xlu0 %v13705_v47, %s13279_s16  ;;  %v1095_v52 = vpop.permute.xlu1 %1094 }
 0x197   : > { %1162 = vst.msk [vmem:[#allocation3 + $0x62] sm:$0x1] %vm812_vm3, %v1095_v52 }
 0x198   : > { %v1097_v39 = vpop.permute.xlu0 %1096  ;;  %1114 = vrot.lane.b32.xlu1 %v13631_v51, %s13280_s17 }
 0x199   : > { %1163 = vst.msk [vmem:[#allocation3 + $0x7a] sm:$0x1] %vm812_vm3, %v1097_v39 }
 0x19a   : > { %1116 = vrot.lane.b32.xlu0 %v13639_v59, %s13280_s17  ;;  %v1436_v43 = vpop.permute.xlu1 %1435 }
 0x19b   : > { %1505 = vst.msk [vmem:[#allocation3 + $0x33] sm:$0x1] %vm812_vm3, %v1436_v43 }
 0x19c   : > { %v1438_v44 = vpop.permute.xlu0 %1437  ;;  %1118 = vrot.lane.b32.xlu1 %v13697_v36, %s13280_s17 }
 0x19d   : > { %1506 = vst.msk [vmem:[#allocation3 + $0x4b] sm:$0x1] %vm812_vm3, %v1438_v44 }
 0x19e   : > { %1120 = vrot.lane.b32.xlu0 %v13705_v47, %s13280_s17  ;;  %v1440_v56 = vpop.permute.xlu1 %1439 }
 0x19f   : > { %1507 = vst.msk [vmem:[#allocation3 + $0x63] sm:$0x1] %vm812_vm3, %v1440_v56 }
 0x1a0   : > { %v1442_v14 = vpop.permute.xlu0 %1441  ;;  %1459 = vrot.lane.b32.xlu1 %v13631_v51, %s13281_s18 }
 0x1a1   : > { %1508 = vst.msk [vmem:[#allocation3 + $0x7b] sm:$0x1] %vm812_vm3, %v1442_v14 }
 0x1a2   : > { %1461 = vrot.lane.b32.xlu0 %v13639_v59, %s13281_s18  ;;  %v1781_v15 = vpop.permute.xlu1 %1780 }
 0x1a3   : > { %1850 = vst.msk [vmem:[#allocation3 + $0x34] sm:$0x1] %vm812_vm3, %v1781_v15 }
 0x1a4   : > { %v1783_v20 = vpop.permute.xlu0 %1782  ;;  %1463 = vrot.lane.b32.xlu1 %v13697_v36, %s13281_s18 }
 0x1a5   : > { %1851 = vst.msk [vmem:[#allocation3 + $0x4c] sm:$0x1] %vm812_vm3, %v1783_v20 }
 0x1a6   : > { %1465 = vrot.lane.b32.xlu0 %v13705_v47, %s13281_s18  ;;  %v1785_v22 = vpop.permute.xlu1 %1784 }
 0x1a7   : > { %1852 = vst.msk [vmem:[#allocation3 + $0x64] sm:$0x1] %vm812_vm3, %v1785_v22 }
 0x1a8   : > { %v1787_v46 = vpop.permute.xlu0 %1786  ;;  %1804 = vrot.lane.b32.xlu1 %v13631_v51, %s13282_s19 }
 0x1a9   : > { %1853 = vst.msk [vmem:[#allocation3 + $0x7c] sm:$0x1] %vm812_vm3, %v1787_v46 }
 0x1aa   : > { %1806 = vrot.lane.b32.xlu0 %v13639_v59, %s13282_s19  ;;  %v2126_v32 = vpop.permute.xlu1 %2125 }
 0x1ab   : > { %2195 = vst.msk [vmem:[#allocation3 + $0x35] sm:$0x1] %vm812_vm3, %v2126_v32 }
 0x1ac   : > { %v2128_v35 = vpop.permute.xlu0 %2127  ;;  %1808 = vrot.lane.b32.xlu1 %v13697_v36, %s13282_s19 }
 0x1ad   : > { %2196 = vst.msk [vmem:[#allocation3 + $0x4d] sm:$0x1] %vm812_vm3, %v2128_v35 }
 0x1ae   : > { %1810 = vrot.lane.b32.xlu0 %v13705_v47, %s13282_s19  ;;  %v2130_v37 = vpop.permute.xlu1 %2129 }
 0x1af   : > { %2197 = vst.msk [vmem:[#allocation3 + $0x65] sm:$0x1] %vm812_vm3, %v2130_v37 }
 0x1b0   : > { %v2132_v38 = vpop.permute.xlu0 %2131  ;;  %2149 = vrot.lane.b32.xlu1 %v13631_v51, %s13283_s20 }
 0x1b1   : > { %2198 = vst.msk [vmem:[#allocation3 + $0x7d] sm:$0x1] %vm812_vm3, %v2132_v38 }
 0x1b2   : > { %2151 = vrot.lane.b32.xlu0 %v13639_v59, %s13283_s20  ;;  %v753_v52 = vpop.permute.xlu1 %752 }
 0x1b3   : > { %819 = vst.msk [vmem:[#allocation3 + $0x91] sm:$0x1] %vm812_vm3, %v753_v52 }
 0x1b4   : > { %v755_v39 = vpop.permute.xlu0 %754  ;;  %2153 = vrot.lane.b32.xlu1 %v13697_v36, %s13283_s20 }
 0x1b5   : > { %820 = vst.msk [vmem:[#allocation3 + $0xa9] sm:$0x1] %vm812_vm3, %v755_v39 }
 0x1b6   : > { %2155 = vrot.lane.b32.xlu0 %v13705_v47, %s13283_s20  ;;  %v757_v43 = vpop.permute.xlu1 %756 }
 0x1b7   : > { %821 = vst.msk [vmem:[#allocation3 + $0xc1] sm:$0x1] %vm812_vm3, %v757_v43 }
 0x1b8   : > { %v759_v44 = vpop.permute.xlu0 %758  ;;  %776 = vrot.lane.b32.xlu1 %v13708_v53, %s13279_s16 }
 0x1b9   : > { %822 = vst.msk [vmem:[#allocation3 + $0xd9] sm:$0x1] %vm812_vm3, %v759_v44 }
 0x1ba   : > { %778 = vrot.lane.b32.xlu0 %v13715_v17, %s13279_s16  ;;  %v1099_v56 = vpop.permute.xlu1 %1098 }
 0x1bb   : > { %1164 = vst.msk [vmem:[#allocation3 + $0x92] sm:$0x1] %vm812_vm3, %v1099_v56 }
 0x1bc   : > { %v1101_v14 = vpop.permute.xlu0 %1100  ;;  %780 = vrot.lane.b32.xlu1 %v13711_v55, %s13279_s16 }
 0x1bd   : > { %1165 = vst.msk [vmem:[#allocation3 + $0xaa] sm:$0x1] %vm812_vm3, %v1101_v14 }
 0x1be   : > { %782 = vrot.lane.b32.xlu0 %v13718_v18, %s13279_s16  ;;  %v1103_v15 = vpop.permute.xlu1 %1102 }
 0x1bf   : > { %1166 = vst.msk [vmem:[#allocation3 + $0xc2] sm:$0x1] %vm812_vm3, %v1103_v15 }
 0x1c0   : > { %v1105_v20 = vpop.permute.xlu0 %1104  ;;  %1122 = vrot.lane.b32.xlu1 %v13708_v53, %s13280_s17 }
 0x1c1   : > { %1167 = vst.msk [vmem:[#allocation3 + $0xda] sm:$0x1] %vm812_vm3, %v1105_v20 }
 0x1c2   : > { %1124 = vrot.lane.b32.xlu0 %v13715_v17, %s13280_s17  ;;  %v1444_v22 = vpop.permute.xlu1 %1443 }
 0x1c3   : > { %1509 = vst.msk [vmem:[#allocation3 + $0x93] sm:$0x1] %vm812_vm3, %v1444_v22 }
 0x1c4   : > { %v1446_v46 = vpop.permute.xlu0 %1445  ;;  %1126 = vrot.lane.b32.xlu1 %v13711_v55, %s13280_s17 }
 0x1c5   : > { %1510 = vst.msk [vmem:[#allocation3 + $0xab] sm:$0x1] %vm812_vm3, %v1446_v46 }
 0x1c6   : > { %1128 = vrot.lane.b32.xlu0 %v13718_v18, %s13280_s17  ;;  %v1448_v32 = vpop.permute.xlu1 %1447 }
 0x1c7   : > { %1511 = vst.msk [vmem:[#allocation3 + $0xc3] sm:$0x1] %vm812_vm3, %v1448_v32 }
 0x1c8   : > { %v1450_v35 = vpop.permute.xlu0 %1449  ;;  %1467 = vrot.lane.b32.xlu1 %v13708_v53, %s13281_s18 }
 0x1c9   : > { %1512 = vst.msk [vmem:[#allocation3 + $0xdb] sm:$0x1] %vm812_vm3, %v1450_v35 }
 0x1ca   : > { %1469 = vrot.lane.b32.xlu0 %v13715_v17, %s13281_s18  ;;  %v1789_v37 = vpop.permute.xlu1 %1788 }
 0x1cb   : > { %1854 = vst.msk [vmem:[#allocation3 + $0x94] sm:$0x1] %vm812_vm3, %v1789_v37 }
 0x1cc   : > { %v1791_v38 = vpop.permute.xlu0 %1790  ;;  %1471 = vrot.lane.b32.xlu1 %v13711_v55, %s13281_s18 }
 0x1cd   : > { %1855 = vst.msk [vmem:[#allocation3 + $0xac] sm:$0x1] %vm812_vm3, %v1791_v38 }
 0x1ce   : > { %1473 = vrot.lane.b32.xlu0 %v13718_v18, %s13281_s18  ;;  %v1793_v52 = vpop.permute.xlu1 %1792 }
 0x1cf   : > { %1856 = vst.msk [vmem:[#allocation3 + $0xc4] sm:$0x1] %vm812_vm3, %v1793_v52 }
 0x1d0   : > { %v1795_v39 = vpop.permute.xlu0 %1794  ;;  %1812 = vrot.lane.b32.xlu1 %v13708_v53, %s13282_s19 }
 0x1d1   : > { %1857 = vst.msk [vmem:[#allocation3 + $0xdc] sm:$0x1] %vm812_vm3, %v1795_v39 }
 0x1d2   : > { %1814 = vrot.lane.b32.xlu0 %v13715_v17, %s13282_s19  ;;  %v2134_v43 = vpop.permute.xlu1 %2133 }
 0x1d3   : > { %2199 = vst.msk [vmem:[#allocation3 + $0x95] sm:$0x1] %vm812_vm3, %v2134_v43 }
 0x1d4   : > { %v2136_v44 = vpop.permute.xlu0 %2135  ;;  %1816 = vrot.lane.b32.xlu1 %v13711_v55, %s13282_s19 }
 0x1d5   : > { %2200 = vst.msk [vmem:[#allocation3 + $0xad] sm:$0x1] %vm812_vm3, %v2136_v44 }
 0x1d6   : > { %1818 = vrot.lane.b32.xlu0 %v13718_v18, %s13282_s19  ;;  %v2138_v56 = vpop.permute.xlu1 %2137 }
 0x1d7   : > { %2201 = vst.msk [vmem:[#allocation3 + $0xc5] sm:$0x1] %vm812_vm3, %v2138_v56 }
 0x1d8   : > { %v2140_v14 = vpop.permute.xlu0 %2139  ;;  %2157 = vrot.lane.b32.xlu1 %v13708_v53, %s13283_s20 }
 0x1d9   : > { %2202 = vst.msk [vmem:[#allocation3 + $0xdd] sm:$0x1] %vm812_vm3, %v2140_v14 }
 0x1da   : > { %2159 = vrot.lane.b32.xlu0 %v13715_v17, %s13283_s20  ;;  %v761_v15 = vpop.permute.xlu1 %760 }
 0x1db   : > { %823 = vst.msk [vmem:[#allocation3 + $0xf1] sm:$0x1] %vm812_vm3, %v761_v15 }
 0x1dc   : > { %v763_v20 = vpop.permute.xlu0 %762  ;;  %2161 = vrot.lane.b32.xlu1 %v13711_v55, %s13283_s20 }
 0x1dd   : > { %824 = vst.msk [vmem:[#allocation3 + $0x109] sm:$0x1] %vm812_vm3, %v763_v20 }
 0x1de   : > { %2163 = vrot.lane.b32.xlu0 %v13718_v18, %s13283_s20  ;;  %v765_v22 = vpop.permute.xlu1 %764 }
 0x1df   : > { %825 = vst.msk [vmem:[#allocation3 + $0x121] sm:$0x1] %vm812_vm3, %v765_v22 }
 0x1e0   : > { %v767_v46 = vpop.permute.xlu0 %766  ;;  %784 = vrot.lane.b32.xlu1 %v13721_v19, %s13279_s16 }
 0x1e1   : > { %826 = vst.msk [vmem:[#allocation3 + $0x139] sm:$0x1] %vm812_vm3, %v767_v46 }
 0x1e2   : > { %786 = vrot.lane.b32.xlu0 %v13731_v21, %s13279_s16  ;;  %v1107_v32 = vpop.permute.xlu1 %1106 }
 0x1e3   : > { %1168 = vst.msk [vmem:[#allocation3 + $0xf2] sm:$0x1] %vm812_vm3, %v1107_v32 }
 0x1e4   : > { %v1109_v35 = vpop.permute.xlu0 %1108  ;;  %1130 = vrot.lane.b32.xlu1 %v13721_v19, %s13280_s17 }
 0x1e5   : > { %1169 = vst.msk [vmem:[#allocation3 + $0x10a] sm:$0x1] %vm812_vm3, %v1109_v35 }
 0x1e6   : > { %1132 = vrot.lane.b32.xlu0 %v13731_v21, %s13280_s17  ;;  %v1111_v37 = vpop.permute.xlu1 %1110 }
 0x1e7   : > { %1170 = vst.msk [vmem:[#allocation3 + $0x122] sm:$0x1] %vm812_vm3, %v1111_v37 }
 0x1e8   : > { %v1113_v38 = vpop.permute.xlu0 %1112  ;;  %1475 = vrot.lane.b32.xlu1 %v13721_v19, %s13281_s18 }
 0x1e9   : > { %1171 = vst.msk [vmem:[#allocation3 + $0x13a] sm:$0x1] %vm812_vm3, %v1113_v38 }
 0x1ea   : > { %1477 = vrot.lane.b32.xlu0 %v13731_v21, %s13281_s18  ;;  %v1452_v52 = vpop.permute.xlu1 %1451 }
 0x1eb   : > { %1513 = vst.msk [vmem:[#allocation3 + $0xf3] sm:$0x1] %vm812_vm3, %v1452_v52 }
 0x1ec   : > { %v1454_v39 = vpop.permute.xlu0 %1453  ;;  %1820 = vrot.lane.b32.xlu1 %v13721_v19, %s13282_s19 }
 0x1ed   : > { %1514 = vst.msk [vmem:[#allocation3 + $0x10b] sm:$0x1] %vm812_vm3, %v1454_v39 }
 0x1ee   : > { %1822 = vrot.lane.b32.xlu0 %v13731_v21, %s13282_s19  ;;  %v1456_v43 = vpop.permute.xlu1 %1455 }
 0x1ef   : > { %1515 = vst.msk [vmem:[#allocation3 + $0x123] sm:$0x1] %vm812_vm3, %v1456_v43 }
 0x1f0   : > { %v1458_v44 = vpop.permute.xlu0 %1457  ;;  %2165 = vrot.lane.b32.xlu1 %v13721_v19, %s13283_s20 }
 0x1f1   : > { %1516 = vst.msk [vmem:[#allocation3 + $0x13b] sm:$0x1] %vm812_vm3, %v1458_v44 }
 0x1f2   : > { %2167 = vrot.lane.b32.xlu0 %v13731_v21, %s13283_s20  ;;  %v1797_v56 = vpop.permute.xlu1 %1796 }
 0x1f3   : > { %1858 = vst.msk [vmem:[#allocation3 + $0xf4] sm:$0x1] %vm812_vm3, %v1797_v56 }
 0x1f4   : > { %v1799_v14 = vpop.permute.xlu0 %1798  ;;  %2470 = vrot.lane.b32.xlu1 %v13671_v23, %s13284_s21 }
 0x1f5   : > { %1859 = vst.msk [vmem:[#allocation3 + $0x10c] sm:$0x1] %vm812_vm3, %v1799_v14 }
 0x1f6   : > { %2472 = vrot.lane.b32.xlu0 %v13685_v16, %s13284_s21  ;;  %v1801_v15 = vpop.permute.xlu1 %1800 }
 0x1f7   : > { %1860 = vst.msk [vmem:[#allocation3 + $0x124] sm:$0x1] %vm812_vm3, %v1801_v15 }
 0x1f8   : > { %v1803_v20 = vpop.permute.xlu0 %1802  ;;  %2474 = vrot.lane.b32.xlu1 %v13675_v24, %s13284_s21 }
 0x1f9   : > { %1861 = vst.msk [vmem:[#allocation3 + $0x13c] sm:$0x1] %vm812_vm3, %v1803_v20 }
 0x1fa   : > { %2476 = vrot.lane.b32.xlu0 %v13689_v45, %s13284_s21  ;;  %v2142_v22 = vpop.permute.xlu1 %2141 }
 0x1fb   : > { %2203 = vst.msk [vmem:[#allocation3 + $0xf5] sm:$0x1] %vm812_vm3, %v2142_v22 }
 0x1fc   : > { %v2144_v46 = vpop.permute.xlu0 %2143  ;;  %2478 = vrot.lane.b32.xlu1 %v13557_v58, %s13284_s21 }
 0x1fd   : > { %2204 = vst.msk [vmem:[#allocation3 + $0x10d] sm:$0x1] %vm812_vm3, %v2144_v46 }
 0x1fe   : > { %2480 = vrot.lane.b32.xlu0 %v13565_v2, %s13284_s21  ;;  %v2146_v32 = vpop.permute.xlu1 %2145 }
 0x1ff   : > { %2205 = vst.msk [vmem:[#allocation3 + $0x125] sm:$0x1] %vm812_vm3, %v2146_v32 }
 0x200   : > { %v2148_v35 = vpop.permute.xlu0 %2147  ;;  %2482 = vrot.lane.b32.xlu1 %v13607_v33, %s13284_s21 }
 0x201   : > { %2206 = vst.msk [vmem:[#allocation3 + $0x13d] sm:$0x1] %vm812_vm3, %v2148_v35 }
 0x202   : > { %2484 = vrot.lane.b32.xlu0 %v13613_v40, %s13284_s21  ;;  %v769_v37 = vpop.permute.xlu1 %768 }
 0x203   : > { %827 = vst.msk [vmem:[#allocation3 + $0x151] sm:$0x1] %vm812_vm3, %v769_v37 }
 0x204   : > { %v771_v38 = vpop.permute.xlu0 %770  ;;  %2486 = vrot.lane.b32.xlu1 %v13616_v41, %s13284_s21 }
 0x205   : > { %828 = vst.msk [vmem:[#allocation3 + $0x169] sm:$0x1] %vm812_vm3, %v771_v38 }
 0x206   : > { %2488 = vrot.lane.b32.xlu0 %v13625_v49, %s13284_s21  ;;  %v773_v52 = vpop.permute.xlu1 %772 }
 0x207   : > { %829 = vst.msk [vmem:[#allocation3 + $0x181] sm:$0x1] %vm812_vm3, %v773_v52 }
 0x208   : > { %v775_v39 = vpop.permute.xlu0 %774  ;;  %2490 = vrot.lane.b32.xlu1 %v13619_v42, %s13284_s21 }
 0x209   : > { %830 = vst.msk [vmem:[#allocation3 + $0x199] sm:$0x1] %vm812_vm3, %v775_v39 }
 0x20a   : > { %2492 = vrot.lane.b32.xlu0 %v13628_v50, %s13284_s21  ;;  %v1115_v43 = vpop.permute.xlu1 %1114 }
 0x20b   : > { %1172 = vst.msk [vmem:[#allocation3 + $0x152] sm:$0x1] %vm812_vm3, %v1115_v43 }
 0x20c   : > { %v1117_v44 = vpop.permute.xlu0 %1116  ;;  %2494 = vrot.lane.b32.xlu1 %v13631_v51, %s13284_s21 }
 0x20d   : > { %1173 = vst.msk [vmem:[#allocation3 + $0x16a] sm:$0x1] %vm812_vm3, %v1117_v44 }
 0x20e   : > { %2496 = vrot.lane.b32.xlu0 %v13639_v59, %s13284_s21  ;;  %v1119_v56 = vpop.permute.xlu1 %1118 }
 0x20f   : > { %1174 = vst.msk [vmem:[#allocation3 + $0x182] sm:$0x1] %vm812_vm3, %v1119_v56 }
 0x210   : > { %v1121_v14 = vpop.permute.xlu0 %1120  ;;  %2498 = vrot.lane.b32.xlu1 %v13697_v36, %s13284_s21 }
 0x211   : > { %1175 = vst.msk [vmem:[#allocation3 + $0x19a] sm:$0x1] %vm812_vm3, %v1121_v14 }
 0x212   : > { %2500 = vrot.lane.b32.xlu0 %v13705_v47, %s13284_s21  ;;  %v1460_v15 = vpop.permute.xlu1 %1459 }
 0x213   : > { %1517 = vst.msk [vmem:[#allocation3 + $0x153] sm:$0x1] %vm812_vm3, %v1460_v15 }
 0x214   : > { %v1462_v20 = vpop.permute.xlu0 %1461  ;;  %2502 = vrot.lane.b32.xlu1 %v13708_v53, %s13284_s21 }
 0x215   : > { %1518 = vst.msk [vmem:[#allocation3 + $0x16b] sm:$0x1] %vm812_vm3, %v1462_v20 }
 0x216   : > { %2504 = vrot.lane.b32.xlu0 %v13715_v17, %s13284_s21  ;;  %v1464_v22 = vpop.permute.xlu1 %1463 }
 0x217   : > { %1519 = vst.msk [vmem:[#allocation3 + $0x183] sm:$0x1] %vm812_vm3, %v1464_v22 }
 0x218   : > { %v1466_v46 = vpop.permute.xlu0 %1465  ;;  %2506 = vrot.lane.b32.xlu1 %v13711_v55, %s13284_s21 }
 0x219   : > { %1520 = vst.msk [vmem:[#allocation3 + $0x19b] sm:$0x1] %vm812_vm3, %v1466_v46 }
 0x21a   : > { %2508 = vrot.lane.b32.xlu0 %v13718_v18, %s13284_s21  ;;  %v1805_v32 = vpop.permute.xlu1 %1804 }
 0x21b   : > { %1862 = vst.msk [vmem:[#allocation3 + $0x154] sm:$0x1] %vm812_vm3, %v1805_v32 }
 0x21c   : > { %v1807_v35 = vpop.permute.xlu0 %1806  ;;  %2510 = vrot.lane.b32.xlu1 %v13721_v19, %s13284_s21 }
 0x21d   : > { %1863 = vst.msk [vmem:[#allocation3 + $0x16c] sm:$0x1] %vm812_vm3, %v1807_v35 }
 0x21e   : > { %2512 = vrot.lane.b32.xlu0 %v13731_v21, %s13284_s21  ;;  %v1809_v37 = vpop.permute.xlu1 %1808 }
 0x21f   : > { %1864 = vst.msk [vmem:[#allocation3 + $0x184] sm:$0x1] %vm812_vm3, %v1809_v37 }
 0x220   : > { %v1811_v38 = vpop.permute.xlu0 %1810  ;;  %2811 = vrot.lane.b32.xlu1 %v13538_v48, %s13285_s22 }
 0x221   : > { %1865 = vst.msk [vmem:[#allocation3 + $0x19c] sm:$0x1] %vm812_vm3, %v1811_v38 }
 0x222   : > { %2813 = vrot.lane.b32.xlu0 %v13549_v54, %s13285_s22  ;;  %v2150_v52 = vpop.permute.xlu1 %2149 }
 0x223   : > { %2207 = vst.msk [vmem:[#allocation3 + $0x155] sm:$0x1] %vm812_vm3, %v2150_v52 }
 0x224   : > { %v2152_v39 = vpop.permute.xlu0 %2151  ;;  %2815 = vrot.lane.b32.xlu1 %v13671_v23, %s13285_s22 }
 0x225   : > { %2208 = vst.msk [vmem:[#allocation3 + $0x16d] sm:$0x1] %vm812_vm3, %v2152_v39 }
 0x226   : > { %2817 = vrot.lane.b32.xlu0 %v13685_v16, %s13285_s22  ;;  %v2154_v43 = vpop.permute.xlu1 %2153 }
 0x227   : > { %2209 = vst.msk [vmem:[#allocation3 + $0x185] sm:$0x1] %vm812_vm3, %v2154_v43 }
 0x228   : > { %v2156_v44 = vpop.permute.xlu0 %2155  ;;  %2819 = vrot.lane.b32.xlu1 %v13675_v24, %s13285_s22 }
 0x229   : > { %2210 = vst.msk [vmem:[#allocation3 + $0x19d] sm:$0x1] %vm812_vm3, %v2156_v44 }
 0x22a   : > { %2821 = vrot.lane.b32.xlu0 %v13689_v45, %s13285_s22  ;;  %v777_v56 = vpop.permute.xlu1 %776 }
 0x22b   : > { %831 = vst.msk [vmem:[#allocation3 + $0x1b1] sm:$0x1] %vm812_vm3, %v777_v56 }
 0x22c   : > { %v779_v14 = vpop.permute.xlu0 %778  ;;  %2823 = vrot.lane.b32.xlu1 %v13557_v58, %s13285_s22 }
 0x22d   : > { %832 = vst.msk [vmem:[#allocation3 + $0x1c9] sm:$0x1] %vm812_vm3, %v779_v14 }
 0x22e   : > { %2825 = vrot.lane.b32.xlu0 %v13565_v2, %s13285_s22  ;;  %v781_v15 = vpop.permute.xlu1 %780 }
 0x22f   : > { %833 = vst.msk [vmem:[#allocation3 + $0x1e1] sm:$0x1] %vm812_vm3, %v781_v15 }
 0x230   : > { %v783_v20 = vpop.permute.xlu0 %782  ;;  %2827 = vrot.lane.b32.xlu1 %v13607_v33, %s13285_s22 }
 0x231   : > { %834 = vst.msk [vmem:[#allocation3 + $0x1f9] sm:$0x1] %vm812_vm3, %v783_v20 }
 0x232   : > { %2829 = vrot.lane.b32.xlu0 %v13613_v40, %s13285_s22  ;;  %v1123_v22 = vpop.permute.xlu1 %1122 }
 0x233   : > { %1176 = vst.msk [vmem:[#allocation3 + $0x1b2] sm:$0x1] %vm812_vm3, %v1123_v22 }
 0x234   : > { %v1125_v46 = vpop.permute.xlu0 %1124  ;;  %2831 = vrot.lane.b32.xlu1 %v13616_v41, %s13285_s22 }
 0x235   : > { %1177 = vst.msk [vmem:[#allocation3 + $0x1ca] sm:$0x1] %vm812_vm3, %v1125_v46 }
 0x236   : > { %2833 = vrot.lane.b32.xlu0 %v13625_v49, %s13285_s22  ;;  %v1127_v32 = vpop.permute.xlu1 %1126 }
 0x237   : > { %1178 = vst.msk [vmem:[#allocation3 + $0x1e2] sm:$0x1] %vm812_vm3, %v1127_v32 }
 0x238   : > { %v1129_v35 = vpop.permute.xlu0 %1128  ;;  %2835 = vrot.lane.b32.xlu1 %v13619_v42, %s13285_s22 }
 0x239   : > { %1179 = vst.msk [vmem:[#allocation3 + $0x1fa] sm:$0x1] %vm812_vm3, %v1129_v35 }
 0x23a   : > { %2837 = vrot.lane.b32.xlu0 %v13628_v50, %s13285_s22  ;;  %v1468_v37 = vpop.permute.xlu1 %1467 }
 0x23b   : > { %1521 = vst.msk [vmem:[#allocation3 + $0x1b3] sm:$0x1] %vm812_vm3, %v1468_v37 }
 0x23c   : > { %v1470_v38 = vpop.permute.xlu0 %1469  ;;  %2839 = vrot.lane.b32.xlu1 %v13631_v51, %s13285_s22 }
 0x23d   : > { %1522 = vst.msk [vmem:[#allocation3 + $0x1cb] sm:$0x1] %vm812_vm3, %v1470_v38 }
 0x23e   : > { %2841 = vrot.lane.b32.xlu0 %v13639_v59, %s13285_s22  ;;  %v1472_v52 = vpop.permute.xlu1 %1471 }
 0x23f   : > { %1523 = vst.msk [vmem:[#allocation3 + $0x1e3] sm:$0x1] %vm812_vm3, %v1472_v52 }
 0x240   : > { %v1474_v39 = vpop.permute.xlu0 %1473  ;;  %2843 = vrot.lane.b32.xlu1 %v13697_v36, %s13285_s22 }
 0x241   : > { %1524 = vst.msk [vmem:[#allocation3 + $0x1fb] sm:$0x1] %vm812_vm3, %v1474_v39 }
 0x242   : > { %2845 = vrot.lane.b32.xlu0 %v13705_v47, %s13285_s22  ;;  %v1813_v43 = vpop.permute.xlu1 %1812 }
 0x243   : > { %1866 = vst.msk [vmem:[#allocation3 + $0x1b4] sm:$0x1] %vm812_vm3, %v1813_v43 }
 0x244   : > { %v1815_v44 = vpop.permute.xlu0 %1814  ;;  %2847 = vrot.lane.b32.xlu1 %v13708_v53, %s13285_s22 }
 0x245   : > { %1867 = vst.msk [vmem:[#allocation3 + $0x1cc] sm:$0x1] %vm812_vm3, %v1815_v44 }
 0x246   : > { %2849 = vrot.lane.b32.xlu0 %v13715_v17, %s13285_s22  ;;  %v1817_v56 = vpop.permute.xlu1 %1816 }
 0x247   : > { %1868 = vst.msk [vmem:[#allocation3 + $0x1e4] sm:$0x1] %vm812_vm3, %v1817_v56 }
 0x248   : > { %v1819_v14 = vpop.permute.xlu0 %1818  ;;  %2851 = vrot.lane.b32.xlu1 %v13711_v55, %s13285_s22 }
 0x249   : > { %1869 = vst.msk [vmem:[#allocation3 + $0x1fc] sm:$0x1] %vm812_vm3, %v1819_v14 }
 0x24a   : > { %2853 = vrot.lane.b32.xlu0 %v13718_v18, %s13285_s22  ;;  %v2158_v15 = vpop.permute.xlu1 %2157 }
 0x24b   : > { %2211 = vst.msk [vmem:[#allocation3 + $0x1b5] sm:$0x1] %vm812_vm3, %v2158_v15 }
 0x24c   : > { %v2160_v20 = vpop.permute.xlu0 %2159  ;;  %2855 = vrot.lane.b32.xlu1 %v13721_v19, %s13285_s22 }
 0x24d   : > { %2212 = vst.msk [vmem:[#allocation3 + $0x1cd] sm:$0x1] %vm812_vm3, %v2160_v20 }
 0x24e   : > { %2857 = vrot.lane.b32.xlu0 %v13731_v21, %s13285_s22  ;;  %v2162_v22 = vpop.permute.xlu1 %2161 }
 0x24f   : > { %2213 = vst.msk [vmem:[#allocation3 + $0x1e5] sm:$0x1] %vm812_vm3, %v2162_v22 }
 0x250   : > { %v2164_v46 = vpop.permute.xlu0 %2163  ;;  %3156 = vrot.lane.b32.xlu1 %v13538_v48, %s13286_s29 }
 0x251   : > { %2214 = vst.msk [vmem:[#allocation3 + $0x1fd] sm:$0x1] %vm812_vm3, %v2164_v46 }
 0x252   : > { %3158 = vrot.lane.b32.xlu0 %v13549_v54, %s13286_s29  ;;  %v785_v32 = vpop.permute.xlu1 %784 }
 0x253   : > { %835 = vst.msk [vmem:[#allocation3 + $0x211] sm:$0x1] %vm812_vm3, %v785_v32 }
 0x254   : > { %v787_v35 = vpop.permute.xlu0 %786  ;;  %3160 = vrot.lane.b32.xlu1 %v13671_v23, %s13286_s29 }
 0x255   : > { %836 = vst.msk [vmem:[#allocation3 + $0x229] sm:$0x1] %vm812_vm3, %v787_v35 }
 0x256   : > { %3162 = vrot.lane.b32.xlu0 %v13685_v16, %s13286_s29  ;;  %v1131_v37 = vpop.permute.xlu1 %1130 }
 0x257   : > { %1180 = vst.msk [vmem:[#allocation3 + $0x212] sm:$0x1] %vm812_vm3, %v1131_v37 }
 0x258   : > { %v1133_v48 = vpop.permute.xlu0 %1132  ;;  %3164 = vrot.lane.b32.xlu1 %v13675_v24, %s13286_s29 }
 0x259   : > { %1181 = vst.msk [vmem:[#allocation3 + $0x22a] sm:$0x1] %vm812_vm3, %v1133_v48 }
 0x25a   : > { %3166 = vrot.lane.b32.xlu0 %v13689_v45, %s13286_s29  ;;  %v1476_v54 = vpop.permute.xlu1 %1475 }
 0x25b   : > { %1525 = vst.msk [vmem:[#allocation3 + $0x213] sm:$0x1] %vm812_vm3, %v1476_v54 }
 0x25c   : > { %v1478_v23 = vpop.permute.xlu0 %1477  ;;  %3168 = vrot.lane.b32.xlu1 %v13557_v58, %s13286_s29 }
 0x25d   : > { %1526 = vst.msk [vmem:[#allocation3 + $0x22b] sm:$0x1] %vm812_vm3, %v1478_v23 }
 0x25e   : > { %3170 = vrot.lane.b32.xlu0 %v13565_v2, %s13286_s29  ;;  %v1821_v16 = vpop.permute.xlu1 %1820 }
 0x25f   : > { %1870 = vst.msk [vmem:[#allocation3 + $0x214] sm:$0x1] %vm812_vm3, %v1821_v16 }
 0x260   : > { %v1823_v24 = vpop.permute.xlu0 %1822  ;;  %3172 = vrot.lane.b32.xlu1 %v13607_v33, %s13286_s29 }
 0x261   : > { %1871 = vst.msk [vmem:[#allocation3 + $0x22c] sm:$0x1] %vm812_vm3, %v1823_v24 }
 0x262   : > { %3174 = vrot.lane.b32.xlu0 %v13613_v40, %s13286_s29  ;;  %v2166_v45 = vpop.permute.xlu1 %2165 }
 0x263   : > { %2215 = vst.msk [vmem:[#allocation3 + $0x215] sm:$0x1] %vm812_vm3, %v2166_v45 }
 0x264   : > { %v2168_v58 = vpop.permute.xlu0 %2167  ;;  %3176 = vrot.lane.b32.xlu1 %v13616_v41, %s13286_s29 }
 0x265   : > { %2216 = vst.msk [vmem:[#allocation3 + $0x22d] sm:$0x1] %vm812_vm3, %v2168_v58 }
 0x266   : > { %3178 = vrot.lane.b32.xlu0 %v13625_v49, %s13286_s29  ;;  %v2471_v2 = vpop.permute.xlu1 %2470 }
 0x267   : > { %2540 = vst.msk [vmem:[#allocation3 + $0x36] sm:$0x1] %vm812_vm3, %v2471_v2 }
 0x268   : > { %v2473_v33 = vpop.permute.xlu0 %2472  ;;  %3180 = vrot.lane.b32.xlu1 %v13619_v42, %s13286_s29 }
 0x269   : > { %2541 = vst.msk [vmem:[#allocation3 + $0x4e] sm:$0x1] %vm812_vm3, %v2473_v33 }
 0x26a   : > { %3182 = vrot.lane.b32.xlu0 %v13628_v50, %s13286_s29  ;;  %v2475_v40 = vpop.permute.xlu1 %2474 }
 0x26b   : > { %2542 = vst.msk [vmem:[#allocation3 + $0x66] sm:$0x1] %vm812_vm3, %v2475_v40 }
 0x26c   : > { %v2477_v41 = vpop.permute.xlu0 %2476  ;;  %3184 = vrot.lane.b32.xlu1 %v13631_v51, %s13286_s29 }
 0x26d   : > { %2543 = vst.msk [vmem:[#allocation3 + $0x7e] sm:$0x1] %vm812_vm3, %v2477_v41 }
 0x26e   : > { %3186 = vrot.lane.b32.xlu0 %v13639_v59, %s13286_s29  ;;  %v2479_v49 = vpop.permute.xlu1 %2478 }
 0x26f   : > { %2544 = vst.msk [vmem:[#allocation3 + $0x96] sm:$0x1] %vm812_vm3, %v2479_v49 }
 0x270   : > { %v2481_v42 = vpop.permute.xlu0 %2480  ;;  %3188 = vrot.lane.b32.xlu1 %v13697_v36, %s13286_s29 }
 0x271   : > { %2545 = vst.msk [vmem:[#allocation3 + $0xae] sm:$0x1] %vm812_vm3, %v2481_v42 }
 0x272   : > { %3190 = vrot.lane.b32.xlu0 %v13705_v47, %s13286_s29  ;;  %v2483_v50 = vpop.permute.xlu1 %2482 }
 0x273   : > { %2546 = vst.msk [vmem:[#allocation3 + $0xc6] sm:$0x1] %vm812_vm3, %v2483_v50 }
 0x274   : > { %v2485_v51 = vpop.permute.xlu0 %2484  ;;  %3192 = vrot.lane.b32.xlu1 %v13708_v53, %s13286_s29 }
 0x275   : > { %2547 = vst.msk [vmem:[#allocation3 + $0xde] sm:$0x1] %vm812_vm3, %v2485_v51 }
 0x276   : > { %3194 = vrot.lane.b32.xlu0 %v13715_v17, %s13286_s29  ;;  %v2487_v59 = vpop.permute.xlu1 %2486 }
 0x277   : > { %2548 = vst.msk [vmem:[#allocation3 + $0xf6] sm:$0x1] %vm812_vm3, %v2487_v59 }
 0x278   : > { %v2489_v36 = vpop.permute.xlu0 %2488  ;;  %3196 = vrot.lane.b32.xlu1 %v13711_v55, %s13286_s29 }
 0x279   : > { %2549 = vst.msk [vmem:[#allocation3 + $0x10e] sm:$0x1] %vm812_vm3, %v2489_v36 }
 0x27a   : > { %3198 = vrot.lane.b32.xlu0 %v13718_v18, %s13286_s29  ;;  %v2491_v47 = vpop.permute.xlu1 %2490 }
 0x27b   : > { %2550 = vst.msk [vmem:[#allocation3 + $0x126] sm:$0x1] %vm812_vm3, %v2491_v47 }
 0x27c   : > { %v2493_v53 = vpop.permute.xlu0 %2492  ;;  %3200 = vrot.lane.b32.xlu1 %v13721_v19, %s13286_s29 }
 0x27d   : > { %2551 = vst.msk [vmem:[#allocation3 + $0x13e] sm:$0x1] %vm812_vm3, %v2493_v53 }
 0x27e   : > { %3202 = vrot.lane.b32.xlu0 %v13731_v21, %s13286_s29  ;;  %v2495_v17 = vpop.permute.xlu1 %2494 }
 0x27f   : > { %2552 = vst.msk [vmem:[#allocation3 + $0x156] sm:$0x1] %vm812_vm3, %v2495_v17 }
 0x280   : > { %v2497_v55 = vpop.permute.xlu0 %2496  ;;  %3501 = vrot.lane.b32.xlu1 %v13562_v1, %s13279_s16 }
 0x281   : > { %2553 = vst.msk [vmem:[#allocation3 + $0x16e] sm:$0x1] %vm812_vm3, %v2497_v55 }
 0x282   : > { %3503 = vrot.lane.b32.xlu0 %v13568_v3, %s13279_s16  ;;  %v2499_v18 = vpop.permute.xlu1 %2498 }
 0x283   : > { %2554 = vst.msk [vmem:[#allocation3 + $0x186] sm:$0x1] %vm812_vm3, %v2499_v18 }
 0x284   : > { %v2501_v19 = vpop.permute.xlu0 %2500  ;;  %3505 = vrot.lane.b32.xlu1 %v13571_v4, %s13279_s16 }
 0x285   : > { %2555 = vst.msk [vmem:[#allocation3 + $0x19e] sm:$0x1] %vm812_vm3, %v2501_v19 }
 0x286   : > { %3507 = vrot.lane.b32.xlu0 %v13577_v7, %s13279_s16  ;;  %v2503_v21 = vpop.permute.xlu1 %2502 }
 0x287   : > { %2556 = vst.msk [vmem:[#allocation3 + $0x1b6] sm:$0x1] %vm812_vm3, %v2503_v21 }
 0x288   : > { %v2505_v38 = vpop.permute.xlu0 %2504  ;;  %3509 = vrot.lane.b32.xlu1 %v13574_v5, %s13279_s16 }
 0x289   : > { %2557 = vst.msk [vmem:[#allocation3 + $0x1ce] sm:$0x1] %vm812_vm3, %v2505_v38 }
 0x28a   : > { %3511 = vrot.lane.b32.xlu0 %v13580_v8, %s13279_s16  ;;  %v2507_v52 = vpop.permute.xlu1 %2506 }
 0x28b   : > { %2558 = vst.msk [vmem:[#allocation3 + $0x1e6] sm:$0x1] %vm812_vm3, %v2507_v52 }
 0x28c   : > { %v2509_v39 = vpop.permute.xlu0 %2508  ;;  %3513 = vrot.lane.b32.xlu1 %v13583_v9, %s13279_s16 }
 0x28d   : > { %2559 = vst.msk [vmem:[#allocation3 + $0x1fe] sm:$0x1] %vm812_vm3, %v2509_v39 }
 0x28e   : > { %3515 = vrot.lane.b32.xlu0 %v13586_v10, %s13279_s16  ;;  %v2511_v43 = vpop.permute.xlu1 %2510 }
 0x28f   : > { %2560 = vst.msk [vmem:[#allocation3 + $0x216] sm:$0x1] %vm812_vm3, %v2511_v43 }
 0x290   : > { %v2513_v44 = vpop.permute.xlu0 %2512  ;;  %3517 = vrot.lane.b32.xlu1 %v13636_v57, %s13279_s16 }
 0x291   : > { %2561 = vst.msk [vmem:[#allocation3 + $0x22e] sm:$0x1] %vm812_vm3, %v2513_v44 }
 0x292   : > { %3519 = vrot.lane.b32.xlu0 %v13642_v60, %s13279_s16  ;;  %v2812_v56 = vpop.permute.xlu1 %2811 }
 0x293   : > { %2883 = vst.msk [vmem:[#allocation3 + $0x7] sm:$0x1] %vm812_vm3, %v2812_v56 }
 0x294   : > { %v2814_v14 = vpop.permute.xlu0 %2813  ;;  %3521 = vrot.lane.b32.xlu1 %v13645_v61, %s13279_s16 }
 0x295   : > { %2884 = vst.msk [vmem:[#allocation3 + $0x1f] sm:$0x1] %vm812_vm3, %v2814_v14 }
 0x296   : > { %3523 = vrot.lane.b32.xlu0 %v13651_v63, %s13279_s16  ;;  %v2816_v15 = vpop.permute.xlu1 %2815 }
 0x297   : > { %2885 = vst.msk [vmem:[#allocation3 + $0x37] sm:$0x1] %vm812_vm3, %v2816_v15 }
 0x298   : > { %v2818_v20 = vpop.permute.xlu0 %2817  ;;  %3525 = vrot.lane.b32.xlu1 %v13648_v62, %s13279_s16 }
 0x299   : > { %2886 = vst.msk [vmem:[#allocation3 + $0x4f] sm:$0x1] %vm812_vm3, %v2818_v20 }
 0x29a   : > { %3527 = vrot.lane.b32.xlu0 %v13654_v11, %s13279_s16  ;;  %v2820_v22 = vpop.permute.xlu1 %2819 }
 0x29b   : > { %2887 = vst.msk [vmem:[#allocation3 + $0x67] sm:$0x1] %vm812_vm3, %v2820_v22 }
 0x29c   : > { %v2822_v46 = vpop.permute.xlu0 %2821  ;;  %3529 = vrot.lane.b32.xlu1 %v13657_v12, %s13279_s16 }
 0x29d   : > { %2888 = vst.msk [vmem:[#allocation3 + $0x7f] sm:$0x1] %vm812_vm3, %v2822_v46 }
 0x29e   : > { %3531 = vrot.lane.b32.xlu0 %v13660_v13, %s13279_s16  ;;  %v2824_v32 = vpop.permute.xlu1 %2823 }
 0x29f   : > { %2889 = vst.msk [vmem:[#allocation3 + $0x97] sm:$0x1] %vm812_vm3, %v2824_v32 }
 0x2a0   : > { %v2826_v35 = vpop.permute.xlu0 %2825  ;;  %3533 = vrot.lane.b32.xlu1 %v13726_v25, %s13279_s16 }
 0x2a1   : > { %2890 = vst.msk [vmem:[#allocation3 + $0xaf] sm:$0x1] %vm812_vm3, %v2826_v35 }
 0x2a2   : > { %3535 = vrot.lane.b32.xlu0 %v13734_v26, %s13279_s16  ;;  %v2828_v37 = vpop.permute.xlu1 %2827 }
 0x2a3   : > { %2891 = vst.msk [vmem:[#allocation3 + $0xc7] sm:$0x1] %vm812_vm3, %v2828_v37 }
 0x2a4   : > { %v2830_v48 = vpop.permute.xlu0 %2829  ;;  %3537 = vrot.lane.b32.xlu1 %v13737_v27, %s13279_s16 }
 0x2a5   : > { %2892 = vst.msk [vmem:[#allocation3 + $0xdf] sm:$0x1] %vm812_vm3, %v2830_v48 }
 0x2a6   : > { %3539 = vrot.lane.b32.xlu0 %v13743_v30, %s13279_s16  ;;  %v2832_v54 = vpop.permute.xlu1 %2831 }
 0x2a7   : > { %2893 = vst.msk [vmem:[#allocation3 + $0xf7] sm:$0x1] %vm812_vm3, %v2832_v54 }
 0x2a8   : > { %v2834_v23 = vpop.permute.xlu0 %2833  ;;  %3541 = vrot.lane.b32.xlu1 %v13740_v28, %s13279_s16 }
 0x2a9   : > { %2894 = vst.msk [vmem:[#allocation3 + $0x10f] sm:$0x1] %vm812_vm3, %v2834_v23 }
 0x2aa   : > { %3543 = vrot.lane.b32.xlu0 %v13746_v29, %s13279_s16  ;;  %v2836_v16 = vpop.permute.xlu1 %2835 }
 0x2ab   : > { %2895 = vst.msk [vmem:[#allocation3 + $0x127] sm:$0x1] %vm812_vm3, %v2836_v16 }
 0x2ac   : > { %v2838_v24 = vpop.permute.xlu0 %2837  ;;  %3545 = vrot.lane.b32.xlu1 %v13749_v31, %s13279_s16 }
 0x2ad   : > { %2896 = vst.msk [vmem:[#allocation3 + $0x13f] sm:$0x1] %vm812_vm3, %v2838_v24 }
 0x2ae   : > { %3547 = vrot.lane.b32.xlu0 %v13752_v34, %s13279_s16  ;;  %v2840_v45 = vpop.permute.xlu1 %2839  ;;  %s13287_s16 = smov 127  }
 0x2af   : > { %2897 = vst.msk [vmem:[#allocation3 + $0x157] sm:$0x1] %vm812_vm3, %v2840_v45 }
 0x2b0   : > { %v2842_v58 = vpop.permute.xlu0 %2841  ;;  %3846 = vrot.lane.b32.xlu1 %v13562_v1, %s13280_s17 }
 0x2b1   : > { %2898 = vst.msk [vmem:[#allocation3 + $0x16f] sm:$0x1] %vm812_vm3, %v2842_v58 }
 0x2b2   : > { %3848 = vrot.lane.b32.xlu0 %v13568_v3, %s13280_s17  ;;  %v2844_v2 = vpop.permute.xlu1 %2843 }
 0x2b3   : > { %2899 = vst.msk [vmem:[#allocation3 + $0x187] sm:$0x1] %vm812_vm3, %v2844_v2 }
 0x2b4   : > { %v2846_v33 = vpop.permute.xlu0 %2845  ;;  %3850 = vrot.lane.b32.xlu1 %v13571_v4, %s13280_s17 }
 0x2b5   : > { %2900 = vst.msk [vmem:[#allocation3 + $0x19f] sm:$0x1] %vm812_vm3, %v2846_v33 }
 0x2b6   : > { %3852 = vrot.lane.b32.xlu0 %v13577_v7, %s13280_s17  ;;  %v2848_v40 = vpop.permute.xlu1 %2847 }
 0x2b7   : > { %2901 = vst.msk [vmem:[#allocation3 + $0x1b7] sm:$0x1] %vm812_vm3, %v2848_v40 }
 0x2b8   : > { %v2850_v41 = vpop.permute.xlu0 %2849  ;;  %3854 = vrot.lane.b32.xlu1 %v13574_v5, %s13280_s17 }
 0x2b9   : > { %2902 = vst.msk [vmem:[#allocation3 + $0x1cf] sm:$0x1] %vm812_vm3, %v2850_v41 }
 0x2ba   : > { %3856 = vrot.lane.b32.xlu0 %v13580_v8, %s13280_s17  ;;  %v2852_v49 = vpop.permute.xlu1 %2851  ;;  %v15242_v6 = vld [vmem:[#allocation3 + $0x180] sm:$0xff] }
 0x2bb   : > { %2903 = vst.msk [vmem:[#allocation3 + $0x1e7] sm:$0x1] %vm812_vm3, %v2852_v49 }
 0x2bc   : > { %v2854_v42 = vpop.permute.xlu0 %2853  ;;  %3858 = vrot.lane.b32.xlu1 %v13583_v9, %s13280_s17 }
 0x2bd   : > { %2904 = vst.msk [vmem:[#allocation3 + $0x1ff] sm:$0x1] %vm812_vm3, %v2854_v42 }
 0x2be   : > { %3860 = vrot.lane.b32.xlu0 %v13586_v10, %s13280_s17  ;;  %v2856_v50 = vpop.permute.xlu1 %2855 }
 0x2bf   : > { %2905 = vst.msk [vmem:[#allocation3 + $0x217] sm:$0x1] %vm812_vm3, %v2856_v50 }
 0x2c0   : > { %v2858_v51 = vpop.permute.xlu0 %2857  ;;  %3862 = vrot.lane.b32.xlu1 %v13636_v57, %s13280_s17 }
 0x2c1   : > { %2906 = vst.msk [vmem:[#allocation3 + $0x22f] sm:$0x1] %vm812_vm3, %v2858_v51 }
 0x2c2   : > { %3864 = vrot.lane.b32.xlu0 %v13642_v60, %s13280_s17  ;;  %v3157_v59 = vpop.permute.xlu1 %3156 }
 0x2c3   : > { %3228 = vst.msk [vmem:[#allocation3 + $0x8] sm:$0x1] %vm812_vm3, %v3157_v59 }
 0x2c4   : > { %v3159_v36 = vpop.permute.xlu0 %3158  ;;  %3866 = vrot.lane.b32.xlu1 %v13645_v61, %s13280_s17 }
 0x2c5   : > { %3229 = vst.msk [vmem:[#allocation3 + $0x20] sm:$0x1] %vm812_vm3, %v3159_v36 }
 0x2c6   : > { %3868 = vrot.lane.b32.xlu0 %v13651_v63, %s13280_s17  ;;  %v3161_v47 = vpop.permute.xlu1 %3160 }
 0x2c7   : > { %3230 = vst.msk [vmem:[#allocation3 + $0x38] sm:$0x1] %vm812_vm3, %v3161_v47 }
 0x2c8   : > { %v3163_v53 = vpop.permute.xlu0 %3162  ;;  %3870 = vrot.lane.b32.xlu1 %v13648_v62, %s13280_s17 }
 0x2c9   : > { %3231 = vst.msk [vmem:[#allocation3 + $0x50] sm:$0x1] %vm812_vm3, %v3163_v53 }
 0x2ca   : > { %3872 = vrot.lane.b32.xlu0 %v13654_v11, %s13280_s17  ;;  %v3165_v17 = vpop.permute.xlu1 %3164 }
 0x2cb   : > { %3232 = vst.msk [vmem:[#allocation3 + $0x68] sm:$0x1] %vm812_vm3, %v3165_v17 }
 0x2cc   : > { %v3167_v55 = vpop.permute.xlu0 %3166  ;;  %3874 = vrot.lane.b32.xlu1 %v13657_v12, %s13280_s17 }
 0x2cd   : > { %3233 = vst.msk [vmem:[#allocation3 + $0x80] sm:$0x1] %vm812_vm3, %v3167_v55 }
 0x2ce   : > { %3876 = vrot.lane.b32.xlu0 %v13660_v13, %s13280_s17  ;;  %v3169_v18 = vpop.permute.xlu1 %3168 }
 0x2cf   : > { %3234 = vst.msk [vmem:[#allocation3 + $0x98] sm:$0x1] %vm812_vm3, %v3169_v18 }
 0x2d0   : > { %v3171_v19 = vpop.permute.xlu0 %3170  ;;  %3878 = vrot.lane.b32.xlu1 %v13726_v25, %s13280_s17 }
 0x2d1   : > { %3235 = vst.msk [vmem:[#allocation3 + $0xb0] sm:$0x1] %vm812_vm3, %v3171_v19 }
 0x2d2   : > { %3880 = vrot.lane.b32.xlu0 %v13734_v26, %s13280_s17  ;;  %v3173_v21 = vpop.permute.xlu1 %3172 }
 0x2d3   : > { %3236 = vst.msk [vmem:[#allocation3 + $0xc8] sm:$0x1] %vm812_vm3, %v3173_v21 }
 0x2d4   : > { %v3175_v38 = vpop.permute.xlu0 %3174  ;;  %3882 = vrot.lane.b32.xlu1 %v13737_v27, %s13280_s17 }
 0x2d5   : > { %3237 = vst.msk [vmem:[#allocation3 + $0xe0] sm:$0x1] %vm812_vm3, %v3175_v38 }
 0x2d6   : > { %3884 = vrot.lane.b32.xlu0 %v13743_v30, %s13280_s17  ;;  %v3177_v52 = vpop.permute.xlu1 %3176 }
 0x2d7   : > { %3238 = vst.msk [vmem:[#allocation3 + $0xf8] sm:$0x1] %vm812_vm3, %v3177_v52 }
 0x2d8   : > { %v3179_v39 = vpop.permute.xlu0 %3178  ;;  %3886 = vrot.lane.b32.xlu1 %v13740_v28, %s13280_s17 }
 0x2d9   : > { %3239 = vst.msk [vmem:[#allocation3 + $0x110] sm:$0x1] %vm812_vm3, %v3179_v39 }
 0x2da   : > { %3888 = vrot.lane.b32.xlu0 %v13746_v29, %s13280_s17  ;;  %v3181_v43 = vpop.permute.xlu1 %3180 }
 0x2db   : > { %3240 = vst.msk [vmem:[#allocation3 + $0x128] sm:$0x1] %vm812_vm3, %v3181_v43 }
 0x2dc   : > { %v3183_v44 = vpop.permute.xlu0 %3182  ;;  %3890 = vrot.lane.b32.xlu1 %v13749_v31, %s13280_s17 }
 0x2dd   : > { %3241 = vst.msk [vmem:[#allocation3 + $0x140] sm:$0x1] %vm812_vm3, %v3183_v44 }
 0x2de   : > { %3892 = vrot.lane.b32.xlu0 %v13752_v34, %s13280_s17  ;;  %v3185_v56 = vpop.permute.xlu1 %3184  ;;  %s13288_s17 = smov 126  }
 0x2df   : > { %3242 = vst.msk [vmem:[#allocation3 + $0x158] sm:$0x1] %vm812_vm3, %v3185_v56 }
 0x2e0   : > { %v3187_v14 = vpop.permute.xlu0 %3186  ;;  %4191 = vrot.lane.b32.xlu1 %v13562_v1, %s13281_s18 }
 0x2e1   : > { %3243 = vst.msk [vmem:[#allocation3 + $0x170] sm:$0x1] %vm812_vm3, %v3187_v14 }
 0x2e2   : > { %4193 = vrot.lane.b32.xlu0 %v13568_v3, %s13281_s18  ;;  %v3189_v15 = vpop.permute.xlu1 %3188 }
 0x2e3   : > { %3244 = vst.msk [vmem:[#allocation3 + $0x188] sm:$0x1] %vm812_vm3, %v3189_v15 }
 0x2e4   : > { %v3191_v20 = vpop.permute.xlu0 %3190  ;;  %4195 = vrot.lane.b32.xlu1 %v13571_v4, %s13281_s18 }
 0x2e5   : > { %3245 = vst.msk [vmem:[#allocation3 + $0x1a0] sm:$0x1] %vm812_vm3, %v3191_v20 }
 0x2e6   : > { %4197 = vrot.lane.b32.xlu0 %v13577_v7, %s13281_s18  ;;  %v3193_v22 = vpop.permute.xlu1 %3192 }
 0x2e7   : > { %3246 = vst.msk [vmem:[#allocation3 + $0x1b8] sm:$0x1] %vm812_vm3, %v3193_v22 }
 0x2e8   : > { %v3195_v46 = vpop.permute.xlu0 %3194  ;;  %4199 = vrot.lane.b32.xlu1 %v13574_v5, %s13281_s18 }
 0x2e9   : > { %3247 = vst.msk [vmem:[#allocation3 + $0x1d0] sm:$0x1] %vm812_vm3, %v3195_v46 }
 0x2ea   : > { %4201 = vrot.lane.b32.xlu0 %v13580_v8, %s13281_s18  ;;  %v3197_v32 = vpop.permute.xlu1 %3196 }
 0x2eb   : > { %3248 = vst.msk [vmem:[#allocation3 + $0x1e8] sm:$0x1] %vm812_vm3, %v3197_v32 }
 0x2ec   : > { %v3199_v35 = vpop.permute.xlu0 %3198  ;;  %4203 = vrot.lane.b32.xlu1 %v13583_v9, %s13281_s18 }
 0x2ed   : > { %3249 = vst.msk [vmem:[#allocation3 + $0x200] sm:$0x1] %vm812_vm3, %v3199_v35 }
 0x2ee   : > { %4205 = vrot.lane.b32.xlu0 %v13586_v10, %s13281_s18  ;;  %v3201_v37 = vpop.permute.xlu1 %3200 }
 0x2ef   : > { %3250 = vst.msk [vmem:[#allocation3 + $0x218] sm:$0x1] %vm812_vm3, %v3201_v37 }
 0x2f0   : > { %v3203_v48 = vpop.permute.xlu0 %3202  ;;  %4207 = vrot.lane.b32.xlu1 %v13636_v57, %s13281_s18 }
 0x2f1   : > { %3251 = vst.msk [vmem:[#allocation3 + $0x230] sm:$0x1] %vm812_vm3, %v3203_v48 }
 0x2f2   : > { %4209 = vrot.lane.b32.xlu0 %v13642_v60, %s13281_s18  ;;  %v3502_v54 = vpop.permute.xlu1 %3501 }
 0x2f3   : > { %3573 = vst.msk [vmem:[#allocation3 + $0x9] sm:$0x1] %vm812_vm3, %v3502_v54 }
 0x2f4   : > { %v3504_v23 = vpop.permute.xlu0 %3503  ;;  %4211 = vrot.lane.b32.xlu1 %v13645_v61, %s13281_s18 }
 0x2f5   : > { %3574 = vst.msk [vmem:[#allocation3 + $0x21] sm:$0x1] %vm812_vm3, %v3504_v23 }
 0x2f6   : > { %4213 = vrot.lane.b32.xlu0 %v13651_v63, %s13281_s18  ;;  %v3506_v16 = vpop.permute.xlu1 %3505 }
 0x2f7   : > { %3575 = vst.msk [vmem:[#allocation3 + $0x39] sm:$0x1] %vm812_vm3, %v3506_v16 }
 0x2f8   : > { %v3508_v24 = vpop.permute.xlu0 %3507  ;;  %4215 = vrot.lane.b32.xlu1 %v13648_v62, %s13281_s18 }
 0x2f9   : > { %3576 = vst.msk [vmem:[#allocation3 + $0x51] sm:$0x1] %vm812_vm3, %v3508_v24 }
 0x2fa   : > { %4217 = vrot.lane.b32.xlu0 %v13654_v11, %s13281_s18  ;;  %v3510_v45 = vpop.permute.xlu1 %3509 }
 0x2fb   : > { %3577 = vst.msk [vmem:[#allocation3 + $0x69] sm:$0x1] %vm812_vm3, %v3510_v45 }
 0x2fc   : > { %v3512_v58 = vpop.permute.xlu0 %3511  ;;  %4219 = vrot.lane.b32.xlu1 %v13657_v12, %s13281_s18 }
 0x2fd   : > { %3578 = vst.msk [vmem:[#allocation3 + $0x81] sm:$0x1] %vm812_vm3, %v3512_v58 }
 0x2fe   : > { %4221 = vrot.lane.b32.xlu0 %v13660_v13, %s13281_s18  ;;  %v3514_v2 = vpop.permute.xlu1 %3513 }
 0x2ff   : > { %3579 = vst.msk [vmem:[#allocation3 + $0x99] sm:$0x1] %vm812_vm3, %v3514_v2 }
 0x300   : > { %v3516_v33 = vpop.permute.xlu0 %3515  ;;  %4223 = vrot.lane.b32.xlu1 %v13726_v25, %s13281_s18 }
 0x301   : > { %3580 = vst.msk [vmem:[#allocation3 + $0xb1] sm:$0x1] %vm812_vm3, %v3516_v33 }
 0x302   : > { %4225 = vrot.lane.b32.xlu0 %v13734_v26, %s13281_s18  ;;  %v3518_v40 = vpop.permute.xlu1 %3517 }
 0x303   : > { %3581 = vst.msk [vmem:[#allocation3 + $0xc9] sm:$0x1] %vm812_vm3, %v3518_v40 }
 0x304   : > { %v3520_v41 = vpop.permute.xlu0 %3519  ;;  %4227 = vrot.lane.b32.xlu1 %v13737_v27, %s13281_s18 }
 0x305   : > { %3582 = vst.msk [vmem:[#allocation3 + $0xe1] sm:$0x1] %vm812_vm3, %v3520_v41 }
 0x306   : > { %4229 = vrot.lane.b32.xlu0 %v13743_v30, %s13281_s18  ;;  %v3522_v49 = vpop.permute.xlu1 %3521 }
 0x307   : > { %3583 = vst.msk [vmem:[#allocation3 + $0xf9] sm:$0x1] %vm812_vm3, %v3522_v49 }
 0x308   : > { %v3524_v42 = vpop.permute.xlu0 %3523  ;;  %4231 = vrot.lane.b32.xlu1 %v13740_v28, %s13281_s18 }
 0x309   : > { %3584 = vst.msk [vmem:[#allocation3 + $0x111] sm:$0x1] %vm812_vm3, %v3524_v42 }
 0x30a   : > { %4233 = vrot.lane.b32.xlu0 %v13746_v29, %s13281_s18  ;;  %v3526_v50 = vpop.permute.xlu1 %3525 }
 0x30b   : > { %3585 = vst.msk [vmem:[#allocation3 + $0x129] sm:$0x1] %vm812_vm3, %v3526_v50 }
 0x30c   : > { %v3528_v51 = vpop.permute.xlu0 %3527  ;;  %4235 = vrot.lane.b32.xlu1 %v13749_v31, %s13281_s18 }
 0x30d   : > { %3586 = vst.msk [vmem:[#allocation3 + $0x141] sm:$0x1] %vm812_vm3, %v3528_v51 }
 0x30e   : > { %4237 = vrot.lane.b32.xlu0 %v13752_v34, %s13281_s18  ;;  %v3530_v59 = vpop.permute.xlu1 %3529 }
 0x30f   : > { %3587 = vst.msk [vmem:[#allocation3 + $0x159] sm:$0x1] %vm812_vm3, %v3530_v59 }
 0x310   : > { %v3532_v36 = vpop.permute.xlu0 %3531  ;;  %4536 = vrot.lane.b32.xlu1 %v13562_v1, %s13282_s19 }
 0x311   : > { %3588 = vst.msk [vmem:[#allocation3 + $0x171] sm:$0x1] %vm812_vm3, %v3532_v36 }
 0x312   : > { %4538 = vrot.lane.b32.xlu0 %v13568_v3, %s13282_s19  ;;  %v3534_v47 = vpop.permute.xlu1 %3533 }
 0x313   : > { %3589 = vst.msk [vmem:[#allocation3 + $0x189] sm:$0x1] %vm812_vm3, %v3534_v47 }
 0x314   : > { %v3536_v53 = vpop.permute.xlu0 %3535  ;;  %4540 = vrot.lane.b32.xlu1 %v13571_v4, %s13282_s19 }
 0x315   : > { %3590 = vst.msk [vmem:[#allocation3 + $0x1a1] sm:$0x1] %vm812_vm3, %v3536_v53 }
 0x316   : > { %4542 = vrot.lane.b32.xlu0 %v13577_v7, %s13282_s19  ;;  %v3538_v17 = vpop.permute.xlu1 %3537 }
 0x317   : > { %3591 = vst.msk [vmem:[#allocation3 + $0x1b9] sm:$0x1] %vm812_vm3, %v3538_v17 }
 0x318   : > { %v3540_v55 = vpop.permute.xlu0 %3539  ;;  %4544 = vrot.lane.b32.xlu1 %v13574_v5, %s13282_s19 }
 0x319   : > { %3592 = vst.msk [vmem:[#allocation3 + $0x1d1] sm:$0x1] %vm812_vm3, %v3540_v55 }
 0x31a   : > { %4546 = vrot.lane.b32.xlu0 %v13580_v8, %s13282_s19  ;;  %v3542_v18 = vpop.permute.xlu1 %3541 }
 0x31b   : > { %3593 = vst.msk [vmem:[#allocation3 + $0x1e9] sm:$0x1] %vm812_vm3, %v3542_v18 }
 0x31c   : > { %v3544_v19 = vpop.permute.xlu0 %3543  ;;  %4548 = vrot.lane.b32.xlu1 %v13583_v9, %s13282_s19 }
 0x31d   : > { %3594 = vst.msk [vmem:[#allocation3 + $0x201] sm:$0x1] %vm812_vm3, %v3544_v19 }
 0x31e   : > { %4550 = vrot.lane.b32.xlu0 %v13586_v10, %s13282_s19  ;;  %v3546_v21 = vpop.permute.xlu1 %3545 }
 0x31f   : > { %3595 = vst.msk [vmem:[#allocation3 + $0x219] sm:$0x1] %vm812_vm3, %v3546_v21 }
 0x320   : > { %v3548_v38 = vpop.permute.xlu0 %3547  ;;  %4552 = vrot.lane.b32.xlu1 %v13636_v57, %s13282_s19 }
 0x321   : > { %3596 = vst.msk [vmem:[#allocation3 + $0x231] sm:$0x1] %vm812_vm3, %v3548_v38 }
 0x322   : > { %4554 = vrot.lane.b32.xlu0 %v13642_v60, %s13282_s19  ;;  %v3847_v52 = vpop.permute.xlu1 %3846 }
 0x323   : > { %3918 = vst.msk [vmem:[#allocation3 + $0xa] sm:$0x1] %vm812_vm3, %v3847_v52 }
 0x324   : > { %v3849_v39 = vpop.permute.xlu0 %3848  ;;  %4556 = vrot.lane.b32.xlu1 %v13645_v61, %s13282_s19 }
 0x325   : > { %3919 = vst.msk [vmem:[#allocation3 + $0x22] sm:$0x1] %vm812_vm3, %v3849_v39 }
 0x326   : > { %4558 = vrot.lane.b32.xlu0 %v13651_v63, %s13282_s19  ;;  %v3851_v43 = vpop.permute.xlu1 %3850 }
 0x327   : > { %3920 = vst.msk [vmem:[#allocation3 + $0x3a] sm:$0x1] %vm812_vm3, %v3851_v43 }
 0x328   : > { %v3853_v44 = vpop.permute.xlu0 %3852  ;;  %4560 = vrot.lane.b32.xlu1 %v13648_v62, %s13282_s19 }
 0x329   : > { %3921 = vst.msk [vmem:[#allocation3 + $0x52] sm:$0x1] %vm812_vm3, %v3853_v44 }
 0x32a   : > { %4562 = vrot.lane.b32.xlu0 %v13654_v11, %s13282_s19  ;;  %v3855_v56 = vpop.permute.xlu1 %3854 }
 0x32b   : > { %3922 = vst.msk [vmem:[#allocation3 + $0x6a] sm:$0x1] %vm812_vm3, %v3855_v56 }
 0x32c   : > { %v3857_v14 = vpop.permute.xlu0 %3856  ;;  %4564 = vrot.lane.b32.xlu1 %v13657_v12, %s13282_s19 }
 0x32d   : > { %3923 = vst.msk [vmem:[#allocation3 + $0x82] sm:$0x1] %vm812_vm3, %v3857_v14 }
 0x32e   : > { %4566 = vrot.lane.b32.xlu0 %v13660_v13, %s13282_s19  ;;  %v3859_v15 = vpop.permute.xlu1 %3858 }
 0x32f   : > { %3924 = vst.msk [vmem:[#allocation3 + $0x9a] sm:$0x1] %vm812_vm3, %v3859_v15 }
 0x330   : > { %v3861_v20 = vpop.permute.xlu0 %3860  ;;  %4568 = vrot.lane.b32.xlu1 %v13726_v25, %s13282_s19 }
 0x331   : > { %3925 = vst.msk [vmem:[#allocation3 + $0xb2] sm:$0x1] %vm812_vm3, %v3861_v20 }
 0x332   : > { %4570 = vrot.lane.b32.xlu0 %v13734_v26, %s13282_s19  ;;  %v3863_v22 = vpop.permute.xlu1 %3862 }
 0x333   : > { %3926 = vst.msk [vmem:[#allocation3 + $0xca] sm:$0x1] %vm812_vm3, %v3863_v22 }
 0x334   : > { %v3865_v46 = vpop.permute.xlu0 %3864  ;;  %4572 = vrot.lane.b32.xlu1 %v13737_v27, %s13282_s19 }
 0x335   : > { %3927 = vst.msk [vmem:[#allocation3 + $0xe2] sm:$0x1] %vm812_vm3, %v3865_v46 }
 0x336   : > { %4574 = vrot.lane.b32.xlu0 %v13743_v30, %s13282_s19  ;;  %v3867_v32 = vpop.permute.xlu1 %3866 }
 0x337   : > { %3928 = vst.msk [vmem:[#allocation3 + $0xfa] sm:$0x1] %vm812_vm3, %v3867_v32 }
 0x338   : > { %v3869_v35 = vpop.permute.xlu0 %3868  ;;  %4576 = vrot.lane.b32.xlu1 %v13740_v28, %s13282_s19 }
 0x339   : > { %3929 = vst.msk [vmem:[#allocation3 + $0x112] sm:$0x1] %vm812_vm3, %v3869_v35 }
 0x33a   : > { %4578 = vrot.lane.b32.xlu0 %v13746_v29, %s13282_s19  ;;  %v3871_v37 = vpop.permute.xlu1 %3870 }
 0x33b   : > { %3930 = vst.msk [vmem:[#allocation3 + $0x12a] sm:$0x1] %vm812_vm3, %v3871_v37 }
 0x33c   : > { %v3873_v48 = vpop.permute.xlu0 %3872  ;;  %4580 = vrot.lane.b32.xlu1 %v13749_v31, %s13282_s19 }
 0x33d   : > { %3931 = vst.msk [vmem:[#allocation3 + $0x142] sm:$0x1] %vm812_vm3, %v3873_v48 }
 0x33e   : > { %4582 = vrot.lane.b32.xlu0 %v13752_v34, %s13282_s19  ;;  %v3875_v54 = vpop.permute.xlu1 %3874 }
 0x33f   : > { %3932 = vst.msk [vmem:[#allocation3 + $0x15a] sm:$0x1] %vm812_vm3, %v3875_v54 }
 0x340   : > { %v3877_v23 = vpop.permute.xlu0 %3876  ;;  %4881 = vrot.lane.b32.xlu1 %v13562_v1, %s13283_s20 }
 0x341   : > { %3933 = vst.msk [vmem:[#allocation3 + $0x172] sm:$0x1] %vm812_vm3, %v3877_v23 }
 0x342   : > { %4883 = vrot.lane.b32.xlu0 %v13568_v3, %s13283_s20  ;;  %v3879_v16 = vpop.permute.xlu1 %3878 }
 0x343   : > { %3934 = vst.msk [vmem:[#allocation3 + $0x18a] sm:$0x1] %vm812_vm3, %v3879_v16 }
 0x344   : > { %v3881_v24 = vpop.permute.xlu0 %3880  ;;  %4885 = vrot.lane.b32.xlu1 %v13571_v4, %s13283_s20 }
 0x345   : > { %3935 = vst.msk [vmem:[#allocation3 + $0x1a2] sm:$0x1] %vm812_vm3, %v3881_v24 }
 0x346   : > { %4887 = vrot.lane.b32.xlu0 %v13577_v7, %s13283_s20  ;;  %v3883_v45 = vpop.permute.xlu1 %3882 }
 0x347   : > { %3936 = vst.msk [vmem:[#allocation3 + $0x1ba] sm:$0x1] %vm812_vm3, %v3883_v45 }
 0x348   : > { %v3885_v58 = vpop.permute.xlu0 %3884  ;;  %4889 = vrot.lane.b32.xlu1 %v13574_v5, %s13283_s20 }
 0x349   : > { %3937 = vst.msk [vmem:[#allocation3 + $0x1d2] sm:$0x1] %vm812_vm3, %v3885_v58 }
 0x34a   : > { %4891 = vrot.lane.b32.xlu0 %v13580_v8, %s13283_s20  ;;  %v3887_v2 = vpop.permute.xlu1 %3886 }
 0x34b   : > { %3938 = vst.msk [vmem:[#allocation3 + $0x1ea] sm:$0x1] %vm812_vm3, %v3887_v2 }
 0x34c   : > { %v3889_v33 = vpop.permute.xlu0 %3888  ;;  %4893 = vrot.lane.b32.xlu1 %v13583_v9, %s13283_s20 }
 0x34d   : > { %3939 = vst.msk [vmem:[#allocation3 + $0x202] sm:$0x1] %vm812_vm3, %v3889_v33 }
 0x34e   : > { %4895 = vrot.lane.b32.xlu0 %v13586_v10, %s13283_s20  ;;  %v3891_v40 = vpop.permute.xlu1 %3890 }
 0x34f   : > { %3940 = vst.msk [vmem:[#allocation3 + $0x21a] sm:$0x1] %vm812_vm3, %v3891_v40 }
 0x350   : > { %v3893_v41 = vpop.permute.xlu0 %3892  ;;  %4897 = vrot.lane.b32.xlu1 %v13636_v57, %s13283_s20 }
 0x351   : > { %3941 = vst.msk [vmem:[#allocation3 + $0x232] sm:$0x1] %vm812_vm3, %v3893_v41 }
 0x352   : > { %4899 = vrot.lane.b32.xlu0 %v13642_v60, %s13283_s20  ;;  %v4192_v49 = vpop.permute.xlu1 %4191 }
 0x353   : > { %4263 = vst.msk [vmem:[#allocation3 + $0xb] sm:$0x1] %vm812_vm3, %v4192_v49 }
 0x354   : > { %v4194_v42 = vpop.permute.xlu0 %4193  ;;  %4901 = vrot.lane.b32.xlu1 %v13645_v61, %s13283_s20 }
 0x355   : > { %4264 = vst.msk [vmem:[#allocation3 + $0x23] sm:$0x1] %vm812_vm3, %v4194_v42 }
 0x356   : > { %4903 = vrot.lane.b32.xlu0 %v13651_v63, %s13283_s20  ;;  %v4196_v50 = vpop.permute.xlu1 %4195 }
 0x357   : > { %4265 = vst.msk [vmem:[#allocation3 + $0x3b] sm:$0x1] %vm812_vm3, %v4196_v50 }
 0x358   : > { %v4198_v51 = vpop.permute.xlu0 %4197  ;;  %4905 = vrot.lane.b32.xlu1 %v13648_v62, %s13283_s20 }
 0x359   : > { %4266 = vst.msk [vmem:[#allocation3 + $0x53] sm:$0x1] %vm812_vm3, %v4198_v51 }
 0x35a   : > { %4907 = vrot.lane.b32.xlu0 %v13654_v11, %s13283_s20  ;;  %v4200_v59 = vpop.permute.xlu1 %4199 }
 0x35b   : > { %4267 = vst.msk [vmem:[#allocation3 + $0x6b] sm:$0x1] %vm812_vm3, %v4200_v59 }
 0x35c   : > { %v4202_v36 = vpop.permute.xlu0 %4201  ;;  %4909 = vrot.lane.b32.xlu1 %v13657_v12, %s13283_s20 }
 0x35d   : > { %4268 = vst.msk [vmem:[#allocation3 + $0x83] sm:$0x1] %vm812_vm3, %v4202_v36 }
 0x35e   : > { %4911 = vrot.lane.b32.xlu0 %v13660_v13, %s13283_s20  ;;  %v4204_v47 = vpop.permute.xlu1 %4203 }
 0x35f   : > { %4269 = vst.msk [vmem:[#allocation3 + $0x9b] sm:$0x1] %vm812_vm3, %v4204_v47 }
 0x360   : > { %v4206_v53 = vpop.permute.xlu0 %4205  ;;  %4913 = vrot.lane.b32.xlu1 %v13726_v25, %s13283_s20 }
 0x361   : > { %4270 = vst.msk [vmem:[#allocation3 + $0xb3] sm:$0x1] %vm812_vm3, %v4206_v53 }
 0x362   : > { %4915 = vrot.lane.b32.xlu0 %v13734_v26, %s13283_s20  ;;  %v4208_v17 = vpop.permute.xlu1 %4207 }
 0x363   : > { %4271 = vst.msk [vmem:[#allocation3 + $0xcb] sm:$0x1] %vm812_vm3, %v4208_v17 }
 0x364   : > { %v4210_v55 = vpop.permute.xlu0 %4209  ;;  %4917 = vrot.lane.b32.xlu1 %v13737_v27, %s13283_s20 }
 0x365   : > { %4272 = vst.msk [vmem:[#allocation3 + $0xe3] sm:$0x1] %vm812_vm3, %v4210_v55 }
 0x366   : > { %4919 = vrot.lane.b32.xlu0 %v13743_v30, %s13283_s20  ;;  %v4212_v18 = vpop.permute.xlu1 %4211 }
 0x367   : > { %4273 = vst.msk [vmem:[#allocation3 + $0xfb] sm:$0x1] %vm812_vm3, %v4212_v18 }
 0x368   : > { %v4214_v19 = vpop.permute.xlu0 %4213  ;;  %4921 = vrot.lane.b32.xlu1 %v13740_v28, %s13283_s20 }
 0x369   : > { %4274 = vst.msk [vmem:[#allocation3 + $0x113] sm:$0x1] %vm812_vm3, %v4214_v19 }
 0x36a   : > { %4923 = vrot.lane.b32.xlu0 %v13746_v29, %s13283_s20  ;;  %v4216_v21 = vpop.permute.xlu1 %4215 }
 0x36b   : > { %4275 = vst.msk [vmem:[#allocation3 + $0x12b] sm:$0x1] %vm812_vm3, %v4216_v21 }
 0x36c   : > { %v4218_v38 = vpop.permute.xlu0 %4217  ;;  %4925 = vrot.lane.b32.xlu1 %v13749_v31, %s13283_s20 }
 0x36d   : > { %4276 = vst.msk [vmem:[#allocation3 + $0x143] sm:$0x1] %vm812_vm3, %v4218_v38 }
 0x36e   : > { %4927 = vrot.lane.b32.xlu0 %v13752_v34, %s13283_s20  ;;  %v4220_v52 = vpop.permute.xlu1 %4219 }
 0x36f   : > { %4277 = vst.msk [vmem:[#allocation3 + $0x15b] sm:$0x1] %vm812_vm3, %v4220_v52 }
 0x370   : > { %v4222_v39 = vpop.permute.xlu0 %4221  ;;  %5226 = vrot.lane.b32.xlu1 %v13562_v1, %s13284_s21 }
 0x371   : > { %4278 = vst.msk [vmem:[#allocation3 + $0x173] sm:$0x1] %vm812_vm3, %v4222_v39 }
 0x372   : > { %5228 = vrot.lane.b32.xlu0 %v13568_v3, %s13284_s21  ;;  %v4224_v43 = vpop.permute.xlu1 %4223 }
 0x373   : > { %4279 = vst.msk [vmem:[#allocation3 + $0x18b] sm:$0x1] %vm812_vm3, %v4224_v43 }
 0x374   : > { %v4226_v44 = vpop.permute.xlu0 %4225  ;;  %5230 = vrot.lane.b32.xlu1 %v13571_v4, %s13284_s21 }
 0x375   : > { %4280 = vst.msk [vmem:[#allocation3 + $0x1a3] sm:$0x1] %vm812_vm3, %v4226_v44 }
 0x376   : > { %5232 = vrot.lane.b32.xlu0 %v13577_v7, %s13284_s21  ;;  %v4228_v56 = vpop.permute.xlu1 %4227 }
 0x377   : > { %4281 = vst.msk [vmem:[#allocation3 + $0x1bb] sm:$0x1] %vm812_vm3, %v4228_v56 }
 0x378   : > { %v4230_v14 = vpop.permute.xlu0 %4229  ;;  %5234 = vrot.lane.b32.xlu1 %v13574_v5, %s13284_s21 }
 0x379   : > { %4282 = vst.msk [vmem:[#allocation3 + $0x1d3] sm:$0x1] %vm812_vm3, %v4230_v14 }
 0x37a   : > { %5236 = vrot.lane.b32.xlu0 %v13580_v8, %s13284_s21  ;;  %v4232_v15 = vpop.permute.xlu1 %4231 }
 0x37b   : > { %4283 = vst.msk [vmem:[#allocation3 + $0x1eb] sm:$0x1] %vm812_vm3, %v4232_v15 }
 0x37c   : > { %v4234_v20 = vpop.permute.xlu0 %4233  ;;  %5238 = vrot.lane.b32.xlu1 %v13583_v9, %s13284_s21 }
 0x37d   : > { %4284 = vst.msk [vmem:[#allocation3 + $0x203] sm:$0x1] %vm812_vm3, %v4234_v20 }
 0x37e   : > { %5240 = vrot.lane.b32.xlu0 %v13586_v10, %s13284_s21  ;;  %v4236_v22 = vpop.permute.xlu1 %4235 }
 0x37f   : > { %4285 = vst.msk [vmem:[#allocation3 + $0x21b] sm:$0x1] %vm812_vm3, %v4236_v22 }
 0x380   : > { %v4238_v46 = vpop.permute.xlu0 %4237  ;;  %5242 = vrot.lane.b32.xlu1 %v13636_v57, %s13284_s21 }
 0x381   : > { %4286 = vst.msk [vmem:[#allocation3 + $0x233] sm:$0x1] %vm812_vm3, %v4238_v46 }
 0x382   : > { %5244 = vrot.lane.b32.xlu0 %v13642_v60, %s13284_s21  ;;  %v4537_v32 = vpop.permute.xlu1 %4536 }
 0x383   : > { %4608 = vst.msk [vmem:[#allocation3 + $0xc] sm:$0x1] %vm812_vm3, %v4537_v32 }
 0x384   : > { %v4539_v35 = vpop.permute.xlu0 %4538  ;;  %5246 = vrot.lane.b32.xlu1 %v13645_v61, %s13284_s21 }
 0x385   : > { %4609 = vst.msk [vmem:[#allocation3 + $0x24] sm:$0x1] %vm812_vm3, %v4539_v35 }
 0x386   : > { %5248 = vrot.lane.b32.xlu0 %v13651_v63, %s13284_s21  ;;  %v4541_v37 = vpop.permute.xlu1 %4540 }
 0x387   : > { %4610 = vst.msk [vmem:[#allocation3 + $0x3c] sm:$0x1] %vm812_vm3, %v4541_v37 }
 0x388   : > { %v4543_v48 = vpop.permute.xlu0 %4542  ;;  %5250 = vrot.lane.b32.xlu1 %v13648_v62, %s13284_s21 }
 0x389   : > { %4611 = vst.msk [vmem:[#allocation3 + $0x54] sm:$0x1] %vm812_vm3, %v4543_v48 }
 0x38a   : > { %5252 = vrot.lane.b32.xlu0 %v13654_v11, %s13284_s21  ;;  %v4545_v54 = vpop.permute.xlu1 %4544 }
 0x38b   : > { %4612 = vst.msk [vmem:[#allocation3 + $0x6c] sm:$0x1] %vm812_vm3, %v4545_v54 }
 0x38c   : > { %v4547_v23 = vpop.permute.xlu0 %4546  ;;  %5254 = vrot.lane.b32.xlu1 %v13657_v12, %s13284_s21 }
 0x38d   : > { %4613 = vst.msk [vmem:[#allocation3 + $0x84] sm:$0x1] %vm812_vm3, %v4547_v23  ;;  %v12592_v23 = vld [vmem:[%s20018_s3 + $0x3] ss:$0 sm:$0xff] }
 0x38e   : > { %5256 = vrot.lane.b32.xlu0 %v13660_v13, %s13284_s21  ;;  %v4549_v16 = vpop.permute.xlu1 %4548 }
 0x38f   : > { %4614 = vst.msk [vmem:[#allocation3 + $0x9c] sm:$0x1] %vm812_vm3, %v4549_v16 }
 0x390   : > { %v4551_v24 = vpop.permute.xlu0 %4550  ;;  %5258 = vrot.lane.b32.xlu1 %v13726_v25, %s13284_s21 }
 0x391   : > { %4615 = vst.msk [vmem:[#allocation3 + $0xb4] sm:$0x1] %vm812_vm3, %v4551_v24  ;;  %v12593_v24 = vld [vmem:[%s20018_s3 + $0x4] ss:$0 sm:$0xff] }
 0x392   : > { %5260 = vrot.lane.b32.xlu0 %v13734_v26, %s13284_s21  ;;  %v4553_v45 = vpop.permute.xlu1 %4552 }
 0x393   : > { %4616 = vst.msk [vmem:[#allocation3 + $0xcc] sm:$0x1] %vm812_vm3, %v4553_v45 }
 0x394   : > { %v4555_v58 = vpop.permute.xlu0 %4554  ;;  %5262 = vrot.lane.b32.xlu1 %v13737_v27, %s13284_s21 }
 0x395   : > { %4617 = vst.msk [vmem:[#allocation3 + $0xe4] sm:$0x1] %vm812_vm3, %v4555_v58  ;;  %v12594_v58 = vld [vmem:[%s20018_s3 + $0x5] ss:$0 sm:$0xff] }
 0x396   : > { %5264 = vrot.lane.b32.xlu0 %v13743_v30, %s13284_s21  ;;  %v4557_v2 = vpop.permute.xlu1 %4556 }
 0x397   : > { %4618 = vst.msk [vmem:[#allocation3 + $0xfc] sm:$0x1] %vm812_vm3, %v4557_v2 }
 0x398   : > { %v4559_v33 = vpop.permute.xlu0 %4558  ;;  %5266 = vrot.lane.b32.xlu1 %v13740_v28, %s13284_s21 }
 0x399   : > { %4619 = vst.msk [vmem:[#allocation3 + $0x114] sm:$0x1] %vm812_vm3, %v4559_v33  ;;  %v12595_v33 = vld [vmem:[%s20018_s3 + $0x6] ss:$0 sm:$0xff] }
 0x39a   : > { %5268 = vrot.lane.b32.xlu0 %v13746_v29, %s13284_s21  ;;  %v4561_v40 = vpop.permute.xlu1 %4560 }
 0x39b   : > { %4620 = vst.msk [vmem:[#allocation3 + $0x12c] sm:$0x1] %vm812_vm3, %v4561_v40 }
 0x39c   : > { %v4563_v41 = vpop.permute.xlu0 %4562  ;;  %5270 = vrot.lane.b32.xlu1 %v13749_v31, %s13284_s21 }
 0x39d   : > { %4621 = vst.msk [vmem:[#allocation3 + $0x144] sm:$0x1] %vm812_vm3, %v4563_v41  ;;  %v12596_v41 = vld [vmem:[%s20018_s3 + $0x7] ss:$0 sm:$0xff] }
 0x39e   : > { %5272 = vrot.lane.b32.xlu0 %v13752_v34, %s13284_s21  ;;  %v4565_v49 = vpop.permute.xlu1 %4564 }
 0x39f   : > { %4622 = vst.msk [vmem:[#allocation3 + $0x15c] sm:$0x1] %vm812_vm3, %v4565_v49 }
 0x3a0   : > { %v4567_v42 = vpop.permute.xlu0 %4566  ;;  %5571 = vrot.lane.b32.xlu1 %v13562_v1, %s13285_s22 }
 0x3a1   : > { %4623 = vst.msk [vmem:[#allocation3 + $0x174] sm:$0x1] %vm812_vm3, %v4567_v42  ;;  %v12597_v42 = vld [vmem:[%s20018_s3 + $0x8] ss:$0 sm:$0xff] }
 0x3a2   : > { %5573 = vrot.lane.b32.xlu0 %v13568_v3, %s13285_s22  ;;  %v4569_v50 = vpop.permute.xlu1 %4568 }
 0x3a3   : > { %4624 = vst.msk [vmem:[#allocation3 + $0x18c] sm:$0x1] %vm812_vm3, %v4569_v50 }
 0x3a4   : > { %v4571_v51 = vpop.permute.xlu0 %4570  ;;  %5575 = vrot.lane.b32.xlu1 %v13571_v4, %s13285_s22 }
 0x3a5   : > { %4625 = vst.msk [vmem:[#allocation3 + $0x1a4] sm:$0x1] %vm812_vm3, %v4571_v51  ;;  %v12598_v51 = vld [vmem:[%s20018_s3 + $0x9] ss:$0 sm:$0xff] }
 0x3a6   : > { %5577 = vrot.lane.b32.xlu0 %v13577_v7, %s13285_s22  ;;  %v4573_v59 = vpop.permute.xlu1 %4572 }
 0x3a7   : > { %4626 = vst.msk [vmem:[#allocation3 + $0x1bc] sm:$0x1] %vm812_vm3, %v4573_v59 }
 0x3a8   : > { %v4575_v36 = vpop.permute.xlu0 %4574  ;;  %5579 = vrot.lane.b32.xlu1 %v13574_v5, %s13285_s22 }
 0x3a9   : > { %4627 = vst.msk [vmem:[#allocation3 + $0x1d4] sm:$0x1] %vm812_vm3, %v4575_v36  ;;  %v12599_v36 = vld [vmem:[%s20018_s3 + $0xa] ss:$0 sm:$0xff] }
 0x3aa   : > { %5581 = vrot.lane.b32.xlu0 %v13580_v8, %s13285_s22  ;;  %v4577_v47 = vpop.permute.xlu1 %4576 }
 0x3ab   : > { %4628 = vst.msk [vmem:[#allocation3 + $0x1ec] sm:$0x1] %vm812_vm3, %v4577_v47 }
 0x3ac   : > { %v4579_v53 = vpop.permute.xlu0 %4578  ;;  %5583 = vrot.lane.b32.xlu1 %v13583_v9, %s13285_s22 }
 0x3ad   : > { %4629 = vst.msk [vmem:[#allocation3 + $0x204] sm:$0x1] %vm812_vm3, %v4579_v53  ;;  %v12600_v53 = vld [vmem:[%s20018_s3 + $0xb] ss:$0 sm:$0xff] }
 0x3ae   : > { %5585 = vrot.lane.b32.xlu0 %v13586_v10, %s13285_s22  ;;  %v4581_v17 = vpop.permute.xlu1 %4580 }
 0x3af   : > { %4630 = vst.msk [vmem:[#allocation3 + $0x21c] sm:$0x1] %vm812_vm3, %v4581_v17 }
 0x3b0   : > { %v4583_v55 = vpop.permute.xlu0 %4582  ;;  %5587 = vrot.lane.b32.xlu1 %v13636_v57, %s13285_s22 }
 0x3b1   : > { %4631 = vst.msk [vmem:[#allocation3 + $0x234] sm:$0x1] %vm812_vm3, %v4583_v55  ;;  %v12601_v55 = vld [vmem:[%s20018_s3 + $0xc] ss:$0 sm:$0xff] }
 0x3b2   : > { %5589 = vrot.lane.b32.xlu0 %v13642_v60, %s13285_s22  ;;  %v4882_v18 = vpop.permute.xlu1 %4881 }
 0x3b3   : > { %4953 = vst.msk [vmem:[#allocation3 + $0xd] sm:$0x1] %vm812_vm3, %v4882_v18 }
 0x3b4   : > { %v4884_v19 = vpop.permute.xlu0 %4883  ;;  %5591 = vrot.lane.b32.xlu1 %v13645_v61, %s13285_s22 }
 0x3b5   : > { %4954 = vst.msk [vmem:[#allocation3 + $0x25] sm:$0x1] %vm812_vm3, %v4884_v19  ;;  %v12602_v19 = vld [vmem:[%s20018_s3 + $0xd] ss:$0 sm:$0xff] }
 0x3b6   : > { %5593 = vrot.lane.b32.xlu0 %v13651_v63, %s13285_s22  ;;  %v4886_v21 = vpop.permute.xlu1 %4885 }
 0x3b7   : > { %4955 = vst.msk [vmem:[#allocation3 + $0x3d] sm:$0x1] %vm812_vm3, %v4886_v21 }
 0x3b8   : > { %v4888_v38 = vpop.permute.xlu0 %4887  ;;  %5595 = vrot.lane.b32.xlu1 %v13648_v62, %s13285_s22 }
 0x3b9   : > { %4956 = vst.msk [vmem:[#allocation3 + $0x55] sm:$0x1] %vm812_vm3, %v4888_v38  ;;  %v12603_v38 = vld [vmem:[%s20018_s3 + $0xe] ss:$0 sm:$0xff] }
 0x3ba   : > { %5597 = vrot.lane.b32.xlu0 %v13654_v11, %s13285_s22  ;;  %v4890_v52 = vpop.permute.xlu1 %4889 }
 0x3bb   : > { %4957 = vst.msk [vmem:[#allocation3 + $0x6d] sm:$0x1] %vm812_vm3, %v4890_v52 }
 0x3bc   : > { %v4892_v39 = vpop.permute.xlu0 %4891  ;;  %5599 = vrot.lane.b32.xlu1 %v13657_v12, %s13285_s22 }
 0x3bd   : > { %4958 = vst.msk [vmem:[#allocation3 + $0x85] sm:$0x1] %vm812_vm3, %v4892_v39  ;;  %v12604_v39 = vld [vmem:[%s20018_s3 + $0xf] ss:$0 sm:$0xff] }
 0x3be   : > { %5601 = vrot.lane.b32.xlu0 %v13660_v13, %s13285_s22  ;;  %v4894_v43 = vpop.permute.xlu1 %4893 }
 0x3bf   : > { %4959 = vst.msk [vmem:[#allocation3 + $0x9d] sm:$0x1] %vm812_vm3, %v4894_v43 }
 0x3c0   : > { %v4896_v44 = vpop.permute.xlu0 %4895  ;;  %5603 = vrot.lane.b32.xlu1 %v13726_v25, %s13285_s22 }
 0x3c1   : > { %4960 = vst.msk [vmem:[#allocation3 + $0xb5] sm:$0x1] %vm812_vm3, %v4896_v44  ;;  %v12605_v44 = vld [vmem:[%s20018_s3 + $0x10] ss:$0 sm:$0xff] }
 0x3c2   : > { %5605 = vrot.lane.b32.xlu0 %v13734_v26, %s13285_s22  ;;  %v4898_v56 = vpop.permute.xlu1 %4897 }
 0x3c3   : > { %4961 = vst.msk [vmem:[#allocation3 + $0xcd] sm:$0x1] %vm812_vm3, %v4898_v56 }
 0x3c4   : > { %v4900_v14 = vpop.permute.xlu0 %4899  ;;  %5607 = vrot.lane.b32.xlu1 %v13737_v27, %s13285_s22 }
 0x3c5   : > { %4962 = vst.msk [vmem:[#allocation3 + $0xe5] sm:$0x1] %vm812_vm3, %v4900_v14  ;;  %v12606_v14 = vld [vmem:[%s20018_s3 + $0x11] ss:$0 sm:$0xff] }
 0x3c6   : > { %5609 = vrot.lane.b32.xlu0 %v13743_v30, %s13285_s22  ;;  %v4902_v15 = vpop.permute.xlu1 %4901 }
 0x3c7   : > { %4963 = vst.msk [vmem:[#allocation3 + $0xfd] sm:$0x1] %vm812_vm3, %v4902_v15 }
 0x3c8   : > { %v4904_v20 = vpop.permute.xlu0 %4903  ;;  %5611 = vrot.lane.b32.xlu1 %v13740_v28, %s13285_s22 }
 0x3c9   : > { %4964 = vst.msk [vmem:[#allocation3 + $0x115] sm:$0x1] %vm812_vm3, %v4904_v20  ;;  %v12607_v20 = vld [vmem:[%s20018_s3 + $0x12] ss:$0 sm:$0xff] }
 0x3ca   : > { %5613 = vrot.lane.b32.xlu0 %v13746_v29, %s13285_s22  ;;  %v4906_v0 = vpop.permute.xlu1 %4905 }
 0x3cb   : > { %4965 = vst.msk [vmem:[#allocation3 + $0x12d] sm:$0x1] %vm812_vm3, %v4906_v0 }
 0x3cc   : > { %v4908_v22 = vpop.permute.xlu0 %4907  ;;  %5615 = vrot.lane.b32.xlu1 %v13749_v31, %s13285_s22 }
 0x3cd   : > { %4966 = vst.msk [vmem:[#allocation3 + $0x145] sm:$0x1] %vm812_vm3, %v4908_v22  ;;  %v12608_v22 = vld [vmem:[%s20018_s3 + $0x13] ss:$0 sm:$0xff] }
 0x3ce   : > { %5617 = vrot.lane.b32.xlu0 %v13752_v34, %s13285_s22  ;;  %v4910_v46 = vpop.permute.xlu1 %4909  ;;  %s269_s22 = sand.u32 1, %s13266_s25  }
 0x3cf   : > { %4967 = vst.msk [vmem:[#allocation3 + $0x15d] sm:$0x1] %vm812_vm3, %v4910_v46 }
 0x3d0   : > { %v4912_v32 = vpop.permute.xlu0 %4911  ;;  %5916 = vrot.lane.b32.xlu1 %v13562_v1, %s13286_s29 }
 0x3d1   : > { %4968 = vst.msk [vmem:[#allocation3 + $0x175] sm:$0x1] %vm812_vm3, %v4912_v32  ;;  %v12609_v32 = vld [vmem:[%s20018_s3 + $0x14] ss:$0 sm:$0xff] }
 0x3d2   : > { %5918 = vrot.lane.b32.xlu0 %v13568_v3, %s13286_s29  ;;  %v4914_v35 = vpop.permute.xlu1 %4913 }
 0x3d3   : > { %4969 = vst.msk [vmem:[#allocation3 + $0x18d] sm:$0x1] %vm812_vm3, %v4914_v35 }
 0x3d4   : > { %v4916_v37 = vpop.permute.xlu0 %4915  ;;  %5920 = vrot.lane.b32.xlu1 %v13571_v4, %s13286_s29 }
 0x3d5   : > { %4970 = vst.msk [vmem:[#allocation3 + $0x1a5] sm:$0x1] %vm812_vm3, %v4916_v37  ;;  %v12610_v37 = vld [vmem:[%s20018_s3 + $0x15] ss:$0 sm:$0xff] }
 0x3d6   : > { %5922 = vrot.lane.b32.xlu0 %v13577_v7, %s13286_s29  ;;  %v4918_v48 = vpop.permute.xlu1 %4917 }
 0x3d7   : > { %4971 = vst.msk [vmem:[#allocation3 + $0x1bd] sm:$0x1] %vm812_vm3, %v4918_v48 }
 0x3d8   : > { %v4920_v1 = vpop.permute.xlu0 %4919  ;;  %5924 = vrot.lane.b32.xlu1 %v13574_v5, %s13286_s29 }
 0x3d9   : > { %4972 = vst.msk [vmem:[#allocation3 + $0x1d5] sm:$0x1] %vm812_vm3, %v4920_v1  ;;  %v12611_v1 = vld [vmem:[%s20018_s3 + $0x16] ss:$0 sm:$0xff] }
 0x3da   : > { %5926 = vrot.lane.b32.xlu0 %v13580_v8, %s13286_s29  ;;  %v4922_v3 = vpop.permute.xlu1 %4921 }
 0x3db   : > { %4973 = vst.msk [vmem:[#allocation3 + $0x1ed] sm:$0x1] %vm812_vm3, %v4922_v3 }
 0x3dc   : > { %v4924_v4 = vpop.permute.xlu0 %4923  ;;  %5928 = vrot.lane.b32.xlu1 %v13583_v9, %s13286_s29 }
 0x3dd   : > { %4974 = vst.msk [vmem:[#allocation3 + $0x205] sm:$0x1] %vm812_vm3, %v4924_v4  ;;  %v12612_v4 = vld [vmem:[%s20018_s3 + $0x17] ss:$0 sm:$0xff] }
 0x3de   : > { %5930 = vrot.lane.b32.xlu0 %v13586_v10, %s13286_s29  ;;  %v4926_v7 = vpop.permute.xlu1 %4925 }
 0x3df   : > { %4975 = vst.msk [vmem:[#allocation3 + $0x21d] sm:$0x1] %vm812_vm3, %v4926_v7 }
 0x3e0   : > { %v4928_v5 = vpop.permute.xlu0 %4927  ;;  %5932 = vrot.lane.b32.xlu1 %v13636_v57, %s13286_s29 }
 0x3e1   : > { %4976 = vst.msk [vmem:[#allocation3 + $0x235] sm:$0x1] %vm812_vm3, %v4928_v5  ;;  %v12637_v5 = vld [vmem:[%s20018_s3 + $0x18] ss:$0 sm:$0xff] }
 0x3e2   : > { %5934 = vrot.lane.b32.xlu0 %v13642_v60, %s13286_s29  ;;  %v5227_v8 = vpop.permute.xlu1 %5226 }
 0x3e3   : > { %5298 = vst.msk [vmem:[#allocation3 + $0xe] sm:$0x1] %vm812_vm3, %v5227_v8 }
 0x3e4   : > { %v5229_v9 = vpop.permute.xlu0 %5228  ;;  %5936 = vrot.lane.b32.xlu1 %v13645_v61, %s13286_s29 }
 0x3e5   : > { %5299 = vst.msk [vmem:[#allocation3 + $0x26] sm:$0x1] %vm812_vm3, %v5229_v9  ;;  %v12638_v9 = vld [vmem:[%s20018_s3 + $0x19] ss:$0 sm:$0xff] }
 0x3e6   : > { %5938 = vrot.lane.b32.xlu0 %v13651_v63, %s13286_s29  ;;  %v5231_v10 = vpop.permute.xlu1 %5230 }
 0x3e7   : > { %5300 = vst.msk [vmem:[#allocation3 + $0x3e] sm:$0x1] %vm812_vm3, %v5231_v10 }
 0x3e8   : > { %v5233_v57 = vpop.permute.xlu0 %5232  ;;  %5940 = vrot.lane.b32.xlu1 %v13648_v62, %s13286_s29 }
 0x3e9   : > { %5301 = vst.msk [vmem:[#allocation3 + $0x56] sm:$0x1] %vm812_vm3, %v5233_v57  ;;  %v12639_v57 = vld [vmem:[%s20018_s3 + $0x1a] ss:$0 sm:$0xff] }
 0x3ea   : > { %5942 = vrot.lane.b32.xlu0 %v13654_v11, %s13286_s29  ;;  %v5235_v60 = vpop.permute.xlu1 %5234 }
 0x3eb   : > { %5302 = vst.msk [vmem:[#allocation3 + $0x6e] sm:$0x1] %vm812_vm3, %v5235_v60 }
 0x3ec   : > { %v5237_v61 = vpop.permute.xlu0 %5236  ;;  %5944 = vrot.lane.b32.xlu1 %v13657_v12, %s13286_s29 }
 0x3ed   : > { %5303 = vst.msk [vmem:[#allocation3 + $0x86] sm:$0x1] %vm812_vm3, %v5237_v61  ;;  %v12640_v61 = vld [vmem:[%s20018_s3 + $0x1b] ss:$0 sm:$0xff] }
 0x3ee   : > { %5946 = vrot.lane.b32.xlu0 %v13660_v13, %s13286_s29  ;;  %v5239_v63 = vpop.permute.xlu1 %5238 }
 0x3ef   : > { %5304 = vst.msk [vmem:[#allocation3 + $0x9e] sm:$0x1] %vm812_vm3, %v5239_v63 }
 0x3f0   : > { %v5241_v62 = vpop.permute.xlu0 %5240  ;;  %5948 = vrot.lane.b32.xlu1 %v13726_v25, %s13286_s29 }
 0x3f1   : > { %5305 = vst.msk [vmem:[#allocation3 + $0xb6] sm:$0x1] %vm812_vm3, %v5241_v62  ;;  %v12641_v62 = vld [vmem:[%s20018_s3 + $0x1c] ss:$0 sm:$0xff] }
 0x3f2   : > { %5950 = vrot.lane.b32.xlu0 %v13734_v26, %s13286_s29  ;;  %v5243_v11 = vpop.permute.xlu1 %5242 }
 0x3f3   : > { %5306 = vst.msk [vmem:[#allocation3 + $0xce] sm:$0x1] %vm812_vm3, %v5243_v11 }
 0x3f4   : > { %v5245_v12 = vpop.permute.xlu0 %5244  ;;  %5952 = vrot.lane.b32.xlu1 %v13737_v27, %s13286_s29 }
 0x3f5   : > { %5307 = vst.msk [vmem:[#allocation3 + $0xe6] sm:$0x1] %vm812_vm3, %v5245_v12  ;;  %v12642_v12 = vld [vmem:[%s20018_s3 + $0x1d] ss:$0 sm:$0xff] }
 0x3f6   : > { %5954 = vrot.lane.b32.xlu0 %v13743_v30, %s13286_s29  ;;  %v5247_v13 = vpop.permute.xlu1 %5246 }
 0x3f7   : > { %5308 = vst.msk [vmem:[#allocation3 + $0xfe] sm:$0x1] %vm812_vm3, %v5247_v13 }
 0x3f8   : > { %v5249_v25 = vpop.permute.xlu0 %5248  ;;  %5956 = vrot.lane.b32.xlu1 %v13740_v28, %s13286_s29  ;;  %v12589_v28 = vld [vmem:[%s20018_s3] ss:$0 sm:$0xff] }
 0x3f9   : > { %5309 = vst.msk [vmem:[#allocation3 + $0x116] sm:$0x1] %vm812_vm3, %v5249_v25  ;;  %v12643_v25 = vld [vmem:[%s20018_s3 + $0x1e] ss:$0 sm:$0xff] }
 0x3fa   : > { %5958 = vrot.lane.b32.xlu0 %v13746_v29, %s13286_s29  ;;  %v5251_v26 = vpop.permute.xlu1 %5250  ;;  %v12590_v29 = vld [vmem:[%s20018_s3 + $0x1] ss:$0 sm:$0xff] }
 0x3fb   : > { %5310 = vst.msk [vmem:[#allocation3 + $0x12e] sm:$0x1] %vm812_vm3, %v5251_v26 }
 0x3fc   : > { %v5253_v27 = vpop.permute.xlu0 %5252  ;;  %5960 = vrot.lane.b32.xlu1 %v13749_v31, %s13286_s29  ;;  %v12591_v31 = vld [vmem:[%s20018_s3 + $0x2] ss:$0 sm:$0xff] }
 0x3fd   : > { %5311 = vst.msk [vmem:[#allocation3 + $0x146] sm:$0x1] %vm812_vm3, %v5253_v27  ;;  %v12644_v27 = vld [vmem:[%s20018_s3 + $0x1f] ss:$0 sm:$0xff] }
 0x3fe   : > { %5962 = vrot.lane.b32.xlu0 %v13752_v34, %s13286_s29  ;;  %v5255_v30 = vpop.permute.xlu1 %5254  ;;  %s12581_s29 = sshll.u32 %s269_s22, 3 }
 0x3ff   : > { %5312 = vst.msk [vmem:[#allocation3 + $0x15e] sm:$0x1] %vm812_vm3, %v5255_v30  ;;  %v12645_v30 = vld [vmem:[%s20018_s3 + $0x20] ss:$0 sm:$0xff] }
 0x400   : > { %v5257_v54 = vpop.permute.xlu0 %5256  ;;  %6205 = vperm.xlu1 %13093, %v12589_v28  }
 0x401   : > { %5313 = vst.msk [vmem:[#allocation3 + $0x176] sm:$0x1] %vm812_vm3, %v5257_v54  ;;  %v12646_v54 = vld [vmem:[%s20018_s3 + $0x21] ss:$0 sm:$0xff] }
 0x402   : > { %6209 = vperm.xlu0 %13092, %v12590_v29   ;;  %v5259_v34 = vpop.permute.xlu1 %5258 }
 0x403   : > { %5314 = vst.msk [vmem:[#allocation3 + $0x18e] sm:$0x1] %vm812_vm3, %v5259_v34  ;;  %v12647_v34 = vld [vmem:[%s20018_s3 + $0x22] ss:$0 sm:$0xff] }
 0x404   : > { %v5261_v16 = vpop.permute.xlu0 %5260  ;;  %6213 = vperm.xlu1 %13093, %v12591_v31  }
 0x405   : > { %5315 = vst.msk [vmem:[#allocation3 + $0x1a6] sm:$0x1] %vm812_vm3, %v5261_v16  ;;  %v12648_v16 = vld [vmem:[%s20018_s3 + $0x23] ss:$0 sm:$0xff] }
 0x406   : > { %6217 = vperm.xlu0 %13092, %v12592_v23   ;;  %v5263_v45 = vpop.permute.xlu1 %5262 }
 0x407   : > { %5316 = vst.msk [vmem:[#allocation3 + $0x1be] sm:$0x1] %vm812_vm3, %v5263_v45  ;;  %v12649_v45 = vld [vmem:[%s20018_s3 + $0x24] ss:$0 sm:$0xff] }
 0x408   : > { %v5265_v2 = vpop.permute.xlu0 %5264  ;;  %6221 = vperm.xlu1 %13093, %v12593_v24  }
 0x409   : > { %5317 = vst.msk [vmem:[#allocation3 + $0x1d6] sm:$0x1] %vm812_vm3, %v5265_v2  ;;  %v12650_v2 = vld [vmem:[%s20018_s3 + $0x25] ss:$0 sm:$0xff] }
 0x40a   : > { %6225 = vperm.xlu0 %13092, %v12594_v58   ;;  %v5267_v40 = vpop.permute.xlu1 %5266 }
 0x40b   : > { %5318 = vst.msk [vmem:[#allocation3 + $0x1ee] sm:$0x1] %vm812_vm3, %v5267_v40  ;;  %v12651_v40 = vld [vmem:[%s20018_s3 + $0x26] ss:$0 sm:$0xff] }
 0x40c   : > { %v5269_v49 = vpop.permute.xlu0 %5268  ;;  %6229 = vperm.xlu1 %13093, %v12595_v33  }
 0x40d   : > { %5319 = vst.msk [vmem:[#allocation3 + $0x206] sm:$0x1] %vm812_vm3, %v5269_v49  ;;  %v12652_v49 = vld [vmem:[%s20018_s3 + $0x27] ss:$0 sm:$0xff] }
 0x40e   : > { %6233 = vperm.xlu0 %13092, %v12596_v41   ;;  %v5271_v50 = vpop.permute.xlu1 %5270 }
 0x40f   : > { %5320 = vst.msk [vmem:[#allocation3 + $0x21e] sm:$0x1] %vm812_vm3, %v5271_v50  ;;  %v12653_v50 = vld [vmem:[%s20018_s3 + $0x28] ss:$0 sm:$0xff] }
 0x410   : > { %v5273_v59 = vpop.permute.xlu0 %5272  ;;  %6237 = vperm.xlu1 %13093, %v12597_v42  }
 0x411   : > { %5321 = vst.msk [vmem:[#allocation3 + $0x236] sm:$0x1] %vm812_vm3, %v5273_v59  ;;  %v12654_v59 = vld [vmem:[%s20018_s3 + $0x29] ss:$0 sm:$0xff] }
 0x412   : > { %6241 = vperm.xlu0 %13092, %v12598_v51   ;;  %v5572_v47 = vpop.permute.xlu1 %5571 }
 0x413   : > { %5643 = vst.msk [vmem:[#allocation3 + $0xf] sm:$0x1] %vm812_vm3, %v5572_v47  ;;  %v12655_v47 = vld [vmem:[%s20018_s3 + $0x2a] ss:$0 sm:$0xff] }
 0x414   : > { %v5574_v17 = vpop.permute.xlu0 %5573  ;;  %6245 = vperm.xlu1 %13093, %v12599_v36  }
 0x415   : > { %5644 = vst.msk [vmem:[#allocation3 + $0x27] sm:$0x1] %vm812_vm3, %v5574_v17  ;;  %v12656_v17 = vld [vmem:[%s20018_s3 + $0x2b] ss:$0 sm:$0xff] }
 0x416   : > { %6249 = vperm.xlu0 %13092, %v12600_v53   ;;  %v5576_v18 = vpop.permute.xlu1 %5575 }
 0x417   : > { %5645 = vst.msk [vmem:[#allocation3 + $0x3f] sm:$0x1] %vm812_vm3, %v5576_v18  ;;  %v12657_v18 = vld [vmem:[%s20018_s3 + $0x2c] ss:$0 sm:$0xff] }
 0x418   : > { %v5578_v21 = vpop.permute.xlu0 %5577  ;;  %6253 = vperm.xlu1 %13093, %v12601_v55  }
 0x419   : > { %5646 = vst.msk [vmem:[#allocation3 + $0x57] sm:$0x1] %vm812_vm3, %v5578_v21  ;;  %v12658_v21 = vld [vmem:[%s20018_s3 + $0x2d] ss:$0 sm:$0xff] }
 0x41a   : > { %6257 = vperm.xlu0 %13092, %v12602_v19   ;;  %v5580_v52 = vpop.permute.xlu1 %5579 }
 0x41b   : > { %5647 = vst.msk [vmem:[#allocation3 + $0x6f] sm:$0x1] %vm812_vm3, %v5580_v52  ;;  %v12659_v52 = vld [vmem:[%s20018_s3 + $0x2e] ss:$0 sm:$0xff] }
 0x41c   : > { %v5582_v43 = vpop.permute.xlu0 %5581  ;;  %6261 = vperm.xlu1 %13093, %v12603_v38  }
 0x41d   : > { %5648 = vst.msk [vmem:[#allocation3 + $0x87] sm:$0x1] %vm812_vm3, %v5582_v43  ;;  %v12660_v43 = vld [vmem:[%s20018_s3 + $0x2f] ss:$0 sm:$0xff] }
 0x41e   : > { %6265 = vperm.xlu0 %13092, %v12604_v39   ;;  %v5584_v56 = vpop.permute.xlu1 %5583 }
 0x41f   : > { %5649 = vst.msk [vmem:[#allocation3 + $0x9f] sm:$0x1] %vm812_vm3, %v5584_v56 }
 0x420   : > { %v5586_v15 = vpop.permute.xlu0 %5585  ;;  %6269 = vperm.xlu1 %13093, %v12605_v44  }
 0x421   : > { %5650 = vst.msk [vmem:[#allocation3 + $0xb7] sm:$0x1] %vm812_vm3, %v5586_v15 }
 0x422   : > { %6273 = vperm.xlu0 %13092, %v12606_v14   ;;  %v5588_v0 = vpop.permute.xlu1 %5587 }
 0x423   : > { %5651 = vst.msk [vmem:[#allocation3 + $0xcf] sm:$0x1] %vm812_vm3, %v5588_v0 }
 0x424   : > { %v5590_v46 = vpop.permute.xlu0 %5589  ;;  %6277 = vperm.xlu1 %13093, %v12607_v20  }
 0x425   : > { %5652 = vst.msk [vmem:[#allocation3 + $0xe7] sm:$0x1] %vm812_vm3, %v5590_v46 }
 0x426   : > { %6281 = vperm.xlu0 %13092, %v12608_v22   ;;  %v5592_v35 = vpop.permute.xlu1 %5591 }
 0x427   : > { %5653 = vst.msk [vmem:[#allocation3 + $0xff] sm:$0x1] %vm812_vm3, %v5592_v35 }
 0x428   : > { %v5594_v48 = vpop.permute.xlu0 %5593  ;;  %6285 = vperm.xlu1 %13093, %v12609_v32  }
 0x429   : > { %5654 = vst.msk [vmem:[#allocation3 + $0x117] sm:$0x1] %vm812_vm3, %v5594_v48 }
 0x42a   : > { %6289 = vperm.xlu0 %13092, %v12610_v37   ;;  %v5596_v3 = vpop.permute.xlu1 %5595 }
 0x42b   : > { %5655 = vst.msk [vmem:[#allocation3 + $0x12f] sm:$0x1] %vm812_vm3, %v5596_v3 }
 0x42c   : > { %v5598_v7 = vpop.permute.xlu0 %5597  ;;  %6293 = vperm.xlu1 %13093, %v12611_v1  }
 0x42d   : > { %5656 = vst.msk [vmem:[#allocation3 + $0x147] sm:$0x1] %vm812_vm3, %v5598_v7 }
 0x42e   : > { %6297 = vperm.xlu0 %13092, %v12612_v4   ;;  %v5600_v8 = vpop.permute.xlu1 %5599 }
 0x42f   : > { %5657 = vst.msk [vmem:[#allocation3 + $0x15f] sm:$0x1] %vm812_vm3, %v5600_v8 }
 0x430   : > { %v5602_v10 = vpop.permute.xlu0 %5601  ;;  %6542 = vperm.xlu1 %13093, %v12637_v5  }
 0x431   : > { %5658 = vst.msk [vmem:[#allocation3 + $0x177] sm:$0x1] %vm812_vm3, %v5602_v10 }
 0x432   : > { %6546 = vperm.xlu0 %13092, %v12638_v9   ;;  %v5604_v60 = vpop.permute.xlu1 %5603 }
 0x433   : > { %5659 = vst.msk [vmem:[#allocation3 + $0x18f] sm:$0x1] %vm812_vm3, %v5604_v60 }
 0x434   : > { %v5606_v63 = vpop.permute.xlu0 %5605  ;;  %6550 = vperm.xlu1 %13093, %v12639_v57  }
 0x435   : > { %5660 = vst.msk [vmem:[#allocation3 + $0x1a7] sm:$0x1] %vm812_vm3, %v5606_v63 }
 0x436   : > { %6554 = vperm.xlu0 %13092, %v12640_v61   ;;  %v5608_v11 = vpop.permute.xlu1 %5607 }
 0x437   : > { %5661 = vst.msk [vmem:[#allocation3 + $0x1bf] sm:$0x1] %vm812_vm3, %v5608_v11 }
 0x438   : > { %v5610_v13 = vpop.permute.xlu0 %5609  ;;  %6558 = vperm.xlu1 %13093, %v12641_v62  }
 0x439   : > { %5662 = vst.msk [vmem:[#allocation3 + $0x1d7] sm:$0x1] %vm812_vm3, %v5610_v13 }
 0x43a   : > { %6562 = vperm.xlu0 %13092, %v12642_v12   ;;  %v5612_v26 = vpop.permute.xlu1 %5611 }
 0x43b   : > { %5663 = vst.msk [vmem:[#allocation3 + $0x1ef] sm:$0x1] %vm812_vm3, %v5612_v26 }
 0x43c   : > { %v5614_v28 = vpop.permute.xlu0 %5613  ;;  %6566 = vperm.xlu1 %13093, %v12643_v25  }
 0x43d   : > { %5664 = vst.msk [vmem:[#allocation3 + $0x207] sm:$0x1] %vm812_vm3, %v5614_v28 }
 0x43e   : > { %6570 = vperm.xlu0 %13092, %v12644_v27   ;;  %v5616_v29 = vpop.permute.xlu1 %5615 }
 0x43f   : > { %5665 = vst.msk [vmem:[#allocation3 + $0x21f] sm:$0x1] %vm812_vm3, %v5616_v29 }
 0x440   : > { %v5618_v31 = vpop.permute.xlu0 %5617  ;;  %6574 = vperm.xlu1 %13093, %v12645_v30  }
 0x441   : > { %5666 = vst.msk [vmem:[#allocation3 + $0x237] sm:$0x1] %vm812_vm3, %v5618_v31  ;;  %v15114_v31 = vld [vmem:[#allocation3] sm:$0xff] }
 0x442   : > { %6578 = vperm.xlu0 %13092, %v12646_v54   ;;  %v5917_v23 = vpop.permute.xlu1 %5916 }
 0x443   : > { %5988 = vst.msk [vmem:[#allocation3 + $0x10] sm:$0x1] %vm812_vm3, %v5917_v23 }
 0x444   : > { %v5919_v24 = vpop.permute.xlu0 %5918  ;;  %6582 = vperm.xlu1 %13093, %v12647_v34   ;;  %v15116_v34 = vld [vmem:[#allocation3 + $0x8] sm:$0xff] }
 0x445   : > { %5989 = vst.msk [vmem:[#allocation3 + $0x28] sm:$0x1] %vm812_vm3, %v5919_v24 }
 0x446   : > { %6586 = vperm.xlu0 %13092, %v12648_v16   ;;  %v5921_v58 = vpop.permute.xlu1 %5920 }
 0x447   : > { %5990 = vst.msk [vmem:[#allocation3 + $0x40] sm:$0x1] %vm812_vm3, %v5921_v58  ;;  %v15122_v58 = vld [vmem:[#allocation3 + $0x18] sm:$0xff] }
 0x448   : > { %v5923_v33 = vpop.permute.xlu0 %5922  ;;  %6590 = vperm.xlu1 %13093, %v12649_v45  }
 0x449   : > { %5991 = vst.msk [vmem:[#allocation3 + $0x58] sm:$0x1] %vm812_vm3, %v5923_v33 }
 0x44a   : > { %6594 = vperm.xlu0 %13092, %v12650_v2   ;;  %v5925_v41 = vpop.permute.xlu1 %5924  ;;  %v15124_v2 = vld [vmem:[#allocation3 + $0x20] sm:$0xff] }
 0x44b   : > { %5992 = vst.msk [vmem:[#allocation3 + $0x70] sm:$0x1] %vm812_vm3, %v5925_v41 }
 0x44c   : > { %v5927_v42 = vpop.permute.xlu0 %5926  ;;  %6598 = vperm.xlu1 %13093, %v12651_v40  }
 0x44d   : > { %5993 = vst.msk [vmem:[#allocation3 + $0x88] sm:$0x1] %vm812_vm3, %v5927_v42  ;;  %v15132_v42 = vld [vmem:[#allocation3 + $0x38] sm:$0xff] }
 0x44e   : > { %6602 = vperm.xlu0 %13092, %v12652_v49   ;;  %v5929_v51 = vpop.permute.xlu1 %5928  ;;  %v15130_v49 = vld [vmem:[#allocation3 + $0x30] sm:$0xff] }
 0x44f   : > { %5994 = vst.msk [vmem:[#allocation3 + $0xa0] sm:$0x1] %vm812_vm3, %v5929_v51 }
 0x450   : > { %v5931_v36 = vpop.permute.xlu0 %5930  ;;  %6606 = vperm.xlu1 %13093, %v12653_v50  }
 0x451   : > { %5995 = vst.msk [vmem:[#allocation3 + $0xb8] sm:$0x1] %vm812_vm3, %v5931_v36  ;;  %v15138_v36 = vld [vmem:[#allocation3 + $0x48] sm:$0xff] }
 0x452   : > { %6610 = vperm.xlu0 %13092, %v12654_v59   ;;  %v5933_v53 = vpop.permute.xlu1 %5932 }
 0x453   : > { %5996 = vst.msk [vmem:[#allocation3 + $0xd0] sm:$0x1] %vm812_vm3, %v5933_v53 }
 0x454   : > { %v5935_v55 = vpop.permute.xlu0 %5934  ;;  %6614 = vperm.xlu1 %13093, %v12655_v47   ;;  %v15140_v47 = vld [vmem:[#allocation3 + $0x50] sm:$0xff] }
 0x455   : > { %5997 = vst.msk [vmem:[#allocation3 + $0xe8] sm:$0x1] %vm812_vm3, %v5935_v55 }
 0x456   : > { %6618 = vperm.xlu0 %13092, %v12656_v17   ;;  %v5937_v19 = vpop.permute.xlu1 %5936 }
 0x457   : > { %5998 = vst.msk [vmem:[#allocation3 + $0x100] sm:$0x1] %vm812_vm3, %v5937_v19  ;;  %v15148_v19 = vld [vmem:[#allocation3 + $0x68] sm:$0xff] }
 0x458   : > { %v5939_v38 = vpop.permute.xlu0 %5938  ;;  %6622 = vperm.xlu1 %13093, %v12657_v18   ;;  %v15146_v18 = vld [vmem:[#allocation3 + $0x60] sm:$0xff] }
 0x459   : > { %5999 = vst.msk [vmem:[#allocation3 + $0x118] sm:$0x1] %vm812_vm3, %v5939_v38 }
 0x45a   : > { %6626 = vperm.xlu0 %13092, %v12658_v21   ;;  %v5941_v39 = vpop.permute.xlu1 %5940 }
 0x45b   : > { %6000 = vst.msk [vmem:[#allocation3 + $0x130] sm:$0x1] %vm812_vm3, %v5941_v39  ;;  %v15154_v39 = vld [vmem:[#allocation3 + $0x78] sm:$0xff] }
 0x45c   : > { %v5943_v44 = vpop.permute.xlu0 %5942  ;;  %6630 = vperm.xlu1 %13093, %v12659_v52  }
 0x45d   : > { %6001 = vst.msk [vmem:[#allocation3 + $0x148] sm:$0x1] %vm812_vm3, %v5943_v44 }
 0x45e   : > { %6634 = vperm.xlu0 %13092, %v12660_v43   ;;  %v5945_v56 = vpop.permute.xlu1 %5944  ;;  %v15156_v43 = vld [vmem:[#allocation3 + $0x80] sm:$0xff] }
 0x45f   : > { %6002 = vst.msk [vmem:[#allocation3 + $0x160] sm:$0x1] %vm812_vm3, %v5945_v56 }
 0x460   : > { %v5947_v14 = vpop.permute.xlu0 %5946 }
 0x461   : > { %6003 = vst.msk [vmem:[#allocation3 + $0x178] sm:$0x1] %vm812_vm3, %v5947_v14 }
 0x462   : > { %v5949_v15 = vpop.permute.xlu1 %5948 }
 0x463   : > { %6004 = vst.msk [vmem:[#allocation3 + $0x190] sm:$0x1] %vm812_vm3, %v5949_v15  ;;  %v15162_v15 = vld [vmem:[#allocation3 + $0x90] sm:$0xff] }
 0x464   : > { %v5951_v20 = vpop.permute.xlu0 %5950 }
 0x465   : > { %6005 = vst.msk [vmem:[#allocation3 + $0x1a8] sm:$0x1] %vm812_vm3, %v5951_v20  ;;  %v15164_v20 = vld [vmem:[#allocation3 + $0x98] sm:$0xff] }
 0x466   : > { %v5953_v0 = vpop.permute.xlu1 %5952 }
 0x467   : > { %6006 = vst.msk [vmem:[#allocation3 + $0x1c0] sm:$0x1] %vm812_vm3, %v5953_v0 }
 0x468   : > { %v5955_v22 = vpop.permute.xlu0 %5954 }
 0x469   : > { %6007 = vst.msk [vmem:[#allocation3 + $0x1d8] sm:$0x1] %vm812_vm3, %v5955_v22 }
 0x46a   : > { %v5957_v46 = vpop.permute.xlu1 %5956 }
 0x46b   : > { %6008 = vst.msk [vmem:[#allocation3 + $0x1f0] sm:$0x1] %vm812_vm3, %v5957_v46 }
 0x46c   : > { %v5959_v32 = vpop.permute.xlu0 %5958 }
 0x46d   : > { %6009 = vst.msk [vmem:[#allocation3 + $0x208] sm:$0x1] %vm812_vm3, %v5959_v32  ;;  %v15170_v32 = vld [vmem:[#allocation3 + $0xa8] sm:$0xff] }
 0x46e   : > { %v5961_v35 = vpop.permute.xlu1 %5960 }
 0x46f   : > { %6010 = vst.msk [vmem:[#allocation3 + $0x220] sm:$0x1] %vm812_vm3, %v5961_v35  ;;  %v15172_v35 = vld [vmem:[#allocation3 + $0xb0] sm:$0xff] }
 0x470   : > { %v5963_v37 = vpop.permute.xlu0 %5962 }
 0x471   : > { %6011 = vst.msk [vmem:[#allocation3 + $0x238] sm:$0x1] %vm812_vm3, %v5963_v37  ;;  %vm11593_vm3 = vcmask 1048448  }
 0x47f   : > { %v15066_v48 = vpop.permute.xlu1 %6205 }
 0x481   : > { %v15068_v1 = vpop.permute.xlu0 %6209 }
 0x483   : > { %v15070_v3 = vpop.permute.xlu1 %6213 }
 0x485   : > { %v15072_v4 = vpop.permute.xlu0 %6217 }
 0x487   : > { %v15074_v7 = vpop.permute.xlu1 %6221 }
 0x488   : > { %20213 = vst [vmem:[#allocation10_spill] sm:$0xff] %v15074_v7 }
 0x489   : > { %v15076_v5 = vpop.permute.xlu0 %6225 }
 0x48a   : > { %20214 = vst [vmem:[#allocation11_spill] sm:$0xff] %v15076_v5 }
 0x48b   : > { %v15078_v8 = vpop.permute.xlu1 %6229 }
 0x48c   : > { %20215 = vst [vmem:[#allocation12_spill] sm:$0xff] %v15078_v8 }
 0x48d   : > { %v15080_v9 = vpop.permute.xlu0 %6233 }
 0x48e   : > { %20216 = vst [vmem:[#allocation13_spill] sm:$0xff] %v15080_v9 }
 0x48f   : > { %v15082_v10 = vpop.permute.xlu1 %6237 }
 0x490   : > { %20217 = vst [vmem:[#allocation14_spill] sm:$0xff] %v15082_v10 }
 0x491   : > { %v15084_v57 = vpop.permute.xlu0 %6241 }
 0x492   : > { %20218 = vst [vmem:[#allocation15_spill] sm:$0xff] %v15084_v57  ;;  %v12698_v57 = vld [vmem:[%s20018_s3 + $0x3d] ss:$0 sm:$0xff] }
 0x493   : > { %v15086_v60 = vpop.permute.xlu1 %6245 }
 0x494   : > { %20219 = vst [vmem:[#allocation16_spill] sm:$0xff] %v15086_v60  ;;  %v15298_v60 = vld [vmem:[#allocation3 + $0x228] sm:$0xff] }
 0x495   : > { %v15088_v61 = vpop.permute.xlu0 %6249 }
 0x496   : > { %20220 = vst [vmem:[#allocation17_spill] sm:$0xff] %v15088_v61 }
 0x497   : > { %v15090_v63 = vpop.permute.xlu1 %6253 }
 0x498   : > { %20221 = vst [vmem:[#allocation18_spill] sm:$0xff] %v15090_v63  ;;  %v15290_v63 = vld [vmem:[#allocation3 + $0x210] sm:$0xff] }
 0x499   : > { %v15092_v62 = vpop.permute.xlu0 %6257 }
 0x49a   : > { %20222 = vst [vmem:[#allocation19_spill] sm:$0xff] %v15092_v62 }
 0x49b   : > { %v15094_v11 = vpop.permute.xlu1 %6261 }
 0x49c   : > { %20223 = vst [vmem:[#allocation20_spill] sm:$0xff] %v15094_v11  ;;  %v15282_v11 = vld [vmem:[#allocation3 + $0x1f8] sm:$0xff] }
 0x49d   : > { %v15096_v12 = vpop.permute.xlu0 %6265 }
 0x49e   : > { %20224 = vst [vmem:[#allocation21_spill] sm:$0xff] %v15096_v12 }
 0x49f   : > { %v15098_v13 = vpop.permute.xlu1 %6269 }
 0x4a0   : > { %20225 = vst [vmem:[#allocation22_spill] sm:$0xff] %v15098_v13  ;;  %v15274_v13 = vld [vmem:[#allocation3 + $0x1e0] sm:$0xff] }
 0x4a1   : > { %v15100_v25 = vpop.permute.xlu0 %6273 }
 0x4a2   : > { %20226 = vst [vmem:[#allocation23_spill] sm:$0xff] %v15100_v25 }
 0x4a3   : > { %v15102_v26 = vpop.permute.xlu1 %6277 }
 0x4a4   : > { %20227 = vst [vmem:[#allocation24_spill] sm:$0xff] %v15102_v26  ;;  %v15266_v26 = vld [vmem:[#allocation3 + $0x1c8] sm:$0xff] }
 0x4a5   : > { %v15104_v27 = vpop.permute.xlu0 %6281 }
 0x4a6   : > { %20228 = vst [vmem:[#allocation25_spill] sm:$0xff] %v15104_v27 }
 0x4a7   : > { %v15106_v28 = vpop.permute.xlu1 %6285 }
 0x4a8   : > { %20229 = vst [vmem:[#allocation26_spill] sm:$0xff] %v15106_v28  ;;  %v15258_v28 = vld [vmem:[#allocation3 + $0x1b0] sm:$0xff] }
 0x4a9   : > { %v15108_v30 = vpop.permute.xlu0 %6289 }
 0x4aa   : > { %20230 = vst [vmem:[#allocation27_spill] sm:$0xff] %v15108_v30 }
 0x4ab   : > { %v15110_v29 = vpop.permute.xlu1 %6293 }
 0x4ac   : > { %20231 = vst [vmem:[#allocation28_spill] sm:$0xff] %v15110_v29  ;;  %v15250_v29 = vld [vmem:[#allocation3 + $0x198] sm:$0xff] }
 0x4ad   : > { %v15112_v54 = vpop.permute.xlu0 %6297 }
 0x4ae   : > { %20232 = vst [vmem:[#allocation29_spill] sm:$0xff] %v15112_v54 }
 0x4af   : > { %v6543_v23 = vpop.permute.xlu1 %6542 }
 0x4b0   : > { %v6637_v16 = vmul.f32 %v6543_v23, %v15114_v31  ;;  %v6638_v24 = vmul.f32 %v6543_v23, %v15116_v34 }
 0x4b1   : > { %v6547_v45 = vpop.permute.xlu0 %6546 }
 0x4b2   : > { %6733 = vrot.lane.b32.xlu1 %v6637_v16, %s13287_s16  ;;  %6735 = vrot.lane.b32.xlu0 %v6638_v24, %s13287_s16  ;;  %v6639_v33 = vmul.f32 %v6547_v45, %v15122_v58  ;;  %v6640_v40 = vmul.f32 %v6547_v45, %v15124_v2  ;;  %v15178_v24 = vld [vmem:[#allocation3 + $0xc0] sm:$0xff]  ;;  %v15180_v45 = vld [vmem:[#allocation3 + $0xc8] sm:$0xff] }
 0x4b3   : > { %v6551_v41 = vpop.permute.xlu1 %6550 }
 0x4b4   : > { %v6641_v50 = vmul.f32 %v6551_v41, %v15130_v49  ;;  %v6642_v51 = vmul.f32 %v6551_v41, %v15132_v42 }
 0x4b5   : > { %v6555_v59 = vpop.permute.xlu0 %6554 }
 0x4b6   : > { %6739 = vrot.lane.b32.xlu0 %v6640_v40, %s13287_s16  ;;  %6737 = vrot.lane.b32.xlu1 %v6639_v33, %s13287_s16  ;;  %v6643_v53 = vmul.f32 %v6555_v59, %v15138_v36  ;;  %v6644_v17 = vmul.f32 %v6555_v59, %v15140_v47 }
 0x4b7   : > { %v6559_v55 = vpop.permute.xlu1 %6558 }
 0x4b8   : > { %v6645_v21 = vmul.f32 %v6559_v55, %v15146_v18  ;;  %v6646_v38 = vmul.f32 %v6559_v55, %v15148_v19  ;;  %v15194_v55 = vld [vmem:[#allocation3 + $0xf0] sm:$0xff] }
 0x4b9   : > { %v6563_v52 = vpop.permute.xlu0 %6562 }
 0x4ba   : > { %6743 = vrot.lane.b32.xlu0 %v6642_v51, %s13287_s16  ;;  %6741 = vrot.lane.b32.xlu1 %v6641_v50, %s13287_s16  ;;  %v6647_v44 = vmul.f32 %v6563_v52, %v15154_v39  ;;  %v6648_v56 = vmul.f32 %v6563_v52, %v15156_v43  ;;  %v15186_v50 = vld [vmem:[#allocation3 + $0xd8] sm:$0xff]  ;;  %v15188_v51 = vld [vmem:[#allocation3 + $0xe0] sm:$0xff] }
 0x4bb   : > { %v6567_v14 = vpop.permute.xlu1 %6566 }
 0x4bc   : > { %v6649_v0 = vmul.f32 %v6567_v14, %v15162_v15  ;;  %v6650_v22 = vmul.f32 %v6567_v14, %v15164_v20  ;;  %v15204_v14 = vld [vmem:[#allocation3 + $0x110] sm:$0xff] }
 0x4bd   : > { %v6571_v46 = vpop.permute.xlu0 %6570 }
 0x4be   : > { %6747 = vrot.lane.b32.xlu0 %v6644_v17, %s13287_s16  ;;  %6745 = vrot.lane.b32.xlu1 %v6643_v53, %s13287_s16  ;;  %v6651_v37 = vmul.f32 %v6571_v46, %v15170_v32  ;;  %v6652_v23 = vmul.f32 %v6571_v46, %v15172_v35 }
 0x4bf   : > { %v6575_v16 = vpop.permute.xlu1 %6574 }
 0x4c0   : > { %v6653_v33 = vmul.f32 %v6575_v16, %v15178_v24  ;;  %v6654_v40 = vmul.f32 %v6575_v16, %v15180_v45 }
 0x4c1   : > { %v6579_v41 = vpop.permute.xlu0 %6578 }
 0x4c2   : > { %6751 = vrot.lane.b32.xlu0 %v6646_v38, %s13287_s16  ;;  %6749 = vrot.lane.b32.xlu1 %v6645_v21, %s13287_s16  ;;  %v6655_v59 = vmul.f32 %v6579_v41, %v15186_v50  ;;  %v6656_v53 = vmul.f32 %v6579_v41, %v15188_v51  ;;  %v15196_v21 = vld [vmem:[#allocation3 + $0xf8] sm:$0xff] }
 0x4c3   : > { %v6583_v17 = vpop.permute.xlu1 %6582  ;;  %v15218_v41 = vld [vmem:[#allocation3 + $0x138] sm:$0xff] }
 0x4c4   : > { %v6657_v38 = vmul.f32 %v6583_v17, %v15194_v55  ;;  %v6658_v52 = vmul.f32 %v6583_v17, %v15196_v21 }
 0x4c6   : > { %6755 = vrot.lane.b32.xlu0 %v6648_v56, %s13287_s16  ;;  %6753 = vrot.lane.b32.xlu1 %v6647_v44, %s13287_s16  ;;  %v6587_v44 = vpop.permute.xlu0 %6586  ;;  %v15202_v56 = vld [vmem:[#allocation3 + $0x108] sm:$0xff] }
 0x4c7   : > { %v6591_v46 = vpop.permute.xlu1 %6590 }
 0x4ca   : > { %6759 = vrot.lane.b32.xlu0 %v6650_v22, %s13287_s16  ;;  %6757 = vrot.lane.b32.xlu1 %v6649_v0, %s13287_s16  ;;  %v6659_v0 = vmul.f32 %v6587_v44, %v15202_v56  ;;  %v6660_v22 = vmul.f32 %v6587_v44, %v15204_v14  ;;  %v15228_v44 = vld [vmem:[#allocation3 + $0x158] sm:$0xff] }
 0x4ce   : > { %6763 = vrot.lane.b32.xlu0 %v6652_v23, %s13287_s16  ;;  %6761 = vrot.lane.b32.xlu1 %v6651_v37, %s13287_s16  ;;  %v15210_v37 = vld [vmem:[#allocation3 + $0x120] sm:$0xff]  ;;  %v15212_v23 = vld [vmem:[#allocation3 + $0x128] sm:$0xff] }
 0x4cf   : > { %v6661_v16 = vmul.f32 %v6591_v46, %v15210_v37 }
 0x4d2   : > { %6767 = vrot.lane.b32.xlu0 %v6654_v40, %s13287_s16  ;;  %6765 = vrot.lane.b32.xlu1 %v6653_v33, %s13287_s16  ;;  %v6662_v33 = vmul.f32 %v6591_v46, %v15212_v23  ;;  %v6595_v40 = vpop.permute.xlu0 %6594 }
 0x4d6   : > { %6771 = vrot.lane.b32.xlu0 %v6656_v53, %s13287_s16  ;;  %6769 = vrot.lane.b32.xlu1 %v6655_v59, %s13287_s16  ;;  %v15220_v59 = vld [vmem:[#allocation3 + $0x140] sm:$0xff]  ;;  %v6663_v53 = vmul.f32 %v6595_v40, %v15218_v41  ;;  %v6603_v46 = vpop.permute.xlu0 %6602 }
 0x4d7   : > { %v6664_v17 = vmul.f32 %v6595_v40, %v15220_v59 }
 0x4da   : > { %6775 = vrot.lane.b32.xlu0 %v6658_v52, %s13287_s16  ;;  %6773 = vrot.lane.b32.xlu1 %v6657_v38, %s13287_s16  ;;  %v6599_v38 = vpop.permute.xlu1 %6598  ;;  %v15226_v52 = vld [vmem:[#allocation3 + $0x150] sm:$0xff]  ;;  %v6611_v54 = vpop.permute.xlu0 %6610 }
 0x4de   : > { %6779 = vrot.lane.b32.xlu0 %v6660_v22, %s13287_s16  ;;  %6777 = vrot.lane.b32.xlu1 %v6659_v0, %s13287_s16  ;;  %v6665_v0 = vmul.f32 %v6599_v38, %v15226_v52  ;;  %v6666_v22 = vmul.f32 %v6599_v38, %v15228_v44  ;;  %v15244_v38 = vld [vmem:[#allocation3 + $0x188] sm:$0xff]  ;;  %v6619_v27 = vpop.permute.xlu0 %6618 }
 0x4e2   : > { %6783 = vrot.lane.b32.xlu0 %v6662_v33, %s13287_s16  ;;  %6781 = vrot.lane.b32.xlu1 %v6661_v16, %s13287_s16  ;;  %v15234_v16 = vld [vmem:[#allocation3 + $0x168] sm:$0xff]  ;;  %v15236_v33 = vld [vmem:[#allocation3 + $0x170] sm:$0xff]  ;;  %v6627_v12 = vpop.permute.xlu0 %6626 }
 0x4e3   : > { %v6667_v40 = vmul.f32 %v6603_v46, %v15234_v16 }
 0x4e6   : > { %6787 = vrot.lane.b32.xlu0 %v6664_v17, %s13287_s16  ;;  %6785 = vrot.lane.b32.xlu1 %v6663_v53, %s13287_s16  ;;  %v6668_v53 = vmul.f32 %v6603_v46, %v15236_v33  ;;  %v6607_v17 = vpop.permute.xlu1 %6606  ;;  %v15252_v46 = vld [vmem:[#allocation3 + $0x1a0] sm:$0xff]  ;;  %v6635_v61 = vpop.permute.xlu0 %6634 }
 0x4ea   : > { %6791 = vrot.lane.b32.xlu0 %v6666_v22, %s13287_s16  ;;  %6789 = vrot.lane.b32.xlu1 %v6665_v0, %s13287_s16  ;;  %v6669_v22 = vmul.f32 %v6607_v17, %v15242_v6  ;;  %v6670_v0 = vmul.f32 %v6607_v17, %v15244_v38  ;;  %v6615_v30 = vpop.permute.xlu1 %6614  ;;  %v15260_v17 = vld [vmem:[#allocation3 + $0x1b8] sm:$0xff] }
 0x4ee   : > { %6795 = vrot.lane.b32.xlu0 %v6668_v53, %s13287_s16  ;;  %6793 = vrot.lane.b32.xlu1 %v6667_v40, %s13287_s16  ;;  %v6671_v53 = vmul.f32 %v6611_v54, %v15250_v29  ;;  %v6672_v40 = vmul.f32 %v6611_v54, %v15252_v46  ;;  %v15268_v54 = vld [vmem:[#allocation3 + $0x1d0] sm:$0xff]  ;;  %v6623_v25 = vpop.permute.xlu1 %6622 }
 0x4f2   : > { %6799 = vrot.lane.b32.xlu0 %v6670_v0, %s13287_s16  ;;  %6797 = vrot.lane.b32.xlu1 %v6669_v22, %s13287_s16  ;;  %v6673_v0 = vmul.f32 %v6615_v30, %v15258_v28  ;;  %v6674_v22 = vmul.f32 %v6615_v30, %v15260_v17  ;;  %v15276_v30 = vld [vmem:[#allocation3 + $0x1e8] sm:$0xff]  ;;  %v6631_v62 = vpop.permute.xlu1 %6630 }
 0x4f6   : > { %6803 = vrot.lane.b32.xlu0 %v6672_v40, %s13287_s16  ;;  %6801 = vrot.lane.b32.xlu1 %v6671_v53, %s13287_s16  ;;  %v6675_v40 = vmul.f32 %v6619_v27, %v15266_v26  ;;  %v6676_v53 = vmul.f32 %v6619_v27, %v15268_v54  ;;  %v15284_v27 = vld [vmem:[#allocation3 + $0x200] sm:$0xff] }
 0x4fa   : > { %6807 = vrot.lane.b32.xlu0 %v6674_v22, %s13287_s16  ;;  %6805 = vrot.lane.b32.xlu1 %v6673_v0, %s13287_s16  ;;  %v6677_v22 = vmul.f32 %v6623_v25, %v15274_v13  ;;  %v6678_v0 = vmul.f32 %v6623_v25, %v15276_v30  ;;  %v15292_v25 = vld [vmem:[#allocation3 + $0x218] sm:$0xff] }
 0x4fe   : > { %6811 = vrot.lane.b32.xlu0 %v6676_v53, %s13287_s16  ;;  %6809 = vrot.lane.b32.xlu1 %v6675_v40, %s13287_s16  ;;  %v6679_v53 = vmul.f32 %v6627_v12, %v15282_v11  ;;  %v6680_v40 = vmul.f32 %v6627_v12, %v15284_v27  ;;  %v15300_v12 = vld [vmem:[#allocation3 + $0x230] sm:$0xff] }
 0x502   : > { %6815 = vrot.lane.b32.xlu0 %v6678_v0, %s13287_s16  ;;  %6813 = vrot.lane.b32.xlu1 %v6677_v22, %s13287_s16  ;;  %v6681_v0 = vmul.f32 %v6631_v62, %v15290_v63  ;;  %v6682_v22 = vmul.f32 %v6631_v62, %v15292_v25  ;;  %v12686_v62 = vld [vmem:[%s20018_s3 + $0x31] ss:$0 sm:$0xff] }
 0x506   : > { %6819 = vrot.lane.b32.xlu0 %v6680_v40, %s13287_s16  ;;  %6817 = vrot.lane.b32.xlu1 %v6679_v53, %s13287_s16  ;;  %v6683_v40 = vmul.f32 %v6635_v61, %v15298_v60  ;;  %v6684_v53 = vmul.f32 %v6635_v61, %v15300_v12  ;;  %v12687_v61 = vld [vmem:[%s20018_s3 + $0x32] ss:$0 sm:$0xff] }
 0x50a   : > { %6823 = vrot.lane.b32.xlu0 %v6682_v22, %s13287_s16  ;;  %6821 = vrot.lane.b32.xlu1 %v6681_v0, %s13287_s16  ;;  %v12685_v0 = vld [vmem:[%s20018_s3 + $0x30] ss:$0 sm:$0xff]  ;;  %v12688_v22 = vld [vmem:[%s20018_s3 + $0x33] ss:$0 sm:$0xff] }
 0x50e   : > { %6827 = vrot.lane.b32.xlu0 %v6684_v53, %s13287_s16  ;;  %6825 = vrot.lane.b32.xlu1 %v6683_v40, %s13287_s16  ;;  %v12690_v40 = vld [vmem:[%s20018_s3 + $0x35] ss:$0 sm:$0xff]  ;;  %v12689_v53 = vld [vmem:[%s20018_s3 + $0x34] ss:$0 sm:$0xff] }
 0x512   : > { %7075 = vperm.xlu0 %13092, %v12686_v62   ;;  %7071 = vperm.xlu1 %13093, %v12685_v0   ;;  %v12692_v62 = vld [vmem:[%s20018_s3 + $0x37] ss:$0 sm:$0xff]  ;;  %v12691_v0 = vld [vmem:[%s20018_s3 + $0x36] ss:$0 sm:$0xff] }
 0x516   : > { %7083 = vperm.xlu0 %13092, %v12688_v22   ;;  %7079 = vperm.xlu1 %13093, %v12687_v61   ;;  %v12694_v22 = vld [vmem:[%s20018_s3 + $0x39] ss:$0 sm:$0xff]  ;;  %v12693_v61 = vld [vmem:[%s20018_s3 + $0x38] ss:$0 sm:$0xff] }
 0x51a   : > { %7091 = vperm.xlu0 %13092, %v12690_v40   ;;  %7087 = vperm.xlu1 %13093, %v12689_v53   ;;  %v12696_v40 = vld [vmem:[%s20018_s3 + $0x3b] ss:$0 sm:$0xff]  ;;  %v12695_v53 = vld [vmem:[%s20018_s3 + $0x3a] ss:$0 sm:$0xff] }
 0x51e   : > { %7099 = vperm.xlu0 %13092, %v12692_v62   ;;  %7095 = vperm.xlu1 %13093, %v12691_v0  }
 0x522   : > { %7107 = vperm.xlu0 %13092, %v12694_v22   ;;  %7103 = vperm.xlu1 %13093, %v12693_v61   ;;  %v12697_v22 = vld [vmem:[%s20018_s3 + $0x3c] ss:$0 sm:$0xff] }
 0x524   : > { %v15342_v62 = vpop.permute.xlu1 %6733  ;;  %v15344_v0 = vpop.permute.xlu0 %6735 }
 0x525   : > { %20233 = vst [vmem:[#allocation30_spill] sm:$0xff] %v15342_v62  ;;  %20234 = vst [vmem:[#allocation31_spill] sm:$0xff] %v15344_v0  ;;  %v12700_v0 = vld [vmem:[%s20018_s3 + $0x3f] ss:$0 sm:$0xff] }
 0x526   : > { %7115 = vperm.xlu0 %13092, %v12696_v40   ;;  %7111 = vperm.xlu1 %13093, %v12695_v53   ;;  %v12699_v40 = vld [vmem:[%s20018_s3 + $0x3e] ss:$0 sm:$0xff] }
 0x528   : > { %v15352_v61 = vpop.permute.xlu1 %6737  ;;  %v15354_v10 = vpop.permute.xlu0 %6739 }
 0x529   : > { %20235 = vst [vmem:[#allocation32_spill] sm:$0xff] %v15352_v61  ;;  %20236 = vst [vmem:[#allocation33_spill] sm:$0xff] %v15354_v10  ;;  %v12702_v10 = vld [vmem:[%s20018_s3 + $0x41] ss:$0 sm:$0xff] }
 0x52a   : > { %7123 = vperm.xlu0 %13092, %v12698_v57   ;;  %7119 = vperm.xlu1 %13093, %v12697_v22   ;;  %v12701_v57 = vld [vmem:[%s20018_s3 + $0x40] ss:$0 sm:$0xff] }
 0x52c   : > { %v15362_v53 = vpop.permute.xlu1 %6741  ;;  %v15364_v62 = vpop.permute.xlu0 %6743 }
 0x52d   : > { %20237 = vst [vmem:[#allocation34_spill] sm:$0xff] %v15362_v53  ;;  %20238 = vst [vmem:[#allocation35_spill] sm:$0xff] %v15364_v62  ;;  %v12704_v62 = vld [vmem:[%s20018_s3 + $0x43] ss:$0 sm:$0xff] }
 0x52e   : > { %7131 = vperm.xlu0 %13092, %v12700_v0   ;;  %7127 = vperm.xlu1 %13093, %v12699_v40   ;;  %v12703_v0 = vld [vmem:[%s20018_s3 + $0x42] ss:$0 sm:$0xff] }
 0x530   : > { %v15372_v22 = vpop.permute.xlu1 %6745  ;;  %v15374_v61 = vpop.permute.xlu0 %6747 }
 0x531   : > { %20239 = vst [vmem:[#allocation36_spill] sm:$0xff] %v15372_v22  ;;  %20240 = vst [vmem:[#allocation37_spill] sm:$0xff] %v15374_v61  ;;  %v12706_v61 = vld [vmem:[%s20018_s3 + $0x45] ss:$0 sm:$0xff] }
 0x532   : > { %7139 = vperm.xlu0 %13092, %v12702_v10   ;;  %7135 = vperm.xlu1 %13093, %v12701_v57   ;;  %v12705_v10 = vld [vmem:[%s20018_s3 + $0x44] ss:$0 sm:$0xff] }
 0x534   : > { %v15382_v40 = vpop.permute.xlu1 %6749  ;;  %v15384_v53 = vpop.permute.xlu0 %6751 }
 0x535   : > { %20241 = vst [vmem:[#allocation38_spill] sm:$0xff] %v15382_v40  ;;  %20242 = vst [vmem:[#allocation39_spill] sm:$0xff] %v15384_v53  ;;  %v12708_v53 = vld [vmem:[%s20018_s3 + $0x47] ss:$0 sm:$0xff] }
 0x536   : > { %7147 = vperm.xlu0 %13092, %v12704_v62   ;;  %7143 = vperm.xlu1 %13093, %v12703_v0   ;;  %v12707_v62 = vld [vmem:[%s20018_s3 + $0x46] ss:$0 sm:$0xff] }
 0x538   : > { %v15392_v57 = vpop.permute.xlu1 %6753  ;;  %v15394_v22 = vpop.permute.xlu0 %6755 }
 0x539   : > { %20243 = vst [vmem:[#allocation40_spill] sm:$0xff] %v15392_v57  ;;  %20244 = vst [vmem:[#allocation41_spill] sm:$0xff] %v15394_v22 }
 0x53a   : > { %7155 = vperm.xlu0 %13092, %v12706_v61   ;;  %7151 = vperm.xlu1 %13093, %v12705_v10  }
 0x53c   : > { %v15402_v0 = vpop.permute.xlu1 %6757  ;;  %v15404_v40 = vpop.permute.xlu0 %6759 }
 0x53d   : > { %20245 = vst [vmem:[#allocation42_spill] sm:$0xff] %v15402_v0  ;;  %20246 = vst [vmem:[#allocation43_spill] sm:$0xff] %v15404_v40 }
 0x53e   : > { %7163 = vperm.xlu0 %13092, %v12708_v53   ;;  %7159 = vperm.xlu1 %13093, %v12707_v62  }
 0x540   : > { %v15406_v9 = vpop.permute.xlu1 %6761  ;;  %v15408_v57 = vpop.permute.xlu0 %6763 }
 0x541   : > { %20247 = vst [vmem:[#allocation44_spill] sm:$0xff] %v15406_v9  ;;  %20248 = vst [vmem:[#allocation45_spill] sm:$0xff] %v15408_v57 }
 0x544   : > { %v15410_v61 = vpop.permute.xlu1 %6765  ;;  %v15412_v10 = vpop.permute.xlu0 %6767 }
 0x545   : > { %20249 = vst [vmem:[#allocation46_spill] sm:$0xff] %v15410_v61  ;;  %20250 = vst [vmem:[#allocation47_spill] sm:$0xff] %v15412_v10 }
 0x548   : > { %v15414_v22 = vpop.permute.xlu1 %6769  ;;  %v15416_v8 = vpop.permute.xlu0 %6771 }
 0x549   : > { %20251 = vst [vmem:[#allocation48_spill] sm:$0xff] %v15414_v22  ;;  %20252 = vst [vmem:[#allocation49_spill] sm:$0xff] %v15416_v8 }
 0x54c   : > { %v15418_v5 = vpop.permute.xlu1 %6773  ;;  %v15420_v7 = vpop.permute.xlu0 %6775 }
 0x54d   : > { %20253 = vst [vmem:[#allocation50_spill] sm:$0xff] %v15418_v5  ;;  %20254 = vst [vmem:[#allocation51_spill] sm:$0xff] %v15420_v7 }
 0x550   : > { %v15422_v0 = vpop.permute.xlu1 %6777  ;;  %v15424_v53 = vpop.permute.xlu0 %6779 }
 0x551   : > { %20255 = vst [vmem:[#allocation52_spill] sm:$0xff] %v15422_v0  ;;  %20256 = vst [vmem:[#allocation53_spill] sm:$0xff] %v15424_v53 }
 0x554   : > { %v15426_v62 = vpop.permute.xlu1 %6781  ;;  %v15428_v9 = vpop.permute.xlu0 %6783 }
 0x555   : > { %20257 = vst [vmem:[#allocation54_spill] sm:$0xff] %v15426_v62  ;;  %20258 = vst [vmem:[#allocation55_spill] sm:$0xff] %v15428_v9 }
 0x558   : > { %v15430_v57 = vpop.permute.xlu1 %6785  ;;  %v15432_v61 = vpop.permute.xlu0 %6787 }
 0x559   : > { %20259 = vst [vmem:[#allocation56_spill] sm:$0xff] %v15430_v57  ;;  %20260 = vst [vmem:[#allocation57_spill] sm:$0xff] %v15432_v61 }
 0x55c   : > { %v15434_v10 = vpop.permute.xlu1 %6789  ;;  %v15436_v22 = vpop.permute.xlu0 %6791 }
 0x55d   : > { %20261 = vst [vmem:[#allocation58_spill] sm:$0xff] %v15434_v10  ;;  %20262 = vst [vmem:[#allocation59_spill] sm:$0xff] %v15436_v22 }
 0x560   : > { %v15438_v8 = vpop.permute.xlu1 %6793  ;;  %v15440_v5 = vpop.permute.xlu0 %6795 }
 0x561   : > { %20263 = vst [vmem:[#allocation60_spill] sm:$0xff] %v15438_v8  ;;  %20264 = vst [vmem:[#allocation61_spill] sm:$0xff] %v15440_v5 }
 0x564   : > { %v15442_v7 = vpop.permute.xlu1 %6797  ;;  %v15444_v0 = vpop.permute.xlu0 %6799 }
 0x565   : > { %20265 = vst [vmem:[#allocation62_spill] sm:$0xff] %v15442_v7  ;;  %20266 = vst [vmem:[#allocation63_spill] sm:$0xff] %v15444_v0 }
 0x568   : > { %v15446_v53 = vpop.permute.xlu1 %6801  ;;  %v15448_v62 = vpop.permute.xlu0 %6803 }
 0x569   : > { %20267 = vst [vmem:[#allocation64_spill] sm:$0xff] %v15446_v53  ;;  %20268 = vst [vmem:[#allocation65_spill] sm:$0xff] %v15448_v62 }
 0x56c   : > { %v15450_v9 = vpop.permute.xlu1 %6805  ;;  %v15452_v57 = vpop.permute.xlu0 %6807 }
 0x56d   : > { %20269 = vst [vmem:[#allocation66_spill] sm:$0xff] %v15450_v9  ;;  %20270 = vst [vmem:[#allocation67_spill] sm:$0xff] %v15452_v57 }
 0x570   : > { %v15454_v61 = vpop.permute.xlu1 %6809  ;;  %v15456_v10 = vpop.permute.xlu0 %6811 }
 0x571   : > { %20271 = vst [vmem:[#allocation68_spill] sm:$0xff] %v15454_v61  ;;  %20272 = vst [vmem:[#allocation69_spill] sm:$0xff] %v15456_v10 }
 0x574   : > { %v15458_v22 = vpop.permute.xlu1 %6813  ;;  %v15460_v8 = vpop.permute.xlu0 %6815 }
 0x575   : > { %20273 = vst [vmem:[#allocation70_spill] sm:$0xff] %v15458_v22  ;;  %20274 = vst [vmem:[#allocation71_spill] sm:$0xff] %v15460_v8 }
 0x578   : > { %v15462_v5 = vpop.permute.xlu1 %6817  ;;  %v15464_v7 = vpop.permute.xlu0 %6819 }
 0x579   : > { %20275 = vst [vmem:[#allocation72_spill] sm:$0xff] %v15462_v5  ;;  %20276 = vst [vmem:[#allocation73_spill] sm:$0xff] %v15464_v7 }
 0x57c   : > { %v15466_v0 = vpop.permute.xlu1 %6821  ;;  %v15468_v53 = vpop.permute.xlu0 %6823 }
 0x57d   : > { %20277 = vst [vmem:[#allocation74_spill] sm:$0xff] %v15466_v0  ;;  %20278 = vst [vmem:[#allocation75_spill] sm:$0xff] %v15468_v53 }
 0x580   : > { %v15470_v62 = vpop.permute.xlu1 %6825  ;;  %v15472_v9 = vpop.permute.xlu0 %6827 }
 0x581   : > { %20279 = vst [vmem:[#allocation76_spill] sm:$0xff] %v15470_v62  ;;  %20280 = vst [vmem:[#allocation77_spill] sm:$0xff] %v15472_v9 }
 0x591   : > { %v7072_v57 = vpop.permute.xlu1 %7071  ;;  %v7076_v22 = vpop.permute.xlu0 %7075 }
 0x592   : > { %v7166_v61 = vmul.f32 %v7072_v57, %v15114_v31  ;;  %v7167_v10 = vmul.f32 %v7072_v57, %v15116_v34  ;;  %v7168_v7 = vmul.f32 %v7076_v22, %v15122_v58  ;;  %v7169_v0 = vmul.f32 %v7076_v22, %v15124_v2 }
 0x594   : > { %7264 = vrot.lane.b32.xlu0 %v7167_v10, %s13288_s17  ;;  %7262 = vrot.lane.b32.xlu1 %v7166_v61, %s13288_s17 }
 0x595   : > { %v7080_v53 = vpop.permute.xlu1 %7079  ;;  %v7084_v34 = vpop.permute.xlu0 %7083 }
 0x596   : > { %v7170_v9 = vmul.f32 %v7080_v53, %v15130_v49  ;;  %v7171_v31 = vmul.f32 %v7080_v53, %v15132_v42  ;;  %v7172_v57 = vmul.f32 %v7084_v34, %v15138_v36  ;;  %v7173_v58 = vmul.f32 %v7084_v34, %v15140_v47 }
 0x598   : > { %7268 = vrot.lane.b32.xlu0 %v7169_v0, %s13288_s17  ;;  %7266 = vrot.lane.b32.xlu1 %v7168_v7, %s13288_s17 }
 0x599   : > { %v7088_v61 = vpop.permute.xlu1 %7087  ;;  %v7092_v49 = vpop.permute.xlu0 %7091 }
 0x59a   : > { %v7174_v7 = vmul.f32 %v7088_v61, %v15146_v18  ;;  %v7175_v2 = vmul.f32 %v7088_v61, %v15148_v19  ;;  %v7177_v42 = vmul.f32 %v7092_v49, %v15156_v43 }
 0x59c   : > { %7272 = vrot.lane.b32.xlu0 %v7171_v31, %s13288_s17  ;;  %7270 = vrot.lane.b32.xlu1 %v7170_v9, %s13288_s17  ;;  %v7176_v9 = vmul.f32 %v7092_v49, %v15154_v39 }
 0x59d   : > { %v7096_v36 = vpop.permute.xlu1 %7095  ;;  %v7100_v22 = vpop.permute.xlu0 %7099 }
 0x59e   : > { %v7178_v47 = vmul.f32 %v7096_v36, %v15162_v15  ;;  %v7179_v18 = vmul.f32 %v7096_v36, %v15164_v20  ;;  %v7180_v19 = vmul.f32 %v7100_v22, %v15170_v32  ;;  %v7181_v39 = vmul.f32 %v7100_v22, %v15172_v35  ;;  %v12737_v22 = vld [vmem:[%s20018_s3 + $0x4c] ss:$0 sm:$0xff] }
 0x5a0   : > { %7276 = vrot.lane.b32.xlu0 %v7173_v58, %s13288_s17  ;;  %7274 = vrot.lane.b32.xlu1 %v7172_v57, %s13288_s17 }
 0x5a1   : > { %v7104_v0 = vpop.permute.xlu1 %7103  ;;  %v7108_v10 = vpop.permute.xlu0 %7107 }
 0x5a2   : > { %v7182_v43 = vmul.f32 %v7104_v0, %v15178_v24  ;;  %v7183_v15 = vmul.f32 %v7104_v0, %v15180_v45  ;;  %v7184_v20 = vmul.f32 %v7108_v10, %v15186_v50  ;;  %v7185_v32 = vmul.f32 %v7108_v10, %v15188_v51  ;;  %v12742_v0 = vld [vmem:[%s20018_s3 + $0x51] ss:$0 sm:$0xff]  ;;  %v12743_v10 = vld [vmem:[%s20018_s3 + $0x52] ss:$0 sm:$0xff] }
 0x5a4   : > { %7280 = vrot.lane.b32.xlu0 %v7175_v2, %s13288_s17  ;;  %7278 = vrot.lane.b32.xlu1 %v7174_v7, %s13288_s17 }
 0x5a5   : > { %v7112_v53 = vpop.permute.xlu1 %7111  ;;  %v7116_v31 = vpop.permute.xlu0 %7115 }
 0x5a6   : > { %v7186_v35 = vmul.f32 %v7112_v53, %v15194_v55  ;;  %v7187_v24 = vmul.f32 %v7112_v53, %v15196_v21  ;;  %v7188_v45 = vmul.f32 %v7116_v31, %v15202_v56  ;;  %v7189_v50 = vmul.f32 %v7116_v31, %v15204_v14  ;;  %v12746_v53 = vld [vmem:[%s20018_s3 + $0x55] ss:$0 sm:$0xff] }
 0x5a8   : > { %7284 = vrot.lane.b32.xlu0 %v7177_v42, %s13288_s17  ;;  %7282 = vrot.lane.b32.xlu1 %v7176_v9, %s13288_s17 }
 0x5a9   : > { %v7120_v34 = vpop.permute.xlu1 %7119  ;;  %v7124_v57 = vpop.permute.xlu0 %7123 }
 0x5aa   : > { %v7190_v51 = vmul.f32 %v7120_v34, %v15210_v37  ;;  %v7191_v55 = vmul.f32 %v7120_v34, %v15212_v23  ;;  %v7192_v21 = vmul.f32 %v7124_v57, %v15218_v41  ;;  %v7193_v56 = vmul.f32 %v7124_v57, %v15220_v59  ;;  %v12749_v57 = vld [vmem:[%s20018_s3 + $0x58] ss:$0 sm:$0xff] }
 0x5ac   : > { %7288 = vrot.lane.b32.xlu0 %v7179_v18, %s13288_s17  ;;  %7286 = vrot.lane.b32.xlu1 %v7178_v47, %s13288_s17 }
 0x5ad   : > { %v7128_v58 = vpop.permute.xlu1 %7127  ;;  %v7132_v61 = vpop.permute.xlu0 %7131 }
 0x5ae   : > { %v7194_v14 = vmul.f32 %v7128_v58, %v15226_v52  ;;  %v7195_v37 = vmul.f32 %v7128_v58, %v15228_v44  ;;  %v7196_v23 = vmul.f32 %v7132_v61, %v15234_v16  ;;  %v7197_v41 = vmul.f32 %v7132_v61, %v15236_v33  ;;  %v12752_v58 = vld [vmem:[%s20018_s3 + $0x5b] ss:$0 sm:$0xff] }
 0x5b0   : > { %7292 = vrot.lane.b32.xlu0 %v7181_v39, %s13288_s17  ;;  %7290 = vrot.lane.b32.xlu1 %v7180_v19, %s13288_s17  ;;  %v12740_v19 = vld [vmem:[%s20018_s3 + $0x4f] ss:$0 sm:$0xff]  ;;  %v12739_v39 = vld [vmem:[%s20018_s3 + $0x4e] ss:$0 sm:$0xff] }
 0x5b1   : > { %v7136_v7 = vpop.permute.xlu1 %7135  ;;  %v7140_v2 = vpop.permute.xlu0 %7139 }
 0x5b2   : > { %v7198_v59 = vmul.f32 %v7136_v7, %v15242_v6  ;;  %v7199_v52 = vmul.f32 %v7136_v7, %v15244_v38  ;;  %v7200_v44 = vmul.f32 %v7140_v2, %v15250_v29  ;;  %v7201_v16 = vmul.f32 %v7140_v2, %v15252_v46  ;;  %v12755_v2 = vld [vmem:[%s20018_s3 + $0x5e] ss:$0 sm:$0xff] }
 0x5b4   : > { %7296 = vrot.lane.b32.xlu0 %v7183_v15, %s13288_s17  ;;  %7294 = vrot.lane.b32.xlu1 %v7182_v43, %s13288_s17  ;;  %v12741_v43 = vld [vmem:[%s20018_s3 + $0x50] ss:$0 sm:$0xff]  ;;  %v12744_v15 = vld [vmem:[%s20018_s3 + $0x53] ss:$0 sm:$0xff] }
 0x5b5   : > { %v7144_v49 = vpop.permute.xlu1 %7143  ;;  %v7148_v9 = vpop.permute.xlu0 %7147 }
 0x5b6   : > { %v7202_v33 = vmul.f32 %v7144_v49, %v15258_v28  ;;  %v7203_v6 = vmul.f32 %v7144_v49, %v15260_v17  ;;  %v7204_v38 = vmul.f32 %v7148_v9, %v15266_v26  ;;  %v7205_v29 = vmul.f32 %v7148_v9, %v15268_v54  ;;  %v12782_v49 = vld [vmem:[%s20018_s3 + $0x61] ss:$0 sm:$0xff] }
 0x5b8   : > { %7300 = vrot.lane.b32.xlu0 %v7185_v32, %s13288_s17  ;;  %7298 = vrot.lane.b32.xlu1 %v7184_v20, %s13288_s17 }
 0x5b9   : > { %v7152_v42 = vpop.permute.xlu1 %7151  ;;  %v7156_v36 = vpop.permute.xlu0 %7155 }
 0x5ba   : > { %v7206_v46 = vmul.f32 %v7152_v42, %v15274_v13  ;;  %v7207_v28 = vmul.f32 %v7152_v42, %v15276_v30  ;;  %v7208_v17 = vmul.f32 %v7156_v36, %v15282_v11  ;;  %v7209_v26 = vmul.f32 %v7156_v36, %v15284_v27  ;;  %v12734_v27 = vld [vmem:[%s20018_s3 + $0x49] ss:$0 sm:$0xff]  ;;  %v12785_v36 = vld [vmem:[%s20018_s3 + $0x64] ss:$0 sm:$0xff] }
 0x5bc   : > { %7304 = vrot.lane.b32.xlu0 %v7187_v24, %s13288_s17  ;;  %7302 = vrot.lane.b32.xlu1 %v7186_v35, %s13288_s17  ;;  %v12745_v35 = vld [vmem:[%s20018_s3 + $0x54] ss:$0 sm:$0xff] }
 0x5bd   : > { %v7160_v47 = vpop.permute.xlu1 %7159  ;;  %v7164_v18 = vpop.permute.xlu0 %7163 }
 0x5be   : > { %v7210_v54 = vmul.f32 %v7160_v47, %v15290_v63  ;;  %v7211_v13 = vmul.f32 %v7160_v47, %v15292_v25  ;;  %v7212_v30 = vmul.f32 %v7164_v18, %v15298_v60  ;;  %v7213_v11 = vmul.f32 %v7164_v18, %v15300_v12  ;;  %v12733_v63 = vld [vmem:[%s20018_s3 + $0x48] ss:$0 sm:$0xff]  ;;  %v12736_v60 = vld [vmem:[%s20018_s3 + $0x4b] ss:$0 sm:$0xff]  ;;  %v12735_v25 = vld [vmem:[%s20018_s3 + $0x4a] ss:$0 sm:$0xff] }
 0x5bf   : > { %v12738_v12 = vld [vmem:[%s20018_s3 + $0x4d] ss:$0 sm:$0xff]  ;;  %v12788_v47 = vld [vmem:[%s20018_s3 + $0x67] ss:$0 sm:$0xff] }
 0x5c0   : > { %7308 = vrot.lane.b32.xlu0 %v7189_v50, %s13288_s17  ;;  %7306 = vrot.lane.b32.xlu1 %v7188_v45, %s13288_s17  ;;  %v12748_v45 = vld [vmem:[%s20018_s3 + $0x57] ss:$0 sm:$0xff]  ;;  %v12747_v50 = vld [vmem:[%s20018_s3 + $0x56] ss:$0 sm:$0xff] }
 0x5c4   : > { %7312 = vrot.lane.b32.xlu0 %v7191_v55, %s13288_s17  ;;  %7310 = vrot.lane.b32.xlu1 %v7190_v51, %s13288_s17  ;;  %v12750_v55 = vld [vmem:[%s20018_s3 + $0x59] ss:$0 sm:$0xff] }
 0x5c8   : > { %7316 = vrot.lane.b32.xlu0 %v7193_v56, %s13288_s17  ;;  %7314 = vrot.lane.b32.xlu1 %v7192_v21, %s13288_s17 }
 0x5cc   : > { %7320 = vrot.lane.b32.xlu0 %v7195_v37, %s13288_s17  ;;  %7318 = vrot.lane.b32.xlu1 %v7194_v14, %s13288_s17  ;;  %v12751_v14 = vld [vmem:[%s20018_s3 + $0x5a] ss:$0 sm:$0xff] }
 0x5d0   : > { %7324 = vrot.lane.b32.xlu0 %v7197_v41, %s13288_s17  ;;  %7322 = vrot.lane.b32.xlu1 %v7196_v23, %s13288_s17  ;;  %v12754_v23 = vld [vmem:[%s20018_s3 + $0x5d] ss:$0 sm:$0xff]  ;;  %v12753_v41 = vld [vmem:[%s20018_s3 + $0x5c] ss:$0 sm:$0xff] }
 0x5d4   : > { %7328 = vrot.lane.b32.xlu0 %v7199_v52, %s13288_s17  ;;  %7326 = vrot.lane.b32.xlu1 %v7198_v59, %s13288_s17  ;;  %v12756_v52 = vld [vmem:[%s20018_s3 + $0x5f] ss:$0 sm:$0xff] }
 0x5d8   : > { %7332 = vrot.lane.b32.xlu0 %v7201_v16, %s13288_s17  ;;  %7330 = vrot.lane.b32.xlu1 %v7200_v44, %s13288_s17 }
 0x5dc   : > { %7336 = vrot.lane.b32.xlu0 %v7203_v6, %s13288_s17  ;;  %7334 = vrot.lane.b32.xlu1 %v7202_v33, %s13288_s17  ;;  %v12781_v33 = vld [vmem:[%s20018_s3 + $0x60] ss:$0 sm:$0xff] }
 0x5e0   : > { %7340 = vrot.lane.b32.xlu0 %v7205_v29, %s13288_s17  ;;  %7338 = vrot.lane.b32.xlu1 %v7204_v38, %s13288_s17  ;;  %v12784_v38 = vld [vmem:[%s20018_s3 + $0x63] ss:$0 sm:$0xff]  ;;  %v12783_v29 = vld [vmem:[%s20018_s3 + $0x62] ss:$0 sm:$0xff] }
 0x5e4   : > { %7344 = vrot.lane.b32.xlu0 %v7207_v28, %s13288_s17  ;;  %7342 = vrot.lane.b32.xlu1 %v7206_v46, %s13288_s17  ;;  %v12786_v28 = vld [vmem:[%s20018_s3 + $0x65] ss:$0 sm:$0xff] }
 0x5e8   : > { %7348 = vrot.lane.b32.xlu0 %v7209_v26, %s13288_s17  ;;  %7346 = vrot.lane.b32.xlu1 %v7208_v17, %s13288_s17 }
 0x5ec   : > { %7352 = vrot.lane.b32.xlu0 %v7211_v13, %s13288_s17  ;;  %7350 = vrot.lane.b32.xlu1 %v7210_v54, %s13288_s17  ;;  %v12787_v54 = vld [vmem:[%s20018_s3 + $0x66] ss:$0 sm:$0xff] }
 0x5f0   : > { %7356 = vrot.lane.b32.xlu0 %v7213_v11, %s13288_s17  ;;  %7354 = vrot.lane.b32.xlu1 %v7212_v30, %s13288_s17  ;;  %v12790_v30 = vld [vmem:[%s20018_s3 + $0x69] ss:$0 sm:$0xff]  ;;  %v12789_v11 = vld [vmem:[%s20018_s3 + $0x68] ss:$0 sm:$0xff] }
 0x5f4   : > { %7652 = vperm.xlu0 %13092, %v12734_v27   ;;  %7648 = vperm.xlu1 %13093, %v12733_v63  }
 0x5f8   : > { %7660 = vperm.xlu0 %13092, %v12736_v60   ;;  %7656 = vperm.xlu1 %13093, %v12735_v25   ;;  %v12792_v60 = vld [vmem:[%s20018_s3 + $0x6b] ss:$0 sm:$0xff]  ;;  %v12791_v25 = vld [vmem:[%s20018_s3 + $0x6a] ss:$0 sm:$0xff] }
 0x5fc   : > { %7668 = vperm.xlu0 %13092, %v12738_v12   ;;  %7664 = vperm.xlu1 %13093, %v12737_v22  }
 0x600   : > { %7676 = vperm.xlu0 %13092, %v12740_v19   ;;  %7672 = vperm.xlu1 %13093, %v12739_v39   ;;  %v12794_v19 = vld [vmem:[%s20018_s3 + $0x6d] ss:$0 sm:$0xff]  ;;  %v12793_v39 = vld [vmem:[%s20018_s3 + $0x6c] ss:$0 sm:$0xff] }
 0x604   : > { %7684 = vperm.xlu0 %13092, %v12742_v0   ;;  %7680 = vperm.xlu1 %13093, %v12741_v43  }
 0x606   : > { %v15606_v20 = vpop.permute.xlu1 %7262  ;;  %v15608_v32 = vpop.permute.xlu0 %7264 }
 0x607   : > { %20281 = vst [vmem:[#allocation78_spill] sm:$0xff] %v15606_v20  ;;  %20282 = vst [vmem:[#allocation79_spill] sm:$0xff] %v15608_v32  ;;  %v12842_v32 = vld [vmem:[%s20018_s3 + $0x85] ss:$0 sm:$0xff] }
 0x608   : > { %7692 = vperm.xlu0 %13092, %v12744_v15   ;;  %7688 = vperm.xlu1 %13093, %v12743_v10   ;;  %v12796_v15 = vld [vmem:[%s20018_s3 + $0x6f] ss:$0 sm:$0xff]  ;;  %v12795_v10 = vld [vmem:[%s20018_s3 + $0x6e] ss:$0 sm:$0xff] }
 0x60a   : > { %v15616_v24 = vpop.permute.xlu1 %7266  ;;  %v15618_v31 = vpop.permute.xlu0 %7268 }
 0x60b   : > { %20283 = vst [vmem:[#allocation80_spill] sm:$0xff] %v15616_v24  ;;  %20284 = vst [vmem:[#allocation81_spill] sm:$0xff] %v15618_v31  ;;  %v16042_v24 = vld [vmem:[#allocation3 + $0x229] sm:$0xff] }
 0x60c   : > { %7700 = vperm.xlu0 %13092, %v12746_v53   ;;  %7696 = vperm.xlu1 %13093, %v12745_v35  }
 0x60e   : > { %v15626_v34 = vpop.permute.xlu1 %7270  ;;  %v15628_v51 = vpop.permute.xlu0 %7272 }
 0x60f   : > { %20285 = vst [vmem:[#allocation82_spill] sm:$0xff] %v15626_v34  ;;  %20286 = vst [vmem:[#allocation83_spill] sm:$0xff] %v15628_v51  ;;  %v16034_v34 = vld [vmem:[#allocation3 + $0x211] sm:$0xff] }
 0x610   : > { %7708 = vperm.xlu0 %13092, %v12748_v45   ;;  %7704 = vperm.xlu1 %13093, %v12747_v50   ;;  %v12798_v45 = vld [vmem:[%s20018_s3 + $0x71] ss:$0 sm:$0xff]  ;;  %v12797_v50 = vld [vmem:[%s20018_s3 + $0x70] ss:$0 sm:$0xff] }
 0x612   : > { %v15636_v21 = vpop.permute.xlu1 %7274  ;;  %v15638_v56 = vpop.permute.xlu0 %7276 }
 0x613   : > { %20287 = vst [vmem:[#allocation84_spill] sm:$0xff] %v15636_v21  ;;  %20288 = vst [vmem:[#allocation85_spill] sm:$0xff] %v15638_v56  ;;  %v16026_v21 = vld [vmem:[#allocation3 + $0x1f9] sm:$0xff] }
 0x614   : > { %7716 = vperm.xlu0 %13092, %v12750_v55   ;;  %7712 = vperm.xlu1 %13093, %v12749_v57  }
 0x616   : > { %v15646_v37 = vpop.permute.xlu1 %7278  ;;  %v15648_v61 = vpop.permute.xlu0 %7280 }
 0x617   : > { %20289 = vst [vmem:[#allocation86_spill] sm:$0xff] %v15646_v37  ;;  %20290 = vst [vmem:[#allocation87_spill] sm:$0xff] %v15648_v61  ;;  %v16018_v37 = vld [vmem:[#allocation3 + $0x1e1] sm:$0xff] }
 0x618   : > { %7724 = vperm.xlu0 %13092, %v12752_v58   ;;  %7720 = vperm.xlu1 %13093, %v12751_v14   ;;  %v12800_v58 = vld [vmem:[%s20018_s3 + $0x73] ss:$0 sm:$0xff]  ;;  %v12799_v14 = vld [vmem:[%s20018_s3 + $0x72] ss:$0 sm:$0xff] }
 0x61a   : > { %v15656_v7 = vpop.permute.xlu1 %7282  ;;  %v15658_v59 = vpop.permute.xlu0 %7284 }
 0x61b   : > { %20291 = vst [vmem:[#allocation88_spill] sm:$0xff] %v15656_v7  ;;  %20292 = vst [vmem:[#allocation89_spill] sm:$0xff] %v15658_v59  ;;  %v16010_v7 = vld [vmem:[#allocation3 + $0x1c9] sm:$0xff] }
 0x61c   : > { %7732 = vperm.xlu0 %13092, %v12754_v23   ;;  %7728 = vperm.xlu1 %13093, %v12753_v41  }
 0x61e   : > { %v15666_v44 = vpop.permute.xlu1 %7286  ;;  %v15668_v16 = vpop.permute.xlu0 %7288 }
 0x61f   : > { %20293 = vst [vmem:[#allocation90_spill] sm:$0xff] %v15666_v44  ;;  %20294 = vst [vmem:[#allocation91_spill] sm:$0xff] %v15668_v16  ;;  %v16002_v44 = vld [vmem:[#allocation3 + $0x1b1] sm:$0xff] }
 0x620   : > { %7740 = vperm.xlu0 %13092, %v12756_v52   ;;  %7736 = vperm.xlu1 %13093, %v12755_v2   ;;  %v12802_v52 = vld [vmem:[%s20018_s3 + $0x75] ss:$0 sm:$0xff]  ;;  %v12801_v2 = vld [vmem:[%s20018_s3 + $0x74] ss:$0 sm:$0xff] }
 0x622   : > { %v15676_v6 = vpop.permute.xlu1 %7290  ;;  %v15678_v9 = vpop.permute.xlu0 %7292 }
 0x623   : > { %20295 = vst [vmem:[#allocation92_spill] sm:$0xff] %v15676_v6  ;;  %20296 = vst [vmem:[#allocation93_spill] sm:$0xff] %v15678_v9  ;;  %v15994_v6 = vld [vmem:[#allocation3 + $0x199] sm:$0xff] }
 0x624   : > { %7989 = vperm.xlu0 %13092, %v12782_v49   ;;  %7985 = vperm.xlu1 %13093, %v12781_v33  }
 0x626   : > { %v15686_v42 = vpop.permute.xlu1 %7294  ;;  %v15688_v46 = vpop.permute.xlu0 %7296 }
 0x627   : > { %20297 = vst [vmem:[#allocation94_spill] sm:$0xff] %v15686_v42  ;;  %20298 = vst [vmem:[#allocation95_spill] sm:$0xff] %v15688_v46  ;;  %v15986_v42 = vld [vmem:[#allocation3 + $0x181] sm:$0xff] }
 0x628   : > { %7997 = vperm.xlu0 %13092, %v12784_v38   ;;  %7993 = vperm.xlu1 %13093, %v12783_v29   ;;  %v12804_v38 = vld [vmem:[%s20018_s3 + $0x77] ss:$0 sm:$0xff]  ;;  %v12803_v29 = vld [vmem:[%s20018_s3 + $0x76] ss:$0 sm:$0xff] }
 0x62a   : > { %v15696_v17 = vpop.permute.xlu1 %7298  ;;  %v15698_v26 = vpop.permute.xlu0 %7300 }
 0x62b   : > { %20299 = vst [vmem:[#allocation96_spill] sm:$0xff] %v15696_v17  ;;  %20300 = vst [vmem:[#allocation97_spill] sm:$0xff] %v15698_v26  ;;  %v15978_v17 = vld [vmem:[#allocation3 + $0x169] sm:$0xff] }
 0x62c   : > { %8005 = vperm.xlu0 %13092, %v12786_v28   ;;  %8001 = vperm.xlu1 %13093, %v12785_v36  }
 0x62e   : > { %v15706_v13 = vpop.permute.xlu1 %7302  ;;  %v15708_v18 = vpop.permute.xlu0 %7304 }
 0x62f   : > { %20301 = vst [vmem:[#allocation98_spill] sm:$0xff] %v15706_v13  ;;  %20302 = vst [vmem:[#allocation99_spill] sm:$0xff] %v15708_v18  ;;  %v15970_v13 = vld [vmem:[#allocation3 + $0x151] sm:$0xff] }
 0x630   : > { %8013 = vperm.xlu0 %13092, %v12788_v47   ;;  %8009 = vperm.xlu1 %13093, %v12787_v54  }
 0x632   : > { %v15716_v27 = vpop.permute.xlu1 %7306  ;;  %v15718_v63 = vpop.permute.xlu0 %7308 }
 0x633   : > { %20303 = vst [vmem:[#allocation100_spill] sm:$0xff] %v15716_v27  ;;  %20304 = vst [vmem:[#allocation101_spill] sm:$0xff] %v15718_v63  ;;  %v15962_v27 = vld [vmem:[#allocation3 + $0x139] sm:$0xff] }
 0x634   : > { %8021 = vperm.xlu0 %13092, %v12790_v30   ;;  %8017 = vperm.xlu1 %13093, %v12789_v11  }
 0x636   : > { %v15726_v12 = vpop.permute.xlu1 %7310  ;;  %v15728_v22 = vpop.permute.xlu0 %7312 }
 0x637   : > { %20305 = vst [vmem:[#allocation102_spill] sm:$0xff] %v15726_v12  ;;  %20306 = vst [vmem:[#allocation103_spill] sm:$0xff] %v15728_v22  ;;  %v15954_v12 = vld [vmem:[#allocation3 + $0x121] sm:$0xff] }
 0x638   : > { %8029 = vperm.xlu0 %13092, %v12792_v60   ;;  %8025 = vperm.xlu1 %13093, %v12791_v25  }
 0x63a   : > { %v15736_v0 = vpop.permute.xlu1 %7314  ;;  %v15738_v43 = vpop.permute.xlu0 %7316 }
 0x63b   : > { %20307 = vst [vmem:[#allocation104_spill] sm:$0xff] %v15736_v0  ;;  %20308 = vst [vmem:[#allocation105_spill] sm:$0xff] %v15738_v43  ;;  %v15946_v0 = vld [vmem:[#allocation3 + $0x109] sm:$0xff] }
 0x63c   : > { %8037 = vperm.xlu0 %13092, %v12794_v19   ;;  %8033 = vperm.xlu1 %13093, %v12793_v39  }
 0x63e   : > { %v15746_v53 = vpop.permute.xlu1 %7318  ;;  %v15748_v35 = vpop.permute.xlu0 %7320 }
 0x63f   : > { %20309 = vst [vmem:[#allocation106_spill] sm:$0xff] %v15746_v53  ;;  %20310 = vst [vmem:[#allocation107_spill] sm:$0xff] %v15748_v35  ;;  %v15938_v53 = vld [vmem:[#allocation3 + $0xf1] sm:$0xff] }
 0x640   : > { %8045 = vperm.xlu0 %13092, %v12796_v15   ;;  %8041 = vperm.xlu1 %13093, %v12795_v10  }
 0x642   : > { %v15756_v55 = vpop.permute.xlu1 %7322  ;;  %v15758_v57 = vpop.permute.xlu0 %7324 }
 0x643   : > { %20311 = vst [vmem:[#allocation108_spill] sm:$0xff] %v15756_v55  ;;  %20312 = vst [vmem:[#allocation109_spill] sm:$0xff] %v15758_v57  ;;  %v15930_v55 = vld [vmem:[#allocation3 + $0xd9] sm:$0xff] }
 0x644   : > { %8053 = vperm.xlu0 %13092, %v12798_v45   ;;  %8049 = vperm.xlu1 %13093, %v12797_v50  }
 0x646   : > { %v15766_v23 = vpop.permute.xlu1 %7326  ;;  %v15768_v41 = vpop.permute.xlu0 %7328 }
 0x647   : > { %20313 = vst [vmem:[#allocation110_spill] sm:$0xff] %v15766_v23  ;;  %20314 = vst [vmem:[#allocation111_spill] sm:$0xff] %v15768_v41  ;;  %v15922_v23 = vld [vmem:[#allocation3 + $0xc1] sm:$0xff] }
 0x648   : > { %8061 = vperm.xlu0 %13092, %v12800_v58   ;;  %8057 = vperm.xlu1 %13093, %v12799_v14  }
 0x64a   : > { %v15776_v49 = vpop.permute.xlu1 %7330  ;;  %v15778_v33 = vpop.permute.xlu0 %7332 }
 0x64b   : > { %20315 = vst [vmem:[#allocation112_spill] sm:$0xff] %v15776_v49  ;;  %20316 = vst [vmem:[#allocation113_spill] sm:$0xff] %v15778_v33  ;;  %v15914_v49 = vld [vmem:[#allocation3 + $0xa9] sm:$0xff] }
 0x64c   : > { %8069 = vperm.xlu0 %13092, %v12802_v52   ;;  %8065 = vperm.xlu1 %13093, %v12801_v2  }
 0x64e   : > { %v15786_v28 = vpop.permute.xlu1 %7334  ;;  %v15788_v36 = vpop.permute.xlu0 %7336 }
 0x64f   : > { %20317 = vst [vmem:[#allocation114_spill] sm:$0xff] %v15786_v28  ;;  %20318 = vst [vmem:[#allocation115_spill] sm:$0xff] %v15788_v36  ;;  %v15906_v28 = vld [vmem:[#allocation3 + $0x91] sm:$0xff] }
 0x650   : > { %8077 = vperm.xlu0 %13092, %v12804_v38   ;;  %8073 = vperm.xlu1 %13093, %v12803_v29  }
 0x652   : > { %v15790_v47 = vpop.permute.xlu1 %7338  ;;  %v15792_v54 = vpop.permute.xlu0 %7340 }
 0x653   : > { %20319 = vst [vmem:[#allocation116_spill] sm:$0xff] %v15790_v47  ;;  %20320 = vst [vmem:[#allocation117_spill] sm:$0xff] %v15792_v54  ;;  %v15898_v47 = vld [vmem:[#allocation3 + $0x79] sm:$0xff] }
 0x656   : > { %v15794_v30 = vpop.permute.xlu1 %7342  ;;  %v15796_v11 = vpop.permute.xlu0 %7344 }
 0x657   : > { %20321 = vst [vmem:[#allocation118_spill] sm:$0xff] %v15794_v30  ;;  %20322 = vst [vmem:[#allocation119_spill] sm:$0xff] %v15796_v11  ;;  %v15890_v30 = vld [vmem:[#allocation3 + $0x61] sm:$0xff] }
 0x65a   : > { %v15798_v60 = vpop.permute.xlu1 %7346  ;;  %v15800_v25 = vpop.permute.xlu0 %7348 }
 0x65b   : > { %20323 = vst [vmem:[#allocation120_spill] sm:$0xff] %v15798_v60  ;;  %20324 = vst [vmem:[#allocation121_spill] sm:$0xff] %v15800_v25  ;;  %v15874_v25 = vld [vmem:[#allocation3 + $0x31] sm:$0xff]  ;;  %v15882_v60 = vld [vmem:[#allocation3 + $0x49] sm:$0xff] }
 0x65e   : > { %v15802_v19 = vpop.permute.xlu1 %7350  ;;  %v15804_v39 = vpop.permute.xlu0 %7352 }
 0x65f   : > { %20325 = vst [vmem:[#allocation122_spill] sm:$0xff] %v15802_v19  ;;  %20326 = vst [vmem:[#allocation123_spill] sm:$0xff] %v15804_v39 }
 0x662   : > { %v15806_v15 = vpop.permute.xlu1 %7354  ;;  %v15808_v10 = vpop.permute.xlu0 %7356 }
 0x663   : > { %20327 = vst [vmem:[#allocation124_spill] sm:$0xff] %v15806_v15  ;;  %20328 = vst [vmem:[#allocation125_spill] sm:$0xff] %v15808_v10 }
 0x673   : > { %v15810_v45 = vpop.permute.xlu1 %7648  ;;  %v15812_v50 = vpop.permute.xlu0 %7652 }
 0x674   : > { %20329 = vst [vmem:[#allocation126_spill] sm:$0xff] %v15810_v45  ;;  %20330 = vst [vmem:[#allocation127_spill] sm:$0xff] %v15812_v50 }
 0x677   : > { %v15814_v58 = vpop.permute.xlu1 %7656  ;;  %v15816_v14 = vpop.permute.xlu0 %7660 }
 0x678   : > { %20331 = vst [vmem:[#allocation128_spill] sm:$0xff] %v15814_v58  ;;  %20332 = vst [vmem:[#allocation129_spill] sm:$0xff] %v15816_v14 }
 0x67b   : > { %v15818_v52 = vpop.permute.xlu1 %7664  ;;  %v15820_v2 = vpop.permute.xlu0 %7668 }
 0x67c   : > { %20333 = vst [vmem:[#allocation130_spill] sm:$0xff] %v15818_v52  ;;  %20334 = vst [vmem:[#allocation131_spill] sm:$0xff] %v15820_v2 }
 0x67f   : > { %v15822_v38 = vpop.permute.xlu1 %7672  ;;  %v15824_v29 = vpop.permute.xlu0 %7676 }
 0x680   : > { %20335 = vst [vmem:[#allocation132_spill] sm:$0xff] %v15822_v38  ;;  %20336 = vst [vmem:[#allocation133_spill] sm:$0xff] %v15824_v29 }
 0x683   : > { %v15826_v39 = vpop.permute.xlu1 %7680  ;;  %v15828_v15 = vpop.permute.xlu0 %7684 }
 0x684   : > { %20337 = vst [vmem:[#allocation134_spill] sm:$0xff] %v15826_v39  ;;  %20338 = vst [vmem:[#allocation135_spill] sm:$0xff] %v15828_v15 }
 0x687   : > { %v15830_v10 = vpop.permute.xlu1 %7688  ;;  %v15832_v19 = vpop.permute.xlu0 %7692 }
 0x688   : > { %20339 = vst [vmem:[#allocation136_spill] sm:$0xff] %v15830_v10  ;;  %20340 = vst [vmem:[#allocation137_spill] sm:$0xff] %v15832_v19 }
 0x68b   : > { %v15834_v50 = vpop.permute.xlu1 %7696  ;;  %v15836_v58 = vpop.permute.xlu0 %7700 }
 0x68c   : > { %20341 = vst [vmem:[#allocation138_spill] sm:$0xff] %v15834_v50  ;;  %20342 = vst [vmem:[#allocation139_spill] sm:$0xff] %v15836_v58  ;;  %v15858_v58 = vld [vmem:[#allocation3 + $0x1] sm:$0xff] }
 0x68f   : > { %v15838_v14 = vpop.permute.xlu1 %7704  ;;  %v15840_v52 = vpop.permute.xlu0 %7708 }
 0x690   : > { %20343 = vst [vmem:[#allocation140_spill] sm:$0xff] %v15838_v14  ;;  %20344 = vst [vmem:[#allocation141_spill] sm:$0xff] %v15840_v52  ;;  %v15860_v14 = vld [vmem:[#allocation3 + $0x9] sm:$0xff] }
 0x693   : > { %v15842_v2 = vpop.permute.xlu1 %7712  ;;  %v15844_v38 = vpop.permute.xlu0 %7716 }
 0x694   : > { %20345 = vst [vmem:[#allocation142_spill] sm:$0xff] %v15842_v2  ;;  %20346 = vst [vmem:[#allocation143_spill] sm:$0xff] %v15844_v38 }
 0x697   : > { %v15846_v29 = vpop.permute.xlu1 %7720  ;;  %v15848_v39 = vpop.permute.xlu0 %7724 }
 0x698   : > { %20347 = vst [vmem:[#allocation144_spill] sm:$0xff] %v15846_v29  ;;  %20348 = vst [vmem:[#allocation145_spill] sm:$0xff] %v15848_v39 }
 0x69b   : > { %v15850_v15 = vpop.permute.xlu1 %7728  ;;  %v15852_v10 = vpop.permute.xlu0 %7732 }
 0x69c   : > { %20349 = vst [vmem:[#allocation146_spill] sm:$0xff] %v15850_v15  ;;  %20350 = vst [vmem:[#allocation147_spill] sm:$0xff] %v15852_v10  ;;  %v15866_v15 = vld [vmem:[#allocation3 + $0x19] sm:$0xff]  ;;  %v15868_v10 = vld [vmem:[#allocation3 + $0x21] sm:$0xff] }
 0x69f   : > { %v15854_v19 = vpop.permute.xlu1 %7736  ;;  %v15856_v50 = vpop.permute.xlu0 %7740 }
 0x6a0   : > { %20351 = vst [vmem:[#allocation148_spill] sm:$0xff] %v15854_v19  ;;  %20352 = vst [vmem:[#allocation149_spill] sm:$0xff] %v15856_v50 }
 0x6a3   : > { %v7986_v52 = vpop.permute.xlu1 %7985  ;;  %v7990_v29 = vpop.permute.xlu0 %7989 }
 0x6a4   : > { %v8080_v2 = vmul.f32 %v7986_v52, %v15858_v58  ;;  %v8081_v38 = vmul.f32 %v7986_v52, %v15860_v14  ;;  %v8082_v50 = vmul.f32 %v7990_v29, %v15866_v15  ;;  %v8083_v19 = vmul.f32 %v7990_v29, %v15868_v10  ;;  %v15876_v52 = vld [vmem:[#allocation3 + $0x39] sm:$0xff]  ;;  %v15884_v29 = vld [vmem:[#allocation3 + $0x51] sm:$0xff] }
 0x6a6   : > { %8178 = vrot.lane.b32.xlu0 %v8081_v38, %s13287_s16  ;;  %8176 = vrot.lane.b32.xlu1 %v8080_v2, %s13287_s16 }
 0x6a7   : > { %v7994_v39 = vpop.permute.xlu1 %7993  ;;  %v7998_v45 = vpop.permute.xlu0 %7997 }
 0x6a8   : > { %v8084_v38 = vmul.f32 %v7994_v39, %v15874_v25  ;;  %v8085_v2 = vmul.f32 %v7994_v39, %v15876_v52  ;;  %v15892_v39 = vld [vmem:[#allocation3 + $0x69] sm:$0xff] }
 0x6aa   : > { %8182 = vrot.lane.b32.xlu0 %v8083_v19, %s13287_s16  ;;  %8180 = vrot.lane.b32.xlu1 %v8082_v50, %s13287_s16  ;;  %v8086_v19 = vmul.f32 %v7998_v45, %v15882_v60  ;;  %v8087_v50 = vmul.f32 %v7998_v45, %v15884_v29  ;;  %v15900_v45 = vld [vmem:[#allocation3 + $0x81] sm:$0xff] }
 0x6ab   : > { %v8002_v11 = vpop.permute.xlu1 %8001  ;;  %v8006_v54 = vpop.permute.xlu0 %8005 }
 0x6ae   : > { %8186 = vrot.lane.b32.xlu0 %v8085_v2, %s13287_s16  ;;  %8184 = vrot.lane.b32.xlu1 %v8084_v38, %s13287_s16  ;;  %v8088_v2 = vmul.f32 %v8002_v11, %v15890_v30  ;;  %v8089_v38 = vmul.f32 %v8002_v11, %v15892_v39  ;;  %v15908_v11 = vld [vmem:[#allocation3 + $0x99] sm:$0xff] }
 0x6af   : > { %v8010_v36 = vpop.permute.xlu1 %8009  ;;  %v8014_v33 = vpop.permute.xlu0 %8013 }
 0x6b2   : > { %8190 = vrot.lane.b32.xlu0 %v8087_v50, %s13287_s16  ;;  %8188 = vrot.lane.b32.xlu1 %v8086_v19, %s13287_s16  ;;  %v8090_v50 = vmul.f32 %v8006_v54, %v15898_v47  ;;  %v8091_v19 = vmul.f32 %v8006_v54, %v15900_v45  ;;  %v15916_v54 = vld [vmem:[#allocation3 + $0xb1] sm:$0xff] }
 0x6b3   : > { %v8018_v41 = vpop.permute.xlu1 %8017  ;;  %v8022_v57 = vpop.permute.xlu0 %8021 }
 0x6b6   : > { %8194 = vrot.lane.b32.xlu0 %v8089_v38, %s13287_s16  ;;  %8192 = vrot.lane.b32.xlu1 %v8088_v2, %s13287_s16  ;;  %v8092_v38 = vmul.f32 %v8010_v36, %v15906_v28  ;;  %v8093_v2 = vmul.f32 %v8010_v36, %v15908_v11  ;;  %v15924_v36 = vld [vmem:[#allocation3 + $0xc9] sm:$0xff] }
 0x6b7   : > { %v8026_v35 = vpop.permute.xlu1 %8025  ;;  %v8030_v43 = vpop.permute.xlu0 %8029 }
 0x6ba   : > { %8198 = vrot.lane.b32.xlu0 %v8091_v19, %s13287_s16  ;;  %8196 = vrot.lane.b32.xlu1 %v8090_v50, %s13287_s16  ;;  %v8094_v19 = vmul.f32 %v8014_v33, %v15914_v49  ;;  %v8095_v50 = vmul.f32 %v8014_v33, %v15916_v54  ;;  %v15932_v33 = vld [vmem:[#allocation3 + $0xe1] sm:$0xff] }
 0x6bb   : > { %v8034_v22 = vpop.permute.xlu1 %8033  ;;  %v8038_v63 = vpop.permute.xlu0 %8037 }
 0x6be   : > { %8202 = vrot.lane.b32.xlu0 %v8093_v2, %s13287_s16  ;;  %8200 = vrot.lane.b32.xlu1 %v8092_v38, %s13287_s16  ;;  %v8096_v2 = vmul.f32 %v8018_v41, %v15922_v23  ;;  %v8097_v38 = vmul.f32 %v8018_v41, %v15924_v36  ;;  %v15940_v41 = vld [vmem:[#allocation3 + $0xf9] sm:$0xff] }
 0x6bf   : > { %v8042_v18 = vpop.permute.xlu1 %8041  ;;  %v8046_v26 = vpop.permute.xlu0 %8045 }
 0x6c2   : > { %8206 = vrot.lane.b32.xlu0 %v8095_v50, %s13287_s16  ;;  %8204 = vrot.lane.b32.xlu1 %v8094_v19, %s13287_s16  ;;  %v8098_v50 = vmul.f32 %v8022_v57, %v15930_v55  ;;  %v8099_v19 = vmul.f32 %v8022_v57, %v15932_v33  ;;  %v15948_v57 = vld [vmem:[#allocation3 + $0x111] sm:$0xff] }
 0x6c3   : > { %v8050_v46 = vpop.permute.xlu1 %8049  ;;  %v8054_v9 = vpop.permute.xlu0 %8053 }
 0x6c6   : > { %8210 = vrot.lane.b32.xlu0 %v8097_v38, %s13287_s16  ;;  %8208 = vrot.lane.b32.xlu1 %v8096_v2, %s13287_s16  ;;  %v8100_v38 = vmul.f32 %v8026_v35, %v15938_v53  ;;  %v8101_v2 = vmul.f32 %v8026_v35, %v15940_v41  ;;  %v15956_v35 = vld [vmem:[#allocation3 + $0x129] sm:$0xff] }
 0x6c7   : > { %v8058_v16 = vpop.permute.xlu1 %8057  ;;  %v8062_v59 = vpop.permute.xlu0 %8061 }
 0x6ca   : > { %8214 = vrot.lane.b32.xlu0 %v8099_v19, %s13287_s16  ;;  %8212 = vrot.lane.b32.xlu1 %v8098_v50, %s13287_s16  ;;  %v8102_v19 = vmul.f32 %v8030_v43, %v15946_v0  ;;  %v8103_v50 = vmul.f32 %v8030_v43, %v15948_v57  ;;  %v15964_v43 = vld [vmem:[#allocation3 + $0x141] sm:$0xff] }
 0x6cb   : > { %v8066_v61 = vpop.permute.xlu1 %8065  ;;  %v8070_v56 = vpop.permute.xlu0 %8069 }
 0x6ce   : > { %8218 = vrot.lane.b32.xlu0 %v8101_v2, %s13287_s16  ;;  %8216 = vrot.lane.b32.xlu1 %v8100_v38, %s13287_s16  ;;  %v8104_v2 = vmul.f32 %v8034_v22, %v15954_v12  ;;  %v8105_v38 = vmul.f32 %v8034_v22, %v15956_v35  ;;  %v15972_v22 = vld [vmem:[#allocation3 + $0x159] sm:$0xff] }
 0x6cf   : > { %v8074_v51 = vpop.permute.xlu1 %8073  ;;  %v8078_v31 = vpop.permute.xlu0 %8077 }
 0x6d2   : > { %8222 = vrot.lane.b32.xlu0 %v8103_v50, %s13287_s16  ;;  %8220 = vrot.lane.b32.xlu1 %v8102_v19, %s13287_s16  ;;  %v8106_v50 = vmul.f32 %v8038_v63, %v15962_v27  ;;  %v8107_v19 = vmul.f32 %v8038_v63, %v15964_v43  ;;  %v15980_v63 = vld [vmem:[#allocation3 + $0x171] sm:$0xff] }
 0x6d6   : > { %8226 = vrot.lane.b32.xlu0 %v8105_v38, %s13287_s16  ;;  %8224 = vrot.lane.b32.xlu1 %v8104_v2, %s13287_s16  ;;  %v8108_v38 = vmul.f32 %v8042_v18, %v15970_v13  ;;  %v8109_v2 = vmul.f32 %v8042_v18, %v15972_v22  ;;  %v15988_v18 = vld [vmem:[#allocation3 + $0x189] sm:$0xff] }
 0x6da   : > { %8230 = vrot.lane.b32.xlu0 %v8107_v19, %s13287_s16  ;;  %8228 = vrot.lane.b32.xlu1 %v8106_v50, %s13287_s16  ;;  %v8110_v19 = vmul.f32 %v8046_v26, %v15978_v17  ;;  %v8111_v50 = vmul.f32 %v8046_v26, %v15980_v63  ;;  %v15996_v26 = vld [vmem:[#allocation3 + $0x1a1] sm:$0xff] }
 0x6de   : > { %8234 = vrot.lane.b32.xlu0 %v8109_v2, %s13287_s16  ;;  %8232 = vrot.lane.b32.xlu1 %v8108_v38, %s13287_s16  ;;  %v8112_v2 = vmul.f32 %v8050_v46, %v15986_v42  ;;  %v8113_v38 = vmul.f32 %v8050_v46, %v15988_v18  ;;  %v16004_v46 = vld [vmem:[#allocation3 + $0x1b9] sm:$0xff] }
 0x6e2   : > { %8238 = vrot.lane.b32.xlu0 %v8111_v50, %s13287_s16  ;;  %8236 = vrot.lane.b32.xlu1 %v8110_v19, %s13287_s16  ;;  %v8114_v50 = vmul.f32 %v8054_v9, %v15994_v6  ;;  %v8115_v19 = vmul.f32 %v8054_v9, %v15996_v26  ;;  %v16012_v9 = vld [vmem:[#allocation3 + $0x1d1] sm:$0xff] }
 0x6e6   : > { %8242 = vrot.lane.b32.xlu0 %v8113_v38, %s13287_s16  ;;  %8240 = vrot.lane.b32.xlu1 %v8112_v2, %s13287_s16  ;;  %v8116_v38 = vmul.f32 %v8058_v16, %v16002_v44  ;;  %v8117_v2 = vmul.f32 %v8058_v16, %v16004_v46  ;;  %v16020_v16 = vld [vmem:[#allocation3 + $0x1e9] sm:$0xff] }
 0x6ea   : > { %8246 = vrot.lane.b32.xlu0 %v8115_v19, %s13287_s16  ;;  %8244 = vrot.lane.b32.xlu1 %v8114_v50, %s13287_s16  ;;  %v8118_v19 = vmul.f32 %v8062_v59, %v16010_v7  ;;  %v8119_v50 = vmul.f32 %v8062_v59, %v16012_v9  ;;  %v16028_v59 = vld [vmem:[#allocation3 + $0x201] sm:$0xff] }
 0x6ee   : > { %8250 = vrot.lane.b32.xlu0 %v8117_v2, %s13287_s16  ;;  %8248 = vrot.lane.b32.xlu1 %v8116_v38, %s13287_s16  ;;  %v8120_v2 = vmul.f32 %v8066_v61, %v16018_v37  ;;  %v8121_v38 = vmul.f32 %v8066_v61, %v16020_v16  ;;  %v16036_v61 = vld [vmem:[#allocation3 + $0x219] sm:$0xff] }
 0x6f2   : > { %8254 = vrot.lane.b32.xlu0 %v8119_v50, %s13287_s16  ;;  %8252 = vrot.lane.b32.xlu1 %v8118_v19, %s13287_s16  ;;  %v8122_v50 = vmul.f32 %v8070_v56, %v16026_v21  ;;  %v8123_v19 = vmul.f32 %v8070_v56, %v16028_v59  ;;  %v16044_v56 = vld [vmem:[#allocation3 + $0x231] sm:$0xff] }
 0x6f6   : > { %8258 = vrot.lane.b32.xlu0 %v8121_v38, %s13287_s16  ;;  %8256 = vrot.lane.b32.xlu1 %v8120_v2, %s13287_s16  ;;  %v8124_v38 = vmul.f32 %v8074_v51, %v16034_v34  ;;  %v8125_v2 = vmul.f32 %v8074_v51, %v16036_v61  ;;  %v12830_v51 = vld [vmem:[%s20018_s3 + $0x79] ss:$0 sm:$0xff] }
 0x6fa   : > { %8262 = vrot.lane.b32.xlu0 %v8123_v19, %s13287_s16  ;;  %8260 = vrot.lane.b32.xlu1 %v8122_v50, %s13287_s16  ;;  %v8126_v19 = vmul.f32 %v8078_v31, %v16042_v24  ;;  %v8127_v50 = vmul.f32 %v8078_v31, %v16044_v56  ;;  %v12831_v31 = vld [vmem:[%s20018_s3 + $0x7a] ss:$0 sm:$0xff] }
 0x6fe   : > { %8266 = vrot.lane.b32.xlu0 %v8125_v2, %s13287_s16  ;;  %8264 = vrot.lane.b32.xlu1 %v8124_v38, %s13287_s16  ;;  %v12829_v38 = vld [vmem:[%s20018_s3 + $0x78] ss:$0 sm:$0xff]  ;;  %v12832_v2 = vld [vmem:[%s20018_s3 + $0x7b] ss:$0 sm:$0xff] }
 0x702   : > { %8270 = vrot.lane.b32.xlu0 %v8127_v50, %s13287_s16  ;;  %8268 = vrot.lane.b32.xlu1 %v8126_v19, %s13287_s16  ;;  %v12834_v19 = vld [vmem:[%s20018_s3 + $0x7d] ss:$0 sm:$0xff]  ;;  %v12833_v50 = vld [vmem:[%s20018_s3 + $0x7c] ss:$0 sm:$0xff] }
 0x706   : > { %8518 = vperm.xlu0 %13092, %v12830_v51   ;;  %8514 = vperm.xlu1 %13093, %v12829_v38   ;;  %v12836_v51 = vld [vmem:[%s20018_s3 + $0x7f] ss:$0 sm:$0xff]  ;;  %v12835_v38 = vld [vmem:[%s20018_s3 + $0x7e] ss:$0 sm:$0xff] }
 0x70a   : > { %8526 = vperm.xlu0 %13092, %v12832_v2   ;;  %8522 = vperm.xlu1 %13093, %v12831_v31   ;;  %v12838_v2 = vld [vmem:[%s20018_s3 + $0x81] ss:$0 sm:$0xff]  ;;  %v12837_v31 = vld [vmem:[%s20018_s3 + $0x80] ss:$0 sm:$0xff] }
 0x70e   : > { %8534 = vperm.xlu0 %13092, %v12834_v19   ;;  %8530 = vperm.xlu1 %13093, %v12833_v50   ;;  %v12840_v19 = vld [vmem:[%s20018_s3 + $0x83] ss:$0 sm:$0xff]  ;;  %v12839_v50 = vld [vmem:[%s20018_s3 + $0x82] ss:$0 sm:$0xff] }
 0x712   : > { %8542 = vperm.xlu0 %13092, %v12836_v51   ;;  %8538 = vperm.xlu1 %13093, %v12835_v38  }
 0x716   : > { %8550 = vperm.xlu0 %13092, %v12838_v2   ;;  %8546 = vperm.xlu1 %13093, %v12837_v31   ;;  %v12841_v2 = vld [vmem:[%s20018_s3 + $0x84] ss:$0 sm:$0xff] }
 0x718   : > { %v16086_v51 = vpop.permute.xlu1 %8176  ;;  %v16088_v38 = vpop.permute.xlu0 %8178 }
 0x719   : > { %20353 = vst [vmem:[#allocation150_spill] sm:$0xff] %v16086_v51  ;;  %20354 = vst [vmem:[#allocation151_spill] sm:$0xff] %v16088_v38  ;;  %v12844_v38 = vld [vmem:[%s20018_s3 + $0x87] ss:$0 sm:$0xff] }
 0x71a   : > { %8558 = vperm.xlu0 %13092, %v12840_v19   ;;  %8554 = vperm.xlu1 %13093, %v12839_v50   ;;  %v12843_v19 = vld [vmem:[%s20018_s3 + $0x86] ss:$0 sm:$0xff] }
 0x71c   : > { %v16096_v31 = vpop.permute.xlu1 %8180  ;;  %v16098_v20 = vpop.permute.xlu0 %8182 }
 0x71d   : > { %20355 = vst [vmem:[#allocation152_spill] sm:$0xff] %v16096_v31  ;;  %20356 = vst [vmem:[#allocation153_spill] sm:$0xff] %v16098_v20  ;;  %v12846_v20 = vld [vmem:[%s20018_s3 + $0x89] ss:$0 sm:$0xff] }
 0x71e   : > { %8566 = vperm.xlu0 %13092, %v12842_v32   ;;  %8562 = vperm.xlu1 %13093, %v12841_v2   ;;  %v12845_v32 = vld [vmem:[%s20018_s3 + $0x88] ss:$0 sm:$0xff] }
 0x720   : > { %v16106_v50 = vpop.permute.xlu1 %8184  ;;  %v16108_v51 = vpop.permute.xlu0 %8186 }
 0x721   : > { %20357 = vst [vmem:[#allocation154_spill] sm:$0xff] %v16106_v50  ;;  %20358 = vst [vmem:[#allocation155_spill] sm:$0xff] %v16108_v51  ;;  %v12848_v51 = vld [vmem:[%s20018_s3 + $0x8b] ss:$0 sm:$0xff] }
 0x722   : > { %8574 = vperm.xlu0 %13092, %v12844_v38   ;;  %8570 = vperm.xlu1 %13093, %v12843_v19   ;;  %v12847_v38 = vld [vmem:[%s20018_s3 + $0x8a] ss:$0 sm:$0xff] }
 0x724   : > { %v16116_v2 = vpop.permute.xlu1 %8188  ;;  %v16118_v31 = vpop.permute.xlu0 %8190 }
 0x725   : > { %20359 = vst [vmem:[#allocation156_spill] sm:$0xff] %v16116_v2  ;;  %20360 = vst [vmem:[#allocation157_spill] sm:$0xff] %v16118_v31  ;;  %v12850_v31 = vld [vmem:[%s20018_s3 + $0x8d] ss:$0 sm:$0xff] }
 0x726   : > { %8582 = vperm.xlu0 %13092, %v12846_v20   ;;  %8578 = vperm.xlu1 %13093, %v12845_v32   ;;  %v12849_v20 = vld [vmem:[%s20018_s3 + $0x8c] ss:$0 sm:$0xff] }
 0x728   : > { %v16126_v19 = vpop.permute.xlu1 %8192  ;;  %v16128_v50 = vpop.permute.xlu0 %8194 }
 0x729   : > { %20361 = vst [vmem:[#allocation158_spill] sm:$0xff] %v16126_v19  ;;  %20362 = vst [vmem:[#allocation159_spill] sm:$0xff] %v16128_v50  ;;  %v12852_v50 = vld [vmem:[%s20018_s3 + $0x8f] ss:$0 sm:$0xff] }
 0x72a   : > { %8590 = vperm.xlu0 %13092, %v12848_v51   ;;  %8586 = vperm.xlu1 %13093, %v12847_v38   ;;  %v12851_v51 = vld [vmem:[%s20018_s3 + $0x8e] ss:$0 sm:$0xff] }
 0x72c   : > { %v16136_v32 = vpop.permute.xlu1 %8196  ;;  %v16138_v2 = vpop.permute.xlu0 %8198 }
 0x72d   : > { %20363 = vst [vmem:[#allocation160_spill] sm:$0xff] %v16136_v32  ;;  %20364 = vst [vmem:[#allocation161_spill] sm:$0xff] %v16138_v2 }
 0x72e   : > { %8598 = vperm.xlu0 %13092, %v12850_v31   ;;  %8594 = vperm.xlu1 %13093, %v12849_v20  }
 0x730   : > { %v16146_v38 = vpop.permute.xlu1 %8200  ;;  %v16148_v19 = vpop.permute.xlu0 %8202 }
 0x731   : > { %20365 = vst [vmem:[#allocation162_spill] sm:$0xff] %v16146_v38  ;;  %20366 = vst [vmem:[#allocation163_spill] sm:$0xff] %v16148_v19  ;;  %v20515_v19 = vld [vmem:[#allocation17_spill] sm:$0xff] }
 0x732   : > { %8606 = vperm.xlu0 %13092, %v12852_v50   ;;  %8602 = vperm.xlu1 %13093, %v12851_v51  }
 0x734   : > { %v16150_v62 = vpop.permute.xlu1 %8204  ;;  %v16152_v32 = vpop.permute.xlu0 %8206 }
 0x735   : > { %20367 = vst [vmem:[#allocation164_spill] sm:$0xff] %v16150_v62  ;;  %20368 = vst [vmem:[#allocation165_spill] sm:$0xff] %v16152_v32 }
 0x738   : > { %v16154_v31 = vpop.permute.xlu1 %8208  ;;  %v16156_v20 = vpop.permute.xlu0 %8210 }
 0x739   : > { %20369 = vst [vmem:[#allocation166_spill] sm:$0xff] %v16154_v31  ;;  %20370 = vst [vmem:[#allocation167_spill] sm:$0xff] %v16156_v20 }
 0x73c   : > { %v16158_v2 = vpop.permute.xlu1 %8212  ;;  %v16160_v5 = vpop.permute.xlu0 %8214 }
 0x73d   : > { %20371 = vst [vmem:[#allocation168_spill] sm:$0xff] %v16158_v2  ;;  %20372 = vst [vmem:[#allocation169_spill] sm:$0xff] %v16160_v5 }
 0x740   : > { %v16162_v8 = vpop.permute.xlu1 %8216  ;;  %v16164_v40 = vpop.permute.xlu0 %8218 }
 0x741   : > { %20373 = vst [vmem:[#allocation170_spill] sm:$0xff] %v16162_v8  ;;  %20374 = vst [vmem:[#allocation171_spill] sm:$0xff] %v16164_v40 }
 0x744   : > { %v16166_v38 = vpop.permute.xlu1 %8220  ;;  %v16168_v50 = vpop.permute.xlu0 %8222 }
 0x745   : > { %20375 = vst [vmem:[#allocation172_spill] sm:$0xff] %v16166_v38  ;;  %20376 = vst [vmem:[#allocation173_spill] sm:$0xff] %v16168_v50 }
 0x748   : > { %v16170_v51 = vpop.permute.xlu1 %8224  ;;  %v16172_v62 = vpop.permute.xlu0 %8226 }
 0x749   : > { %20377 = vst [vmem:[#allocation174_spill] sm:$0xff] %v16170_v51  ;;  %20378 = vst [vmem:[#allocation175_spill] sm:$0xff] %v16172_v62 }
 0x74c   : > { %v16174_v32 = vpop.permute.xlu1 %8228  ;;  %v16176_v31 = vpop.permute.xlu0 %8230 }
 0x74d   : > { %20379 = vst [vmem:[#allocation176_spill] sm:$0xff] %v16174_v32  ;;  %20380 = vst [vmem:[#allocation177_spill] sm:$0xff] %v16176_v31 }
 0x750   : > { %v16178_v20 = vpop.permute.xlu1 %8232  ;;  %v16180_v2 = vpop.permute.xlu0 %8234 }
 0x751   : > { %20381 = vst [vmem:[#allocation178_spill] sm:$0xff] %v16178_v20  ;;  %20382 = vst [vmem:[#allocation179_spill] sm:$0xff] %v16180_v2 }
 0x754   : > { %v16182_v5 = vpop.permute.xlu1 %8236  ;;  %v16184_v8 = vpop.permute.xlu0 %8238 }
 0x755   : > { %20383 = vst [vmem:[#allocation180_spill] sm:$0xff] %v16182_v5  ;;  %20384 = vst [vmem:[#allocation181_spill] sm:$0xff] %v16184_v8 }
 0x758   : > { %v16186_v40 = vpop.permute.xlu1 %8240  ;;  %v16188_v38 = vpop.permute.xlu0 %8242 }
 0x759   : > { %20385 = vst [vmem:[#allocation182_spill] sm:$0xff] %v16186_v40  ;;  %20386 = vst [vmem:[#allocation183_spill] sm:$0xff] %v16188_v38 }
 0x75c   : > { %v16190_v50 = vpop.permute.xlu1 %8244  ;;  %v16192_v51 = vpop.permute.xlu0 %8246 }
 0x75d   : > { %20387 = vst [vmem:[#allocation184_spill] sm:$0xff] %v16190_v50  ;;  %20388 = vst [vmem:[#allocation185_spill] sm:$0xff] %v16192_v51 }
 0x760   : > { %v16194_v62 = vpop.permute.xlu1 %8248  ;;  %v16196_v32 = vpop.permute.xlu0 %8250 }
 0x761   : > { %20389 = vst [vmem:[#allocation186_spill] sm:$0xff] %v16194_v62  ;;  %20390 = vst [vmem:[#allocation187_spill] sm:$0xff] %v16196_v32 }
 0x764   : > { %v16198_v31 = vpop.permute.xlu1 %8252  ;;  %v16200_v20 = vpop.permute.xlu0 %8254 }
 0x765   : > { %20391 = vst [vmem:[#allocation188_spill] sm:$0xff] %v16198_v31  ;;  %20392 = vst [vmem:[#allocation189_spill] sm:$0xff] %v16200_v20 }
 0x768   : > { %v16202_v2 = vpop.permute.xlu1 %8256  ;;  %v16204_v5 = vpop.permute.xlu0 %8258 }
 0x769   : > { %20393 = vst [vmem:[#allocation190_spill] sm:$0xff] %v16202_v2  ;;  %20394 = vst [vmem:[#allocation191_spill] sm:$0xff] %v16204_v5  ;;  %v20514_v5 = vld [vmem:[#allocation16_spill] sm:$0xff] }
 0x76c   : > { %v16206_v8 = vpop.permute.xlu1 %8260  ;;  %v16208_v40 = vpop.permute.xlu0 %8262 }
 0x76d   : > { %20395 = vst [vmem:[#allocation192_spill] sm:$0xff] %v16206_v8  ;;  %20396 = vst [vmem:[#allocation193_spill] sm:$0xff] %v16208_v40 }
 0x770   : > { %v16210_v38 = vpop.permute.xlu1 %8264  ;;  %v16212_v50 = vpop.permute.xlu0 %8266 }
 0x771   : > { %20397 = vst [vmem:[#allocation194_spill] sm:$0xff] %v16210_v38  ;;  %20398 = vst [vmem:[#allocation195_spill] sm:$0xff] %v16212_v50  ;;  %v13115_v50 = vld [vmem:[#allocation3 + $0xf0] sm:$0xff] }
 0x774   : > { %v16214_v51 = vpop.permute.xlu1 %8268  ;;  %v16216_v62 = vpop.permute.xlu0 %8270 }
 0x775   : > { %20399 = vst [vmem:[#allocation196_spill] sm:$0xff] %v16214_v51  ;;  %20400 = vst [vmem:[#allocation197_spill] sm:$0xff] %v16216_v62 }
 0x785   : > { %v8515_v32 = vpop.permute.xlu1 %8514  ;;  %v8519_v2 = vpop.permute.xlu0 %8518 }
 0x786   : > { %v8609_v31 = vmul.f32 %v8515_v32, %v15858_v58  ;;  %v8610_v20 = vmul.f32 %v8515_v32, %v15860_v14  ;;  %v8611_v40 = vmul.f32 %v8519_v2, %v15866_v15  ;;  %v8612_v38 = vmul.f32 %v8519_v2, %v15868_v10 }
 0x788   : > { %8707 = vrot.lane.b32.xlu0 %v8610_v20, %s13288_s17  ;;  %8705 = vrot.lane.b32.xlu1 %v8609_v31, %s13288_s17 }
 0x789   : > { %v8523_v8 = vpop.permute.xlu1 %8522  ;;  %v8527_v51 = vpop.permute.xlu0 %8526 }
 0x78a   : > { %v8613_v62 = vmul.f32 %v8523_v8, %v15874_v25  ;;  %v8614_v58 = vmul.f32 %v8523_v8, %v15876_v52  ;;  %v8615_v14 = vmul.f32 %v8527_v51, %v15882_v60  ;;  %v8616_v15 = vmul.f32 %v8527_v51, %v15884_v29 }
 0x78c   : > { %8711 = vrot.lane.b32.xlu0 %v8612_v38, %s13288_s17  ;;  %8709 = vrot.lane.b32.xlu1 %v8611_v40, %s13288_s17 }
 0x78d   : > { %v8531_v32 = vpop.permute.xlu1 %8530  ;;  %v8535_v10 = vpop.permute.xlu0 %8534 }
 0x78e   : > { %v8617_v40 = vmul.f32 %v8531_v32, %v15890_v30  ;;  %v8618_v25 = vmul.f32 %v8531_v32, %v15892_v39  ;;  %v8619_v8 = vmul.f32 %v8535_v10, %v15898_v47 }
 0x790   : > { %8715 = vrot.lane.b32.xlu0 %v8614_v58, %s13288_s17  ;;  %8713 = vrot.lane.b32.xlu1 %v8613_v62, %s13288_s17  ;;  %v8620_v62 = vmul.f32 %v8535_v10, %v15900_v45 }
 0x791   : > { %v8539_v60 = vpop.permute.xlu1 %8538  ;;  %v8543_v29 = vpop.permute.xlu0 %8542 }
 0x792   : > { %v8621_v52 = vmul.f32 %v8539_v60, %v15906_v28  ;;  %v8622_v30 = vmul.f32 %v8539_v60, %v15908_v11  ;;  %v8623_v39 = vmul.f32 %v8543_v29, %v15914_v49  ;;  %v8624_v47 = vmul.f32 %v8543_v29, %v15916_v54  ;;  %v12884_v29 = vld [vmem:[%s20018_s3 + $0x97] ss:$0 sm:$0xff] }
 0x794   : > { %8719 = vrot.lane.b32.xlu0 %v8616_v15, %s13288_s17  ;;  %8717 = vrot.lane.b32.xlu1 %v8615_v14, %s13288_s17 }
 0x795   : > { %v8547_v2 = vpop.permute.xlu1 %8546  ;;  %v8551_v38 = vpop.permute.xlu0 %8550 }
 0x796   : > { %v8625_v45 = vmul.f32 %v8547_v2, %v15922_v23  ;;  %v8626_v28 = vmul.f32 %v8547_v2, %v15924_v36  ;;  %v8627_v11 = vmul.f32 %v8551_v38, %v15930_v55  ;;  %v8628_v49 = vmul.f32 %v8551_v38, %v15932_v33  ;;  %v12885_v2 = vld [vmem:[%s20018_s3 + $0x98] ss:$0 sm:$0xff] }
 0x798   : > { %8723 = vrot.lane.b32.xlu0 %v8618_v25, %s13288_s17  ;;  %8721 = vrot.lane.b32.xlu1 %v8617_v40, %s13288_s17 }
 0x799   : > { %v8555_v31 = vpop.permute.xlu1 %8554  ;;  %v8559_v20 = vpop.permute.xlu0 %8558 }
 0x79a   : > { %v8629_v54 = vmul.f32 %v8555_v31, %v15938_v53  ;;  %v8630_v23 = vmul.f32 %v8555_v31, %v15940_v41  ;;  %v8631_v36 = vmul.f32 %v8559_v20, %v15946_v0  ;;  %v8632_v55 = vmul.f32 %v8559_v20, %v15948_v57  ;;  %v12889_v31 = vld [vmem:[%s20018_s3 + $0x9c] ss:$0 sm:$0xff]  ;;  %v12892_v20 = vld [vmem:[%s20018_s3 + $0x9f] ss:$0 sm:$0xff] }
 0x79c   : > { %8727 = vrot.lane.b32.xlu0 %v8620_v62, %s13288_s17  ;;  %8725 = vrot.lane.b32.xlu1 %v8619_v8, %s13288_s17 }
 0x79d   : > { %v8563_v51 = vpop.permute.xlu1 %8562  ;;  %v8567_v58 = vpop.permute.xlu0 %8566 }
 0x79e   : > { %v8633_v33 = vmul.f32 %v8563_v51, %v15954_v12  ;;  %v8634_v53 = vmul.f32 %v8563_v51, %v15956_v35  ;;  %v8635_v41 = vmul.f32 %v8567_v58, %v15962_v27  ;;  %v8636_v0 = vmul.f32 %v8567_v58, %v15964_v43 }
 0x7a0   : > { %8731 = vrot.lane.b32.xlu0 %v8622_v30, %s13288_s17  ;;  %8729 = vrot.lane.b32.xlu1 %v8621_v52, %s13288_s17  ;;  %v12881_v30 = vld [vmem:[%s20018_s3 + $0x94] ss:$0 sm:$0xff] }
 0x7a1   : > { %v8571_v14 = vpop.permute.xlu1 %8570  ;;  %v8575_v15 = vpop.permute.xlu0 %8574 }
 0x7a2   : > { %v8637_v57 = vmul.f32 %v8571_v14, %v15970_v13  ;;  %v8638_v12 = vmul.f32 %v8571_v14, %v15972_v22  ;;  %v8639_v35 = vmul.f32 %v8575_v15, %v15978_v17  ;;  %v8640_v27 = vmul.f32 %v8575_v15, %v15980_v63  ;;  %v12895_v14 = vld [vmem:[%s20018_s3 + $0xa2] ss:$0 sm:$0xff]  ;;  %v12898_v15 = vld [vmem:[%s20018_s3 + $0xa5] ss:$0 sm:$0xff] }
 0x7a4   : > { %8735 = vrot.lane.b32.xlu0 %v8624_v47, %s13288_s17  ;;  %8733 = vrot.lane.b32.xlu1 %v8623_v39, %s13288_s17  ;;  %v12883_v39 = vld [vmem:[%s20018_s3 + $0x96] ss:$0 sm:$0xff]  ;;  %v12886_v47 = vld [vmem:[%s20018_s3 + $0x99] ss:$0 sm:$0xff] }
 0x7a5   : > { %v8579_v32 = vpop.permute.xlu1 %8578  ;;  %v8583_v40 = vpop.permute.xlu0 %8582 }
 0x7a6   : > { %v8641_v43 = vmul.f32 %v8579_v32, %v15986_v42  ;;  %v8642_v13 = vmul.f32 %v8579_v32, %v15988_v18  ;;  %v8643_v22 = vmul.f32 %v8583_v40, %v15994_v6  ;;  %v8644_v17 = vmul.f32 %v8583_v40, %v15996_v26 }
 0x7a8   : > { %8739 = vrot.lane.b32.xlu0 %v8626_v28, %s13288_s17  ;;  %8737 = vrot.lane.b32.xlu1 %v8625_v45, %s13288_s17  ;;  %v12888_v45 = vld [vmem:[%s20018_s3 + $0x9b] ss:$0 sm:$0xff]  ;;  %v12887_v28 = vld [vmem:[%s20018_s3 + $0x9a] ss:$0 sm:$0xff] }
 0x7a9   : > { %v8587_v25 = vpop.permute.xlu1 %8586  ;;  %v8591_v10 = vpop.permute.xlu0 %8590 }
 0x7aa   : > { %v8645_v63 = vmul.f32 %v8587_v25, %v16002_v44  ;;  %v8646_v42 = vmul.f32 %v8587_v25, %v16004_v46  ;;  %v8647_v18 = vmul.f32 %v8591_v10, %v16010_v7  ;;  %v8648_v6 = vmul.f32 %v8591_v10, %v16012_v9  ;;  %v12925_v25 = vld [vmem:[%s20018_s3 + $0xa8] ss:$0 sm:$0xff]  ;;  %v12928_v10 = vld [vmem:[%s20018_s3 + $0xab] ss:$0 sm:$0xff] }
 0x7ac   : > { %8743 = vrot.lane.b32.xlu0 %v8628_v49, %s13288_s17  ;;  %8741 = vrot.lane.b32.xlu1 %v8627_v11, %s13288_s17  ;;  %v12890_v49 = vld [vmem:[%s20018_s3 + $0x9d] ss:$0 sm:$0xff] }
 0x7ad   : > { %v8595_v8 = vpop.permute.xlu1 %8594  ;;  %v8599_v62 = vpop.permute.xlu0 %8598 }
 0x7ae   : > { %v8649_v26 = vmul.f32 %v8595_v8, %v16018_v37  ;;  %v8650_v44 = vmul.f32 %v8595_v8, %v16020_v16  ;;  %v8651_v46 = vmul.f32 %v8599_v62, %v16026_v21  ;;  %v8652_v7 = vmul.f32 %v8599_v62, %v16028_v59  ;;  %v12878_v59 = vld [vmem:[%s20018_s3 + $0x91] ss:$0 sm:$0xff] }
 0x7b0   : > { %8747 = vrot.lane.b32.xlu0 %v8630_v23, %s13288_s17  ;;  %8745 = vrot.lane.b32.xlu1 %v8629_v54, %s13288_s17 }
 0x7b1   : > { %v8603_v60 = vpop.permute.xlu1 %8602  ;;  %v8607_v52 = vpop.permute.xlu0 %8606 }
 0x7b2   : > { %v8653_v9 = vmul.f32 %v8603_v60, %v16034_v34  ;;  %v8654_v37 = vmul.f32 %v8603_v60, %v16036_v61  ;;  %v8655_v16 = vmul.f32 %v8607_v52, %v16042_v24  ;;  %v8656_v21 = vmul.f32 %v8607_v52, %v16044_v56  ;;  %v12877_v34 = vld [vmem:[%s20018_s3 + $0x90] ss:$0 sm:$0xff]  ;;  %v12880_v24 = vld [vmem:[%s20018_s3 + $0x93] ss:$0 sm:$0xff]  ;;  %v12879_v61 = vld [vmem:[%s20018_s3 + $0x92] ss:$0 sm:$0xff] }
 0x7b3   : > { %v12882_v56 = vld [vmem:[%s20018_s3 + $0x95] ss:$0 sm:$0xff]  ;;  %v12931_v60 = vld [vmem:[%s20018_s3 + $0xae] ss:$0 sm:$0xff]  ;;  %v12934_v52 = vld [vmem:[%s20018_s3 + $0xb1] ss:$0 sm:$0xff] }
 0x7b4   : > { %8751 = vrot.lane.b32.xlu0 %v8632_v55, %s13288_s17  ;;  %8749 = vrot.lane.b32.xlu1 %v8631_v36, %s13288_s17  ;;  %v12891_v36 = vld [vmem:[%s20018_s3 + $0x9e] ss:$0 sm:$0xff] }
 0x7b8   : > { %8755 = vrot.lane.b32.xlu0 %v8634_v53, %s13288_s17  ;;  %8753 = vrot.lane.b32.xlu1 %v8633_v33, %s13288_s17  ;;  %v12894_v33 = vld [vmem:[%s20018_s3 + $0xa1] ss:$0 sm:$0xff]  ;;  %v12893_v53 = vld [vmem:[%s20018_s3 + $0xa0] ss:$0 sm:$0xff] }
 0x7bc   : > { %8759 = vrot.lane.b32.xlu0 %v8636_v0, %s13288_s17  ;;  %8757 = vrot.lane.b32.xlu1 %v8635_v41, %s13288_s17  ;;  %v12896_v0 = vld [vmem:[%s20018_s3 + $0xa3] ss:$0 sm:$0xff] }
 0x7c0   : > { %8763 = vrot.lane.b32.xlu0 %v8638_v12, %s13288_s17  ;;  %8761 = vrot.lane.b32.xlu1 %v8637_v57, %s13288_s17 }
 0x7c4   : > { %8767 = vrot.lane.b32.xlu0 %v8640_v27, %s13288_s17  ;;  %8765 = vrot.lane.b32.xlu1 %v8639_v35, %s13288_s17  ;;  %v12897_v35 = vld [vmem:[%s20018_s3 + $0xa4] ss:$0 sm:$0xff] }
 0x7c8   : > { %8771 = vrot.lane.b32.xlu0 %v8642_v13, %s13288_s17  ;;  %8769 = vrot.lane.b32.xlu1 %v8641_v43, %s13288_s17  ;;  %v12900_v43 = vld [vmem:[%s20018_s3 + $0xa7] ss:$0 sm:$0xff]  ;;  %v12899_v13 = vld [vmem:[%s20018_s3 + $0xa6] ss:$0 sm:$0xff] }
 0x7cc   : > { %8775 = vrot.lane.b32.xlu0 %v8644_v17, %s13288_s17  ;;  %8773 = vrot.lane.b32.xlu1 %v8643_v22, %s13288_s17  ;;  %v12926_v17 = vld [vmem:[%s20018_s3 + $0xa9] ss:$0 sm:$0xff] }
 0x7d0   : > { %8779 = vrot.lane.b32.xlu0 %v8646_v42, %s13288_s17  ;;  %8777 = vrot.lane.b32.xlu1 %v8645_v63, %s13288_s17 }
 0x7d4   : > { %8783 = vrot.lane.b32.xlu0 %v8648_v6, %s13288_s17  ;;  %8781 = vrot.lane.b32.xlu1 %v8647_v18, %s13288_s17  ;;  %v12927_v18 = vld [vmem:[%s20018_s3 + $0xaa] ss:$0 sm:$0xff] }
 0x7d8   : > { %8787 = vrot.lane.b32.xlu0 %v8650_v44, %s13288_s17  ;;  %8785 = vrot.lane.b32.xlu1 %v8649_v26, %s13288_s17  ;;  %v12930_v26 = vld [vmem:[%s20018_s3 + $0xad] ss:$0 sm:$0xff]  ;;  %v12929_v44 = vld [vmem:[%s20018_s3 + $0xac] ss:$0 sm:$0xff] }
 0x7dc   : > { %8791 = vrot.lane.b32.xlu0 %v8652_v7, %s13288_s17  ;;  %8789 = vrot.lane.b32.xlu1 %v8651_v46, %s13288_s17  ;;  %v12932_v7 = vld [vmem:[%s20018_s3 + $0xaf] ss:$0 sm:$0xff] }
 0x7e0   : > { %8795 = vrot.lane.b32.xlu0 %v8654_v37, %s13288_s17  ;;  %8793 = vrot.lane.b32.xlu1 %v8653_v9, %s13288_s17 }
 0x7e4   : > { %8799 = vrot.lane.b32.xlu0 %v8656_v21, %s13288_s17  ;;  %8797 = vrot.lane.b32.xlu1 %v8655_v16, %s13288_s17  ;;  %v12933_v16 = vld [vmem:[%s20018_s3 + $0xb0] ss:$0 sm:$0xff] }
 0x7e8   : > { %9095 = vperm.xlu0 %13092, %v12878_v59   ;;  %9091 = vperm.xlu1 %13093, %v12877_v34   ;;  %v12936_v34 = vld [vmem:[%s20018_s3 + $0xb3] ss:$0 sm:$0xff] }
 0x7ec   : > { %9103 = vperm.xlu0 %13092, %v12880_v24   ;;  %9099 = vperm.xlu1 %13093, %v12879_v61   ;;  %v12935_v24 = vld [vmem:[%s20018_s3 + $0xb2] ss:$0 sm:$0xff] }
 0x7f0   : > { %9111 = vperm.xlu0 %13092, %v12882_v56   ;;  %9107 = vperm.xlu1 %13093, %v12881_v30   ;;  %v12938_v30 = vld [vmem:[%s20018_s3 + $0xb5] ss:$0 sm:$0xff] }
 0x7f4   : > { %9119 = vperm.xlu0 %13092, %v12884_v29   ;;  %9115 = vperm.xlu1 %13093, %v12883_v39   ;;  %v12937_v29 = vld [vmem:[%s20018_s3 + $0xb4] ss:$0 sm:$0xff] }
 0x7f8   : > { %9127 = vperm.xlu0 %13092, %v12886_v47   ;;  %9123 = vperm.xlu1 %13093, %v12885_v2   ;;  %v12940_v2 = vld [vmem:[%s20018_s3 + $0xb7] ss:$0 sm:$0xff] }
 0x7fa   : > { %v16350_v38 = vpop.permute.xlu1 %8705  ;;  %v16352_v11 = vpop.permute.xlu0 %8707 }
 0x7fb   : > { %20401 = vst [vmem:[#allocation198_spill] sm:$0xff] %v16350_v38  ;;  %20402 = vst [vmem:[#allocation199_spill] sm:$0xff] %v16352_v11  ;;  %v13114_v38 = vld [vmem:[#allocation3 + $0xe0] sm:$0xff] }
 0x7fc   : > { %9135 = vperm.xlu0 %13092, %v12888_v45   ;;  %9131 = vperm.xlu1 %13093, %v12887_v28   ;;  %v12939_v45 = vld [vmem:[%s20018_s3 + $0xb6] ss:$0 sm:$0xff] }
 0x7fe   : > { %v16360_v54 = vpop.permute.xlu1 %8709  ;;  %v16362_v23 = vpop.permute.xlu0 %8711 }
 0x7ff   : > { %20403 = vst [vmem:[#allocation200_spill] sm:$0xff] %v16360_v54  ;;  %20404 = vst [vmem:[#allocation201_spill] sm:$0xff] %v16362_v23  ;;  %v13113_v23 = vld [vmem:[#allocation3 + $0xd8] sm:$0xff]  ;;  %v20513_v54 = vld [vmem:[#allocation15_spill] sm:$0xff] }
 0x800   : > { %9143 = vperm.xlu0 %13092, %v12890_v49   ;;  %9139 = vperm.xlu1 %13093, %v12889_v31   ;;  %v12942_v31 = vld [vmem:[%s20018_s3 + $0xb9] ss:$0 sm:$0xff]  ;;  %v16944_v11 = vmul.f32 %v13113_v23, %v20513_v54 }
 0x802   : > { %v16370_v55 = vpop.permute.xlu1 %8713  ;;  %v16372_v51 = vpop.permute.xlu0 %8715 }
 0x803   : > { %20405 = vst [vmem:[#allocation202_spill] sm:$0xff] %v16370_v55  ;;  %20406 = vst [vmem:[#allocation203_spill] sm:$0xff] %v16372_v51  ;;  %v20512_v51 = vld [vmem:[#allocation14_spill] sm:$0xff] }
 0x804   : > { %9151 = vperm.xlu0 %13092, %v12892_v20   ;;  %9147 = vperm.xlu1 %13093, %v12891_v36   ;;  %v12941_v20 = vld [vmem:[%s20018_s3 + $0xb8] ss:$0 sm:$0xff] }
 0x806   : > { %v16380_v58 = vpop.permute.xlu1 %8717  ;;  %v16382_v41 = vpop.permute.xlu0 %8719 }
 0x807   : > { %20407 = vst [vmem:[#allocation204_spill] sm:$0xff] %v16380_v58  ;;  %20408 = vst [vmem:[#allocation205_spill] sm:$0xff] %v16382_v41  ;;  %v20511_v41 = vld [vmem:[#allocation13_spill] sm:$0xff] }
 0x808   : > { %9159 = vperm.xlu0 %13092, %v12894_v33   ;;  %9155 = vperm.xlu1 %13093, %v12893_v53   ;;  %v12944_v53 = vld [vmem:[%s20018_s3 + $0xbb] ss:$0 sm:$0xff]  ;;  %v13111_v58 = vld [vmem:[#allocation3 + $0xc0] sm:$0xff] }
 0x80a   : > { %v16390_v57 = vpop.permute.xlu1 %8721  ;;  %v16392_v12 = vpop.permute.xlu0 %8723 }
 0x80b   : > { %20409 = vst [vmem:[#allocation206_spill] sm:$0xff] %v16390_v57  ;;  %20410 = vst [vmem:[#allocation207_spill] sm:$0xff] %v16392_v12 }
 0x80c   : > { %9167 = vperm.xlu0 %13092, %v12896_v0   ;;  %9163 = vperm.xlu1 %13093, %v12895_v14   ;;  %v12943_v0 = vld [vmem:[%s20018_s3 + $0xba] ss:$0 sm:$0xff] }
 0x80e   : > { %v16400_v27 = vpop.permute.xlu1 %8725  ;;  %v16402_v32 = vpop.permute.xlu0 %8727 }
 0x80f   : > { %20411 = vst [vmem:[#allocation208_spill] sm:$0xff] %v16400_v27  ;;  %20412 = vst [vmem:[#allocation209_spill] sm:$0xff] %v16402_v32  ;;  %v13103_v32 = vld [vmem:[#allocation3 + $0x60] sm:$0xff]  ;;  %v20507_v27 = vld [vmem:[#allocation10_spill] sm:$0xff] }
 0x810   : > { %9175 = vperm.xlu0 %13092, %v12898_v15   ;;  %9171 = vperm.xlu1 %13093, %v12897_v35   ;;  %v12946_v35 = vld [vmem:[%s20018_s3 + $0xbd] ss:$0 sm:$0xff] }
 0x812   : > { %v16410_v40 = vpop.permute.xlu1 %8729  ;;  %v16412_v22 = vpop.permute.xlu0 %8731 }
 0x813   : > { %20413 = vst [vmem:[#allocation210_spill] sm:$0xff] %v16410_v40  ;;  %20414 = vst [vmem:[#allocation211_spill] sm:$0xff] %v16412_v22  ;;  %v13097_v22 = vld [vmem:[#allocation3 + $0x18] sm:$0xff] }
 0x814   : > { %9183 = vperm.xlu0 %13092, %v12900_v43   ;;  %9179 = vperm.xlu1 %13093, %v12899_v13   ;;  %v12945_v43 = vld [vmem:[%s20018_s3 + $0xbc] ss:$0 sm:$0xff] }
 0x816   : > { %v16420_v63 = vpop.permute.xlu1 %8733  ;;  %v16422_v42 = vpop.permute.xlu0 %8735 }
 0x817   : > { %20415 = vst [vmem:[#allocation212_spill] sm:$0xff] %v16420_v63  ;;  %20416 = vst [vmem:[#allocation213_spill] sm:$0xff] %v16422_v42 }
 0x818   : > { %9432 = vperm.xlu0 %13092, %v12926_v17   ;;  %9428 = vperm.xlu1 %13093, %v12925_v25   ;;  %v12948_v25 = vld [vmem:[%s20018_s3 + $0xbf] ss:$0 sm:$0xff] }
 0x81a   : > { %v16430_v6 = vpop.permute.xlu1 %8737  ;;  %v16432_v8 = vpop.permute.xlu0 %8739 }
 0x81b   : > { %20417 = vst [vmem:[#allocation214_spill] sm:$0xff] %v16430_v6  ;;  %20418 = vst [vmem:[#allocation215_spill] sm:$0xff] %v16432_v8 }
 0x81c   : > { %9440 = vperm.xlu0 %13092, %v12928_v10   ;;  %9436 = vperm.xlu1 %13093, %v12927_v18   ;;  %v12947_v10 = vld [vmem:[%s20018_s3 + $0xbe] ss:$0 sm:$0xff] }
 0x81e   : > { %v16440_v62 = vpop.permute.xlu1 %8741  ;;  %v16442_v46 = vpop.permute.xlu0 %8743 }
 0x81f   : > { %20419 = vst [vmem:[#allocation216_spill] sm:$0xff] %v16440_v62  ;;  %20420 = vst [vmem:[#allocation217_spill] sm:$0xff] %v16442_v46 }
 0x820   : > { %9448 = vperm.xlu0 %13092, %v12930_v26   ;;  %9444 = vperm.xlu1 %13093, %v12929_v44  }
 0x822   : > { %v16450_v9 = vpop.permute.xlu1 %8745  ;;  %v16452_v37 = vpop.permute.xlu0 %8747 }
 0x823   : > { %20421 = vst [vmem:[#allocation218_spill] sm:$0xff] %v16450_v9  ;;  %20422 = vst [vmem:[#allocation219_spill] sm:$0xff] %v16452_v37 }
 0x824   : > { %9456 = vperm.xlu0 %13092, %v12932_v7   ;;  %9452 = vperm.xlu1 %13093, %v12931_v60  }
 0x826   : > { %v16460_v21 = vpop.permute.xlu1 %8749  ;;  %v16462_v59 = vpop.permute.xlu0 %8751 }
 0x827   : > { %20423 = vst [vmem:[#allocation220_spill] sm:$0xff] %v16460_v21  ;;  %20424 = vst [vmem:[#allocation221_spill] sm:$0xff] %v16462_v59  ;;  %v16792_v59 = vld [vmem:[#allocation3 + $0x112] sm:$0xff] }
 0x828   : > { %9464 = vperm.xlu0 %13092, %v12934_v52   ;;  %9460 = vperm.xlu1 %13093, %v12933_v16  }
 0x82a   : > { %v16470_v61 = vpop.permute.xlu1 %8753  ;;  %v16472_v56 = vpop.permute.xlu0 %8755 }
 0x82b   : > { %20425 = vst [vmem:[#allocation222_spill] sm:$0xff] %v16470_v61  ;;  %20426 = vst [vmem:[#allocation223_spill] sm:$0xff] %v16472_v56  ;;  %v16783_v56 = vld [vmem:[#allocation3 + $0xf2] sm:$0xff] }
 0x82c   : > { %9472 = vperm.xlu0 %13092, %v12936_v34   ;;  %9468 = vperm.xlu1 %13093, %v12935_v24  }
 0x82e   : > { %v16480_v39 = vpop.permute.xlu1 %8757  ;;  %v16482_v47 = vpop.permute.xlu0 %8759 }
 0x82f   : > { %20427 = vst [vmem:[#allocation224_spill] sm:$0xff] %v16480_v39  ;;  %20428 = vst [vmem:[#allocation225_spill] sm:$0xff] %v16482_v47 }
 0x830   : > { %9480 = vperm.xlu0 %13092, %v12938_v30   ;;  %9476 = vperm.xlu1 %13093, %v12937_v29  }
 0x832   : > { %v16490_v28 = vpop.permute.xlu1 %8761  ;;  %v16492_v49 = vpop.permute.xlu0 %8763 }
 0x833   : > { %20429 = vst [vmem:[#allocation226_spill] sm:$0xff] %v16490_v28  ;;  %20430 = vst [vmem:[#allocation227_spill] sm:$0xff] %v16492_v49  ;;  %v16763_v49 = vld [vmem:[#allocation3 + $0xfa] sm:$0xff] }
 0x834   : > { %9488 = vperm.xlu0 %13092, %v12940_v2   ;;  %9484 = vperm.xlu1 %13093, %v12939_v45  }
 0x836   : > { %v16500_v36 = vpop.permute.xlu1 %8765  ;;  %v16502_v33 = vpop.permute.xlu0 %8767 }
 0x837   : > { %20431 = vst [vmem:[#allocation228_spill] sm:$0xff] %v16500_v36  ;;  %20432 = vst [vmem:[#allocation229_spill] sm:$0xff] %v16502_v33  ;;  %v13001_v36 = vld [vmem:[%s20019_s4 + $0x4] ss:$0 sm:$0xff] }
 0x838   : > { %9496 = vperm.xlu0 %13092, %v12942_v31   ;;  %9492 = vperm.xlu1 %13093, %v12941_v20  }
 0x83a   : > { %v16510_v14 = vpop.permute.xlu1 %8769  ;;  %v16512_v15 = vpop.permute.xlu0 %8771 }
 0x83b   : > { %20433 = vst [vmem:[#allocation230_spill] sm:$0xff] %v16510_v14  ;;  %20434 = vst [vmem:[#allocation231_spill] sm:$0xff] %v16512_v15  ;;  %v8916_v15 = vld [vmem:[#allocation3 + $0xe2] sm:$0xff]  ;;  %v13008_v14 = vld [vmem:[%s20019_s4 + $0xb] ss:$0 sm:$0xff] }
 0x83c   : > { %9504 = vperm.xlu0 %13092, %v12944_v53   ;;  %9500 = vperm.xlu1 %13093, %v12943_v0  }
 0x83e   : > { %v16520_v13 = vpop.permute.xlu1 %8773  ;;  %v16522_v17 = vpop.permute.xlu0 %8775 }
 0x83f   : > { %20435 = vst [vmem:[#allocation232_spill] sm:$0xff] %v16520_v13  ;;  %20436 = vst [vmem:[#allocation233_spill] sm:$0xff] %v16522_v17  ;;  %v12997_v17 = vld [vmem:[%s20019_s4] ss:$0 sm:$0xff]  ;;  %v13005_v13 = vld [vmem:[%s20019_s4 + $0x8] ss:$0 sm:$0xff] }
 0x840   : > { %9512 = vperm.xlu0 %13092, %v12946_v35   ;;  %9508 = vperm.xlu1 %13093, %v12945_v43  }
 0x842   : > { %v16530_v18 = vpop.permute.xlu1 %8777  ;;  %v16532_v26 = vpop.permute.xlu0 %8779 }
 0x843   : > { %20437 = vst [vmem:[#allocation234_spill] sm:$0xff] %v16530_v18  ;;  %20438 = vst [vmem:[#allocation235_spill] sm:$0xff] %v16532_v26  ;;  %v12999_v26 = vld [vmem:[%s20019_s4 + $0x2] ss:$0 sm:$0xff] }
 0x844   : > { %9520 = vperm.xlu0 %13092, %v12948_v25   ;;  %9516 = vperm.xlu1 %13093, %v12947_v10  }
 0x846   : > { %v16534_v44 = vpop.permute.xlu1 %8781  ;;  %v16536_v7 = vpop.permute.xlu0 %8783 }
 0x847   : > { %20439 = vst [vmem:[#allocation236_spill] sm:$0xff] %v16534_v44  ;;  %20440 = vst [vmem:[#allocation237_spill] sm:$0xff] %v16536_v7  ;;  %v16634_v7 = vld [vmem:[#allocation3 + $0x62] sm:$0xff] }
 0x848   : > { %20475 = vst [vmem:[#allocation272_spill] sm:$0xff] %v16634_v7 }
 0x84a   : > { %v16538_v60 = vpop.permute.xlu1 %8785  ;;  %v16540_v52 = vpop.permute.xlu0 %8787 }
 0x84b   : > { %20441 = vst [vmem:[#allocation238_spill] sm:$0xff] %v16538_v60  ;;  %20442 = vst [vmem:[#allocation239_spill] sm:$0xff] %v16540_v52  ;;  %v16626_v52 = vld [vmem:[#allocation3 + $0x4a] sm:$0xff] }
 0x84c   : > { %20474 = vst [vmem:[#allocation271_spill] sm:$0xff] %v16626_v52 }
 0x84e   : > { %v16542_v16 = vpop.permute.xlu1 %8789  ;;  %v16544_v34 = vpop.permute.xlu0 %8791 }
 0x84f   : > { %20443 = vst [vmem:[#allocation240_spill] sm:$0xff] %v16542_v16  ;;  %20444 = vst [vmem:[#allocation241_spill] sm:$0xff] %v16544_v34 }
 0x852   : > { %v16546_v24 = vpop.permute.xlu1 %8793  ;;  %v16548_v30 = vpop.permute.xlu0 %8795 }
 0x853   : > { %20445 = vst [vmem:[#allocation242_spill] sm:$0xff] %v16546_v24  ;;  %20446 = vst [vmem:[#allocation243_spill] sm:$0xff] %v16548_v30 }
 0x856   : > { %v16550_v29 = vpop.permute.xlu1 %8797  ;;  %v16552_v2 = vpop.permute.xlu0 %8799 }
 0x857   : > { %20447 = vst [vmem:[#allocation244_spill] sm:$0xff] %v16550_v29  ;;  %20448 = vst [vmem:[#allocation245_spill] sm:$0xff] %v16552_v2 }
 0x867   : > { %v16554_v45 = vpop.permute.xlu1 %9091  ;;  %v16556_v31 = vpop.permute.xlu0 %9095 }
 0x868   : > { %20449 = vst [vmem:[#allocation246_spill] sm:$0xff] %v16554_v45  ;;  %20450 = vst [vmem:[#allocation247_spill] sm:$0xff] %v16556_v31  ;;  %v16618_v45 = vld [vmem:[#allocation3 + $0x32] sm:$0xff] }
 0x86b   : > { %v16558_v20 = vpop.permute.xlu1 %9099  ;;  %v16560_v53 = vpop.permute.xlu0 %9103 }
 0x86c   : > { %20451 = vst [vmem:[#allocation248_spill] sm:$0xff] %v16558_v20  ;;  %20452 = vst [vmem:[#allocation249_spill] sm:$0xff] %v16560_v53 }
 0x86f   : > { %v16562_v0 = vpop.permute.xlu1 %9107  ;;  %v16564_v35 = vpop.permute.xlu0 %9111 }
 0x870   : > { %20453 = vst [vmem:[#allocation250_spill] sm:$0xff] %v16562_v0  ;;  %20454 = vst [vmem:[#allocation251_spill] sm:$0xff] %v16564_v35 }
 0x873   : > { %v16566_v43 = vpop.permute.xlu1 %9115  ;;  %v16568_v25 = vpop.permute.xlu0 %9119 }
 0x874   : > { %20455 = vst [vmem:[#allocation252_spill] sm:$0xff] %v16566_v43  ;;  %20456 = vst [vmem:[#allocation253_spill] sm:$0xff] %v16568_v25 }
 0x877   : > { %v16570_v10 = vpop.permute.xlu1 %9123  ;;  %v16572_v29 = vpop.permute.xlu0 %9127 }
 0x878   : > { %20457 = vst [vmem:[#allocation254_spill] sm:$0xff] %v16570_v10  ;;  %20458 = vst [vmem:[#allocation255_spill] sm:$0xff] %v16572_v29 }
 0x87b   : > { %v16574_v2 = vpop.permute.xlu1 %9131  ;;  %v16576_v30 = vpop.permute.xlu0 %9135 }
 0x87c   : > { %20459 = vst [vmem:[#allocation256_spill] sm:$0xff] %v16574_v2  ;;  %20460 = vst [vmem:[#allocation257_spill] sm:$0xff] %v16576_v30 }
 0x87f   : > { %v16578_v24 = vpop.permute.xlu1 %9139  ;;  %v16580_v20 = vpop.permute.xlu0 %9143 }
 0x880   : > { %20461 = vst [vmem:[#allocation258_spill] sm:$0xff] %v16578_v24  ;;  %20462 = vst [vmem:[#allocation259_spill] sm:$0xff] %v16580_v20  ;;  %v16602_v20 = vld [vmem:[#allocation3 + $0x2] sm:$0xff] }
 0x881   : > { %20473 = vst [vmem:[#allocation270_spill] sm:$0xff] %v16602_v20 }
 0x883   : > { %v16582_v53 = vpop.permute.xlu1 %9147  ;;  %v16584_v0 = vpop.permute.xlu0 %9151 }
 0x884   : > { %20463 = vst [vmem:[#allocation260_spill] sm:$0xff] %v16582_v53  ;;  %20464 = vst [vmem:[#allocation261_spill] sm:$0xff] %v16584_v0  ;;  %v16604_v53 = vld [vmem:[#allocation3 + $0xa] sm:$0xff] }
 0x887   : > { %v16586_v35 = vpop.permute.xlu1 %9155  ;;  %v16588_v43 = vpop.permute.xlu0 %9159 }
 0x888   : > { %20465 = vst [vmem:[#allocation262_spill] sm:$0xff] %v16586_v35  ;;  %20466 = vst [vmem:[#allocation263_spill] sm:$0xff] %v16588_v43 }
 0x88b   : > { %v16590_v25 = vpop.permute.xlu1 %9163  ;;  %v16592_v10 = vpop.permute.xlu0 %9167 }
 0x88c   : > { %20467 = vst [vmem:[#allocation264_spill] sm:$0xff] %v16590_v25  ;;  %20468 = vst [vmem:[#allocation265_spill] sm:$0xff] %v16592_v10 }
 0x88f   : > { %v16594_v34 = vpop.permute.xlu1 %9171  ;;  %v16596_v2 = vpop.permute.xlu0 %9175 }
 0x890   : > { %20469 = vst [vmem:[#allocation266_spill] sm:$0xff] %v16594_v34  ;;  %20470 = vst [vmem:[#allocation267_spill] sm:$0xff] %v16596_v2  ;;  %v16610_v34 = vld [vmem:[#allocation3 + $0x1a] sm:$0xff]  ;;  %v16612_v2 = vld [vmem:[#allocation3 + $0x22] sm:$0xff] }
 0x893   : > { %v16598_v30 = vpop.permute.xlu1 %9179  ;;  %v16600_v24 = vpop.permute.xlu0 %9183 }
 0x894   : > { %20471 = vst [vmem:[#allocation268_spill] sm:$0xff] %v16598_v30  ;;  %20472 = vst [vmem:[#allocation269_spill] sm:$0xff] %v16600_v24 }
 0x897   : > { %v9429_v0 = vpop.permute.xlu1 %9428  ;;  %v9433_v25 = vpop.permute.xlu0 %9432 }
 0x898   : > { %v9523_v35 = vmul.f32 %v9429_v0, %v16602_v20  ;;  %v9524_v43 = vmul.f32 %v9429_v0, %v16604_v53  ;;  %v9525_v24 = vmul.f32 %v9433_v25, %v16610_v34  ;;  %v9526_v30 = vmul.f32 %v9433_v25, %v16612_v2  ;;  %v16620_v0 = vld [vmem:[#allocation3 + $0x3a] sm:$0xff]  ;;  %v16628_v25 = vld [vmem:[#allocation3 + $0x52] sm:$0xff] }
 0x899   : > { %v13130_v20 = vld [vmem:[#allocation3 + $0x1a0] sm:$0xff] }
 0x89a   : > { %9621 = vrot.lane.b32.xlu0 %v9524_v43, %s13287_s16  ;;  %9619 = vrot.lane.b32.xlu1 %v9523_v35, %s13287_s16 }
 0x89b   : > { %v9437_v10 = vpop.permute.xlu1 %9436  ;;  %v9441_v16 = vpop.permute.xlu0 %9440 }
 0x89c   : > { %v9527_v43 = vmul.f32 %v9437_v10, %v16618_v45  ;;  %v9528_v35 = vmul.f32 %v9437_v10, %v16620_v0  ;;  %v16636_v10 = vld [vmem:[#allocation3 + $0x6a] sm:$0xff] }
 0x89d   : > { %20476 = vst [vmem:[#allocation273_spill] sm:$0xff] %v16636_v10 }
 0x89e   : > { %9625 = vrot.lane.b32.xlu0 %v9526_v30, %s13287_s16  ;;  %9623 = vrot.lane.b32.xlu1 %v9525_v24, %s13287_s16  ;;  %v9529_v30 = vmul.f32 %v9441_v16, %v16626_v52  ;;  %v9530_v24 = vmul.f32 %v9441_v16, %v16628_v25  ;;  %v8907_v16 = vld [vmem:[#allocation3 + $0x7a] sm:$0xff] }
 0x89f   : > { %v9445_v60 = vpop.permute.xlu1 %9444  ;;  %v16640_v44 = vpop.permute.xlu0 %9448 }
 0x8a2   : > { %9629 = vrot.lane.b32.xlu0 %v9528_v35, %s13287_s16  ;;  %9627 = vrot.lane.b32.xlu1 %v9527_v43, %s13287_s16  ;;  %v9531_v35 = vmul.f32 %v9445_v60, %v16634_v7  ;;  %v9532_v43 = vmul.f32 %v9445_v60, %v16636_v10  ;;  %v12975_v60 = vld [vmem:[%s20018_s3 + $0xc2] ss:$0 sm:$0xff]  ;;  %v20516_v7 = vld [vmem:[#allocation18_spill] sm:$0xff] }
 0x8a6   : > { %9633 = vrot.lane.b32.xlu0 %v9530_v24, %s13287_s16  ;;  %9631 = vrot.lane.b32.xlu1 %v9529_v30, %s13287_s16  ;;  %v12974_v24 = vld [vmem:[%s20018_s3 + $0xc1] ss:$0 sm:$0xff]  ;;  %v9533_v30 = vmul.f32 %v16640_v44, %v8907_v16  ;;  %v12983_v16 = vld [vmem:[%s20018_s3 + $0xca] ss:$0 sm:$0xff] }
 0x8aa   : > { %9637 = vrot.lane.b32.xlu0 %v9532_v43, %s13287_s16  ;;  %9635 = vrot.lane.b32.xlu1 %v9531_v35, %s13287_s16  ;;  %v12982_v43 = vld [vmem:[%s20018_s3 + $0xc9] ss:$0 sm:$0xff]  ;;  %v12973_v35 = vld [vmem:[%s20018_s3 + $0xc0] ss:$0 sm:$0xff] }
 0x8ae   : > { %9961 = vperm.xlu0 %13092, %v12974_v24   ;;  %9639 = vrot.lane.b32.xlu1 %v9533_v30, %s13287_s16  ;;  %v12981_v24 = vld [vmem:[%s20018_s3 + $0xc8] ss:$0 sm:$0xff]  ;;  %v12976_v30 = vld [vmem:[%s20018_s3 + $0xc3] ss:$0 sm:$0xff] }
 0x8b2   : > { %9965 = vperm.xlu0 %13092, %v12975_v60   ;;  %9993 = vperm.xlu1 %13093, %v12982_v43   ;;  %v12977_v60 = vld [vmem:[%s20018_s3 + $0xc4] ss:$0 sm:$0xff]  ;;  %v12984_v43 = vld [vmem:[%s20018_s3 + $0xcb] ss:$0 sm:$0xff] }
 0x8b6   : > { %9957 = vperm.xlu0 %13092, %v12973_v35   ;;  %9997 = vperm.xlu1 %13093, %v12983_v16   ;;  %v12978_v35 = vld [vmem:[%s20018_s3 + $0xc5] ss:$0 sm:$0xff]  ;;  %v12985_v16 = vld [vmem:[%s20018_s3 + $0xcc] ss:$0 sm:$0xff] }
 0x8ba   : > { %9989 = vperm.xlu0 %13092, %v12981_v24   ;;  %9969 = vperm.xlu1 %13093, %v12976_v30   ;;  %v12979_v24 = vld [vmem:[%s20018_s3 + $0xc6] ss:$0 sm:$0xff]  ;;  %v12986_v30 = vld [vmem:[%s20018_s3 + $0xcd] ss:$0 sm:$0xff] }
 0x8be   : > { %9973 = vperm.xlu0 %13092, %v12977_v60   ;;  %10001 = vperm.xlu1 %13093, %v12984_v43   ;;  %v12980_v60 = vld [vmem:[%s20018_s3 + $0xc7] ss:$0 sm:$0xff]  ;;  %v12987_v43 = vld [vmem:[%s20018_s3 + $0xce] ss:$0 sm:$0xff] }
 0x8c2   : > { %9977 = vperm.xlu0 %13092, %v12978_v35   ;;  %10005 = vperm.xlu1 %13093, %v12985_v16   ;;  %v12990_v35 = vld [vmem:[%s20018_s3 + $0xd1] ss:$0 sm:$0xff]  ;;  %v12988_v16 = vld [vmem:[%s20018_s3 + $0xcf] ss:$0 sm:$0xff] }
 0x8c6   : > { %9981 = vperm.xlu0 %13092, %v12979_v24   ;;  %10009 = vperm.xlu1 %13093, %v12986_v30   ;;  %v12989_v24 = vld [vmem:[%s20018_s3 + $0xd0] ss:$0 sm:$0xff]  ;;  %v12991_v30 = vld [vmem:[%s20018_s3 + $0xd2] ss:$0 sm:$0xff] }
 0x8ca   : > { %9985 = vperm.xlu0 %13092, %v12980_v60   ;;  %10013 = vperm.xlu1 %13093, %v12987_v43   ;;  %v12993_v60 = vld [vmem:[%s20018_s3 + $0xd4] ss:$0 sm:$0xff]  ;;  %v12992_v43 = vld [vmem:[%s20018_s3 + $0xd3] ss:$0 sm:$0xff] }
 0x8ce   : > { %10025 = vperm.xlu0 %13092, %v12990_v35   ;;  %10017 = vperm.xlu1 %13093, %v12988_v16   ;;  %v12995_v35 = vld [vmem:[%s20018_s3 + $0xd6] ss:$0 sm:$0xff]  ;;  %v12994_v16 = vld [vmem:[%s20018_s3 + $0xd5] ss:$0 sm:$0xff] }
 0x8d2   : > { %10021 = vperm.xlu0 %13092, %v12989_v24   ;;  %10029 = vperm.xlu1 %13093, %v12991_v30   ;;  %v16715_v24 = vpop.permute.xlu1 %9452  ;;  %v12998_v30 = vld [vmem:[%s20019_s4 + $0x1] ss:$0 sm:$0xff] }
 0x8d3   : > { %20477 = vst [vmem:[#allocation274_spill] sm:$0xff] %v16715_v24  ;;  %v20528_v24 = vld [vmem:[#allocation25_spill] sm:$0xff] }
 0x8d6   : > { %10037 = vperm.xlu0 %13092, %v12993_v60   ;;  %10033 = vperm.xlu1 %13093, %v12992_v43   ;;  %v12996_v60 = vld [vmem:[%s20018_s3 + $0xd7] ss:$0 sm:$0xff]  ;;  %v16723_v43 = vpop.permute.xlu0 %9456 }
 0x8d7   : > { %20478 = vst [vmem:[#allocation275_spill] sm:$0xff] %v16723_v43  ;;  %v20519_v43 = vld [vmem:[#allocation20_spill] sm:$0xff] }
 0x8da   : > { %10045 = vperm.xlu0 %13092, %v12995_v35   ;;  %10041 = vperm.xlu1 %13093, %v12994_v16   ;;  %v13006_v35 = vld [vmem:[%s20019_s4 + $0x9] ss:$0 sm:$0xff]  ;;  %v16731_v16 = vpop.permute.xlu1 %9460  ;;  %v9465_v18 = vpop.permute.xlu0 %9464 }
 0x8de   : > { %10489 = vperm.xlu0 %13092, %v12998_v30   ;;  %10049 = vperm.xlu1 %13093, %v12996_v60   ;;  %v13007_v30 = vld [vmem:[%s20019_s4 + $0xa] ss:$0 sm:$0xff]  ;;  %v9469_v60 = vpop.permute.xlu1 %9468 }
 0x8e2   : > { %10493 = vperm.xlu0 %13092, %v12999_v26   ;;  %10521 = vperm.xlu1 %13093, %v13006_v35   ;;  %v13000_v26 = vld [vmem:[%s20019_s4 + $0x3] ss:$0 sm:$0xff]  ;;  %v16745_v35 = vpop.permute.xlu0 %9472 }
 0x8e6   : > { %10485 = vperm.xlu0 %13092, %v12997_v17   ;;  %10525 = vperm.xlu1 %13093, %v13007_v30   ;;  %v9542_v17 = vmul.f32 %v9465_v18, %v8916_v15  ;;  %v16750_v30 = vpop.permute.xlu1 %9476  ;;  %v16753_v33 = vpop.permute.xlu0 %9480 }
 0x8e7   : > { %20479 = vst [vmem:[#allocation276_spill] sm:$0xff] %v16753_v33 }
 0x8ea   : > { %10517 = vperm.xlu0 %13092, %v13005_v13   ;;  %10497 = vperm.xlu1 %13093, %v13000_v26   ;;  %v13009_v13 = vld [vmem:[%s20019_s4 + $0xc] ss:$0 sm:$0xff]  ;;  %v16761_v26 = vld [vmem:[#allocation3 + $0xda] sm:$0xff]  ;;  %v16765_v28 = vpop.permute.xlu1 %9484  ;;  %v16769_v47 = vpop.permute.xlu0 %9488 }
 0x8eb   : > { %20480 = vst [vmem:[#allocation277_spill] sm:$0xff] %v16765_v28  ;;  %20481 = vst [vmem:[#allocation278_spill] sm:$0xff] %v16769_v47  ;;  %v13122_v47 = vld [vmem:[#allocation3 + $0x140] sm:$0xff]  ;;  %v13133_v28 = vld [vmem:[#allocation3 + $0x1c8] sm:$0xff] }
 0x8ee   : > { %10529 = vperm.xlu1 %13093, %v13008_v14   ;;  %9657 = vrot.lane.b32.xlu0 %v9542_v17, %s13287_s16  ;;  %v9541_v14 = vmul.f32 %v9465_v18, %v16761_v26  ;;  %v9544_v17 = vmul.f32 %v9469_v60, %v16763_v49  ;;  %v16779_v39 = vpop.permute.xlu1 %9492  ;;  %v16781_v18 = vld [vmem:[#allocation3 + $0xca] sm:$0xff]  ;;  %v16785_v61 = vpop.permute.xlu0 %9496 }
 0x8ef   : > { %20482 = vst [vmem:[#allocation279_spill] sm:$0xff] %v16779_v39  ;;  %20483 = vst [vmem:[#allocation280_spill] sm:$0xff] %v16785_v61  ;;  %v20510_v39 = vld [vmem:[#allocation12_spill] sm:$0xff]  ;;  %v20518_v61 = vld [vmem:[#allocation19_spill] sm:$0xff] }
 0x8f2   : > { %10501 = vperm.xlu1 %13093, %v13001_v36   ;;  %10533 = vperm.xlu0 %13092, %v13009_v13   ;;  %v13010_v36 = vld [vmem:[%s20019_s4 + $0xd] ss:$0 sm:$0xff]  ;;  %v13002_v13 = vld [vmem:[%s20019_s4 + $0x5] ss:$0 sm:$0xff]  ;;  %v16794_v29 = vpop.permute.xlu1 %9500 }
 0x8f3   : > { %20484 = vst [vmem:[#allocation281_spill] sm:$0xff] %v16794_v29  ;;  %v13117_v29 = vld [vmem:[#allocation3 + $0x108] sm:$0xff] }
 0x8f6   : > { %9661 = vrot.lane.b32.xlu0 %v9544_v17, %s13287_s16  ;;  %9655 = vrot.lane.b32.xlu1 %v9541_v14, %s13287_s16  ;;  %v9540_v14 = vmul.f32 %v16731_v16, %v16781_v18  ;;  %v9543_v17 = vmul.f32 %v9469_v60, %v16783_v56  ;;  %v16801_v21 = vpop.permute.xlu1 %9508 }
 0x8f7   : > { %20486 = vst [vmem:[#allocation283_spill] sm:$0xff] %v16801_v21 }
 0x8fa   : > { %10537 = vperm.xlu0 %13092, %v13010_v36   ;;  %10505 = vperm.xlu1 %13093, %v13002_v13   ;;  %v9546_v36 = vmul.f32 %v16745_v35, %v16792_v59  ;;  %v16798_v13 = vpop.permute.xlu0 %9504  ;;  %v16805_v60 = vpop.permute.xlu1 %9516 }
 0x8fb   : > { %20485 = vst [vmem:[#allocation282_spill] sm:$0xff] %v16798_v13  ;;  %20488 = vst [vmem:[#allocation285_spill] sm:$0xff] %v16805_v60 }
 0x8fe   : > { %9659 = vrot.lane.b32.xlu0 %v9543_v17, %s13287_s16  ;;  %9653 = vrot.lane.b32.xlu1 %v9540_v14, %s13287_s16  ;;  %v16803_v37 = vpop.permute.xlu0 %9512 }
 0x8ff   : > { %20487 = vst [vmem:[#allocation284_spill] sm:$0xff] %v16803_v37 }
 0x902   : > { %9665 = vrot.lane.b32.xlu1 %v9546_v36, %s13287_s16  ;;  %v16807_v17 = vpop.permute.xlu0 %9520 }
 0x903   : > { %20489 = vst [vmem:[#allocation286_spill] sm:$0xff] %v16807_v17 }
 0x90c   : > { %v16809_v14 = vpop.permute.xlu1 %9619  ;;  %v16811_v9 = vpop.permute.xlu0 %9621 }
 0x90d   : > { %20490 = vst [vmem:[#allocation287_spill] sm:$0xff] %v16809_v14  ;;  %20491 = vst [vmem:[#allocation288_spill] sm:$0xff] %v16811_v9 }
 0x910   : > { %v16813_v46 = vpop.permute.xlu1 %9623  ;;  %v16815_v62 = vpop.permute.xlu0 %9625 }
 0x911   : > { %20492 = vst [vmem:[#allocation289_spill] sm:$0xff] %v16813_v46  ;;  %20493 = vst [vmem:[#allocation290_spill] sm:$0xff] %v16815_v62 }
 0x914   : > { %v16817_v8 = vpop.permute.xlu1 %9627  ;;  %v16819_v13 = vpop.permute.xlu0 %9629 }
 0x915   : > { %20494 = vst [vmem:[#allocation291_spill] sm:$0xff] %v16817_v8  ;;  %20495 = vst [vmem:[#allocation292_spill] sm:$0xff] %v16819_v13 }
 0x918   : > { %v16821_v36 = vpop.permute.xlu1 %9631  ;;  %v16823_v21 = vpop.permute.xlu0 %9633 }
 0x919   : > { %20496 = vst [vmem:[#allocation293_spill] sm:$0xff] %v16821_v36  ;;  %20497 = vst [vmem:[#allocation294_spill] sm:$0xff] %v16823_v21  ;;  %v13003_v36 = vld [vmem:[%s20019_s4 + $0x6] ss:$0 sm:$0xff] }
 0x91c   : > { %v16825_v37 = vpop.permute.xlu1 %9635  ;;  %v16827_v60 = vpop.permute.xlu0 %9637 }
 0x91d   : > { %20498 = vst [vmem:[#allocation295_spill] sm:$0xff] %v16825_v37  ;;  %20499 = vst [vmem:[#allocation296_spill] sm:$0xff] %v16827_v60  ;;  %v16839_v37 = vld [vmem:[#allocation3 + $0xc2] sm:$0xff] }
 0x91e   : > { %20501 = vst [vmem:[#allocation298_spill] sm:$0xff] %v16839_v37 }
 0x920   : > { %v16829_v17 = vpop.permute.xlu1 %9639 }
 0x921   : > { %20500 = vst [vmem:[#allocation297_spill] sm:$0xff] %v16829_v17 }
 0x92d   : > { %v9962_v14 = vpop.permute.xlu0 %9961 }
 0x92e   : > { %v10055_v9 = vmul.f32 %v9962_v14, %v16612_v2  ;;  %v9539_v2 = vmul.f32 %v16731_v16, %v16839_v37  ;;  %v13128_v37 = vld [vmem:[#allocation3 + $0x188] sm:$0xff] }
 0x930   : > { %10154 = vrot.lane.b32.xlu0 %v10055_v9, %s13288_s17  ;;  %v13011_v9 = vld [vmem:[%s20019_s4 + $0xe] ss:$0 sm:$0xff] }
 0x931   : > { %v9994_v46 = vpop.permute.xlu1 %9993  ;;  %v16833_v62 = vpop.permute.xlu0 %9965 }
 0x932   : > { %v10071_v8 = vmul.f32 %v9994_v46, %v8916_v15  ;;  %v16851_v15 = vld [vmem:[#allocation3 + $0x10a] sm:$0xff] }
 0x933   : > { %20502 = vst [vmem:[#allocation299_spill] sm:$0xff] %v16851_v15  ;;  %v9545_v13 = vmul.f32 %v16745_v35, %v16851_v15  ;;  %v13095_v35 = vld [vmem:[#allocation3] sm:$0xff] }
 0x934   : > { %10186 = vrot.lane.b32.xlu1 %v10071_v8, %s13288_s17  ;;  %10509 = vperm.xlu0 %13092, %v13003_v36   ;;  %v16853_v8 = vld [vmem:[#allocation3 + $0x12a] sm:$0xff]  ;;  %v16875_v63 = vmul.f32 %v13095_v35, %v15066_v48  ;;  %v13127_v15 = vld [vmem:[#allocation3 + $0x180] sm:$0xff] }
 0x935   : > { %v16841_v60 = vpop.permute.xlu1 %9997  ;;  %v16843_v17 = vpop.permute.xlu0 %9957  ;;  %20503 = vst [vmem:[#allocation300_spill] sm:$0xff] %v16853_v8  ;;  %v9548_v6 = vmul.f32 %v16750_v30, %v16853_v8  ;;  %v13099_v35 = vld [vmem:[#allocation3 + $0x30] sm:$0xff] }
 0x936   : > { %v16892_v31 = vmul.f32 %v13099_v35, %v15070_v3 }
 0x938   : > { %10541 = vperm.xlu1 %13093, %v13011_v9   ;;  %9651 = vrot.lane.b32.xlu0 %v9539_v2, %s13287_s16  ;;  %v10054_v9 = vmul.f32 %v9962_v14, %v16610_v34  ;;  %v10057_v2 = vmul.f32 %v16833_v62, %v16620_v0  ;;  %v16881_v34 = vmul.f32 %v13097_v22, %v15068_v1  ;;  %v13101_v22 = vld [vmem:[#allocation3 + $0x48] sm:$0xff] }
 0x939   : > { %v16855_v36 = vpop.permute.xlu1 %9969  ;;  %v16857_v21 = vpop.permute.xlu0 %9989  ;;  %v10070_v0 = vmul.f32 %v9994_v46, %v16761_v26  ;;  %v10073_v14 = vmul.f32 %v16841_v60, %v16763_v49  ;;  %v16898_v46 = vmul.f32 %v13101_v22, %v15072_v4  ;;  %v13102_v26 = vld [vmem:[#allocation3 + $0x50] sm:$0xff] }
 0x93a   : > { %v16901_v49 = vmul.f32 %v13102_v26, %v15072_v4  ;;  %v13106_v4 = vld [vmem:[#allocation3 + $0x80] sm:$0xff] }
 0x93c   : > { %9663 = vrot.lane.b32.xlu1 %v9545_v13, %s13287_s16  ;;  %9669 = vrot.lane.b32.xlu0 %v9548_v6, %s13287_s16  ;;  %v13096_v13 = vld [vmem:[#allocation3 + $0x8] sm:$0xff] }
 0x93d   : > { %v16865_v16 = vpop.permute.xlu1 %10001  ;;  %v16870_v42 = vpop.permute.xlu0 %9973  ;;  %v16878_v6 = vmul.f32 %v13096_v13, %v15066_v48  ;;  %v13100_v48 = vld [vmem:[#allocation3 + $0x38] sm:$0xff] }
 0x93e   : > { %20504 = vst [vmem:[#allocation301_spill] sm:$0xff] %v16865_v16  ;;  %20505 = vst [vmem:[#allocation302_spill] sm:$0xff] %v16870_v42  ;;  %v16895_v13 = vmul.f32 %v13100_v48, %v15070_v3  ;;  %v13105_v3 = vld [vmem:[#allocation3 + $0x78] sm:$0xff]  ;;  %v20509_v48 = vld [vmem:[#allocation11_spill] sm:$0xff] }
 0x93f   : > { %v16914_v22 = vmul.f32 %v13105_v3, %v20509_v48  ;;  %v16917_v26 = vmul.f32 %v13106_v4, %v20509_v48  ;;  %v13109_v3 = vld [vmem:[#allocation3 + $0xa8] sm:$0xff]  ;;  %v13110_v4 = vld [vmem:[#allocation3 + $0xb0] sm:$0xff] }
 0x940   : > { %10152 = vrot.lane.b32.xlu1 %v10054_v9, %s13288_s17  ;;  %10158 = vrot.lane.b32.xlu0 %v10057_v2, %s13288_s17  ;;  %v13098_v2 = vld [vmem:[#allocation3 + $0x20] sm:$0xff]  ;;  %v16932_v48 = vmul.f32 %v13109_v3, %v20511_v41  ;;  %v16947_v3 = vmul.f32 %v13114_v38, %v20513_v54  ;;  %v20523_v42 = vld [vmem:[#allocation22_spill] sm:$0xff] }
 0x941   : > { %v16886_v9 = vpop.permute.xlu1 %10005  ;;  %v16889_v40 = vmul.f32 %v13098_v2, %v15068_v1  ;;  %v16904_v1 = vmul.f32 %v13103_v32, %v20507_v27  ;;  %v13104_v2 = vld [vmem:[#allocation3 + $0x68] sm:$0xff]  ;;  %v16909_v12 = vpop.permute.xlu0 %9977  ;;  %v13107_v32 = vld [vmem:[#allocation3 + $0x90] sm:$0xff]  ;;  %v16997_v10 = vmul.f32 %v13127_v15, %v20523_v42 }
 0x942   : > { %20506 = vst [vmem:[#allocation303_spill] sm:$0xff] %v16886_v9  ;;  %v16907_v35 = vmul.f32 %v13104_v2, %v20507_v27  ;;  %20508 = vst [vmem:[#allocation10_spill] sm:$0xff] %v16909_v12  ;;  %v16920_v57 = vmul.f32 %v13107_v32, %v20510_v39  ;;  %v13108_v27 = vld [vmem:[#allocation3 + $0x98] sm:$0xff]  ;;  %v16935_v32 = vmul.f32 %v13110_v4, %v20511_v41  ;;  %v13119_v12 = vld [vmem:[#allocation3 + $0x120] sm:$0xff] }
 0x943   : > { %v16923_v2 = vmul.f32 %v13108_v27, %v20510_v39  ;;  %v16938_v39 = vmul.f32 %v13111_v58, %v20512_v51  ;;  %v13112_v27 = vld [vmem:[#allocation3 + $0xc8] sm:$0xff]  ;;  %v16950_v41 = vmul.f32 %v13115_v50, %v20514_v5  ;;  %v13116_v4 = vld [vmem:[#allocation3 + $0xf8] sm:$0xff]  ;;  %v16962_v38 = vmul.f32 %v13119_v12, %v20516_v7 }
 0x944   : > { %10184 = vrot.lane.b32.xlu1 %v10070_v0, %s13288_s17  ;;  %10190 = vrot.lane.b32.xlu0 %v10073_v14, %s13288_s17  ;;  %v13004_v0 = vld [vmem:[%s20019_s4 + $0x7] ss:$0 sm:$0xff]  ;;  %v13012_v14 = vld [vmem:[%s20019_s4 + $0xf] ss:$0 sm:$0xff]  ;;  %v16941_v55 = vmul.f32 %v13112_v27, %v20512_v51  ;;  %v16953_v58 = vmul.f32 %v13116_v4, %v20514_v5  ;;  %v16956_v51 = vmul.f32 %v13117_v29, %v20515_v19  ;;  %v13118_v27 = vld [vmem:[#allocation3 + $0x110] sm:$0xff] }
 0x945   : > { %v16959_v23 = vmul.f32 %v13118_v27, %v20515_v19  ;;  %v16964_v54 = vpop.permute.xlu1 %10009  ;;  %v13120_v50 = vld [vmem:[#allocation3 + $0x128] sm:$0xff]  ;;  %v13121_v4 = vld [vmem:[#allocation3 + $0x138] sm:$0xff]  ;;  %v16973_v19 = vmul.f32 %v13122_v47, %v20518_v61  ;;  %v13123_v27 = vld [vmem:[#allocation3 + $0x150] sm:$0xff]  ;;  %v16994_v8 = vpop.permute.xlu0 %9981 }
 0x946   : > { %20517 = vst [vmem:[#allocation11_spill] sm:$0xff] %v16964_v54  ;;  %v16967_v5 = vmul.f32 %v13120_v50, %v20516_v7  ;;  %v16970_v29 = vmul.f32 %v13121_v4, %v20518_v61  ;;  %v16976_v12 = vmul.f32 %v13123_v27, %v20519_v43  ;;  %v16978_v9 = vld [vmem:[#allocation3 + $0x82] sm:$0xff]  ;;  %v13124_v7 = vld [vmem:[#allocation3 + $0x158] sm:$0xff]  ;;  %v13126_v61 = vld [vmem:[#allocation3 + $0x170] sm:$0xff] }
 0x947   : > { %20520 = vst [vmem:[#allocation12_spill] sm:$0xff] %v16978_v9  ;;  %v13125_v50 = vld [vmem:[#allocation3 + $0x168] sm:$0xff]  ;;  %v20521_v4 = vld [vmem:[#allocation21_spill] sm:$0xff]  ;;  %v9534_v27 = vmul.f32 %v16640_v44, %v16978_v9  ;;  %20522 = vst [vmem:[#allocation13_spill] sm:$0xff] %v16994_v8 }
 0x948   : > { %10513 = vperm.xlu1 %13093, %v13004_v0   ;;  %10545 = vperm.xlu0 %13092, %v13012_v14   ;;  %v13014_v0 = vld [vmem:[%s20019_s4 + $0x11] ss:$0 sm:$0xff]  ;;  %v16984_v14 = vmul.f32 %v13124_v7, %v20519_v43  ;;  %v16987_v54 = vmul.f32 %v13125_v50, %v20521_v4  ;;  %v16990_v47 = vmul.f32 %v13126_v61, %v20521_v4  ;;  %v13129_v7 = vld [vmem:[#allocation3 + $0x198] sm:$0xff] }
 0x949   : > { %v17000_v43 = vmul.f32 %v13128_v37, %v20523_v42  ;;  %v20524_v50 = vld [vmem:[#allocation23_spill] sm:$0xff]  ;;  %v20525_v44 = vld [vmem:[#allocation24_spill] sm:$0xff]  ;;  %v17015_v42 = vmul.f32 %v13133_v28, %v20528_v24  ;;  %v17030_v28 = vld [vmem:[#allocation3 + $0x122] sm:$0xff] }
 0x94a   : > { %v17003_v52 = vmul.f32 %v13129_v7, %v20524_v50  ;;  %v17006_v4 = vmul.f32 %v13130_v20, %v20524_v50  ;;  %v13131_v61 = vld [vmem:[#allocation3 + $0x1b0] sm:$0xff]  ;;  %v13132_v8 = vld [vmem:[#allocation3 + $0x1b8] sm:$0xff]  ;;  %v13135_v20 = vld [vmem:[#allocation3 + $0x1e0] sm:$0xff]  ;;  %20536 = vst [vmem:[#allocation21_spill] sm:$0xff] %v17030_v28 }
 0x94b   : > { %v17009_v9 = vmul.f32 %v13131_v61, %v20525_v44  ;;  %v17012_v15 = vmul.f32 %v13132_v8, %v20525_v44  ;;  %20529 = vst [vmem:[#allocation16_spill] sm:$0xff] %v17015_v42  ;;  %v13134_v37 = vld [vmem:[#allocation3 + $0x1d0] sm:$0xff]  ;;  %v20531_v50 = vld [vmem:[#allocation26_spill] sm:$0xff]  ;;  %v13137_v8 = vld [vmem:[#allocation3 + $0x1f8] sm:$0xff] }
 0x94c   : > { %10553 = vperm.xlu1 %13093, %v13014_v0   ;;  %9641 = vrot.lane.b32.xlu0 %v9534_v27, %s13287_s16  ;;  %v17019_v7 = vmul.f32 %v13134_v37, %v20528_v24  ;;  %v17022_v16 = vmul.f32 %v13135_v20, %v20531_v50  ;;  %v13136_v61 = vld [vmem:[#allocation3 + $0x1e8] sm:$0xff]  ;;  %v20534_v44 = vld [vmem:[#allocation27_spill] sm:$0xff]  ;;  %v13138_v27 = vld [vmem:[#allocation3 + $0x200] sm:$0xff] }
 0x94d   : > { %20526 = vst [vmem:[#allocation14_spill] sm:$0xff] %v17009_v9  ;;  %20527 = vst [vmem:[#allocation15_spill] sm:$0xff] %v17012_v15  ;;  %v17025_v9 = vmul.f32 %v13136_v61, %v20531_v50  ;;  %v17028_v15 = vmul.f32 %v13137_v8, %v20534_v44  ;;  %v17032_v0 = vld [vmem:[#allocation3 + $0x142] sm:$0xff]  ;;  %v17035_v24 = vmul.f32 %v13138_v27, %v20534_v44  ;;  %v13139_v37 = vld [vmem:[#allocation3 + $0x210] sm:$0xff]  ;;  %v17044_v8 = vpop.permute.xlu1 %10013 }
 0x94e   : > { %20530 = vst [vmem:[#allocation17_spill] sm:$0xff] %v17019_v7  ;;  %20532 = vst [vmem:[#allocation18_spill] sm:$0xff] %v17022_v16  ;;  %v20538_v7 = vld [vmem:[#allocation28_spill] sm:$0xff]  ;;  %v9547_v50 = vmul.f32 %v16750_v30, %v17030_v28  ;;  %v9550_v61 = vmul.f32 %v16753_v33, %v17032_v0  ;;  %v13141_v16 = vld [vmem:[#allocation3 + $0x228] sm:$0xff]  ;;  %v17071_v33 = vpop.permute.xlu0 %9985 }
 0x94f   : > { %20533 = vst [vmem:[#allocation19_spill] sm:$0xff] %v17025_v9  ;;  %20535 = vst [vmem:[#allocation20_spill] sm:$0xff] %v17028_v15  ;;  %v17038_v20 = vmul.f32 %v13139_v37, %v20538_v7  ;;  %v13140_v15 = vld [vmem:[#allocation3 + $0x218] sm:$0xff]  ;;  %v20541_v42 = vld [vmem:[#allocation29_spill] sm:$0xff] }
 0x950   : > { %20537 = vst [vmem:[#allocation22_spill] sm:$0xff] %v17032_v0  ;;  %20540 = vst [vmem:[#allocation24_spill] sm:$0xff] %v17044_v8  ;;  %v17047_v9 = vmul.f32 %v13140_v15, %v20538_v7  ;;  %v17050_v44 = vmul.f32 %v13141_v16, %v20541_v42  ;;  %v13142_v27 = vld [vmem:[#allocation3 + $0x230] sm:$0xff]  ;;  %v20544_v8 = vld [vmem:[#allocation32_spill] sm:$0xff]  ;;  %9667 = vrot.lane.b32.xlu1 %v9547_v50, %s13287_s16  ;;  %9673 = vrot.lane.b32.xlu0 %v9550_v61, %s13287_s16 }
 0x951   : > { %20539 = vst [vmem:[#allocation23_spill] sm:$0xff] %v17038_v20  ;;  %v17053_v37 = vmul.f32 %v13142_v27, %v20541_v42  ;;  %v20542_v20 = vld [vmem:[#allocation30_spill] sm:$0xff]  ;;  %v20543_v0 = vld [vmem:[#allocation31_spill] sm:$0xff]  ;;  %v17065_v15 = vadd.f32 %v20544_v8, %v16881_v34  ;;  %v20545_v7 = vld [vmem:[#allocation33_spill] sm:$0xff] }
 0x952   : > { %v17057_v30 = vadd.f32 %v20542_v20, %v16875_v63  ;;  %v17061_v28 = vadd.f32 %v20543_v0, %v16878_v6  ;;  %v17069_v16 = vadd.f32 %v20545_v7, %v16889_v40  ;;  %20546 = vst [vmem:[#allocation25_spill] sm:$0xff] %v17071_v33  ;;  %v20547_v63 = vld [vmem:[#allocation34_spill] sm:$0xff]  ;;  %v20548_v6 = vld [vmem:[#allocation35_spill] sm:$0xff]  ;;  %v20549_v34 = vld [vmem:[#allocation36_spill] sm:$0xff]  ;;  %v10053_v7 = vmul.f32 %v16843_v17, %v16604_v53 }
 0x953   : > { %v17077_v42 = vadd.f32 %v20547_v63, %v16892_v31  ;;  %v17081_v0 = vadd.f32 %v20548_v6, %v16895_v13  ;;  %v17085_v20 = vadd.f32 %v20549_v34, %v16898_v46  ;;  %v20550_v40 = vld [vmem:[#allocation37_spill] sm:$0xff]  ;;  %v20551_v50 = vld [vmem:[#allocation38_spill] sm:$0xff]  ;;  %v20552_v61 = vld [vmem:[#allocation39_spill] sm:$0xff]  ;;  %v10056_v13 = vmul.f32 %v16833_v62, %v16618_v45 }
 0x954   : > { %v17089_v8 = vadd.f32 %v20550_v40, %v16901_v49  ;;  %v17093_v27 = vadd.f32 %v20551_v50, %v16904_v1  ;;  %v17097_v31 = vadd.f32 %v20552_v61, %v16907_v35  ;;  %v20553_v46 = vld [vmem:[#allocation40_spill] sm:$0xff]  ;;  %v20554_v49 = vld [vmem:[#allocation41_spill] sm:$0xff]  ;;  %v20555_v1 = vld [vmem:[#allocation42_spill] sm:$0xff]  ;;  %v17131_v61 = vpop.permute.xlu1 %10017  ;;  %10150 = vrot.lane.b32.xlu1 %v10053_v7, %s13288_s17 }
 0x955   : > { %v17105_v63 = vadd.f32 %v20553_v46, %v16914_v22  ;;  %v17109_v6 = vadd.f32 %v20554_v49, %v16917_v26  ;;  %v17113_v34 = vadd.f32 %v20555_v1, %v16920_v57  ;;  %v20556_v35 = vld [vmem:[#allocation43_spill] sm:$0xff]  ;;  %v20557_v62 = vld [vmem:[#allocation44_spill] sm:$0xff]  ;;  %v20558_v53 = vld [vmem:[#allocation45_spill] sm:$0xff]  ;;  %20560 = vst [vmem:[#allocation26_spill] sm:$0xff] %v17131_v61  ;;  %10156 = vrot.lane.b32.xlu0 %v10056_v13, %s13288_s17 }
 0x956   : > { %v17117_v40 = vadd.f32 %v20556_v35, %v16923_v2  ;;  %v17121_v45 = vadd.f32 %v20557_v62, %v16932_v48  ;;  %v17125_v22 = vadd.f32 %v20558_v53, %v16935_v32  ;;  %v20559_v50 = vld [vmem:[#allocation46_spill] sm:$0xff]  ;;  %v20561_v57 = vld [vmem:[#allocation47_spill] sm:$0xff]  ;;  %v20562_v48 = vld [vmem:[#allocation48_spill] sm:$0xff]  ;;  %v10069_v62 = vmul.f32 %v16857_v21, %v16781_v18 }
 0x957   : > { %v17129_v26 = vadd.f32 %v20559_v50, %v16938_v39  ;;  %v17137_v2 = vadd.f32 %v20561_v57, %v16941_v55  ;;  %v17141_v46 = vadd.f32 %v20562_v48, %v16944_v11  ;;  %v20563_v32 = vld [vmem:[#allocation49_spill] sm:$0xff]  ;;  %v20564_v39 = vld [vmem:[#allocation50_spill] sm:$0xff]  ;;  %v20565_v13 = vld [vmem:[#allocation51_spill] sm:$0xff]  ;;  %v10059_v11 = vmul.f32 %v16855_v36, %v16628_v25 }
 0x958   : > { %v17145_v49 = vadd.f32 %v20563_v32, %v16947_v3  ;;  %v17149_v1 = vadd.f32 %v20564_v39, %v16950_v41  ;;  %v17153_v35 = vadd.f32 %v20565_v13, %v16953_v58  ;;  %v20566_v7 = vld [vmem:[#allocation52_spill] sm:$0xff]  ;;  %v17163_v3 = vpop.permute.xlu0 %10025  ;;  %v20568_v53 = vld [vmem:[#allocation53_spill] sm:$0xff]  ;;  %v20569_v50 = vld [vmem:[#allocation54_spill] sm:$0xff] }
 0x959   : > { %v17157_v55 = vadd.f32 %v20566_v7, %v16956_v51  ;;  %20567 = vst [vmem:[#allocation27_spill] sm:$0xff] %v17163_v3  ;;  %v17167_v41 = vadd.f32 %v20568_v53, %v16959_v23  ;;  %v17171_v58 = vadd.f32 %v20569_v50, %v16962_v38  ;;  %v20570_v57 = vld [vmem:[#allocation55_spill] sm:$0xff]  ;;  %v20571_v48 = vld [vmem:[#allocation56_spill] sm:$0xff]  ;;  %v20572_v18 = vld [vmem:[#allocation57_spill] sm:$0xff]  ;;  %10162 = vrot.lane.b32.xlu1 %v10059_v11, %s13288_s17 }
 0x95a   : > { %v17175_v51 = vadd.f32 %v20570_v57, %v16967_v5  ;;  %v17179_v25 = vadd.f32 %v20571_v48, %v16970_v29  ;;  %v17183_v32 = vadd.f32 %v20572_v18, %v16973_v19  ;;  %v20573_v39 = vld [vmem:[#allocation58_spill] sm:$0xff]  ;;  %v20574_v13 = vld [vmem:[#allocation59_spill] sm:$0xff]  ;;  %10182 = vrot.lane.b32.xlu0 %v10069_v62, %s13288_s17  ;;  %v20575_v5 = vld [vmem:[#allocation60_spill] sm:$0xff] }
 0x95b   : > { %v17187_v23 = vadd.f32 %v20573_v39, %v16976_v12  ;;  %v17191_v38 = vadd.f32 %v20574_v13, %v16984_v14  ;;  %v17197_v29 = vadd.f32 %v20575_v5, %v16987_v54  ;;  %v20576_v7 = vld [vmem:[#allocation61_spill] sm:$0xff]  ;;  %v20577_v53 = vld [vmem:[#allocation62_spill] sm:$0xff]  ;;  %v20578_v50 = vld [vmem:[#allocation63_spill] sm:$0xff] }
 0x95c   : > { %v17201_v19 = vadd.f32 %v20576_v7, %v16990_v47  ;;  %v17205_v12 = vadd.f32 %v20577_v53, %v16997_v10  ;;  %v17209_v14 = vadd.f32 %v20578_v50, %v17000_v43  ;;  %v20579_v11 = vld [vmem:[#allocation64_spill] sm:$0xff]  ;;  %v20580_v62 = vld [vmem:[#allocation65_spill] sm:$0xff]  ;;  %v10072_v47 = vmul.f32 %v16841_v60, %v16783_v56  ;;  %v17223_v10 = vpop.permute.xlu1 %10029  ;;  %v20583_v39 = vld [vmem:[#allocation14_spill] sm:$0xff] }
 0x95d   : > { %v17213_v57 = vadd.f32 %v20579_v11, %v17003_v52  ;;  %v17217_v54 = vadd.f32 %v20580_v62, %v17006_v4  ;;  %v20581_v48 = vld [vmem:[#allocation301_spill] sm:$0xff]  ;;  %20582 = vst [vmem:[#allocation28_spill] sm:$0xff] %v17223_v10  ;;  %v20584_v13 = vld [vmem:[#allocation66_spill] sm:$0xff]  ;;  %v20585_v5 = vld [vmem:[#allocation15_spill] sm:$0xff] }
 0x95e   : > { %v10075_v18 = vmul.f32 %v20581_v48, %v16792_v59  ;;  %v17227_v43 = vadd.f32 %v20584_v13, %v20583_v39  ;;  %v20586_v7 = vld [vmem:[#allocation67_spill] sm:$0xff]  ;;  %v20587_v53 = vld [vmem:[#allocation16_spill] sm:$0xff]  ;;  %v20589_v11 = vld [vmem:[#allocation17_spill] sm:$0xff]  ;;  %10188 = vrot.lane.b32.xlu1 %v10072_v47, %s13288_s17 }
 0x95f   : > { %v17231_v52 = vadd.f32 %v20586_v7, %v20585_v5  ;;  %v20588_v50 = vld [vmem:[#allocation68_spill] sm:$0xff]  ;;  %v20590_v62 = vld [vmem:[#allocation69_spill] sm:$0xff]  ;;  %v20591_v60 = vld [vmem:[#allocation18_spill] sm:$0xff]  ;;  %v17253_v7 = vpop.permute.xlu0 %10021 }
 0x960   : > { %v17235_v4 = vadd.f32 %v20588_v50, %v20587_v53  ;;  %v17239_v56 = vadd.f32 %v20590_v62, %v20589_v11  ;;  %v20592_v59 = vld [vmem:[#allocation70_spill] sm:$0xff]  ;;  %v20593_v10 = vld [vmem:[#allocation19_spill] sm:$0xff]  ;;  %v20595_v13 = vld [vmem:[#allocation20_spill] sm:$0xff]  ;;  %20597 = vst [vmem:[#allocation29_spill] sm:$0xff] %v17253_v7  ;;  %10194 = vrot.lane.b32.xlu0 %v10075_v18, %s13288_s17 }
 0x961   : > { %v17243_v3 = vadd.f32 %v20592_v59, %v20591_v60  ;;  %v20594_v61 = vld [vmem:[#allocation71_spill] sm:$0xff]  ;;  %v20596_v33 = vld [vmem:[#allocation72_spill] sm:$0xff]  ;;  %v20598_v53 = vld [vmem:[#allocation73_spill] sm:$0xff] }
 0x962   : > { %v17247_v39 = vadd.f32 %v20594_v61, %v20593_v10  ;;  %v17251_v5 = vadd.f32 %v20596_v33, %v20595_v13  ;;  %v17259_v50 = vadd.f32 %v20598_v53, %v17035_v24  ;;  %v20599_v11 = vld [vmem:[#allocation23_spill] sm:$0xff]  ;;  %v20600_v62 = vld [vmem:[#allocation74_spill] sm:$0xff]  ;;  %v20602_v33 = vld [vmem:[#allocation76_spill] sm:$0xff] }
 0x963   : > { %v17263_v60 = vadd.f32 %v20600_v62, %v20599_v11  ;;  %v20601_v61 = vld [vmem:[#allocation75_spill] sm:$0xff]  ;;  %v17271_v59 = vadd.f32 %v20602_v33, %v17050_v44  ;;  %v17273_v13 = vld [vmem:[#allocation3 + $0x9a] sm:$0xff]  ;;  %v20606_v53 = vld [vmem:[#allocation78_spill] sm:$0xff] }
 0x964   : > { %v17267_v10 = vadd.f32 %v20601_v61, %v17047_v9  ;;  %20604 = vst [vmem:[#allocation31_spill] sm:$0xff] %v17273_v13  ;;  %v13015_v47 = vld [vmem:[%s20019_s4 + $0x12] ss:$0 sm:$0xff]  ;;  %v20605_v24 = vld [vmem:[#allocation77_spill] sm:$0xff]  ;;  %v17284_v11 = vadd.f32 %v20606_v53, %v17057_v30  ;;  %v20608_v44 = vld [vmem:[#allocation274_spill] sm:$0xff] }
 0x965   : > { %20603 = vst [vmem:[#allocation30_spill] sm:$0xff] %v17271_v59  ;;  %v17280_v18 = vadd.f32 %v20605_v24, %v17053_v37  ;;  %v20607_v9 = vld [vmem:[#allocation79_spill] sm:$0xff]  ;;  %v9536_v61 = vmul.f32 %v20608_v44, %v17273_v13  ;;  %v20609_v33 = vld [vmem:[#allocation80_spill] sm:$0xff]  ;;  %v20610_v59 = vld [vmem:[#allocation81_spill] sm:$0xff]  ;;  %10557 = vperm.xlu1 %13093, %v13015_v47  }
 0x966   : > { %v17288_v62 = vadd.f32 %v20607_v9, %v17061_v28  ;;  %v17294_v7 = vadd.f32 %v20609_v33, %v17065_v15  ;;  %v17298_v48 = vadd.f32 %v20610_v59, %v17069_v16  ;;  %v20611_v37 = vld [vmem:[#allocation82_spill] sm:$0xff]  ;;  %v20612_v30 = vld [vmem:[#allocation83_spill] sm:$0xff]  ;;  %v20613_v28 = vld [vmem:[#allocation84_spill] sm:$0xff]  ;;  %v17320_v59 = vpop.permute.xlu1 %10033 }
 0x967   : > { %v17302_v24 = vadd.f32 %v20611_v37, %v17077_v42  ;;  %v17306_v53 = vadd.f32 %v20612_v30, %v17081_v0  ;;  %v17310_v9 = vadd.f32 %v20613_v28, %v17085_v20  ;;  %v20614_v13 = vld [vmem:[#allocation85_spill] sm:$0xff]  ;;  %v20615_v33 = vld [vmem:[#allocation86_spill] sm:$0xff]  ;;  %20616 = vst [vmem:[#allocation32_spill] sm:$0xff] %v17320_v59  ;;  %9645 = vrot.lane.b32.xlu0 %v9536_v61, %s13287_s16  ;;  %v20617_v42 = vld [vmem:[#allocation87_spill] sm:$0xff] }
 0x968   : > { %v17314_v15 = vadd.f32 %v20614_v13, %v17089_v8  ;;  %v17318_v16 = vadd.f32 %v20615_v33, %v17093_v27  ;;  %v17325_v0 = vadd.f32 %v20617_v42, %v17097_v31  ;;  %v20618_v20 = vld [vmem:[#allocation88_spill] sm:$0xff]  ;;  %v20619_v8 = vld [vmem:[#allocation89_spill] sm:$0xff]  ;;  %v20620_v27 = vld [vmem:[#allocation90_spill] sm:$0xff] }
 0x969   : > { %v17329_v37 = vadd.f32 %v20618_v20, %v17105_v63  ;;  %v17333_v13 = vadd.f32 %v20619_v8, %v17109_v6  ;;  %v17337_v30 = vadd.f32 %v20620_v27, %v17113_v34  ;;  %v17339_v28 = vld [vmem:[#allocation3 + $0x13a] sm:$0xff]  ;;  %v20623_v61 = vld [vmem:[#allocation91_spill] sm:$0xff]  ;;  %v17355_v34 = vpop.permute.xlu0 %10037  ;;  %v20629_v44 = vld [vmem:[#allocation94_spill] sm:$0xff] }
 0x96a   : > { %20621 = vst [vmem:[#allocation33_spill] sm:$0xff] %v17339_v28  ;;  %v17341_v47 = vld [vmem:[#allocation3 + $0x15a] sm:$0xff]  ;;  %v17345_v31 = vadd.f32 %v20623_v61, %v17117_v40  ;;  %20627 = vst [vmem:[#allocation35_spill] sm:$0xff] %v17355_v34  ;;  %v17363_v40 = vadd.f32 %v20629_v44, %v17129_v26  ;;  %v20630_v61 = vld [vmem:[#allocation95_spill] sm:$0xff] }
 0x96b   : > { %20622 = vst [vmem:[#allocation34_spill] sm:$0xff] %v17341_v47  ;;  %v20624_v33 = vld [vmem:[#allocation92_spill] sm:$0xff]  ;;  %v20626_v20 = vld [vmem:[#allocation277_spill] sm:$0xff]  ;;  %v20633_v34 = vld [vmem:[#allocation98_spill] sm:$0xff] }
 0x96c   : > { %v17349_v63 = vadd.f32 %v20624_v33, %v17121_v45  ;;  %v20625_v42 = vld [vmem:[#allocation276_spill] sm:$0xff]  ;;  %v9552_v8 = vmul.f32 %v20626_v20, %v17341_v47  ;;  %v20628_v27 = vld [vmem:[#allocation93_spill] sm:$0xff]  ;;  %v17367_v45 = vadd.f32 %v20630_v61, %v17137_v2 }
 0x96d   : > { %v9549_v6 = vmul.f32 %v20625_v42, %v17339_v28  ;;  %v17359_v59 = vadd.f32 %v20628_v27, %v17125_v22  ;;  %v20631_v33 = vld [vmem:[#allocation96_spill] sm:$0xff]  ;;  %v20632_v47 = vld [vmem:[#allocation97_spill] sm:$0xff]  ;;  %v17379_v22 = vadd.f32 %v20633_v34, %v17149_v1  ;;  %v20634_v27 = vld [vmem:[#allocation99_spill] sm:$0xff] }
 0x96e   : > { %v17371_v42 = vadd.f32 %v20631_v33, %v17141_v46  ;;  %v17375_v28 = vadd.f32 %v20632_v47, %v17145_v49  ;;  %v17383_v26 = vadd.f32 %v20634_v27, %v17153_v35  ;;  %9677 = vrot.lane.b32.xlu0 %v9552_v8, %s13287_s16  ;;  %v20635_v2 = vld [vmem:[#allocation100_spill] sm:$0xff]  ;;  %v20636_v44 = vld [vmem:[#allocation101_spill] sm:$0xff]  ;;  %v20637_v47 = vld [vmem:[#allocation102_spill] sm:$0xff] }
 0x96f   : > { %9671 = vrot.lane.b32.xlu1 %v9549_v6, %s13287_s16  ;;  %v17389_v46 = vadd.f32 %v20635_v2, %v17157_v55  ;;  %v17393_v49 = vadd.f32 %v20636_v44, %v17167_v41  ;;  %v17397_v1 = vadd.f32 %v20637_v47, %v17171_v58  ;;  %v20638_v34 = vld [vmem:[#allocation103_spill] sm:$0xff]  ;;  %v20639_v6 = vld [vmem:[#allocation104_spill] sm:$0xff]  ;;  %v20640_v8 = vld [vmem:[#allocation105_spill] sm:$0xff]  ;;  %v17415_v58 = vpop.permute.xlu1 %10041 }
 0x970   : > { %v17401_v35 = vadd.f32 %v20638_v34, %v17175_v51  ;;  %v17405_v61 = vadd.f32 %v20639_v6, %v17179_v25  ;;  %v17409_v55 = vadd.f32 %v20640_v8, %v17183_v32  ;;  %v20641_v33 = vld [vmem:[#allocation270_spill] sm:$0xff]  ;;  %v20642_v27 = vld [vmem:[#allocation271_spill] sm:$0xff]  ;;  %20643 = vst [vmem:[#allocation36_spill] sm:$0xff] %v17415_v58  ;;  %v20646_v34 = vld [vmem:[#allocation108_spill] sm:$0xff] }
 0x971   : > { %v10052_v41 = vmul.f32 %v16843_v17, %v20641_v33  ;;  %v10058_v2 = vmul.f32 %v16855_v36, %v20642_v27  ;;  %v20644_v44 = vld [vmem:[#allocation106_spill] sm:$0xff]  ;;  %v20645_v47 = vld [vmem:[#allocation107_spill] sm:$0xff]  ;;  %v17427_v32 = vadd.f32 %v20646_v34, %v17197_v29  ;;  %v20647_v6 = vld [vmem:[#allocation109_spill] sm:$0xff] }
 0x972   : > { %v17419_v51 = vadd.f32 %v20644_v44, %v17187_v23  ;;  %v17423_v25 = vadd.f32 %v20645_v47, %v17191_v38  ;;  %v17431_v17 = vadd.f32 %v20647_v6, %v17201_v19  ;;  %v20648_v36 = vld [vmem:[#allocation110_spill] sm:$0xff]  ;;  %v20649_v33 = vld [vmem:[#allocation111_spill] sm:$0xff]  ;;  %v20650_v27 = vld [vmem:[#allocation112_spill] sm:$0xff]  ;;  %v17445_v44 = vpop.permute.xlu0 %10045 }
 0x973   : > { %v17435_v8 = vadd.f32 %v20648_v36, %v17205_v12  ;;  %v17439_v23 = vadd.f32 %v20649_v33, %v17209_v14  ;;  %v17443_v38 = vadd.f32 %v20650_v27, %v17213_v57  ;;  %20651 = vst [vmem:[#allocation37_spill] sm:$0xff] %v17445_v44  ;;  %10148 = vrot.lane.b32.xlu1 %v10052_v41, %s13288_s17  ;;  %v20652_v29 = vld [vmem:[#allocation113_spill] sm:$0xff]  ;;  %v20653_v12 = vld [vmem:[#allocation114_spill] sm:$0xff]  ;;  %v20654_v14 = vld [vmem:[#allocation115_spill] sm:$0xff] }
 0x974   : > { %10160 = vrot.lane.b32.xlu0 %v10058_v2, %s13288_s17  ;;  %v17451_v19 = vadd.f32 %v20652_v29, %v17217_v54  ;;  %v17455_v47 = vadd.f32 %v20653_v12, %v17227_v43  ;;  %v17459_v34 = vadd.f32 %v20654_v14, %v17231_v52  ;;  %v20655_v57 = vld [vmem:[#allocation116_spill] sm:$0xff]  ;;  %v20657_v41 = vld [vmem:[#allocation117_spill] sm:$0xff]  ;;  %v20659_v2 = vld [vmem:[#allocation118_spill] sm:$0xff] }
 0x975   : > { %v17463_v6 = vadd.f32 %v20655_v57, %v17235_v4  ;;  %v17467_v36 = vadd.f32 %v20657_v41, %v17239_v56  ;;  %v17471_v54 = vadd.f32 %v20659_v2, %v17243_v3  ;;  %v20661_v33 = vld [vmem:[#allocation298_spill] sm:$0xff]  ;;  %v20662_v27 = vld [vmem:[#allocation273_spill] sm:$0xff]  ;;  %v20664_v52 = vld [vmem:[#allocation119_spill] sm:$0xff] }
 0x976   : > { %v10068_v43 = vmul.f32 %v16857_v21, %v20661_v33  ;;  %v20663_v29 = vld [vmem:[#allocation302_spill] sm:$0xff]  ;;  %v17479_v14 = vadd.f32 %v20664_v52, %v17247_v39  ;;  %v20666_v4 = vld [vmem:[#allocation120_spill] sm:$0xff]  ;;  %v20669_v2 = vld [vmem:[#allocation121_spill] sm:$0xff]  ;;  %v17493_v52 = vpop.permute.xlu1 %10049 }
 0x977   : > { %20656 = vst [vmem:[#allocation38_spill] sm:$0xff] %v17463_v6  ;;  %20658 = vst [vmem:[#allocation39_spill] sm:$0xff] %v17467_v36  ;;  %v10061_v12 = vmul.f32 %v20663_v29, %v20662_v27  ;;  %v17483_v57 = vadd.f32 %v20666_v4, %v17251_v5  ;;  %v13143_v56 = vld [vmem:[#allocation3 + $0x1] sm:$0xff]  ;;  %v13144_v58 = vld [vmem:[#allocation3 + $0x9] sm:$0xff]  ;;  %v17489_v21 = vadd.f32 %v20669_v2, %v17259_v50 }
 0x978   : > { %20660 = vst [vmem:[#allocation40_spill] sm:$0xff] %v17471_v54  ;;  %20665 = vst [vmem:[#allocation41_spill] sm:$0xff] %v17479_v14  ;;  %v20668_v41 = vld [vmem:[#allocation126_spill] sm:$0xff]  ;;  %v13145_v33 = vld [vmem:[#allocation3 + $0x19] sm:$0xff]  ;;  %10180 = vrot.lane.b32.xlu0 %v10068_v43, %s13288_s17 }
 0x979   : > { %20667 = vst [vmem:[#allocation42_spill] sm:$0xff] %v17483_v57  ;;  %v7743_v44 = vmul.f32 %v13143_v56, %v20668_v41  ;;  %v7744_v3 = vmul.f32 %v13144_v58, %v20668_v41  ;;  %20670 = vst [vmem:[#allocation43_spill] sm:$0xff] %v17489_v21  ;;  %v20671_v27 = vld [vmem:[#allocation127_spill] sm:$0xff]  ;;  %v13146_v36 = vld [vmem:[#allocation3 + $0x21] sm:$0xff]  ;;  %10166 = vrot.lane.b32.xlu1 %v10061_v12, %s13288_s17 }
 0x97a   : > { %v7745_v54 = vmul.f32 %v13145_v33, %v20671_v27  ;;  %v7746_v39 = vmul.f32 %v13146_v36, %v20671_v27  ;;  %20672 = vst [vmem:[#allocation44_spill] sm:$0xff] %v17493_v52  ;;  %v20673_v5 = vld [vmem:[#allocation122_spill] sm:$0xff]  ;;  %v20675_v58 = vld [vmem:[#allocation123_spill] sm:$0xff]  ;;  %v20677_v41 = vld [vmem:[#allocation128_spill] sm:$0xff] }
 0x97b   : > { %v17499_v4 = vadd.f32 %v20673_v5, %v17263_v60  ;;  %v17503_v50 = vadd.f32 %v20675_v58, %v17267_v10  ;;  %v13147_v56 = vld [vmem:[#allocation3 + $0x31] sm:$0xff]  ;;  %v13148_v33 = vld [vmem:[#allocation3 + $0x39] sm:$0xff]  ;;  %v13149_v27 = vld [vmem:[#allocation3 + $0x49] sm:$0xff]  ;;  %v17513_v10 = vpop.permute.xlu0 %10489 }
 0x97c   : > { %v7747_v2 = vmul.f32 %v13147_v56, %v20677_v41  ;;  %v7748_v36 = vmul.f32 %v13148_v33, %v20677_v41  ;;  %v20678_v52 = vld [vmem:[#allocation129_spill] sm:$0xff]  ;;  %v13150_v43 = vld [vmem:[#allocation3 + $0x51] sm:$0xff]  ;;  %20683 = vst [vmem:[#allocation47_spill] sm:$0xff] %v17513_v10  ;;  %v20684_v58 = vld [vmem:[#allocation30_spill] sm:$0xff]  ;;  %v17534_v10 = vadd.f32 %v7746_v39, %v17298_v48 }
 0x97d   : > { %20674 = vst [vmem:[#allocation45_spill] sm:$0xff] %v17499_v4  ;;  %20676 = vst [vmem:[#allocation46_spill] sm:$0xff] %v17503_v50  ;;  %v7749_v21 = vmul.f32 %v13149_v27, %v20678_v52  ;;  %v7750_v12 = vmul.f32 %v13150_v43, %v20678_v52  ;;  %v20679_v57 = vld [vmem:[#allocation299_spill] sm:$0xff]  ;;  %v20680_v14 = vld [vmem:[#allocation301_spill] sm:$0xff]  ;;  %v17524_v27 = vadd.f32 %v7743_v44, %v17284_v11 }
 0x97e   : > { %v10074_v60 = vmul.f32 %v20680_v14, %v20679_v57  ;;  %v20681_v5 = vld [vmem:[#allocation300_spill] sm:$0xff]  ;;  %v20682_v4 = vld [vmem:[#allocation303_spill] sm:$0xff]  ;;  %v20686_v41 = vld [vmem:[#allocation125_spill] sm:$0xff]  ;;  %v17527_v52 = vadd.f32 %v7744_v3, %v17288_v62  ;;  %20688 = vst [vmem:[#allocation48_spill] sm:$0xff] %v17534_v10  ;;  %v17541_v3 = vadd.f32 %v7747_v2, %v17302_v24  ;;  %v17560_v2 = vpop.permute.xlu1 %10521 }
 0x97f   : > { %v10077_v6 = vmul.f32 %v20682_v4, %v20681_v5  ;;  %v20685_v50 = vld [vmem:[#allocation124_spill] sm:$0xff]  ;;  %v17521_v33 = vadd.f32 %v20686_v41, %v17280_v18  ;;  %v13151_v14 = vld [vmem:[#allocation3 + $0x61] sm:$0xff]  ;;  %v17531_v5 = vadd.f32 %v7745_v54, %v17294_v7  ;;  %v13152_v18 = vld [vmem:[#allocation3 + $0x69] sm:$0xff]  ;;  %v17555_v24 = vadd.f32 %v7749_v21, %v17310_v9  ;;  %20694 = vst [vmem:[#allocation52_spill] sm:$0xff] %v17560_v2 }
 0x980   : > { %v17517_v56 = vadd.f32 %v20685_v50, %v20684_v58  ;;  %v20687_v57 = vld [vmem:[#allocation130_spill] sm:$0xff]  ;;  %10192 = vrot.lane.b32.xlu1 %v10074_v60, %s13288_s17  ;;  %v13153_v44 = vld [vmem:[#allocation3 + $0x79] sm:$0xff]  ;;  %v20689_v50 = vld [vmem:[#allocation131_spill] sm:$0xff]  ;;  %20690 = vst [vmem:[#allocation49_spill] sm:$0xff] %v17541_v3  ;;  %v17544_v58 = vadd.f32 %v7748_v36, %v17306_v53  ;;  %v17558_v53 = vadd.f32 %v7750_v12, %v17314_v15 }
 0x981   : > { %v7751_v43 = vmul.f32 %v13151_v14, %v20687_v57  ;;  %10198 = vrot.lane.b32.xlu0 %v10077_v6, %s13288_s17  ;;  %v7752_v11 = vmul.f32 %v13152_v18, %v20687_v57  ;;  %v7753_v62 = vmul.f32 %v13153_v44, %v20689_v50  ;;  %v13016_v48 = vld [vmem:[%s20019_s4 + $0x13] ss:$0 sm:$0xff]  ;;  %v13013_v7 = vld [vmem:[%s20019_s4 + $0x10] ss:$0 sm:$0xff]  ;;  %v13154_v6 = vld [vmem:[#allocation3 + $0x81] sm:$0xff] }
 0x982   : > { %20691 = vst [vmem:[#allocation50_spill] sm:$0xff] %v17544_v58  ;;  %v7754_v54 = vmul.f32 %v13154_v6, %v20689_v50  ;;  %v13155_v39 = vld [vmem:[#allocation3 + $0x91] sm:$0xff]  ;;  %20693 = vst [vmem:[#allocation51_spill] sm:$0xff] %v17558_v53  ;;  %v13156_v36 = vld [vmem:[#allocation3 + $0x99] sm:$0xff]  ;;  %v17571_v53 = vpop.permute.xlu0 %10493 }
 0x983   : > { %v20692_v60 = vld [vmem:[#allocation132_spill] sm:$0xff]  ;;  %v13157_v57 = vld [vmem:[#allocation3 + $0xa9] sm:$0xff]  ;;  %v20695_v18 = vld [vmem:[#allocation133_spill] sm:$0xff]  ;;  %v17569_v2 = vadd.f32 %v7751_v43, %v17318_v16  ;;  %20698 = vst [vmem:[#allocation53_spill] sm:$0xff] %v17571_v53 }
 0x984   : > { %v7755_v41 = vmul.f32 %v13155_v39, %v20692_v60  ;;  %v7756_v14 = vmul.f32 %v13156_v36, %v20692_v60  ;;  %v7757_v44 = vmul.f32 %v13157_v57, %v20695_v18  ;;  %v13158_v58 = vld [vmem:[#allocation3 + $0xb1] sm:$0xff]  ;;  %v13159_v6 = vld [vmem:[#allocation3 + $0xc1] sm:$0xff]  ;;  %v13160_v10 = vld [vmem:[#allocation3 + $0xc9] sm:$0xff]  ;;  %10549 = vperm.xlu1 %13093, %v13013_v7   ;;  %v17586_v43 = vadd.f32 %v7754_v54, %v17333_v13 }
 0x985   : > { %v7758_v50 = vmul.f32 %v13158_v58, %v20695_v18  ;;  %v20696_v3 = vld [vmem:[#allocation134_spill] sm:$0xff]  ;;  %v13161_v21 = vld [vmem:[#allocation3 + $0xd9] sm:$0xff]  ;;  %v20697_v15 = vld [vmem:[#allocation135_spill] sm:$0xff]  ;;  %10561 = vperm.xlu0 %13092, %v13016_v48  }
 0x986   : > { %v7759_v39 = vmul.f32 %v13159_v6, %v20696_v3  ;;  %v7760_v9 = vmul.f32 %v13160_v10, %v20696_v3  ;;  %v7761_v12 = vmul.f32 %v13161_v21, %v20697_v15  ;;  %v13162_v60 = vld [vmem:[#allocation3 + $0xe1] sm:$0xff]  ;;  %v13163_v58 = vld [vmem:[#allocation3 + $0xf1] sm:$0xff]  ;;  %v17576_v6 = vadd.f32 %v7752_v11, %v17325_v0  ;;  %v13172_v53 = vld [vmem:[#allocation3 + $0x159] sm:$0xff] }
 0x987   : > { %v7762_v36 = vmul.f32 %v13162_v60, %v20697_v15  ;;  %v20699_v57 = vld [vmem:[#allocation136_spill] sm:$0xff]  ;;  %v17579_v10 = vadd.f32 %v7753_v62, %v17329_v37  ;;  %v17589_v48 = vadd.f32 %v7755_v41, %v17337_v30  ;;  %v20702_v7 = vld [vmem:[#allocation274_spill] sm:$0xff]  ;;  %v20703_v15 = vld [vmem:[#allocation275_spill] sm:$0xff]  ;;  %v17596_v11 = vadd.f32 %v7756_v14, %v17345_v31  ;;  %v17614_v31 = vpop.permute.xlu1 %10525 }
 0x988   : > { %v7763_v18 = vmul.f32 %v13163_v58, %v20699_v57  ;;  %v17581_v3 = vld [vmem:[#allocation3 + $0x92] sm:$0xff]  ;;  %v17599_v37 = vadd.f32 %v7757_v44, %v17349_v63  ;;  %v17602_v62 = vadd.f32 %v7758_v50, %v17359_v59  ;;  %v17605_v13 = vadd.f32 %v7759_v39, %v17363_v40  ;;  %20704 = vst [vmem:[#allocation56_spill] sm:$0xff] %v17614_v31  ;;  %v13165_v59 = vld [vmem:[#allocation3 + $0x109] sm:$0xff]  ;;  %v20705_v63 = vld [vmem:[#allocation137_spill] sm:$0xff] }
 0x989   : > { %20700 = vst [vmem:[#allocation54_spill] sm:$0xff] %v17581_v3  ;;  %v17583_v16 = vld [vmem:[#allocation3 + $0xb2] sm:$0xff]  ;;  %v9535_v21 = vmul.f32 %v20702_v7, %v17581_v3  ;;  %v17609_v41 = vadd.f32 %v7760_v9, %v17367_v45  ;;  %v17612_v60 = vadd.f32 %v7761_v12, %v17371_v42  ;;  %v7765_v14 = vmul.f32 %v13165_v59, %v20705_v63  ;;  %v13167_v9 = vld [vmem:[#allocation3 + $0x121] sm:$0xff] }
 0x98a   : > { %20701 = vst [vmem:[#allocation55_spill] sm:$0xff] %v17583_v16  ;;  %v9538_v0 = vmul.f32 %v20703_v15, %v17583_v16  ;;  %v13164_v30 = vld [vmem:[#allocation3 + $0xf9] sm:$0xff]  ;;  %v13166_v40 = vld [vmem:[#allocation3 + $0x111] sm:$0xff]  ;;  %v17621_v50 = vadd.f32 %v7762_v36, %v17375_v28  ;;  %v17624_v45 = vadd.f32 %v7763_v18, %v17379_v22  ;;  %v20708_v12 = vld [vmem:[#allocation138_spill] sm:$0xff]  ;;  %v17636_v36 = vpop.permute.xlu0 %10485 }
 0x98b   : > { %v7764_v54 = vmul.f32 %v13164_v30, %v20699_v57  ;;  %9643 = vrot.lane.b32.xlu1 %v9535_v21, %s13287_s16  ;;  %v7766_v44 = vmul.f32 %v13166_v40, %v20705_v63  ;;  %v17626_v42 = vld [vmem:[#allocation3 + $0x152] sm:$0xff]  ;;  %v7767_v58 = vmul.f32 %v13167_v9, %v20708_v12  ;;  %v13168_v57 = vld [vmem:[#allocation3 + $0x129] sm:$0xff]  ;;  %20710 = vst [vmem:[#allocation59_spill] sm:$0xff] %v17636_v36  ;;  %v13170_v59 = vld [vmem:[#allocation3 + $0x141] sm:$0xff] }
 0x98c   : > { %9649 = vrot.lane.b32.xlu0 %v9538_v0, %s13287_s16  ;;  %20706 = vst [vmem:[#allocation57_spill] sm:$0xff] %v17626_v42  ;;  %v17628_v39 = vld [vmem:[#allocation3 + $0x172] sm:$0xff]  ;;  %v7768_v7 = vmul.f32 %v13168_v57, %v20708_v12  ;;  %v9551_v21 = vmul.f32 %v20626_v20, %v17626_v42  ;;  %v20709_v0 = vld [vmem:[#allocation278_spill] sm:$0xff]  ;;  %v20713_v16 = vld [vmem:[#allocation141_spill] sm:$0xff] }
 0x98d   : > { %20707 = vst [vmem:[#allocation58_spill] sm:$0xff] %v17628_v39  ;;  %v9554_v28 = vmul.f32 %v20709_v0, %v17628_v39  ;;  %v13169_v22 = vld [vmem:[#allocation3 + $0x139] sm:$0xff]  ;;  %v20711_v18 = vld [vmem:[#allocation139_spill] sm:$0xff]  ;;  %v17645_v36 = vadd.f32 %v7764_v54, %v17383_v26  ;;  %v17660_v26 = vadd.f32 %v7767_v58, %v17397_v1 }
 0x98e   : > { %v7769_v30 = vmul.f32 %v13169_v22, %v20711_v18  ;;  %v7770_v63 = vmul.f32 %v13170_v59, %v20711_v18  ;;  %v13171_v40 = vld [vmem:[#allocation3 + $0x151] sm:$0xff]  ;;  %v13173_v57 = vld [vmem:[#allocation3 + $0x169] sm:$0xff]  ;;  %v13175_v22 = vld [vmem:[#allocation3 + $0x181] sm:$0xff]  ;;  %v17663_v54 = vadd.f32 %v7768_v7, %v17401_v35 }
 0x98f   : > { %v20712_v31 = vld [vmem:[#allocation140_spill] sm:$0xff]  ;;  %v7773_v20 = vmul.f32 %v13173_v57, %v20713_v16  ;;  %9675 = vrot.lane.b32.xlu1 %v9551_v21, %s13287_s16  ;;  %v20714_v18 = vld [vmem:[#allocation142_spill] sm:$0xff] }
 0x990   : > { %v7771_v9 = vmul.f32 %v13171_v40, %v20712_v31  ;;  %v7772_v12 = vmul.f32 %v13172_v53, %v20712_v31  ;;  %v13174_v42 = vld [vmem:[#allocation3 + $0x171] sm:$0xff]  ;;  %9681 = vrot.lane.b32.xlu0 %v9554_v28, %s13287_s16  ;;  %v7775_v59 = vmul.f32 %v13175_v22, %v20714_v18  ;;  %v13176_v40 = vld [vmem:[#allocation3 + $0x189] sm:$0xff]  ;;  %v17652_v53 = vadd.f32 %v7765_v14, %v17389_v46  ;;  %v17669_v22 = vpop.permute.xlu1 %10497  ;;  %v13177_v14 = vld [vmem:[#allocation3 + $0x199] sm:$0xff] }
 0x991   : > { %v7774_v39 = vmul.f32 %v13174_v42, %v20713_v16  ;;  %v7776_v3 = vmul.f32 %v13176_v40, %v20714_v18  ;;  %v17655_v31 = vadd.f32 %v7766_v44, %v17393_v49  ;;  %v17657_v16 = vld [vmem:[#allocation3 + $0x1a2] sm:$0xff]  ;;  %v20716_v42 = vld [vmem:[#allocation280_spill] sm:$0xff]  ;;  %20718 = vst [vmem:[#allocation61_spill] sm:$0xff] %v17669_v22  ;;  %v17672_v46 = vadd.f32 %v7769_v30, %v17405_v61  ;;  %v20719_v44 = vld [vmem:[#allocation143_spill] sm:$0xff]  ;;  %v17690_v61 = vpop.permute.xlu0 %10517 }
 0x992   : > { %20715 = vst [vmem:[#allocation60_spill] sm:$0xff] %v17657_v16  ;;  %v9558_v21 = vmul.f32 %v20716_v42, %v17657_v16  ;;  %v20717_v28 = vld [vmem:[#allocation272_spill] sm:$0xff]  ;;  %v17675_v49 = vadd.f32 %v7770_v63, %v17409_v55  ;;  %v17678_v1 = vadd.f32 %v7771_v9, %v17419_v51  ;;  %v17681_v35 = vadd.f32 %v7772_v12, %v17423_v25  ;;  %v13178_v55 = vld [vmem:[#allocation3 + $0x1a1] sm:$0xff]  ;;  %v13181_v12 = vld [vmem:[#allocation3 + $0x1c9] sm:$0xff] }
 0x993   : > { %v10060_v57 = vmul.f32 %v20663_v29, %v20717_v28  ;;  %v7777_v58 = vmul.f32 %v13177_v14, %v20719_v44  ;;  %v17685_v7 = vadd.f32 %v7773_v20, %v17427_v32  ;;  %v17688_v29 = vadd.f32 %v7774_v39, %v17431_v17  ;;  %20720 = vst [vmem:[#allocation62_spill] sm:$0xff] %v17690_v61  ;;  %v13179_v25 = vld [vmem:[#allocation3 + $0x1b1] sm:$0xff]  ;;  %v13180_v17 = vld [vmem:[#allocation3 + $0x1b9] sm:$0xff]  ;;  %v13186_v22 = vld [vmem:[#allocation3 + $0x201] sm:$0xff] }
 0x994   : > { %9689 = vrot.lane.b32.xlu1 %v9558_v21, %s13287_s16  ;;  %v7778_v51 = vmul.f32 %v13178_v55, %v20719_v44  ;;  %v20721_v30 = vld [vmem:[#allocation144_spill] sm:$0xff]  ;;  %v17697_v9 = vadd.f32 %v7775_v59, %v17435_v8  ;;  %v17700_v32 = vadd.f32 %v7776_v3, %v17439_v23  ;;  %v20724_v20 = vld [vmem:[#allocation145_spill] sm:$0xff]  ;;  %v20728_v59 = vld [vmem:[#allocation146_spill] sm:$0xff] }
 0x995   : > { %10164 = vrot.lane.b32.xlu0 %v10060_v57, %s13288_s17  ;;  %v7779_v63 = vmul.f32 %v13179_v25, %v20721_v30  ;;  %v7780_v39 = vmul.f32 %v13180_v17, %v20721_v30  ;;  %v7781_v18 = vmul.f32 %v13181_v12, %v20724_v20  ;;  %v20725_v40 = vld [vmem:[#allocation21_spill] sm:$0xff]  ;;  %v20726_v28 = vld [vmem:[#allocation12_spill] sm:$0xff]  ;;  %v20727_v57 = vld [vmem:[#allocation10_spill] sm:$0xff] }
 0x996   : > { %20722 = vst [vmem:[#allocation63_spill] sm:$0xff] %v17697_v9  ;;  %20723 = vst [vmem:[#allocation64_spill] sm:$0xff] %v17700_v32  ;;  %v10076_v21 = vmul.f32 %v20682_v4, %v20725_v40  ;;  %v10063_v14 = vmul.f32 %v20727_v57, %v20726_v28  ;;  %v13182_v44 = vld [vmem:[#allocation3 + $0x1d1] sm:$0xff]  ;;  %v13183_v8 = vld [vmem:[#allocation3 + $0x1e1] sm:$0xff]  ;;  %v17715_v9 = vpop.permute.xlu1 %10529 }
 0x997   : > { %v7782_v55 = vmul.f32 %v13182_v44, %v20724_v20  ;;  %v7783_v25 = vmul.f32 %v13183_v8, %v20728_v59  ;;  %v13184_v23 = vld [vmem:[#allocation3 + $0x1e9] sm:$0xff]  ;;  %v13185_v61 = vld [vmem:[#allocation3 + $0x1f9] sm:$0xff]  ;;  %v13187_v16 = vld [vmem:[#allocation3 + $0x211] sm:$0xff]  ;;  %20731 = vst [vmem:[#allocation65_spill] sm:$0xff] %v17715_v9 }
 0x998   : > { %v7784_v3 = vmul.f32 %v13184_v23, %v20728_v59  ;;  %v20729_v30 = vld [vmem:[#allocation147_spill] sm:$0xff]  ;;  %v20730_v4 = vld [vmem:[#allocation148_spill] sm:$0xff]  ;;  %10170 = vrot.lane.b32.xlu1 %v10063_v14, %s13288_s17  ;;  %v20732_v44 = vld [vmem:[#allocation149_spill] sm:$0xff]  ;;  %v17734_v14 = vadd.f32 %v7780_v39, %v17459_v34 }
 0x999   : > { %v7785_v17 = vmul.f32 %v13185_v61, %v20729_v30  ;;  %v7786_v12 = vmul.f32 %v13186_v22, %v20729_v30  ;;  %v7787_v40 = vmul.f32 %v13187_v16, %v20730_v4  ;;  %v13188_v32 = vld [vmem:[#allocation3 + $0x219] sm:$0xff]  ;;  %10196 = vrot.lane.b32.xlu0 %v10076_v21, %s13288_s17  ;;  %v13189_v20 = vld [vmem:[#allocation3 + $0x229] sm:$0xff]  ;;  %v13190_v59 = vld [vmem:[#allocation3 + $0x231] sm:$0xff]  ;;  %v17722_v22 = vadd.f32 %v7777_v58, %v17443_v38  ;;  %v17741_v58 = vpop.permute.xlu0 %9657 }
 0x99a   : > { %v7788_v28 = vmul.f32 %v13188_v32, %v20730_v4  ;;  %v7789_v8 = vmul.f32 %v13189_v20, %v20732_v44  ;;  %v7790_v61 = vmul.f32 %v13190_v59, %v20732_v44  ;;  %v17725_v16 = vadd.f32 %v7778_v51, %v17451_v19  ;;  %v13017_v32 = vld [vmem:[%s20019_s4 + $0x14] ss:$0 sm:$0xff]  ;;  %v20733_v23 = vld [vmem:[#allocation38_spill] sm:$0xff]  ;;  %20737 = vst [vmem:[#allocation66_spill] sm:$0xff] %v17741_v58  ;;  %v20739_v44 = vld [vmem:[#allocation40_spill] sm:$0xff] }
 0x99b   : > { %v17731_v21 = vadd.f32 %v7779_v63, %v17455_v47  ;;  %v17737_v30 = vadd.f32 %v7781_v18, %v20733_v23  ;;  %v20735_v4 = vld [vmem:[#allocation22_spill] sm:$0xff]  ;;  %v20736_v20 = vld [vmem:[#allocation11_spill] sm:$0xff]  ;;  %v17747_v59 = vadd.f32 %v7783_v25, %v20739_v44  ;;  %v20740_v9 = vld [vmem:[#allocation41_spill] sm:$0xff] }
 0x99c   : > { %v10079_v38 = vmul.f32 %v20736_v20, %v20735_v4  ;;  %v20738_v19 = vld [vmem:[#allocation39_spill] sm:$0xff]  ;;  %v17750_v47 = vadd.f32 %v7784_v3, %v20740_v9  ;;  %v20741_v63 = vld [vmem:[#allocation42_spill] sm:$0xff]  ;;  %v20743_v23 = vld [vmem:[#allocation45_spill] sm:$0xff] }
 0x99d   : > { %20734 = vst [vmem:[#allocation14_spill] sm:$0xff] %v17737_v30  ;;  %v17744_v51 = vadd.f32 %v7782_v55, %v20738_v19  ;;  %v17753_v34 = vadd.f32 %v7785_v17, %v20741_v63  ;;  %v20742_v39 = vld [vmem:[#allocation43_spill] sm:$0xff]  ;;  %v17759_v30 = vadd.f32 %v7787_v40, %v20743_v23  ;;  %v20744_v4 = vld [vmem:[#allocation46_spill] sm:$0xff]  ;;  %10565 = vperm.xlu0 %13092, %v13017_v32   ;;  %v20749_v32 = vld [vmem:[#allocation152_spill] sm:$0xff] }
 0x99e   : > { %v17756_v18 = vadd.f32 %v7786_v12, %v20742_v39  ;;  %v17762_v58 = vadd.f32 %v7788_v28, %v20744_v4  ;;  %10202 = vrot.lane.b32.xlu1 %v10079_v38, %s13288_s17  ;;  %v20745_v55 = vld [vmem:[#allocation150_spill] sm:$0xff]  ;;  %v20746_v9 = vld [vmem:[#allocation151_spill] sm:$0xff]  ;;  %v17774_v17 = vadd.f32 %v7789_v8, %v17517_v56  ;;  %v17777_v40 = vadd.f32 %v7790_v61, %v17521_v33  ;;  %v20751_v38 = vld [vmem:[#allocation153_spill] sm:$0xff]  ;;  %v17795_v33 = vpop.permute.xlu1 %10501 }
 0x99f   : > { %v17767_v25 = vadd.f32 %v20745_v55, %v17524_v27  ;;  %v17771_v3 = vadd.f32 %v20746_v9, %v17527_v52  ;;  %v17779_v12 = vld [vmem:[#allocation3 + $0xaa] sm:$0xff]  ;;  %v17785_v4 = vadd.f32 %v20749_v32, %v17531_v5  ;;  %v20750_v27 = vld [vmem:[#allocation48_spill] sm:$0xff]  ;;  %20752 = vst [vmem:[#allocation16_spill] sm:$0xff] %v17795_v33  ;;  %v20753_v8 = vld [vmem:[#allocation49_spill] sm:$0xff] }
 0x9a0   : > { %20747 = vst [vmem:[#allocation15_spill] sm:$0xff] %v17779_v12  ;;  %v17781_v28 = vld [vmem:[#allocation3 + $0x16a] sm:$0xff]  ;;  %v17789_v19 = vadd.f32 %v20751_v38, %v20750_v27  ;;  %v9537_v52 = vmul.f32 %v20703_v15, %v17779_v12  ;;  %v20757_v23 = vld [vmem:[#allocation156_spill] sm:$0xff]  ;;  %v20759_v32 = vld [vmem:[#allocation157_spill] sm:$0xff] }
 0x9a1   : > { %20748 = vst [vmem:[#allocation67_spill] sm:$0xff] %v17781_v28  ;;  %v9553_v56 = vmul.f32 %v20709_v0, %v17781_v28  ;;  %v20754_v61 = vld [vmem:[#allocation154_spill] sm:$0xff]  ;;  %v20756_v39 = vld [vmem:[#allocation155_spill] sm:$0xff]  ;;  %v17807_v55 = vadd.f32 %v20757_v23, %v17555_v24  ;;  %v20764_v24 = vld [vmem:[#allocation161_spill] sm:$0xff] }
 0x9a2   : > { %v17799_v44 = vadd.f32 %v20754_v61, %v20753_v8  ;;  %v20755_v63 = vld [vmem:[#allocation50_spill] sm:$0xff]  ;;  %v20758_v9 = vld [vmem:[#allocation51_spill] sm:$0xff]  ;;  %v20762_v61 = vld [vmem:[#allocation160_spill] sm:$0xff]  ;;  %9647 = vrot.lane.b32.xlu1 %v9537_v52, %s13287_s16  ;;  %v17831_v23 = vadd.f32 %v20764_v24, %v17586_v43 }
 0x9a3   : > { %v17803_v5 = vadd.f32 %v20756_v39, %v20755_v63  ;;  %v17811_v15 = vadd.f32 %v20759_v32, %v20758_v9  ;;  %v20760_v0 = vld [vmem:[#allocation158_spill] sm:$0xff]  ;;  %v20761_v38 = vld [vmem:[#allocation159_spill] sm:$0xff]  ;;  %v17823_v63 = vadd.f32 %v20762_v61, %v17579_v10  ;;  %v17825_v39 = vpop.permute.xlu0 %10533  ;;  %9679 = vrot.lane.b32.xlu0 %v9553_v56, %s13287_s16  ;;  %v20767_v10 = vld [vmem:[#allocation164_spill] sm:$0xff] }
 0x9a4   : > { %v17815_v27 = vadd.f32 %v20760_v0, %v17569_v2  ;;  %v17819_v8 = vadd.f32 %v20761_v38, %v17576_v6  ;;  %20763 = vst [vmem:[#allocation68_spill] sm:$0xff] %v17825_v39  ;;  %v20765_v2 = vld [vmem:[#allocation162_spill] sm:$0xff]  ;;  %v20766_v6 = vld [vmem:[#allocation163_spill] sm:$0xff]  ;;  %v17843_v0 = vadd.f32 %v20767_v10, %v17599_v37  ;;  %v17845_v38 = vld [vmem:[#allocation3 + $0x19a] sm:$0xff] }
 0x9a5   : > { %v17835_v9 = vadd.f32 %v20765_v2, %v17589_v48  ;;  %v17839_v32 = vadd.f32 %v20766_v6, %v17596_v11  ;;  %20768 = vst [vmem:[#allocation17_spill] sm:$0xff] %v17845_v38  ;;  %v17847_v56 = vld [vmem:[#allocation3 + $0x1ba] sm:$0xff]  ;;  %v20771_v61 = vld [vmem:[#allocation166_spill] sm:$0xff]  ;;  %v9557_v11 = vmul.f32 %v20716_v42, %v17845_v38  ;;  %v20773_v37 = vld [vmem:[#allocation167_spill] sm:$0xff] }
 0x9a6   : > { %20769 = vst [vmem:[#allocation69_spill] sm:$0xff] %v17847_v56  ;;  %v20770_v52 = vld [vmem:[#allocation165_spill] sm:$0xff]  ;;  %v17855_v48 = vadd.f32 %v20771_v61, %v17605_v13  ;;  %v17863_v6 = vadd.f32 %v20773_v37, %v17609_v41  ;;  %v20774_v10 = vld [vmem:[#allocation168_spill] sm:$0xff]  ;;  %v20776_v13 = vld [vmem:[#allocation170_spill] sm:$0xff] }
 0x9a7   : > { %v17851_v43 = vadd.f32 %v20770_v52, %v17602_v62  ;;  %v20772_v24 = vld [vmem:[#allocation281_spill] sm:$0xff]  ;;  %v17867_v39 = vadd.f32 %v20774_v10, %v17612_v60  ;;  %v17875_v61 = vadd.f32 %v20776_v13, %v17624_v45  ;;  %v20777_v42 = vld [vmem:[#allocation171_spill] sm:$0xff]  ;;  %v17889_v10 = vpop.permute.xlu1 %9655  ;;  %9687 = vrot.lane.b32.xlu1 %v9557_v11, %s13287_s16  ;;  %v20795_v38 = vld [vmem:[#allocation64_spill] sm:$0xff] }
 0x9a8   : > { %v9560_v2 = vmul.f32 %v20772_v24, %v17847_v56  ;;  %v20775_v62 = vld [vmem:[#allocation169_spill] sm:$0xff]  ;;  %v17879_v33 = vadd.f32 %v20777_v42, %v17645_v36  ;;  %v20778_v56 = vld [vmem:[#allocation172_spill] sm:$0xff]  ;;  %20780 = vst [vmem:[#allocation18_spill] sm:$0xff] %v17889_v10  ;;  %v20782_v36 = vld [vmem:[#allocation175_spill] sm:$0xff] }
 0x9a9   : > { %v17871_v52 = vadd.f32 %v20775_v62, %v17621_v50  ;;  %v17883_v41 = vadd.f32 %v20778_v56, %v17652_v53  ;;  %v20779_v37 = vld [vmem:[#allocation173_spill] sm:$0xff]  ;;  %v20781_v50 = vld [vmem:[#allocation174_spill] sm:$0xff]  ;;  %v17899_v62 = vadd.f32 %v20782_v36, %v17663_v54  ;;  %v20783_v53 = vld [vmem:[#allocation176_spill] sm:$0xff] }
 0x9aa   : > { %v17887_v60 = vadd.f32 %v20779_v37, %v17655_v31  ;;  %9693 = vrot.lane.b32.xlu0 %v9560_v2, %s13287_s16  ;;  %v17895_v45 = vadd.f32 %v20781_v50, %v17660_v26  ;;  %v17903_v56 = vadd.f32 %v20783_v53, %v17672_v46  ;;  %v20784_v31 = vld [vmem:[#allocation177_spill] sm:$0xff]  ;;  %v20785_v2 = vld [vmem:[#allocation178_spill] sm:$0xff]  ;;  %v20786_v11 = vld [vmem:[#allocation179_spill] sm:$0xff]  ;;  %v17923_v53 = vpop.permute.xlu0 %9661 }
 0x9ab   : > { %v17907_v13 = vadd.f32 %v20784_v31, %v17675_v49  ;;  %v17911_v42 = vadd.f32 %v20785_v2, %v17678_v1  ;;  %v17915_v26 = vadd.f32 %v20786_v11, %v17681_v35  ;;  %v17917_v37 = vld [vmem:[#allocation3 + $0x7a] sm:$0xff]  ;;  %v20788_v50 = vld [vmem:[#allocation31_spill] sm:$0xff]  ;;  %20790 = vst [vmem:[#allocation19_spill] sm:$0xff] %v17923_v53  ;;  %v20794_v11 = vld [vmem:[#allocation182_spill] sm:$0xff] }
 0x9ac   : > { %20787 = vst [vmem:[#allocation70_spill] sm:$0xff] %v17917_v37  ;;  %v10062_v54 = vmul.f32 %v17917_v37, %v20727_v57  ;;  %v20789_v46 = vld [vmem:[#allocation13_spill] sm:$0xff]  ;;  %v20791_v49 = vld [vmem:[#allocation180_spill] sm:$0xff]  ;;  %v20793_v35 = vld [vmem:[#allocation63_spill] sm:$0xff] }
 0x9ad   : > { %v10065_v36 = vmul.f32 %v20789_v46, %v20788_v50  ;;  %v17927_v31 = vadd.f32 %v20791_v49, %v17685_v7  ;;  %v20792_v1 = vld [vmem:[#allocation181_spill] sm:$0xff]  ;;  %v17935_v10 = vadd.f32 %v20794_v11, %v20793_v35  ;;  %v20796_v28 = vld [vmem:[#allocation183_spill] sm:$0xff]  ;;  %v20797_v12 = vld [vmem:[#allocation184_spill] sm:$0xff] }
 0x9ae   : > { %v17931_v2 = vadd.f32 %v20792_v1, %v17688_v29  ;;  %v17939_v57 = vadd.f32 %v20796_v28, %v20795_v38  ;;  %v17943_v50 = vadd.f32 %v20797_v12, %v17722_v22  ;;  %v20798_v53 = vld [vmem:[#allocation185_spill] sm:$0xff]  ;;  %v20799_v49 = vld [vmem:[#allocation186_spill] sm:$0xff]  ;;  %10168 = vrot.lane.b32.xlu1 %v10062_v54, %s13288_s17  ;;  %v20800_v1 = vld [vmem:[#allocation187_spill] sm:$0xff] }
 0x9af   : > { %v17947_v7 = vadd.f32 %v20798_v53, %v17725_v16  ;;  %v17951_v29 = vadd.f32 %v20799_v49, %v17731_v21  ;;  %10174 = vrot.lane.b32.xlu0 %v10065_v36, %s13288_s17  ;;  %v17957_v28 = vadd.f32 %v20800_v1, %v17734_v14  ;;  %v20801_v38 = vld [vmem:[#allocation14_spill] sm:$0xff]  ;;  %v20802_v35 = vld [vmem:[#allocation188_spill] sm:$0xff]  ;;  %v20803_v12 = vld [vmem:[#allocation189_spill] sm:$0xff] }
 0x9b0   : > { %v17961_v22 = vadd.f32 %v20802_v35, %v20801_v38  ;;  %v17965_v16 = vadd.f32 %v20803_v12, %v17744_v51  ;;  %v20804_v53 = vld [vmem:[#allocation190_spill] sm:$0xff]  ;;  %v20805_v54 = vld [vmem:[#allocation191_spill] sm:$0xff]  ;;  %v20806_v36 = vld [vmem:[#allocation192_spill] sm:$0xff]  ;;  %v17983_v51 = vpop.permute.xlu1 %10505 }
 0x9b1   : > { %v17969_v21 = vadd.f32 %v20804_v53, %v17747_v59  ;;  %v17973_v11 = vadd.f32 %v20805_v54, %v17750_v47  ;;  %v17977_v14 = vadd.f32 %v20806_v36, %v17753_v34  ;;  %v20807_v49 = vld [vmem:[#allocation33_spill] sm:$0xff]  ;;  %v20808_v38 = vld [vmem:[#allocation34_spill] sm:$0xff]  ;;  %v20809_v35 = vld [vmem:[#allocation24_spill] sm:$0xff]  ;;  %20810 = vst [vmem:[#allocation71_spill] sm:$0xff] %v17983_v51 }
 0x9b2   : > { %v10078_v1 = vmul.f32 %v20736_v20, %v20807_v49  ;;  %v10081_v37 = vmul.f32 %v20809_v35, %v20808_v38  ;;  %v20811_v12 = vld [vmem:[#allocation193_spill] sm:$0xff]  ;;  %v20812_v53 = vld [vmem:[#allocation194_spill] sm:$0xff]  ;;  %v20813_v54 = vld [vmem:[#allocation195_spill] sm:$0xff] }
 0x9b3   : > { %v17987_v59 = vadd.f32 %v20811_v12, %v17756_v18  ;;  %v17991_v47 = vadd.f32 %v20812_v53, %v17759_v30  ;;  %v17995_v34 = vadd.f32 %v20813_v54, %v17762_v58  ;;  %v20814_v36 = vld [vmem:[#allocation196_spill] sm:$0xff]  ;;  %v20815_v38 = vld [vmem:[#allocation197_spill] sm:$0xff]  ;;  %v20816_v51 = vld [vmem:[#allocation198_spill] sm:$0xff]  ;;  %v18013_v53 = vpop.permute.xlu0 %10537 }
 0x9b4   : > { %v17999_v20 = vadd.f32 %v20814_v36, %v17774_v17  ;;  %v18003_v49 = vadd.f32 %v20815_v38, %v17777_v40  ;;  %v18007_v18 = vadd.f32 %v20816_v51, %v17767_v25  ;;  %v20817_v12 = vld [vmem:[#allocation199_spill] sm:$0xff]  ;;  %20818 = vst [vmem:[#allocation20_spill] sm:$0xff] %v18013_v53  ;;  %10200 = vrot.lane.b32.xlu1 %v10078_v1, %s13288_s17  ;;  %v20819_v58 = vld [vmem:[#allocation200_spill] sm:$0xff]  ;;  %v20820_v40 = vld [vmem:[#allocation201_spill] sm:$0xff] }
 0x9b5   : > { %v18011_v30 = vadd.f32 %v20817_v12, %v17771_v3  ;;  %10206 = vrot.lane.b32.xlu0 %v10081_v37, %s13288_s17  ;;  %v18019_v17 = vadd.f32 %v20819_v58, %v17785_v4  ;;  %v8852_v38 = vadd.f32 %v20820_v40, %v17789_v19  ;;  %v20821_v25 = vld [vmem:[#allocation202_spill] sm:$0xff]  ;;  %v20822_v3 = vld [vmem:[#allocation203_spill] sm:$0xff]  ;;  %v20825_v4 = vld [vmem:[#allocation204_spill] sm:$0xff] }
 0x9b6   : > { %v18025_v51 = vadd.f32 %v20821_v25, %v17799_v44  ;;  %v18029_v54 = vadd.f32 %v20822_v3, %v17803_v5  ;;  %v18031_v36 = vld [vmem:[#allocation3 + $0x18a] sm:$0xff]  ;;  %v13018_v37 = vld [vmem:[%s20019_s4 + $0x15] ss:$0 sm:$0xff]  ;;  %v18038_v1 = vadd.f32 %v20825_v4, %v17807_v55  ;;  %v20826_v19 = vld [vmem:[#allocation205_spill] sm:$0xff] }
 0x9b7   : > { %20824 = vst [vmem:[#allocation73_spill] sm:$0xff] %v18031_v36  ;;  %v18042_v12 = vadd.f32 %v20826_v19, %v17811_v15  ;;  %v20828_v44 = vld [vmem:[#allocation206_spill] sm:$0xff]  ;;  %v20830_v5 = vld [vmem:[#allocation279_spill] sm:$0xff]  ;;  %v20832_v53 = vld [vmem:[#allocation208_spill] sm:$0xff] }
 0x9b8   : > { %20823 = vst [vmem:[#allocation72_spill] sm:$0xff] %v18029_v54  ;;  %v18046_v58 = vadd.f32 %v20828_v44, %v17815_v27  ;;  %v9556_v40 = vmul.f32 %v20830_v5, %v18031_v36  ;;  %v20831_v25 = vld [vmem:[#allocation207_spill] sm:$0xff]  ;;  %v18056_v54 = vadd.f32 %v20832_v53, %v17823_v63  ;;  %v20833_v55 = vld [vmem:[#allocation209_spill] sm:$0xff]  ;;  %v20835_v27 = vld [vmem:[#allocation210_spill] sm:$0xff]  ;;  %v18075_v63 = vpop.permute.xlu1 %9653  ;;  %10569 = vperm.xlu1 %13093, %v13018_v37  }
 0x9b9   : > { %20827 = vst [vmem:[#allocation23_spill] sm:$0xff] %v18042_v12  ;;  %v18052_v3 = vadd.f32 %v20831_v25, %v17819_v8  ;;  %v18060_v4 = vadd.f32 %v20833_v55, %v17831_v23  ;;  %v13192_v15 = vld [vmem:[#allocation3 + $0x22] sm:$0xff]  ;;  %v20834_v19 = vld [vmem:[#allocation247_spill] sm:$0xff]  ;;  %v18065_v44 = vadd.f32 %v20835_v27, %v17835_v9  ;;  %v20837_v8 = vld [vmem:[#allocation212_spill] sm:$0xff] }
 0x9ba   : > { %20829 = vst [vmem:[#allocation74_spill] sm:$0xff] %v18046_v58  ;;  %v9189_v12 = vmul.f32 %v13192_v15, %v20834_v19  ;;  %v20836_v36 = vld [vmem:[#allocation211_spill] sm:$0xff]  ;;  %v18073_v25 = vadd.f32 %v20837_v8, %v17843_v0  ;;  %20838 = vst [vmem:[#allocation75_spill] sm:$0xff] %v18075_v63  ;;  %9685 = vrot.lane.b32.xlu0 %v9556_v40, %s13287_s16  ;;  %v20839_v23 = vld [vmem:[#allocation213_spill] sm:$0xff] }
 0x9bb   : > { %v18069_v58 = vadd.f32 %v20836_v36, %v17839_v32  ;;  %v18080_v53 = vadd.f32 %v20839_v23, %v17851_v43  ;;  %v20840_v9 = vld [vmem:[#allocation214_spill] sm:$0xff]  ;;  %v20842_v32 = vld [vmem:[#allocation215_spill] sm:$0xff]  ;;  %v20843_v0 = vld [vmem:[#allocation216_spill] sm:$0xff] }
 0x9bc   : > { %v18084_v55 = vadd.f32 %v20840_v9, %v17855_v48  ;;  %v18088_v36 = vadd.f32 %v20842_v32, %v17863_v6  ;;  %v18092_v15 = vadd.f32 %v20843_v0, %v17867_v39  ;;  %v18094_v27 = vld [vmem:[#allocation3 + $0x1b2] sm:$0xff]  ;;  %v20846_v40 = vld [vmem:[#allocation217_spill] sm:$0xff]  ;;  %v20847_v8 = vld [vmem:[#allocation218_spill] sm:$0xff]  ;;  %v18108_v32 = vpop.permute.xlu0 %9659 }
 0x9bd   : > { %20844 = vst [vmem:[#allocation77_spill] sm:$0xff] %v18094_v27  ;;  %v18096_v37 = vld [vmem:[#allocation3 + $0x1d2] sm:$0xff]  ;;  %v8868_v43 = vadd.f32 %v20846_v40, %v17871_v52  ;;  %v18102_v23 = vadd.f32 %v20847_v8, %v17875_v61  ;;  %v9559_v48 = vmul.f32 %v20772_v24, %v18094_v27  ;;  %v20849_v6 = vld [vmem:[#allocation282_spill] sm:$0xff]  ;;  %20850 = vst [vmem:[#allocation80_spill] sm:$0xff] %v18108_v32 }
 0x9be   : > { %20841 = vst [vmem:[#allocation76_spill] sm:$0xff] %v18084_v55  ;;  %20845 = vst [vmem:[#allocation78_spill] sm:$0xff] %v18096_v37  ;;  %v9562_v9 = vmul.f32 %v20849_v6, %v18096_v37  ;;  %v20851_v39 = vld [vmem:[#allocation219_spill] sm:$0xff]  ;;  %v20852_v63 = vld [vmem:[#allocation220_spill] sm:$0xff]  ;;  %v9237_v8 = vadd.f32 %v9189_v12, %v8852_v38 }
 0x9bf   : > { %20848 = vst [vmem:[#allocation79_spill] sm:$0xff] %v18102_v23  ;;  %v18112_v0 = vadd.f32 %v20851_v39, %v17879_v33  ;;  %v18116_v55 = vadd.f32 %v20852_v63, %v17883_v41  ;;  %v13193_v52 = vld [vmem:[#allocation3 + $0xe2] sm:$0xff]  ;;  %v20853_v40 = vld [vmem:[#allocation255_spill] sm:$0xff]  ;;  %9691 = vrot.lane.b32.xlu1 %v9559_v48, %s13287_s16  ;;  %v20857_v41 = vld [vmem:[#allocation224_spill] sm:$0xff] }
 0x9c0   : > { %v9205_v61 = vmul.f32 %v13193_v52, %v20853_v40  ;;  %v20854_v23 = vld [vmem:[#allocation221_spill] sm:$0xff]  ;;  %v20855_v37 = vld [vmem:[#allocation222_spill] sm:$0xff]  ;;  %v20856_v32 = vld [vmem:[#allocation223_spill] sm:$0xff]  ;;  %9697 = vrot.lane.b32.xlu0 %v9562_v9, %s13287_s16  ;;  %v18135_v63 = vadd.f32 %v20857_v41, %v17903_v56 }
 0x9c1   : > { %v18121_v24 = vadd.f32 %v20854_v23, %v17887_v60  ;;  %v18125_v27 = vadd.f32 %v20855_v37, %v17895_v45  ;;  %v18129_v33 = vadd.f32 %v20856_v32, %v17899_v62  ;;  %v20858_v38 = vld [vmem:[#allocation225_spill] sm:$0xff]  ;;  %v20859_v12 = vld [vmem:[#allocation226_spill] sm:$0xff]  ;;  %v20862_v62 = vld [vmem:[#allocation227_spill] sm:$0xff] }
 0x9c2   : > { %v18139_v60 = vadd.f32 %v20858_v38, %v17907_v13  ;;  %v18143_v45 = vadd.f32 %v20859_v12, %v17911_v42  ;;  %v20861_v37 = vld [vmem:[#allocation290_spill] sm:$0xff]  ;;  %v18148_v32 = vadd.f32 %v20862_v62, %v17915_v26  ;;  %v20864_v48 = vld [vmem:[#allocation228_spill] sm:$0xff]  ;;  %v20867_v52 = vld [vmem:[#allocation55_spill] sm:$0xff]  ;;  %v18158_v38 = vpop.permute.xlu1 %9665  ;;  %v10155_v42 = vpop.permute.xlu0 %10154  ;;  %v9253_v62 = vadd.f32 %v9205_v61, %v8868_v43 }
 0x9c3   : > { %v9766_v23 = vadd.f32 %v20861_v37, %v9237_v8  ;;  %v18152_v9 = vadd.f32 %v20864_v48, %v17927_v31  ;;  %v20866_v56 = vld [vmem:[#allocation54_spill] sm:$0xff]  ;;  %v20868_v13 = vld [vmem:[#allocation25_spill] sm:$0xff]  ;;  %20869 = vst [vmem:[#allocation84_spill] sm:$0xff] %v18158_v38  ;;  %v20872_v48 = vld [vmem:[#allocation231_spill] sm:$0xff] }
 0x9c4   : > { %20860 = vst [vmem:[#allocation81_spill] sm:$0xff] %v18143_v45  ;;  %20863 = vst [vmem:[#allocation82_spill] sm:$0xff] %v18148_v32  ;;  %v10064_v39 = vmul.f32 %v20789_v46, %v20866_v56  ;;  %v10067_v41 = vmul.f32 %v20868_v13, %v20867_v52  ;;  %v20870_v12 = vld [vmem:[#allocation229_spill] sm:$0xff]  ;;  %v20871_v26 = vld [vmem:[#allocation230_spill] sm:$0xff] }
 0x9c5   : > { %20865 = vst [vmem:[#allocation83_spill] sm:$0xff] %v18152_v9  ;;  %v18162_v8 = vadd.f32 %v20870_v12, %v17931_v2  ;;  %v18166_v37 = vadd.f32 %v20871_v26, %v17935_v10  ;;  %v10295_v31 = vadd.f32 %v10155_v42, %v9766_v23  ;;  %v18170_v9 = vadd.f32 %v20872_v48, %v17939_v57  ;;  %v20873_v46 = vld [vmem:[#allocation232_spill] sm:$0xff]  ;;  %v20874_v38 = vld [vmem:[#allocation233_spill] sm:$0xff]  ;;  %v20875_v10 = vld [vmem:[#allocation234_spill] sm:$0xff] }
 0x9c6   : > { %v18174_v45 = vadd.f32 %v20873_v46, %v17943_v50  ;;  %v18178_v32 = vadd.f32 %v20874_v38, %v17947_v7  ;;  %10172 = vrot.lane.b32.xlu1 %v10064_v39, %s13288_s17  ;;  %10178 = vrot.lane.b32.xlu0 %v10067_v41, %s13288_s17  ;;  %v18184_v2 = vadd.f32 %v20875_v10, %v17951_v29  ;;  %v20877_v43 = vld [vmem:[#allocation235_spill] sm:$0xff]  ;;  %v20878_v61 = vld [vmem:[#allocation66_spill] sm:$0xff]  ;;  %v20880_v12 = vld [vmem:[#allocation236_spill] sm:$0xff] }
 0x9c7   : > { %v18188_v57 = vadd.f32 %v20877_v43, %v17957_v28  ;;  %v9782_v23 = vadd.f32 %v20878_v61, %v9253_v62  ;;  %v20879_v50 = vld [vmem:[#allocation47_spill] sm:$0xff]  ;;  %v18194_v7 = vadd.f32 %v20880_v12, %v17961_v22  ;;  %v20882_v39 = vld [vmem:[#allocation237_spill] sm:$0xff]  ;;  %v20885_v26 = vld [vmem:[#allocation58_spill] sm:$0xff]  ;;  %v10187_v28 = vpop.permute.xlu1 %10186 }
 0x9c8   : > { %20876 = vst [vmem:[#allocation85_spill] sm:$0xff] %v18184_v2  ;;  %v10583_v42 = vadd.f32 %v20879_v50, %v10295_v31  ;;  %v18198_v38 = vadd.f32 %v20882_v39, %v17965_v16  ;;  %v20884_v41 = vld [vmem:[#allocation57_spill] sm:$0xff]  ;;  %v20886_v48 = vld [vmem:[#allocation26_spill] sm:$0xff]  ;;  %v20888_v31 = vld [vmem:[#allocation239_spill] sm:$0xff] }
 0x9c9   : > { %20881 = vst [vmem:[#allocation86_spill] sm:$0xff] %v18194_v7  ;;  %v10080_v29 = vmul.f32 %v20809_v35, %v20884_v41  ;;  %v10083_v46 = vmul.f32 %v20886_v48, %v20885_v26  ;;  %v20887_v10 = vld [vmem:[#allocation238_spill] sm:$0xff]  ;;  %v18210_v43 = vadd.f32 %v20888_v31, %v17973_v11  ;;  %v10311_v61 = vadd.f32 %v10187_v28, %v9782_v23  ;;  %v20889_v16 = vld [vmem:[#allocation240_spill] sm:$0xff]  ;;  %v13019_v31 = vld [vmem:[%s20019_s4 + $0x16] ss:$0 sm:$0xff] }
 0x9ca   : > { %20883 = vst [vmem:[#allocation87_spill] sm:$0xff] %v18198_v38  ;;  %v18206_v62 = vadd.f32 %v20887_v10, %v17969_v21  ;;  %v10631_v22 = vmax.f32 %v10583_v42, 0.0  ;;  %v18214_v12 = vadd.f32 %v20889_v16, %v17977_v14  ;;  %v13194_v39 = vld [vmem:[#allocation3 + $0x2] sm:$0xff]  ;;  %v13195_v38 = vld [vmem:[#allocation3 + $0xa] sm:$0xff]  ;;  %v13196_v23 = vld [vmem:[#allocation3 + $0x1a] sm:$0xff] }
 0x9cb   : > { %v20891_v35 = vld [vmem:[#allocation246_spill] sm:$0xff]  ;;  %10204 = vrot.lane.b32.xlu1 %v10080_v29, %s13288_s17  ;;  %10210 = vrot.lane.b32.xlu0 %v10083_v46, %s13288_s17  ;;  %v20892_v21 = vld [vmem:[#allocation241_spill] sm:$0xff]  ;;  %v9188_v42 = vmul.f32 %v13196_v23, %v20834_v19  ;;  %v20894_v28 = vld [vmem:[#allocation52_spill] sm:$0xff] }
 0x9cc   : > { %20890 = vst [vmem:[#allocation88_spill] sm:$0xff] %v18214_v12  ;;  %v9186_v7 = vmul.f32 %v13194_v39, %v20891_v35  ;;  %v9187_v2 = vmul.f32 %v13195_v38, %v20891_v35  ;;  %v18222_v11 = vadd.f32 %v20892_v21, %v17987_v59  ;;  %v10679_v14 = vmin.f32 %v10631_v22, 6.0  ;;  %v20895_v38 = vld [vmem:[#allocation242_spill] sm:$0xff]  ;;  %v20897_v29 = vld [vmem:[#allocation243_spill] sm:$0xff]  ;;  %v20898_v59 = vld [vmem:[#allocation244_spill] sm:$0xff] }
 0x9cd   : > { %v10599_v10 = vadd.f32 %v20894_v28, %v10311_v61  ;;  %v18231_v16 = vadd.f32 %v20895_v38, %v17991_v47  ;;  %v18235_v46 = vadd.f32 %v20897_v29, %v17995_v34  ;;  %v18239_v39 = vadd.f32 %v20898_v59, %v17999_v20  ;;  %v20900_v19 = vld [vmem:[#allocation60_spill] sm:$0xff]  ;;  %v20901_v22 = vld [vmem:[#allocation27_spill] sm:$0xff]  ;;  %v20902_v61 = vld [vmem:[#allocation245_spill] sm:$0xff] }
 0x9ce   : > { %20893 = vst [vmem:[#allocation89_spill] sm:$0xff] %v18222_v11  ;;  %v10087_v35 = vmul.f32 %v20901_v22, %v20900_v19  ;;  %v18245_v21 = vadd.f32 %v20902_v61, %v18003_v49  ;;  %v13197_v23 = vld [vmem:[#allocation3 + $0x32] sm:$0xff]  ;;  %v13198_v47 = vld [vmem:[#allocation3 + $0x3a] sm:$0xff]  ;;  %10728 = vst.msk [vmem:[#allocation4 + $0x18] sm:$0xff] %vm10724_vm5, %v10679_v14  ;;  %v18252_v59 = vadd.f32 %v9186_v7, %v18007_v18 }
 0x9cf   : > { %20896 = vst [vmem:[#allocation90_spill] sm:$0xff] %v18231_v16  ;;  %20899 = vst [vmem:[#allocation91_spill] sm:$0xff] %v18239_v39  ;;  %v20904_v12 = vld [vmem:[#allocation248_spill] sm:$0xff]  ;;  %v10647_v34 = vmax.f32 %v10599_v10, 0.0  ;;  %v13199_v29 = vld [vmem:[#allocation3 + $0x4a] sm:$0xff]  ;;  %v18255_v39 = vadd.f32 %v9187_v2, %v18011_v30  ;;  %10573 = vperm.xlu0 %13092, %v13019_v31  }
 0x9d0   : > { %20903 = vst [vmem:[#allocation92_spill] sm:$0xff] %v18245_v21  ;;  %v9190_v11 = vmul.f32 %v13197_v23, %v20904_v12  ;;  %v9191_v38 = vmul.f32 %v13198_v47, %v20904_v12  ;;  %v20905_v16 = vld [vmem:[#allocation249_spill] sm:$0xff]  ;;  %20906 = vst [vmem:[#allocation276_spill] sm:$0xff] %v18252_v59  ;;  %10218 = vrot.lane.b32.xlu1 %v10087_v35, %s13288_s17  ;;  %v13200_v49 = vld [vmem:[#allocation3 + $0x52] sm:$0xff] }
 0x9d1   : > { %v9192_v20 = vmul.f32 %v13199_v29, %v20905_v16  ;;  %20907 = vst [vmem:[#allocation277_spill] sm:$0xff] %v18255_v39  ;;  %v9193_v61 = vmul.f32 %v13200_v49, %v20905_v16  ;;  %v13201_v23 = vld [vmem:[#allocation3 + $0x62] sm:$0xff]  ;;  %v18262_v10 = vld [vmem:[#allocation3 + $0x1ca] sm:$0xff]  ;;  %v18265_v29 = vadd.f32 %v9188_v42, %v18019_v17  ;;  %v10695_v18 = vmin.f32 %v10647_v34, 6.0  ;;  %v20913_v21 = vld [vmem:[#allocation252_spill] sm:$0xff] }
 0x9d2   : > { %v20908_v12 = vld [vmem:[#allocation250_spill] sm:$0xff]  ;;  %v20909_v2 = vld [vmem:[#allocation251_spill] sm:$0xff]  ;;  %v9561_v49 = vmul.f32 %v20849_v6, %v18262_v10  ;;  %v18279_v42 = vadd.f32 %v9190_v11, %v18025_v51  ;;  %v20914_v34 = vld [vmem:[#allocation72_spill] sm:$0xff] }
 0x9d3   : > { %v9194_v47 = vmul.f32 %v13201_v23, %v20908_v12  ;;  %v18260_v14 = vld [vmem:[#allocation3 + $0x182] sm:$0xff]  ;;  %v13202_v7 = vld [vmem:[#allocation3 + $0x6a] sm:$0xff]  ;;  %v20911_v23 = vld [vmem:[#allocation12_spill] sm:$0xff]  ;;  %10744 = vst.msk [vmem:[#allocation4 + $0x98] sm:$0xff] %vm10724_vm5, %v10695_v18 }
 0x9d4   : > { %v9195_v30 = vmul.f32 %v13202_v7, %v20908_v12  ;;  %v20910_v31 = vld [vmem:[#allocation70_spill] sm:$0xff]  ;;  %v9555_v16 = vmul.f32 %v20830_v5, %v18260_v14  ;;  %v9197_v39 = vmul.f32 %v20909_v2, %v20911_v23  ;;  %v20912_v59 = vld [vmem:[#allocation31_spill] sm:$0xff]  ;;  %v18282_v12 = vadd.f32 %v9191_v38, %v20914_v34  ;;  %v20915_v7 = vld [vmem:[#allocation253_spill] sm:$0xff]  ;;  %9695 = vrot.lane.b32.xlu0 %v9561_v49, %s13287_s16 }
 0x9d5   : > { %v9196_v35 = vmul.f32 %v20910_v31, %v20909_v2  ;;  %v9199_v17 = vmul.f32 %v20913_v21, %v20912_v59  ;;  %v9198_v5 = vmul.f32 %v20913_v21, %v20866_v56  ;;  %v9201_v6 = vmul.f32 %v20915_v7, %v20867_v52  ;;  %v20916_v51 = vld [vmem:[#allocation15_spill] sm:$0xff]  ;;  %v13203_v38 = vld [vmem:[#allocation3 + $0xda] sm:$0xff]  ;;  %v20918_v21 = vld [vmem:[#allocation74_spill] sm:$0xff] }
 0x9d6   : > { %v18290_v31 = vadd.f32 %v9192_v20, %v18038_v1  ;;  %9683 = vrot.lane.b32.xlu1 %v9555_v16, %s13287_s16  ;;  %v9200_v11 = vmul.f32 %v20915_v7, %v20916_v51  ;;  %v9204_v59 = vmul.f32 %v13203_v38, %v20853_v40  ;;  %v18297_v18 = vld [vmem:[#allocation3 + $0x1ea] sm:$0xff]  ;;  %v18303_v52 = vadd.f32 %v9194_v47, %v20918_v21  ;;  %v13204_v23 = vld [vmem:[#allocation3 + $0xc2] sm:$0xff]  ;;  %v18317_v47 = vpop.permute.xlu0 %10509  ;;  %v13207_v21 = vld [vmem:[#allocation3 + $0xf2] sm:$0xff] }
 0x9d7   : > { %v20917_v2 = vld [vmem:[#allocation23_spill] sm:$0xff]  ;;  %v18308_v49 = vadd.f32 %v9195_v30, %v18052_v3  ;;  %v18311_v16 = vadd.f32 %v9196_v35, %v18056_v54  ;;  %v10066_v40 = vmul.f32 %v20868_v13, %v20916_v51  ;;  %v20920_v34 = vld [vmem:[#allocation254_spill] sm:$0xff]  ;;  %20921 = vst [vmem:[#allocation93_spill] sm:$0xff] %v18317_v47  ;;  %v18323_v3 = vadd.f32 %v9199_v17, %v18069_v58  ;;  %v13206_v30 = vld [vmem:[#allocation3 + $0xfa] sm:$0xff] }
 0x9d8   : > { %v18300_v56 = vadd.f32 %v9193_v61, %v20917_v2  ;;  %v20919_v1 = vld [vmem:[#allocation283_spill] sm:$0xff]  ;;  %v9202_v7 = vmul.f32 %v13204_v23, %v20920_v34  ;;  %v18320_v2 = vadd.f32 %v9197_v39, %v18060_v4  ;;  %v20922_v54 = vld [vmem:[#allocation256_spill] sm:$0xff]  ;;  %v18329_v13 = vadd.f32 %v9198_v5, %v18065_v44  ;;  %v20925_v23 = vld [vmem:[#allocation257_spill] sm:$0xff] }
 0x9d9   : > { %v9564_v20 = vmul.f32 %v20919_v1, %v18297_v18  ;;  %v13205_v61 = vld [vmem:[#allocation3 + $0xca] sm:$0xff]  ;;  %v9207_v35 = vmul.f32 %v13206_v30, %v20922_v54  ;;  %10176 = vrot.lane.b32.xlu0 %v10066_v40, %s13288_s17  ;;  %v18332_v51 = vadd.f32 %v9201_v6, %v18080_v53  ;;  %v9206_v4 = vmul.f32 %v13207_v21, %v20922_v54  ;;  %v13209_v40 = vld [vmem:[#allocation3 + $0x112] sm:$0xff]  ;;  %v20929_v30 = vld [vmem:[#allocation17_spill] sm:$0xff] }
 0x9da   : > { %v9203_v38 = vmul.f32 %v13205_v61, %v20920_v34  ;;  %20923 = vst [vmem:[#allocation94_spill] sm:$0xff] %v18329_v13  ;;  %v13208_v39 = vld [vmem:[#allocation3 + $0x10a] sm:$0xff]  ;;  %v18337_v17 = vadd.f32 %v9204_v59, %v18092_v15  ;;  %v18340_v34 = vadd.f32 %v9200_v11, %v18073_v25  ;;  %v10086_v54 = vmul.f32 %v20901_v22, %v20929_v30  ;;  %v20930_v21 = vld [vmem:[#allocation21_spill] sm:$0xff]  ;;  %v18355_v11 = vpop.permute.xlu1 %10541 }
 0x9db   : > { %9701 = vrot.lane.b32.xlu1 %v9564_v20, %s13287_s16  ;;  %20924 = vst [vmem:[#allocation95_spill] sm:$0xff] %v18332_v51  ;;  %v9208_v58 = vmul.f32 %v13208_v39, %v20925_v23  ;;  %v9209_v20 = vmul.f32 %v13209_v40, %v20925_v23  ;;  %v13210_v44 = vld [vmem:[#allocation3 + $0x12a] sm:$0xff]  ;;  %20933 = vst [vmem:[#allocation97_spill] sm:$0xff] %v18355_v11  ;;  %v20934_v23 = vld [vmem:[#allocation76_spill] sm:$0xff] }
 0x9dc   : > { %20926 = vst [vmem:[#allocation96_spill] sm:$0xff] %v18340_v34  ;;  %v20927_v5 = vld [vmem:[#allocation258_spill] sm:$0xff]  ;;  %v20928_v53 = vld [vmem:[#allocation67_spill] sm:$0xff]  ;;  %v18353_v25 = vadd.f32 %v9203_v38, %v18088_v36  ;;  %v18358_v40 = vadd.f32 %v9202_v7, %v20934_v23  ;;  %v20937_v51 = vld [vmem:[#allocation260_spill] sm:$0xff] }
 0x9dd   : > { %v9211_v61 = vmul.f32 %v13210_v44, %v20927_v5  ;;  %v10082_v6 = vmul.f32 %v20886_v48, %v20928_v53  ;;  %v9210_v39 = vmul.f32 %v20927_v5, %v20930_v21  ;;  %v20931_v15 = vld [vmem:[#allocation22_spill] sm:$0xff]  ;;  %v20932_v59 = vld [vmem:[#allocation259_spill] sm:$0xff]  ;;  %v18360_v44 = vpop.permute.xlu0 %9651  ;;  %v20935_v48 = vld [vmem:[#allocation33_spill] sm:$0xff]  ;;  %v9255_v5 = vadd.f32 %v9207_v35, %v18112_v0  ;;  %10216 = vrot.lane.b32.xlu0 %v10086_v54, %s13288_s17 }
 0x9de   : > { %v9213_v47 = vmul.f32 %v20932_v59, %v20931_v15  ;;  %v9212_v34 = vmul.f32 %v20932_v59, %v20935_v48  ;;  %v20936_v22 = vld [vmem:[#allocation34_spill] sm:$0xff]  ;;  %v9214_v36 = vmul.f32 %v20937_v51, %v20884_v41  ;;  %v20938_v7 = vld [vmem:[#allocation261_spill] sm:$0xff]  ;;  %v20939_v15 = vld [vmem:[#allocation79_spill] sm:$0xff]  ;;  %v18384_v54 = vadd.f32 %v9209_v20, %v18121_v24  ;;  %v18396_v48 = vpop.permute.xlu1 %9663 }
 0x9df   : > { %v9215_v13 = vmul.f32 %v20937_v51, %v20936_v22  ;;  %10208 = vrot.lane.b32.xlu1 %v10082_v6, %s13288_s17  ;;  %v9216_v38 = vmul.f32 %v20938_v7, %v20928_v53  ;;  %v9217_v21 = vmul.f32 %v20938_v7, %v20885_v26  ;;  %v18376_v59 = vadd.f32 %v9206_v4, %v20939_v15  ;;  %v13020_v0 = vld [vmem:[%s20019_s4 + $0x17] ss:$0 sm:$0xff]  ;;  %v20940_v35 = vld [vmem:[#allocation69_spill] sm:$0xff]  ;;  %v20941_v6 = vld [vmem:[#allocation28_spill] sm:$0xff] }
 0x9e0   : > { %v10089_v23 = vmul.f32 %v20941_v6, %v20940_v35  ;;  %v18387_v41 = vadd.f32 %v9208_v58, %v18116_v55  ;;  %v18390_v51 = vadd.f32 %v9211_v61, %v18129_v33  ;;  %v20942_v26 = vld [vmem:[#allocation263_spill] sm:$0xff]  ;;  %v18401_v7 = vadd.f32 %v9210_v39, %v18125_v27  ;;  %v20943_v55 = vld [vmem:[#allocation73_spill] sm:$0xff]  ;;  %v20944_v58 = vld [vmem:[#allocation262_spill] sm:$0xff] }
 0x9e1   : > { %v9220_v4 = vmul.f32 %v20942_v26, %v20929_v30  ;;  %v9221_v53 = vmul.f32 %v20942_v26, %v20900_v19  ;;  %v18398_v22 = vpop.permute.xlu0 %9669  ;;  %v18404_v24 = vadd.f32 %v9213_v47, %v18139_v60  ;;  %v9219_v33 = vmul.f32 %v20944_v58, %v20943_v55  ;;  %10577 = vperm.xlu0 %13092, %v13020_v0   ;;  %v20945_v19 = vld [vmem:[#allocation82_spill] sm:$0xff]  ;;  %v20946_v60 = vld [vmem:[#allocation81_spill] sm:$0xff]  ;;  %v20949_v0 = vld [vmem:[#allocation83_spill] sm:$0xff] }
 0x9e2   : > { %v18410_v20 = vadd.f32 %v9212_v34, %v18135_v63  ;;  %v18413_v61 = vadd.f32 %v9215_v13, %v20945_v19  ;;  %v9218_v30 = vmul.f32 %v20944_v58, %v18260_v14  ;;  %v18417_v27 = vld [vmem:[#allocation3 + $0x1e2] sm:$0xff]  ;;  %v18422_v47 = vadd.f32 %v9214_v36, %v20946_v60  ;;  %v20951_v13 = vld [vmem:[#allocation284_spill] sm:$0xff] }
 0x9e3   : > { %10222 = vrot.lane.b32.xlu1 %v10089_v23, %s13288_s17  ;;  %v18419_v39 = vld [vmem:[#allocation3 + $0x202] sm:$0xff]  ;;  %v18425_v15 = vadd.f32 %v9217_v21, %v18162_v8  ;;  %v18428_v23 = vadd.f32 %v9216_v38, %v20949_v0  ;;  %v9563_v63 = vmul.f32 %v20919_v1, %v18417_v27  ;;  %v20953_v19 = vld [vmem:[#allocation292_spill] sm:$0xff]  ;;  %v10153_v38 = vpop.permute.xlu1 %10152  ;;  %v18443_v0 = vadd.f32 %v9221_v53, %v18178_v32 }
 0x9e4   : > { %20947 = vst [vmem:[#allocation98_spill] sm:$0xff] %v18422_v47  ;;  %v9566_v34 = vmul.f32 %v20951_v13, %v18419_v39  ;;  %v20952_v26 = vld [vmem:[#allocation289_spill] sm:$0xff]  ;;  %v9768_v11 = vadd.f32 %v20953_v19, %v18282_v12  ;;  %v20955_v60 = vld [vmem:[#allocation264_spill] sm:$0xff]  ;;  %v18446_v1 = vadd.f32 %v9220_v4, %v18174_v45  ;;  %v18460_v45 = vadd.f32 %v9218_v30, %v18166_v37  ;;  %v20965_v19 = vld [vmem:[#allocation78_spill] sm:$0xff] }
 0x9e5   : > { %20948 = vst [vmem:[#allocation99_spill] sm:$0xff] %v18425_v15  ;;  %20950 = vst [vmem:[#allocation100_spill] sm:$0xff] %v18428_v23  ;;  %v9765_v58 = vadd.f32 %v20952_v26, %v18265_v29  ;;  %v20954_v36 = vld [vmem:[#allocation77_spill] sm:$0xff]  ;;  %v9223_v8 = vmul.f32 %v20955_v60, %v20940_v35  ;;  %v10159_v21 = vpop.permute.xlu0 %10158  ;;  %v18451_v29 = vadd.f32 %v9219_v33, %v18170_v9 }
 0x9e6   : > { %v9222_v47 = vmul.f32 %v20955_v60, %v20954_v36  ;;  %20956 = vst [vmem:[#allocation101_spill] sm:$0xff] %v18443_v0  ;;  %20957 = vst [vmem:[#allocation102_spill] sm:$0xff] %v18446_v1  ;;  %v10297_v15 = vadd.f32 %v10159_v21, %v9768_v11  ;;  %9705 = vrot.lane.b32.xlu0 %v9566_v34, %s13287_s16  ;;  %v20959_v12 = vld [vmem:[#allocation265_spill] sm:$0xff]  ;;  %v10088_v26 = vmul.f32 %v20941_v6, %v20954_v36  ;;  %v20962_v11 = vld [vmem:[#allocation18_spill] sm:$0xff] }
 0x9e7   : > { %v10294_v23 = vadd.f32 %v10153_v38, %v9765_v58  ;;  %9699 = vrot.lane.b32.xlu1 %v9563_v63, %s13287_s16  ;;  %20958 = vst [vmem:[#allocation103_spill] sm:$0xff] %v18451_v29  ;;  %v9224_v35 = vmul.f32 %v20959_v12, %v18262_v10  ;;  %v20960_v32 = vld [vmem:[#allocation29_spill] sm:$0xff]  ;;  %20961 = vst [vmem:[#allocation104_spill] sm:$0xff] %v18460_v45  ;;  %v9781_v4 = vadd.f32 %v20962_v11, %v18337_v17  ;;  %v20963_v63 = vld [vmem:[#allocation19_spill] sm:$0xff]  ;;  %v10185_v38 = vpop.permute.xlu1 %10184 }
 0x9e8   : > { %v10085_v53 = vmul.f32 %v20960_v32, %v20943_v55  ;;  %v9784_v34 = vadd.f32 %v20963_v63, %v9255_v5  ;;  %v20964_v33 = vld [vmem:[#allocation53_spill] sm:$0xff]  ;;  %v9225_v60 = vmul.f32 %v20959_v12, %v20965_v19  ;;  %v20966_v6 = vld [vmem:[#allocation266_spill] sm:$0xff]  ;;  %v18472_v37 = vadd.f32 %v9223_v8, %v18188_v57  ;;  %v20970_v11 = vld [vmem:[#allocation267_spill] sm:$0xff] }
 0x9e9   : > { %v10582_v9 = vadd.f32 %v20879_v50, %v10294_v23  ;;  %v10585_v58 = vadd.f32 %v20964_v33, %v10297_v15  ;;  %v9226_v36 = vmul.f32 %v20966_v6, %v18417_v27  ;;  %v10191_v55 = vpop.permute.xlu0 %10190  ;;  %v20968_v30 = vld [vmem:[#allocation85_spill] sm:$0xff]  ;;  %v10310_v23 = vadd.f32 %v10185_v38, %v9781_v4  ;;  %v20971_v8 = vld [vmem:[#allocation32_spill] sm:$0xff]  ;;  %v18503_v45 = vld [vmem:[#allocation3 + $0x22a] sm:$0xff] }
 0x9ea   : > { %20967 = vst [vmem:[#allocation105_spill] sm:$0xff] %v18472_v37  ;;  %v18475_v21 = vadd.f32 %v9222_v47, %v20968_v30  ;;  %v18477_v17 = vld [vmem:[#allocation3 + $0x1fa] sm:$0xff]  ;;  %v10313_v15 = vadd.f32 %v10191_v55, %v9784_v34  ;;  %10220 = vrot.lane.b32.xlu0 %v10088_v26, %s13288_s17  ;;  %v9227_v12 = vmul.f32 %v20966_v6, %v18297_v18  ;;  %v18493_v34 = vld [vmem:[#allocation3 + $0x232] sm:$0xff]  ;;  %v20979_v37 = vld [vmem:[#allocation86_spill] sm:$0xff] }
 0x9eb   : > { %v10630_v5 = vmax.f32 %v10582_v9, 0.0  ;;  %v10633_v50 = vmax.f32 %v10585_v58, 0.0  ;;  %10214 = vrot.lane.b32.xlu1 %v10085_v53, %s13288_s17  ;;  %v9229_v57 = vmul.f32 %v20970_v11, %v18419_v39  ;;  %v9565_v47 = vmul.f32 %v20951_v13, %v18477_v17  ;;  %v18489_v9 = vld [vmem:[#allocation3 + $0x212] sm:$0xff]  ;;  %v18491_v4 = vld [vmem:[#allocation3 + $0x21a] sm:$0xff] }
 0x9ec   : > { %20969 = vst [vmem:[#allocation270_spill] sm:$0xff] %v18475_v21  ;;  %v10091_v63 = vmul.f32 %v20971_v8, %v20965_v19  ;;  %v10598_v58 = vadd.f32 %v20894_v28, %v10310_v23  ;;  %v20972_v6 = vld [vmem:[#allocation56_spill] sm:$0xff]  ;;  %v9228_v55 = vmul.f32 %v20970_v11, %v18477_v17  ;;  %v20974_v21 = vld [vmem:[#allocation269_spill] sm:$0xff]  ;;  %v20977_v11 = vld [vmem:[#allocation87_spill] sm:$0xff] }
 0x9ed   : > { %v10678_v53 = vmin.f32 %v10630_v5, 6.0  ;;  %v10681_v26 = vmin.f32 %v10633_v50, 6.0  ;;  %v10601_v38 = vadd.f32 %v20972_v6, %v10313_v15  ;;  %v20973_v13 = vld [vmem:[#allocation268_spill] sm:$0xff]  ;;  %v9233_v29 = vmul.f32 %v20974_v21, %v18493_v34  ;;  %v18507_v5 = vpop.permute.xlu1 %10513  ;;  %v18509_v50 = vpop.permute.xlu0 %10545  ;;  %v21011_v1 = vld [vmem:[#allocation293_spill] sm:$0xff] }
 0x9ee   : > { %v9230_v30 = vmul.f32 %v20973_v13, %v18489_v9  ;;  %v9231_v19 = vmul.f32 %v20973_v13, %v18491_v4  ;;  %20975 = vst [vmem:[#allocation271_spill] sm:$0xff] %v18507_v5  ;;  %20976 = vst [vmem:[#allocation106_spill] sm:$0xff] %v18509_v50  ;;  %v9232_v28 = vmul.f32 %v20974_v21, %v18503_v45  ;;  %v10646_v23 = vmax.f32 %v10598_v58, 0.0  ;;  %v18526_v21 = vld [vmem:[#allocation4 + $0x19] sm:$0x1] }
 0x9ef   : > { %10727 = vst.msk [vmem:[#allocation4 + $0x10] sm:$0xff] %vm10724_vm5, %v10678_v53  ;;  %10730 = vst.msk [vmem:[#allocation4 + $0x28] sm:$0xff] %vm10724_vm5, %v10681_v26  ;;  %v10649_v15 = vmax.f32 %v10601_v38, 0.0  ;;  %10226 = vrot.lane.b32.xlu1 %v10091_v63, %s13288_s17  ;;  %9703 = vrot.lane.b32.xlu0 %v9565_v47, %s13287_s16  ;;  %v18518_v13 = vadd.f32 %v9225_v60, %v20977_v11  ;;  %v18521_v5 = vadd.f32 %v9224_v35, %v20979_v37  ;;  %v20983_v26 = vld [vmem:[#allocation89_spill] sm:$0xff]  ;;  %v18534_v63 = vld [vmem:[#allocation4 + $0x1a] sm:$0x1] }
 0x9f0   : > { %v18524_v50 = vadd.f32 %v9227_v12, %v18210_v43  ;;  %v18529_v53 = vadd.f32 %v9226_v36, %v18206_v62  ;;  %v18532_v58 = vadd.f32 %v9229_v57, %v20983_v26  ;;  %v20985_v47 = vld [vmem:[#allocation285_spill] sm:$0xff]  ;;  %v10084_v35 = vmul.f32 %v20960_v32, %v18260_v14  ;;  %v18540_v43 = vld [vmem:[#allocation4 + $0x1b] sm:$0x1]  ;;  %v18542_v12 = vld [vmem:[#allocation4 + $0x1c] sm:$0x1] }
 0x9f1   : > { %20978 = vst [vmem:[#allocation107_spill] sm:$0xff] %v18518_v13  ;;  %20980 = vst [vmem:[#allocation108_spill] sm:$0xff] %v18521_v5  ;;  %v9568_v60 = vmul.f32 %v20985_v47, %v18491_v4  ;;  %v10694_v37 = vmin.f32 %v10646_v23, 6.0  ;;  %v10697_v38 = vmin.f32 %v10649_v15, 6.0  ;;  %v18544_v11 = vpop.permute.xlu1 %10553  ;;  %v18546_v62 = vpop.permute.xlu0 %9641  ;;  %v20987_v36 = vld [vmem:[#allocation88_spill] sm:$0xff]  ;;  %v18552_v26 = vadd.f32 %v9231_v19, %v18235_v46 }
 0x9f2   : > { %20981 = vst [vmem:[#allocation109_spill] sm:$0xff] %v18524_v50  ;;  %20982 = vst [vmem:[#allocation110_spill] sm:$0xff] %v18529_v53  ;;  %v18549_v57 = vadd.f32 %v9228_v55, %v20987_v36  ;;  %v20992_v14 = vld [vmem:[#allocation92_spill] sm:$0xff]  ;;  %v9567_v15 = vmul.f32 %v20985_v47, %v18489_v9  ;;  %v20995_v50 = vld [vmem:[#allocation286_spill] sm:$0xff]  ;;  %v18619_v0 = vadd.f32 %v21011_v1, %v18290_v31 }
 0x9f3   : > { %20984 = vst [vmem:[#allocation111_spill] sm:$0xff] %v18532_v58  ;;  %20986 = vst [vmem:[#allocation112_spill] sm:$0xff] %v18544_v11  ;;  %v20990_v58 = vld [vmem:[#allocation90_spill] sm:$0xff]  ;;  %v18558_v32 = vadd.f32 %v9233_v29, %v20992_v14  ;;  %v18560_v23 = vld [vmem:[#allocation4 + $0x1d] sm:$0x1]  ;;  %v18566_v5 = vmul.f32 %v20995_v50, %v18503_v45  ;;  %9709 = vrot.lane.b32.xlu1 %v9568_v60, %s13287_s16  ;;  %10212 = vrot.lane.b32.xlu0 %v10084_v35, %s13288_s17 }
 0x9f4   : > { %20988 = vst [vmem:[#allocation113_spill] sm:$0xff] %v18549_v57  ;;  %20989 = vst [vmem:[#allocation114_spill] sm:$0xff] %v18552_v26  ;;  %v18555_v53 = vadd.f32 %v9230_v30, %v20990_v58  ;;  %v18572_v46 = vld [vmem:[#allocation4 + $0x99] sm:$0x1]  ;;  %v18574_v29 = vld [vmem:[#allocation4 + $0x9a] sm:$0x1]  ;;  %v9570_v35 = vmul.f32 %v20995_v50, %v18493_v34 }
 0x9f5   : > { %20993 = vst [vmem:[#allocation116_spill] sm:$0xff] %v18558_v32  ;;  %20994 = vst [vmem:[#allocation117_spill] sm:$0xff] %v18560_v23  ;;  %v20997_v55 = vld [vmem:[#allocation91_spill] sm:$0xff]  ;;  %v18579_v19 = vld [vmem:[#allocation4 + $0x1e] sm:$0x1] }
 0x9f6   : > { %20991 = vst [vmem:[#allocation115_spill] sm:$0xff] %v18555_v53  ;;  %10743 = vst.msk [vmem:[#allocation4 + $0x90] sm:$0xff] %vm10724_vm5, %v10694_v37  ;;  %v18577_v30 = vadd.f32 %v9232_v28, %v20997_v55  ;;  %v18585_v60 = vld [vmem:[#allocation4 + $0x1f] sm:$0x1]  ;;  %v21002_v14 = vld [vmem:[#allocation287_spill] sm:$0xff]  ;;  %v10090_v28 = vmul.f32 %v20971_v8, %v18262_v10  ;;  %v18605_v53 = vpop.permute.xlu0 %9673 }
 0x9f7   : > { %10746 = vst.msk [vmem:[#allocation4 + $0xa8] sm:$0xff] %vm10724_vm5, %v10697_v38  ;;  %20996 = vst [vmem:[#allocation118_spill] sm:$0xff] %v18574_v29  ;;  %v21001_v36 = vld [vmem:[#allocation276_spill] sm:$0xff]  ;;  %v21003_v55 = vld [vmem:[#allocation35_spill] sm:$0xff] }
 0x9f8   : > { %20998 = vst [vmem:[#allocation298_spill] sm:$0xff] %v18577_v30  ;;  %20999 = vst [vmem:[#allocation273_spill] sm:$0xff] %v18579_v19  ;;  %v18591_v32 = vadd.f32 %v21002_v14, %v21001_v36  ;;  %v10093_v58 = vmul.f32 %v21003_v55, %v18297_v18  ;;  %v18597_v47 = vld [vmem:[#allocation4 + $0x9b] sm:$0x1]  ;;  %v18599_v37 = vld [vmem:[#allocation4 + $0x9c] sm:$0x1]  ;;  %v18603_v30 = vpop.permute.xlu1 %9667  ;;  %10224 = vrot.lane.b32.xlu1 %v10090_v28, %s13288_s17 }
 0x9f9   : > { %21000 = vst [vmem:[#allocation302_spill] sm:$0xff] %v18585_v60  ;;  %21004 = vst [vmem:[#allocation119_spill] sm:$0xff] %v18597_v47  ;;  %v18601_v38 = vld [vmem:[#allocation4 + $0x18] sm:$0x1]  ;;  %v18610_v10 = vld [vmem:[#allocation4 + $0x9d] sm:$0x1] }
 0x9fa   : > { %21005 = vst [vmem:[#allocation120_spill] sm:$0xff] %v18599_v37  ;;  %21006 = vst [vmem:[#allocation126_spill] sm:$0xff] %v18601_v38  ;;  %v21008_v8 = vld [vmem:[#allocation277_spill] sm:$0xff]  ;;  %v21009_v26 = vld [vmem:[#allocation288_spill] sm:$0xff]  ;;  %10230 = vrot.lane.b32.xlu0 %v10093_v58, %s13288_s17  ;;  %v10092_v58 = vmul.f32 %v21003_v55, %v18417_v27  ;;  %v10157_v38 = vpop.permute.xlu0 %10156 }
 0x9fb   : > { %21007 = vst [vmem:[#allocation121_spill] sm:$0xff] %v18610_v10  ;;  %v9764_v57 = vadd.f32 %v21009_v26, %v21008_v8  ;;  %v21010_v11 = vld [vmem:[#allocation291_spill] sm:$0xff]  ;;  %v18623_v36 = vld [vmem:[#allocation4 + $0x29] sm:$0x1]  ;;  %v18625_v14 = vld [vmem:[#allocation4 + $0x9e] sm:$0x1] }
 0x9fc   : > { %v9767_v13 = vadd.f32 %v21010_v11, %v18279_v42  ;;  %21012 = vst [vmem:[#allocation127_spill] sm:$0xff] %v18625_v14  ;;  %v18627_v50 = vld [vmem:[#allocation4 + $0x9f] sm:$0x1]  ;;  %v18629_v18 = vld [vmem:[#allocation4 + $0x11] sm:$0x1]  ;;  %v21015_v1 = vld [vmem:[#allocation294_spill] sm:$0xff]  ;;  %v10151_v31 = vpop.permute.xlu1 %10150  ;;  %9707 = vrot.lane.b32.xlu1 %v9567_v15, %s13287_s16 }
 0x9fd   : > { %21013 = vst [vmem:[#allocation122_spill] sm:$0xff] %v18627_v50  ;;  %21014 = vst [vmem:[#allocation123_spill] sm:$0xff] %v18629_v18  ;;  %v9770_v28 = vadd.f32 %v21015_v1, %v18300_v56  ;;  %v21016_v8 = vld [vmem:[#allocation36_spill] sm:$0xff]  ;;  %v18645_v26 = vld [vmem:[#allocation4 + $0x2a] sm:$0x1]  ;;  %v10293_v60 = vadd.f32 %v10151_v31, %v9764_v57 }
 0x9fe   : > { %v18641_v19 = vmul.f32 %v21016_v8, %v18477_v17  ;;  %v10095_v23 = vmul.f32 %v21016_v8, %v18419_v39  ;;  %v18647_v42 = vld [vmem:[#allocation4 + $0x12] sm:$0x1]  ;;  %v18649_v11 = vld [vmem:[#allocation4 + $0x2b] sm:$0x1]  ;;  %v18652_v1 = vld [vmem:[#allocation4 + $0x13] sm:$0x1]  ;;  %v10296_v37 = vadd.f32 %v10157_v38, %v9767_v13  ;;  %9713 = vrot.lane.b32.xlu0 %v9570_v35, %s13287_s16 }
 0x9ff   : > { %21017 = vst [vmem:[#allocation128_spill] sm:$0xff] %v18647_v42  ;;  %21018 = vst [vmem:[#allocation129_spill] sm:$0xff] %v18652_v1  ;;  %v21019_v39 = vld [vmem:[#allocation75_spill] sm:$0xff]  ;;  %v18661_v47 = vld [vmem:[#allocation4 + $0xa9] sm:$0x1] }
 0xa00   : > { %v9780_v8 = vadd.f32 %v21019_v39, %v18353_v25  ;;  %v18663_v56 = vld [vmem:[#allocation4 + $0x91] sm:$0x1]  ;;  %v18665_v29 = vld [vmem:[#allocation4 + $0xaa] sm:$0x1]  ;;  %v18671_v57 = vld [vmem:[#allocation4 + $0x2c] sm:$0x1]  ;;  %v10584_v50 = vadd.f32 %v20964_v33, %v10296_v37  ;;  %v10163_v55 = vpop.permute.xlu1 %10162  ;;  %v10183_v25 = vpop.permute.xlu0 %10182  ;;  %10228 = vrot.lane.b32.xlu1 %v10092_v58, %s13288_s17 }
 0xa01   : > { %21020 = vst [vmem:[#allocation299_spill] sm:$0xff] %v18663_v56  ;;  %v21021_v13 = vld [vmem:[#allocation80_spill] sm:$0xff]  ;;  %v21023_v31 = vld [vmem:[#allocation59_spill] sm:$0xff]  ;;  %v18681_v27 = vld [vmem:[#allocation4 + $0xab] sm:$0x1] }
 0xa02   : > { %v9783_v15 = vadd.f32 %v21021_v13, %v18376_v59  ;;  %v21022_v38 = vld [vmem:[#allocation84_spill] sm:$0xff]  ;;  %v10581_v39 = vadd.f32 %v21023_v31, %v10293_v60  ;;  %v18679_v14 = vld [vmem:[#allocation4 + $0x92] sm:$0x1]  ;;  %v18683_v17 = vld [vmem:[#allocation4 + $0x93] sm:$0x1]  ;;  %v10632_v60 = vmax.f32 %v10584_v50, 0.0  ;;  %v10309_v33 = vadd.f32 %v10183_v25, %v9780_v8  ;;  %10234 = vrot.lane.b32.xlu0 %v10095_v23, %s13288_s17 }
 0xa03   : > { %v9786_v35 = vadd.f32 %v21022_v38, %v18384_v54  ;;  %21024 = vst [vmem:[#allocation301_spill] sm:$0xff] %v18679_v14  ;;  %21025 = vst [vmem:[#allocation300_spill] sm:$0xff] %v18683_v17  ;;  %v10299_v38 = vadd.f32 %v10163_v55, %v9770_v28  ;;  %v18691_v37 = vld [vmem:[#allocation4 + $0xac] sm:$0x1]  ;;  %v18693_v10 = vld [vmem:[#allocation4 + $0x14] sm:$0x1] }
 0xa04   : > { %v10629_v13 = vmax.f32 %v10581_v39, 0.0  ;;  %21026 = vst [vmem:[#allocation303_spill] sm:$0xff] %v18693_v10  ;;  %v10680_v28 = vmin.f32 %v10632_v60, 6.0  ;;  %v21027_v55 = vld [vmem:[#allocation61_spill] sm:$0xff]  ;;  %v21028_v58 = vld [vmem:[#allocation62_spill] sm:$0xff]  ;;  %v21029_v56 = vld [vmem:[#allocation295_spill] sm:$0xff]  ;;  %v10189_v59 = vpop.permute.xlu1 %10188  ;;  %v10195_v39 = vpop.permute.xlu0 %10194  ;;  %9711 = vrot.lane.b32.xlu1 %v18566_v5, %s13287_s16 }
 0xa05   : > { %v10587_v8 = vadd.f32 %v21027_v55, %v10299_v38  ;;  %v10597_v25 = vadd.f32 %v21028_v58, %v10309_v33  ;;  %v18701_v23 = vld [vmem:[#allocation4 + $0x94] sm:$0x1]  ;;  %v18703_v54 = vld [vmem:[#allocation4 + $0x2d] sm:$0x1]  ;;  %v18707_v1 = vadd.f32 %v21029_v56, %v18303_v52  ;;  %v21031_v42 = vld [vmem:[#allocation296_spill] sm:$0xff]  ;;  %v10315_v17 = vadd.f32 %v10195_v39, %v9786_v35  ;;  %s13289_s16 = smov 16  }
 0xa06   : > { %v10677_v50 = vmin.f32 %v10629_v13, 6.0  ;;  %v18711_v18 = vadd.f32 %v21031_v42, %v18308_v49  ;;  %v18715_v38 = vld [vmem:[#allocation4 + $0xad] sm:$0x1]  ;;  %v18717_v33 = vld [vmem:[#allocation4 + $0x15] sm:$0x1]  ;;  %10729 = vst.msk [vmem:[#allocation4 + $0x20] sm:$0xff] %vm10724_vm5, %v10680_v28  ;;  %10232 = vrot.lane.b32.xlu0 %v18641_v19, %s13288_s17 }
 0xa07   : > { %21030 = vst [vmem:[#allocation30_spill] sm:$0xff] %v18707_v1  ;;  %v10635_v52 = vmax.f32 %v10587_v8, 0.0  ;;  %v10645_v56 = vmax.f32 %v10597_v25, 0.0  ;;  %v10312_v1 = vadd.f32 %v10189_v59, %v9783_v15  ;;  %v18725_v49 = vld [vmem:[#allocation4 + $0x95] sm:$0x1]  ;;  %v21032_v60 = vld [vmem:[#allocation37_spill] sm:$0xff] }
 0xa08   : > { %10726 = vst.msk [vmem:[#allocation4 + $0x8] sm:$0xff] %vm10724_vm5, %v10677_v50  ;;  %v18727_v42 = vld [vmem:[#allocation4 + $0x2e] sm:$0x1]  ;;  %v10096_v50 = vmul.f32 %v21032_v60, %v18489_v9  ;;  %v10097_v28 = vmul.f32 %v21032_v60, %v18491_v4  ;;  %v18737_v5 = vld [vmem:[#allocation4 + $0x16] sm:$0x1]  ;;  %v21033_v25 = vld [vmem:[#allocation65_spill] sm:$0xff]  ;;  %v18745_v10 = vpop.permute.xlu1 %10557  ;;  %v9646_v4 = vpop.permute.xlu0 %9645 }
 0xa09   : > { %v18735_v59 = vld [vmem:[#allocation4 + $0xae] sm:$0x1]  ;;  %v10683_v19 = vmin.f32 %v10635_v52, 6.0  ;;  %v10693_v39 = vmin.f32 %v10645_v56, 6.0  ;;  %v10600_v8 = vadd.f32 %v20972_v6, %v10312_v1  ;;  %v10603_v13 = vadd.f32 %v21033_v25, %v10315_v17  ;;  %v18741_v14 = vld [vmem:[#allocation4 + $0x96] sm:$0x1] }
 0xa0a   : > { %v18743_v9 = vld [vmem:[#allocation4 + $0x2f] sm:$0x1]  ;;  %21034 = vst [vmem:[#allocation124_spill] sm:$0xff] %v18745_v10  ;;  %10238 = vrot.lane.b32.xlu1 %v10097_v28, %s13288_s17  ;;  %10236 = vrot.lane.b32.xlu0 %v10096_v50, %s13288_s17  ;;  %v21035_v15 = vld [vmem:[#allocation297_spill] sm:$0xff]  ;;  %v21036_v52 = vld [vmem:[#allocation44_spill] sm:$0xff]  ;;  %v18773_v56 = vadd.f32 %v18360_v44, %v18358_v40  ;;  %v18793_v40 = vadd.f32 %v18603_v30, %v18401_v7 }
 0xa0b   : > { %10732 = vst.msk [vmem:[#allocation4 + $0x38] sm:$0xff] %vm10724_vm5, %v10683_v19  ;;  %10742 = vst.msk [vmem:[#allocation4 + $0x88] sm:$0xff] %vm10724_vm5, %v10693_v39  ;;  %v10648_v6 = vmax.f32 %v10600_v8, 0.0  ;;  %v10651_v1 = vmax.f32 %v10603_v13, 0.0  ;;  %v18759_v35 = vadd.f32 %v21035_v15, %v18311_v16  ;;  %v10098_v19 = vmul.f32 %v21036_v52, %v18503_v45  ;;  %v18765_v8 = vld [vmem:[#allocation4 + $0xaf] sm:$0x1] }
 0xa0c   : > { %21037 = vst [vmem:[#allocation125_spill] sm:$0xff] %v18765_v8  ;;  %v18767_v28 = vld [vmem:[#allocation4 + $0x17] sm:$0x1]  ;;  %v10099_v50 = vmul.f32 %v21036_v52, %v18493_v34  ;;  %v18777_v45 = vld [vmem:[#allocation4 + $0x28] sm:$0x1]  ;;  %v18781_v13 = vadd.f32 %v18396_v48, %v18387_v41  ;;  %v18785_v39 = vadd.f32 %v18398_v22, %v18390_v51  ;;  %v18789_v34 = vadd.f32 %v18546_v62, %v18320_v2  ;;  %v9672_v44 = vpop.permute.xlu1 %9671  ;;  %v9678_v52 = vpop.permute.xlu0 %9677 }
 0xa0d   : > { %21038 = vst [vmem:[#allocation130_spill] sm:$0xff] %v18767_v28  ;;  %v10696_v16 = vmin.f32 %v10648_v6, 6.0  ;;  %v10699_v15 = vmin.f32 %v10651_v1, 6.0  ;;  %v18775_v17 = vld [vmem:[#allocation4 + $0x97] sm:$0x1]  ;;  %21040 = vst [vmem:[#allocation132_spill] sm:$0xff] %v18777_v45  ;;  %v18799_v41 = vadd.f32 %v18605_v53, %v18404_v24  ;;  %v18813_v53 = vadd.f32 %v9646_v4, %v18323_v3 }
 0xa0e   : > { %21039 = vst [vmem:[#allocation131_spill] sm:$0xff] %v18775_v17  ;;  %v18795_v1 = vld [vmem:[#allocation4 + $0x21] sm:$0x1]  ;;  %10242 = vrot.lane.b32.xlu1 %v10099_v50, %s13288_s17  ;;  %10240 = vrot.lane.b32.xlu0 %v10098_v19, %s13288_s17  ;;  %v21041_v2 = vrot.slane %v18526_v21, 7  ;;  %v18808_v48 = vld [vmem:[#allocation4 + $0x22] sm:$0x1] }
 0xa0f   : > { %v11693_v6 = vld [vmem:[#allocation4 + $0x9] sm:$0x1]  ;;  %v11795_v60 = vld [vmem:[#allocation4 + $0xa] sm:$0x1]  ;;  %10745 = vst.msk [vmem:[#allocation4 + $0xa0] sm:$0xff] %vm10724_vm5, %v10696_v16  ;;  %10748 = vst.msk [vmem:[#allocation4 + $0xb8] sm:$0xff] %vm10724_vm5, %v10699_v15  ;;  %v18821_v16 = vadd.f32 %v9672_v44, %v18410_v20 }
 0xa10   : > { %v11742_v51 = vsel %vm10822_vm6, %v21041_v2, %v11693_v6  ;;  %v11897_v22 = vld [vmem:[#allocation4 + $0xb] sm:$0x1]  ;;  %v21042_v62 = vrot.slane %v18534_v63, 7  ;;  %v11999_v50 = vld [vmem:[#allocation4 + $0xc] sm:$0x1]  ;;  %v21043_v2 = vrot.slane %v18540_v43, 7  ;;  %v10161_v19 = vpop.permute.xlu0 %10160 }
 0xa11   : > { %v18828_v4 = vld [vmem:[#allocation4 + $0x23] sm:$0x1]  ;;  %v12101_v63 = vld [vmem:[#allocation4 + $0xd] sm:$0x1]  ;;  %v21044_v20 = vrot.slane %v18623_v36, 6  ;;  %v21045_v6 = vrot.slane %v18645_v26, 6 }
 0xa12   : > { %v11844_v30 = vsel %vm10822_vm6, %v21042_v62, %v11795_v60  ;;  %v11946_v3 = vsel %vm10822_vm6, %v21043_v2, %v11897_v22  ;;  %v18831_v60 = vadd.f32 %v9678_v52, %v18413_v61  ;;  %v10149_v62 = vpop.permute.xlu1 %10148  ;;  %v11696_v21 = vld [vmem:[#allocation4 + $0x39] sm:$0x1]  ;;  %v11701_v24 = vld [vmem:[#allocation4 + $0x89] sm:$0x1]  ;;  %v11798_v7 = vld [vmem:[#allocation4 + $0x3a] sm:$0x1]  ;;  %v10298_v52 = vadd.f32 %v10161_v19, %v18619_v0 }
 0xa13   : > { %v11744_v44 = vsel %vm10825_vm7, %v21044_v20, %v11742_v51  ;;  %v11846_v43 = vsel %vm10825_vm7, %v21045_v6, %v11844_v30  ;;  %v21046_v22 = vrot.slane %v18542_v12, 7  ;;  %v10292_v61 = vadd.f32 %v10149_v62, %v18591_v32  ;;  %v11803_v51 = vld [vmem:[#allocation4 + $0x8a] sm:$0x1]  ;;  %v11900_v20 = vld [vmem:[#allocation4 + $0x3b] sm:$0x1]  ;;  %v21091_v10 = vld [vmem:[#allocation303_spill] sm:$0xff] }
 0xa14   : > { %v11745_v15 = vrot.slane %v11696_v21, 5  ;;  %v21047_v45 = vrot.slane %v18572_v46, 7  ;;  %v11847_v17 = vrot.slane %v11798_v7, 5  ;;  %v21048_v28 = vld [vmem:[#allocation118_spill] sm:$0xff]  ;;  %v21050_v12 = vrot.slane %v18649_v11, 6  ;;  %s13290_s17 = smov 32  }
 0xa15   : > { %v12048_v2 = vsel %vm10822_vm6, %v21046_v22, %v11999_v50  ;;  %v21049_v26 = vrot.slane %v21048_v28, 7  ;;  %v10580_v0 = vadd.f32 %v21023_v31, %v10292_v61  ;;  %v10586_v19 = vadd.f32 %v21027_v55, %v10298_v52  ;;  %v11905_v21 = vld [vmem:[#allocation4 + $0x8b] sm:$0x1]  ;;  %v12007_v61 = vld [vmem:[#allocation4 + $0x8c] sm:$0x1] }
 0xa16   : > { %v11756_v36 = vsel %vm10822_vm6, %v21047_v45, %v11701_v24  ;;  %v11948_v50 = vsel %vm10825_vm7, %v21050_v12, %v11946_v3  ;;  %v11949_v46 = vrot.slane %v11900_v20, 5  ;;  %v21051_v45 = vrot.slane %v18671_v57, 6  ;;  %v10167_v28 = vpop.permute.xlu1 %10166  ;;  %v10181_v24 = vpop.permute.xlu0 %10180  ;;  %v11704_v11 = vld [vmem:[#allocation4 + $0xb9] sm:$0x1]  ;;  %v11806_v31 = vld [vmem:[#allocation4 + $0xba] sm:$0x1] }
 0xa17   : > { %v11858_v30 = vsel %vm10822_vm6, %v21049_v26, %v11803_v51  ;;  %v18862_v6 = vsel %vm10828_vm8, %v11745_v15, %v11744_v44  ;;  %v21052_v3 = vrot.slane %v18661_v47, 6  ;;  %v21053_v55 = vrot.slane %v18665_v29, 6  ;;  %v21054_v57 = vld [vmem:[#allocation117_spill] sm:$0xff]  ;;  %v21056_v12 = vld [vmem:[#allocation119_spill] sm:$0xff] }
 0xa18   : > { %v18859_v7 = vsel %vm10825_vm7, %v21051_v45, %v12048_v2  ;;  %v21055_v52 = vrot.slane %v21054_v57, 7  ;;  %v10628_v51 = vmax.f32 %v10580_v0, 0.0  ;;  %v10634_v20 = vmax.f32 %v10586_v19, 0.0  ;;  %v18877_v47 = vld [vmem:[#allocation4 + $0xa1] sm:$0x1]  ;;  %v21058_v0 = vld [vmem:[#allocation16_spill] sm:$0xff] }
 0xa19   : > { %v11758_v62 = vsel %vm10825_vm7, %v21052_v3, %v11756_v36  ;;  %v11860_v22 = vsel %vm10825_vm7, %v21053_v55, %v11858_v30  ;;  %v10301_v15 = vadd.f32 %v10167_v28, %v18711_v18  ;;  %v10308_v44 = vadd.f32 %v10181_v24, %v18773_v56  ;;  %v11908_v36 = vld [vmem:[#allocation4 + $0xbb] sm:$0x1]  ;;  %v18887_v28 = vld [vmem:[#allocation4 + $0xa2] sm:$0x1] }
 0xa1a   : > { %v18873_v2 = vsel %vm10822_vm6, %v21055_v52, %v12101_v63  ;;  %v11759_v26 = vrot.slane %v11704_v11, 5  ;;  %v18880_v29 = vsel %vm10828_vm8, %v11847_v17, %v11846_v43  ;;  %v11861_v30 = vrot.slane %v11806_v31, 5  ;;  %v10193_v56 = vpop.permute.xlu1 %10192  ;;  %v10199_v24 = vpop.permute.xlu0 %10198  ;;  %v12002_v31 = vld [vmem:[#allocation4 + $0x3c] sm:$0x1]  ;;  %v12211_v11 = vld [vmem:[#allocation4 + $0x8e] sm:$0x1] }
 0xa1b   : > { %v21057_v45 = vrot.slane %v21056_v12, 7  ;;  %v10676_v63 = vmin.f32 %v10628_v51, 6.0  ;;  %v10682_v55 = vmin.f32 %v10634_v20, 6.0  ;;  %v10589_v19 = vadd.f32 %v21058_v0, %v10301_v15  ;;  %v21059_v57 = vld [vmem:[#allocation120_spill] sm:$0xff] }
 0xa1c   : > { %v10596_v18 = vadd.f32 %v21028_v58, %v10308_v44  ;;  %v18891_v17 = vsel %vm10828_vm8, %v11949_v46, %v11948_v50  ;;  %v11963_v43 = vrot.slane %v11908_v36, 5  ;;  %v21060_v52 = vrot.slane %v21059_v57, 7  ;;  %v18900_v44 = vld [vmem:[#allocation4 + $0xa3] sm:$0x1]  ;;  %v12010_v50 = vld [vmem:[#allocation4 + $0xbc] sm:$0x1] }
 0xa1d   : > { %v11960_v3 = vsel %vm10822_vm6, %v21057_v45, %v11905_v21  ;;  %10725 = vst.msk [vmem:[#allocation4] sm:$0xff] %vm10724_vm5, %v10676_v63  ;;  %10731 = vst.msk [vmem:[#allocation4 + $0x30] sm:$0xff] %vm10724_vm5, %v10682_v55  ;;  %v10637_v58 = vmax.f32 %v10589_v19, 0.0  ;;  %v10314_v20 = vadd.f32 %v10193_v56, %v18781_v13  ;;  %v10317_v15 = vadd.f32 %v10199_v24, %v18785_v39  ;;  %v18902_v46 = vld [vmem:[#allocation4 + $0x24] sm:$0x1]  ;;  %v21062_v56 = vld [vmem:[#allocation68_spill] sm:$0xff] }
 0xa1e   : > { %v12062_v21 = vsel %vm10822_vm6, %v21060_v52, %v12007_v61  ;;  %v10644_v51 = vmax.f32 %v10596_v18, 0.0  ;;  %v18905_v36 = vsel %vm10828_vm8, %v11759_v26, %v11758_v62  ;;  %v18908_v61 = vsel %vm10828_vm8, %v11861_v30, %v11860_v22  ;;  %v12104_v13 = vld [vmem:[#allocation4 + $0x3d] sm:$0x1]  ;;  %v12109_v55 = vld [vmem:[#allocation4 + $0x8d] sm:$0x1]  ;;  %v18918_v26 = vpop.permute.xlu1 %10549  ;;  %v18920_v22 = vpop.permute.xlu0 %10561 }
 0xa1f   : > { %v21061_v45 = vrot.slane %v18681_v27, 6  ;;  %v10685_v39 = vmin.f32 %v10637_v58, 6.0  ;;  %v10602_v18 = vadd.f32 %v21033_v25, %v10314_v20  ;;  %v10605_v24 = vadd.f32 %v21062_v56, %v10317_v15  ;;  %v18916_v57 = vld [vmem:[#allocation4 + $0xa4] sm:$0x1]  ;;  %v12112_v62 = vld [vmem:[#allocation4 + $0xbd] sm:$0x1] }
 0xa20   : > { %v10692_v19 = vmin.f32 %v10644_v51, 6.0  ;;  %21063 = vst [vmem:[#allocation133_spill] sm:$0xff] %v18918_v26  ;;  %21064 = vst [vmem:[#allocation134_spill] sm:$0xff] %v18920_v22  ;;  %v12065_v52 = vrot.slane %v12010_v50, 5  ;;  %v18926_v58 = vld [vmem:[#allocation4 + $0x25] sm:$0x1] }
 0xa21   : > { %v11962_v63 = vsel %vm10825_vm7, %v21061_v45, %v11960_v3  ;;  %v12051_v3 = vrot.slane %v12002_v31, 5  ;;  %10734 = vst.msk [vmem:[#allocation4 + $0x48] sm:$0xff] %vm10724_vm5, %v10685_v39  ;;  %v10650_v25 = vmax.f32 %v10602_v18, 0.0  ;;  %v10653_v51 = vmax.f32 %v10605_v24, 0.0  ;;  %v21066_v50 = vld [vmem:[#allocation121_spill] sm:$0xff] }
 0xa22   : > { %v18923_v30 = vsel %vm10828_vm8, %v11963_v43, %v11962_v63  ;;  %10741 = vst.msk [vmem:[#allocation4 + $0x80] sm:$0xff] %vm10724_vm5, %v10692_v19  ;;  %v21065_v20 = vrot.slane %v18691_v37, 6  ;;  %v12153_v45 = vrot.slane %v12104_v13, 5  ;;  %v12203_v43 = vld [vmem:[#allocation4 + $0xe] sm:$0x1]  ;;  %v21067_v27 = vrot.slane %v21066_v50, 7  ;;  %v9650_v63 = vpop.permute.xlu0 %9649 }
 0xa23   : > { %v12167_v39 = vrot.slane %v12112_v62, 5  ;;  %v10698_v19 = vmin.f32 %v10650_v25, 6.0  ;;  %v10701_v18 = vmin.f32 %v10653_v51, 6.0  ;;  %v21068_v24 = vrot.slane %v18703_v54, 6  ;;  %v12305_v13 = vld [vmem:[#allocation4 + $0xf] sm:$0x1] }
 0xa24   : > { %v12064_v15 = vsel %vm10825_vm7, %v21065_v20, %v12062_v21  ;;  %v12164_v12 = vsel %vm10822_vm6, %v21067_v27, %v12109_v55  ;;  %v9644_v20 = vpop.permute.xlu1 %9643  ;;  %v10876_v32 = vld [vmem:[#allocation4 + $0x1] sm:$0x1]  ;;  %v10879_v31 = vld [vmem:[#allocation4 + $0x31] sm:$0x1]  ;;  %v10979_v22 = vld [vmem:[#allocation4 + $0x2] sm:$0x1]  ;;  %v18945_v55 = vsel %vm10828_vm8, %v12051_v3, %v18859_v7 }
 0xa25   : > { %v12152_v37 = vsel %vm10825_vm7, %v21068_v24, %v18873_v2  ;;  %v18948_v62 = vsel %vm10828_vm8, %v12065_v52, %v12064_v15  ;;  %v21069_v54 = vrot.slane %v18715_v38, 6  ;;  %10747 = vst.msk [vmem:[#allocation4 + $0xb0] sm:$0xff] %vm10724_vm5, %v10698_v19  ;;  %10750 = vst.msk [vmem:[#allocation4 + $0xc8] sm:$0xff] %vm10724_vm5, %v10701_v18  ;;  %v21070_v25 = vld [vmem:[#allocation123_spill] sm:$0xff]  ;;  %v10928_v7 = vrot.slane %v10879_v31, 5  ;;  %v21072_v15 = vld [vmem:[#allocation273_spill] sm:$0xff] }
 0xa26   : > { %v18951_v27 = vsel %vm10828_vm8, %v12153_v45, %v12152_v37  ;;  %v21071_v51 = vrot.slane %v21070_v25, 7  ;;  %v10982_v3 = vld [vmem:[#allocation4 + $0x32] sm:$0x1]  ;;  %v11082_v24 = vld [vmem:[#allocation4 + $0x3] sm:$0x1]  ;;  %v21073_v45 = vrot.slane %v21072_v15, 7 }
 0xa27   : > { %v12166_v2 = vsel %vm10825_vm7, %v21069_v54, %v12164_v12  ;;  %v21074_v12 = vrot.slane %v18795_v1, 6  ;;  %v21075_v37 = vld [vmem:[#allocation128_spill] sm:$0xff]  ;;  %v11031_v25 = vrot.slane %v10982_v3, 5  ;;  %v21077_v31 = vld [vmem:[#allocation129_spill] sm:$0xff]  ;;  %v21080_v1 = vld [vmem:[#allocation127_spill] sm:$0xff]  ;;  %v21092_v8 = vrot.slane %v21091_v10, 7 }
 0xa28   : > { %v10925_v50 = vsel %vm10822_vm6, %v21071_v51, %v10876_v32  ;;  %v18962_v52 = vsel %vm10828_vm8, %v12167_v39, %v12166_v2  ;;  %v12252_v38 = vsel %vm10822_vm6, %v21073_v45, %v12203_v43  ;;  %v21076_v18 = vrot.slane %v21075_v37, 7  ;;  %v11085_v32 = vld [vmem:[#allocation4 + $0x33] sm:$0x1]  ;;  %v11185_v39 = vld [vmem:[#allocation4 + $0x4] sm:$0x1]  ;;  %v21084_v37 = vld [vmem:[#allocation94_spill] sm:$0xff] }
 0xa29   : > { %v10927_v19 = vsel %vm10825_vm7, %v21074_v12, %v10925_v50  ;;  %v21078_v51 = vrot.slane %v21077_v31, 7  ;;  %v21079_v2 = vrot.slane %v18808_v48, 6  ;;  %v11134_v43 = vrot.slane %v11085_v32, 5  ;;  %v11288_v45 = vld [vmem:[#allocation4 + $0x5] sm:$0x1]  ;;  %v21082_v12 = vld [vmem:[#allocation302_spill] sm:$0xff]  ;;  %v9676_v48 = vpop.permute.xlu1 %9675 }
 0xa2a   : > { %v11028_v54 = vsel %vm10822_vm6, %v21076_v18, %v10979_v22  ;;  %v21081_v26 = vrot.slane %v21080_v1, 7  ;;  %v21083_v22 = vrot.slane %v21082_v12, 7  ;;  %v18990_v18 = vadd.f32 %v9644_v20, %v21084_v37  ;;  %v11697_v32 = vld [vmem:[#allocation4 + $0x49] sm:$0x1]  ;;  %v21089_v12 = vld [vmem:[#allocation299_spill] sm:$0xff]  ;;  %v21099_v10 = vld [vmem:[#allocation300_spill] sm:$0xff] }
 0xa2b   : > { %v11131_v21 = vsel %vm10822_vm6, %v21078_v51, %v11082_v24  ;;  %v11030_v15 = vsel %vm10825_vm7, %v21079_v2, %v11028_v54  ;;  %v21086_v24 = vld [vmem:[#allocation95_spill] sm:$0xff]  ;;  %v9682_v54 = vpop.permute.xlu0 %9681  ;;  %v18996_v51 = vsel %vm10828_vm8, %v10928_v7, %v10927_v19  ;;  %v10884_v2 = vld [vmem:[#allocation4 + $0x81] sm:$0x1]  ;;  %v10987_v37 = vld [vmem:[#allocation4 + $0x82] sm:$0x1]  ;;  %v11234_v7 = vsel %vm10822_vm6, %v21092_v8, %v11185_v39 }
 0xa2c   : > { %v18982_v50 = vsel %vm10822_vm6, %v21081_v26, %v12211_v11  ;;  %v18987_v3 = vsel %vm10822_vm6, %v21083_v22, %v12305_v13  ;;  %21085 = vst [vmem:[#allocation135_spill] sm:$0xff] %v18990_v18  ;;  %v18993_v31 = vadd.f32 %v9650_v63, %v21086_v24  ;;  %v11799_v11 = vld [vmem:[#allocation4 + $0x4a] sm:$0x1]  ;;  %v21088_v26 = vrot.slane %v18828_v4, 6  ;;  %v11901_v24 = vld [vmem:[#allocation4 + $0x4b] sm:$0x1] }
 0xa2d   : > { %v11747_v13 = vrot.slane %v11697_v32, 4  ;;  %v21090_v22 = vrot.slane %v21089_v12, 7  ;;  %v19005_v63 = vsel %vm10828_vm8, %v11031_v25, %v11030_v15  ;;  %v11849_v19 = vrot.slane %v11799_v11, 4  ;;  %v11090_v32 = vld [vmem:[#allocation4 + $0x83] sm:$0x1]  ;;  %v21096_v25 = vld [vmem:[#allocation98_spill] sm:$0xff] }
 0xa2e   : > { %21087 = vst [vmem:[#allocation136_spill] sm:$0xff] %v18993_v31  ;;  %v11133_v1 = vsel %vm10825_vm7, %v21088_v26, %v11131_v21  ;;  %v21093_v31 = vld [vmem:[#allocation301_spill] sm:$0xff]  ;;  %v11951_v21 = vrot.slane %v11901_v24, 4  ;;  %v21095_v26 = vrot.slane %v18717_v33, 7  ;;  %v19019_v15 = vadd.f32 %v9676_v48, %v21096_v25  ;;  %v21097_v12 = vld [vmem:[#allocation99_spill] sm:$0xff]  ;;  %v9690_v33 = vpop.permute.xlu1 %9689 }
 0xa2f   : > { %v10939_v20 = vsel %vm10822_vm6, %v21090_v22, %v10884_v2  ;;  %v21094_v18 = vrot.slane %v21093_v31, 7  ;;  %v19022_v22 = vadd.f32 %v9682_v54, %v21097_v12  ;;  %v21100_v8 = vrot.slane %v21099_v10, 7  ;;  %v12003_v31 = vld [vmem:[#allocation4 + $0x4c] sm:$0x1]  ;;  %v11705_v48 = vld [vmem:[#allocation4 + $0xc9] sm:$0x1] }
 0xa30   : > { %v19016_v2 = vsel %vm10822_vm6, %v21095_v26, %v11288_v45  ;;  %v19034_v45 = vsel %vm10831_vm9, %v11747_v13, %v18862_v6  ;;  %v10887_v24 = vld [vmem:[#allocation4 + $0xb1] sm:$0x1]  ;;  %v21102_v54 = vrot.slane %v18877_v47, 6  ;;  %v11807_v25 = vld [vmem:[#allocation4 + $0xca] sm:$0x1]  ;;  %v19048_v6 = vsel %vm10831_vm9, %v11849_v19, %v18880_v29 }
 0xa31   : > { %v11042_v4 = vsel %vm10822_vm6, %v21094_v18, %v10987_v37  ;;  %21098 = vst [vmem:[#allocation274_spill] sm:$0xff] %v19022_v22  ;;  %v11145_v39 = vsel %vm10822_vm6, %v21100_v8, %v11090_v32  ;;  %v21101_v18 = vrot.slane %v18727_v42, 6  ;;  %v10165_v37 = vpop.permute.xlu0 %10164  ;;  %v21103_v32 = vrot.slane %v18887_v28, 6  ;;  %v21104_v12 = vld [vmem:[#allocation30_spill] sm:$0xff]  ;;  %v10990_v13 = vld [vmem:[#allocation4 + $0xb2] sm:$0x1] }
 0xa32   : > { %v10941_v26 = vsel %vm10825_vm7, %v21102_v54, %v10939_v20  ;;  %v10300_v10 = vadd.f32 %v10165_v37, %v21104_v12  ;;  %v11761_v8 = vrot.slane %v11705_v48, 4  ;;  %v11909_v47 = vld [vmem:[#allocation4 + $0xcb] sm:$0x1]  ;;  %v11863_v22 = vrot.slane %v11807_v25, 4  ;;  %v11188_v37 = vld [vmem:[#allocation4 + $0x34] sm:$0x1] }
 0xa33   : > { %v19030_v11 = vsel %vm10825_vm7, %v21101_v18, %v12252_v38  ;;  %v11044_v42 = vsel %vm10825_vm7, %v21103_v32, %v11042_v4  ;;  %v19043_v38 = vsel %vm10828_vm8, %v11134_v43, %v11133_v1  ;;  %v10942_v18 = vrot.slane %v10887_v24, 5  ;;  %v11093_v4 = vld [vmem:[#allocation4 + $0xb3] sm:$0x1]  ;;  %v21106_v48 = vld [vmem:[#allocation101_spill] sm:$0xff]  ;;  %v12011_v54 = vld [vmem:[#allocation4 + $0xcc] sm:$0x1] }
 0xa34   : > { %v11045_v20 = vrot.slane %v10990_v13, 5  ;;  %v19052_v28 = vsel %vm10831_vm9, %v11951_v21, %v18891_v17  ;;  %v21105_v43 = vrot.slane %v18900_v44, 6  ;;  %v19058_v24 = vadd.f32 %v9690_v33, %v21106_v48  ;;  %v11193_v12 = vld [vmem:[#allocation4 + $0x84] sm:$0x1]  ;;  %v10171_v17 = vpop.permute.xlu1 %10170  ;;  %v21109_v48 = vld [vmem:[#allocation71_spill] sm:$0xff] }
 0xa35   : > { %v10588_v29 = vadd.f32 %v21058_v0, %v10300_v10  ;;  %v11965_v19 = vrot.slane %v11909_v47, 4  ;;  %v21107_v25 = vrot.slane %v18902_v46, 6  ;;  %v10197_v21 = vpop.permute.xlu0 %10196  ;;  %v19066_v44 = vsel %vm10831_vm9, %v11761_v8, %v18905_v36 }
 0xa36   : > { %v11147_v1 = vsel %vm10825_vm7, %v21105_v43, %v11145_v39  ;;  %v19069_v39 = vsel %vm10828_vm8, %v10942_v18, %v10941_v26  ;;  %v11148_v33 = vrot.slane %v11093_v4, 5  ;;  %v12053_v13 = vrot.slane %v12003_v31, 4  ;;  %v12105_v31 = vld [vmem:[#allocation4 + $0x4d] sm:$0x1] }
 0xa37   : > { %v11236_v32 = vsel %vm10825_vm7, %v21107_v25, %v11234_v7  ;;  %v10636_v43 = vmax.f32 %v10588_v29, 0.0  ;;  %v10303_v0 = vadd.f32 %v10171_v17, %v18789_v34  ;;  %v10316_v10 = vadd.f32 %v10197_v21, %v18793_v40  ;;  %v11196_v7 = vld [vmem:[#allocation4 + $0xb4] sm:$0x1]  ;;  %v11291_v29 = vld [vmem:[#allocation4 + $0x35] sm:$0x1] }
 0xa38   : > { %v19075_v46 = vsel %vm10831_vm9, %v11863_v22, %v18908_v61  ;;  %v19078_v47 = vsel %vm10828_vm8, %v11045_v20, %v11044_v42  ;;  %v12067_v36 = vrot.slane %v12011_v54, 4  ;;  %v11237_v8 = vrot.slane %v11188_v37, 5  ;;  %v12113_v22 = vld [vmem:[#allocation4 + $0xcd] sm:$0x1]  ;;  %v10203_v42 = vpop.permute.xlu1 %10202 }
 0xa39   : > { %v21108_v26 = vrot.slane %v18701_v23, 7  ;;  %v10684_v4 = vmin.f32 %v10636_v43, 6.0  ;;  %v10591_v34 = vadd.f32 %v21109_v48, %v10303_v0  ;;  %v10604_v40 = vadd.f32 %v21062_v56, %v10316_v10  ;;  %v19089_v20 = vpop.permute.xlu0 %10565  ;;  %v11298_v0 = vld [vmem:[#allocation4 + $0xa5] sm:$0x1]  ;;  %v12207_v10 = vld [vmem:[#allocation4 + $0x4e] sm:$0x1] }
 0xa3a   : > { %v19087_v61 = vsel %vm10831_vm9, %v11965_v19, %v18923_v30  ;;  %v19092_v37 = vsel %vm10828_vm8, %v11148_v33, %v11147_v1  ;;  %v19096_v23 = vsel %vm10831_vm9, %v12053_v13, %v18945_v55  ;;  %v21110_v54 = vrot.slane %v18916_v57, 6  ;;  %v12206_v30 = vld [vmem:[#allocation4 + $0x3e] sm:$0x1]  ;;  %v11299_v1 = vld [vmem:[#allocation4 + $0xb5] sm:$0x1] }
 0xa3b   : > { %v11248_v18 = vsel %vm10822_vm6, %v21108_v26, %v11193_v12  ;;  %v11251_v25 = vrot.slane %v11196_v7, 5  ;;  %v11296_v12 = vld [vmem:[#allocation4 + $0x85] sm:$0x1]  ;;  %10733 = vst.msk [vmem:[#allocation4 + $0x40] sm:$0xff] %vm10724_vm5, %v10684_v4  ;;  %v10639_v19 = vmax.f32 %v10591_v34, 0.0  ;;  %v10652_v17 = vmax.f32 %v10604_v40, 0.0 }
 0xa3c   : > { %v11250_v56 = vsel %vm10825_vm7, %v21110_v54, %v11248_v18  ;;  %v10319_v21 = vadd.f32 %v10203_v42, %v18799_v41  ;;  %v12155_v43 = vrot.slane %v12105_v31, 4  ;;  %v19105_v33 = vsel %vm10831_vm9, %v12067_v36, %v18948_v62  ;;  %v21111_v18 = vld [vmem:[#allocation20_spill] sm:$0xff]  ;;  %v9648_v40 = vpop.permute.xlu1 %9647  ;;  %v12215_v42 = vld [vmem:[#allocation4 + $0xce] sm:$0x1] }
 0xa3d   : > { %v19108_v55 = vsel %vm10828_vm8, %v11237_v8, %v11236_v32  ;;  %v12169_v57 = vrot.slane %v12113_v22, 4  ;;  %v11340_v13 = vrot.slane %v11291_v29, 5  ;;  %v10687_v7 = vmin.f32 %v10639_v19, 6.0  ;;  %v12214_v34 = vld [vmem:[#allocation4 + $0xbe] sm:$0x1]  ;;  %v9680_v62 = vpop.permute.xlu0 %9679 }
 0xa3e   : > { %v10700_v26 = vmin.f32 %v10652_v17, 6.0  ;;  %v10607_v4 = vadd.f32 %v21111_v18, %v10319_v21  ;;  %v21112_v41 = vrot.slane %v18926_v58, 6  ;;  %v19116_v36 = vsel %vm10828_vm8, %v11251_v25, %v11250_v56  ;;  %v21114_v25 = vld [vmem:[#allocation96_spill] sm:$0xff]  ;;  %v11391_v17 = vld [vmem:[#allocation4 + $0x6] sm:$0x1] }
 0xa3f   : > { %v21113_v32 = vrot.slane %v18725_v49, 7  ;;  %v11354_v22 = vrot.slane %v11299_v1, 5  ;;  %v12255_v29 = vrot.slane %v12206_v30, 5  ;;  %10736 = vst.msk [vmem:[#allocation4 + $0x58] sm:$0xff] %vm10724_vm5, %v10687_v7  ;;  %v11352_v54 = vrot.slane %v11298_v0, 6 }
 0xa40   : > { %v11339_v31 = vsel %vm10825_vm7, %v21112_v41, %v19016_v2  ;;  %10749 = vst.msk [vmem:[#allocation4 + $0xc0] sm:$0xff] %vm10724_vm5, %v10700_v26  ;;  %v10655_v58 = vmax.f32 %v10607_v4, 0.0  ;;  %v19125_v2 = vsel %vm10831_vm9, %v12155_v43, %v18951_v27  ;;  %v12257_v56 = vrot.slane %v12207_v10, 4  ;;  %v19135_v21 = vld [vmem:[#allocation4 + $0x26] sm:$0x1]  ;;  %v21115_v26 = vld [vmem:[#allocation100_spill] sm:$0xff] }
 0xa41   : > { %v11351_v8 = vsel %vm10822_vm6, %v21113_v32, %v11296_v12  ;;  %v19128_v19 = vadd.f32 %v9648_v40, %v21114_v25  ;;  %v19132_v49 = vsel %vm10831_vm9, %v12169_v57, %v18962_v52  ;;  %v11341_v12 = vsel %vm10828_vm8, %v11340_v13, %v11339_v31  ;;  %v19140_v0 = vld [vmem:[#allocation4 + $0x36] sm:$0x1]  ;;  %v11399_v10 = vld [vmem:[#allocation4 + $0x86] sm:$0x1]  ;;  %v9688_v52 = vpop.permute.xlu1 %9687  ;;  %v9694_v57 = vpop.permute.xlu0 %9693 }
 0xa42   : > { %v12269_v30 = vrot.slane %v12214_v34, 5  ;;  %v10703_v1 = vmin.f32 %v10655_v58, 6.0  ;;  %v11353_v7 = vsel %vm10825_vm7, %v11352_v54, %v11351_v8  ;;  %v12256_v27 = vsel %vm10828_vm8, %v12255_v29, %v19030_v11  ;;  %v10880_v13 = vld [vmem:[#allocation4 + $0x41] sm:$0x1]  ;;  %v10983_v41 = vld [vmem:[#allocation4 + $0x42] sm:$0x1] }
 0xa43   : > { %v12271_v43 = vrot.slane %v12215_v42, 4  ;;  %v19143_v4 = vadd.f32 %v9680_v62, %v21115_v26  ;;  %v11086_v31 = vld [vmem:[#allocation4 + $0x43] sm:$0x1]  ;;  %v19146_v34 = vsel %vm10828_vm8, %v11354_v22, %v11353_v7  ;;  %v19149_v40 = vsel %vm10831_vm9, %v12257_v56, %v12256_v27  ;;  %v11189_v29 = vld [vmem:[#allocation4 + $0x44] sm:$0x1] }
 0xa44   : > { %v21116_v11 = vrot.slane %v18735_v59, 6  ;;  %10752 = vst.msk [vmem:[#allocation4 + $0xd8] sm:$0xff] %vm10724_vm5, %v10703_v1  ;;  %v10930_v62 = vrot.slane %v10880_v13, 4  ;;  %v11033_v8 = vrot.slane %v10983_v41, 4  ;;  %v11292_v42 = vld [vmem:[#allocation4 + $0x45] sm:$0x1] }
 0xa45   : > { %v21117_v54 = vrot.slane %v18737_v5, 7  ;;  %v11136_v25 = vrot.slane %v11086_v31, 4  ;;  %v11239_v56 = vrot.slane %v11189_v29, 4  ;;  %v11342_v7 = vrot.slane %v11292_v42, 4  ;;  %v21121_v41 = vld [vmem:[#allocation105_spill] sm:$0xff] }
 0xa46   : > { %v12268_v32 = vsel %vm10825_vm7, %v21116_v11, %v18982_v50  ;;  %v21118_v27 = vrot.slane %v18741_v14, 7  ;;  %v21119_v50 = vld [vmem:[#allocation102_spill] sm:$0xff]  ;;  %v11441_v26 = vrot.slane %v19135_v21, 6  ;;  %v11443_v13 = vrot.slane %v19140_v0, 5  ;;  %v10169_v14 = vpop.permute.xlu1 %10168  ;;  %v11698_v11 = vld [vmem:[#allocation4 + $0x59] sm:$0x1] }
 0xa47   : > { %v12270_v58 = vsel %vm10828_vm8, %v12269_v30, %v12268_v32  ;;  %v11440_v22 = vsel %vm10822_vm6, %v21117_v54, %v11391_v17  ;;  %v19166_v1 = vadd.f32 %v9688_v52, %v21119_v50  ;;  %v21120_v5 = vrot.slane %v18743_v9, 6  ;;  %v12313_v17 = vld [vmem:[#allocation4 + $0x8f] sm:$0x1]  ;;  %v10888_v21 = vld [vmem:[#allocation4 + $0xc1] sm:$0x1] }
 0xa48   : > { %v19163_v59 = vsel %vm10822_vm6, %v21118_v27, %v11399_v10  ;;  %v19177_v31 = vadd.f32 %v9694_v57, %v21121_v41  ;;  %v10175_v10 = vpop.permute.xlu0 %10174  ;;  %v19181_v52 = vsel %vm10831_vm9, %v10930_v62, %v18996_v51  ;;  %v11800_v32 = vld [vmem:[#allocation4 + $0x5a] sm:$0x1]  ;;  %v19185_v0 = vsel %vm10831_vm9, %v11033_v8, %v19005_v63  ;;  %v10991_v54 = vld [vmem:[#allocation4 + $0xc2] sm:$0x1]  ;;  %v11902_v27 = vld [vmem:[#allocation4 + $0x5b] sm:$0x1] }
 0xa49   : > { %v19174_v30 = vsel %vm10825_vm7, %v21120_v5, %v18987_v3  ;;  %v19188_v9 = vsel %vm10831_vm9, %v12271_v43, %v12270_v58  ;;  %v10302_v3 = vadd.f32 %v10169_v14, %v18759_v35  ;;  %v10305_v57 = vadd.f32 %v10175_v10, %v18813_v53  ;;  %v21122_v62 = vld [vmem:[#allocation93_spill] sm:$0xff] }
 0xa4a   : > { %v11749_v29 = vrot.slane %v11698_v11, 3  ;;  %v10944_v42 = vrot.slane %v10888_v21, 4  ;;  %v11851_v50 = vrot.slane %v11800_v32, 3  ;;  %v19194_v51 = vsel %vm10831_vm9, %v11136_v25, %v19043_v38  ;;  %v11094_v5 = vld [vmem:[#allocation4 + $0xc3] sm:$0x1]  ;;  %v10201_v41 = vpop.permute.xlu1 %10200 }
 0xa4b   : > { %v19198_v63 = vsel %vm10831_vm9, %v11239_v56, %v19108_v55  ;;  %v19201_v43 = vsel %vm10831_vm9, %v11342_v7, %v11341_v12  ;;  %v10590_v35 = vadd.f32 %v21109_v48, %v10302_v3  ;;  %v10593_v53 = vadd.f32 %v21122_v62, %v10305_v57  ;;  %v11706_v25 = vld [vmem:[#allocation4 + $0xd9] sm:$0x1]  ;;  %v11808_v12 = vld [vmem:[#allocation4 + $0xda] sm:$0x1]  ;;  %v11910_v56 = vld [vmem:[#allocation4 + $0xdb] sm:$0x1] }
 0xa4c   : > { %v11047_v8 = vrot.slane %v10991_v54, 4  ;;  %v11953_v58 = vrot.slane %v11902_v27, 3  ;;  %v10207_v14 = vpop.permute.xlu0 %10206  ;;  %v19207_v38 = vsel %vm10834_vm10, %v11749_v29, %v19034_v45  ;;  %v19211_v55 = vsel %vm10831_vm9, %v10944_v42, %v19069_v39  ;;  %v21123_v7 = vld [vmem:[#allocation122_spill] sm:$0xff]  ;;  %v12004_v57 = vld [vmem:[#allocation4 + $0x5c] sm:$0x1] }
 0xa4d   : > { %v11442_v48 = vsel %vm10825_vm7, %v11441_v26, %v11440_v22  ;;  %v21124_v10 = vrot.slane %v21123_v7, 7  ;;  %v10638_v21 = vmax.f32 %v10590_v35, 0.0  ;;  %v10641_v32 = vmax.f32 %v10593_v53, 0.0  ;;  %v11197_v29 = vld [vmem:[#allocation4 + $0xc4] sm:$0x1] }
 0xa4e   : > { %v10318_v3 = vadd.f32 %v10201_v41, %v18821_v16  ;;  %v10321_v45 = vadd.f32 %v10207_v14, %v18831_v60  ;;  %v11763_v54 = vrot.slane %v11706_v25, 3  ;;  %v19223_v39 = vsel %vm10834_vm10, %v11851_v50, %v19048_v6  ;;  %v12106_v26 = vld [vmem:[#allocation4 + $0x5d] sm:$0x1]  ;;  %v21125_v35 = vld [vmem:[#allocation97_spill] sm:$0xff]  ;;  %v19227_v41 = vpop.permute.xlu1 %10569 }
 0xa4f   : > { %v19217_v11 = vsel %vm10822_vm6, %v21124_v10, %v12313_v17  ;;  %v11865_v42 = vrot.slane %v11808_v12, 3  ;;  %v11967_v22 = vrot.slane %v11910_v56, 3  ;;  %v10686_v27 = vmin.f32 %v10638_v21, 6.0  ;;  %v12012_v10 = vld [vmem:[#allocation4 + $0xdc] sm:$0x1]  ;;  %21126 = vst [vmem:[#allocation275_spill] sm:$0xff] %v19227_v41 }
 0xa50   : > { %v10689_v7 = vmin.f32 %v10641_v32, 6.0  ;;  %v10606_v17 = vadd.f32 %v21111_v18, %v10318_v3  ;;  %v10609_v53 = vadd.f32 %v21125_v35, %v10321_v45  ;;  %v12114_v16 = vld [vmem:[#allocation4 + $0xdd] sm:$0x1]  ;;  %v9686_v60 = vpop.permute.xlu0 %9685  ;;  %v19231_v14 = vsel %vm10831_vm9, %v11047_v8, %v19078_v47  ;;  %v11300_v8 = vld [vmem:[#allocation4 + $0xc5] sm:$0x1] }
 0xa51   : > { %v19235_v6 = vsel %vm10834_vm10, %v11953_v58, %v19052_v28  ;;  %v11150_v50 = vrot.slane %v11094_v5, 4  ;;  %v19238_v25 = vsel %vm10828_vm8, %v11443_v13, %v11442_v48  ;;  %10735 = vst.msk [vmem:[#allocation4 + $0x50] sm:$0xff] %vm10724_vm5, %v10686_v27  ;;  %v19244_v56 = vsel %vm10834_vm10, %v11763_v54, %v19066_v44  ;;  %v11401_v21 = vld [vmem:[#allocation4 + $0xa6] sm:$0x1]  ;;  %v12208_v13 = vld [vmem:[#allocation4 + $0x5e] sm:$0x1] }
 0xa52   : > { %10738 = vst.msk [vmem:[#allocation4 + $0x68] sm:$0xff] %vm10724_vm5, %v10689_v7  ;;  %v10654_v18 = vmax.f32 %v10606_v17, 0.0  ;;  %v10657_v12 = vmax.f32 %v10609_v53, 0.0  ;;  %v12055_v47 = vrot.slane %v12004_v57, 3  ;;  %v12069_v28 = vrot.slane %v12012_v10, 3  ;;  %v21127_v17 = vld [vmem:[#allocation103_spill] sm:$0xff] }
 0xa53   : > { %v11253_v58 = vrot.slane %v11197_v29, 4  ;;  %v12157_v5 = vrot.slane %v12106_v26, 3  ;;  %v12171_v32 = vrot.slane %v12114_v16, 3  ;;  %v11402_v48 = vld [vmem:[#allocation4 + $0xb6] sm:$0x1]  ;;  %v19250_v7 = vsel %vm10834_vm10, %v11865_v42, %v19075_v46  ;;  %v9692_v26 = vpop.permute.xlu1 %9691 }
 0xa54   : > { %v19246_v3 = vld [vmem:[#allocation4 + $0x3f] sm:$0x1]  ;;  %v10702_v45 = vmin.f32 %v10654_v18, 6.0  ;;  %v10705_v27 = vmin.f32 %v10657_v12, 6.0  ;;  %v19254_v44 = vsel %vm10834_vm10, %v11967_v22, %v19087_v61  ;;  %v12216_v57 = vld [vmem:[#allocation4 + $0xde] sm:$0x1]  ;;  %v19257_v29 = vadd.f32 %v9686_v60, %v21127_v17  ;;  %v9698_v53 = vpop.permute.xlu0 %9697 }
 0xa55   : > { %v11395_v54 = vld [vmem:[#allocation4 + $0x46] sm:$0x1]  ;;  %v19261_v10 = vsel %vm10831_vm9, %v11150_v50, %v19092_v37  ;;  %v19265_v16 = vsel %vm10834_vm10, %v12055_v47, %v19096_v23  ;;  %v11356_v46 = vrot.slane %v11300_v8, 4  ;;  %v19269_v61 = vld [vmem:[#allocation4 + $0x4f] sm:$0x1]  ;;  %v19275_v22 = vsel %vm10834_vm10, %v12069_v28, %v19105_v33 }
 0xa56   : > { %v19267_v42 = vld [vmem:[#allocation4 + $0xc6] sm:$0x1]  ;;  %21128 = vst [vmem:[#allocation137_spill] sm:$0xff] %v19269_v61  ;;  %10751 = vst.msk [vmem:[#allocation4 + $0xd0] sm:$0xff] %vm10724_vm5, %v10702_v45  ;;  %v19279_v37 = vsel %vm10831_vm9, %v11253_v58, %v19116_v36  ;;  %v19283_v23 = vsel %vm10834_vm10, %v12157_v5, %v19125_v2  ;;  %v12259_v60 = vrot.slane %v12208_v13, 3  ;;  %v19287_v50 = vsel %vm10834_vm10, %v12171_v32, %v19132_v49  ;;  %v21129_v58 = vld [vmem:[#allocation270_spill] sm:$0xff] }
 0xa57   : > { %10754 = vst.msk [vmem:[#allocation4 + $0xe8] sm:$0xff] %vm10724_vm5, %v10705_v27  ;;  %v12273_v18 = vrot.slane %v12216_v57, 3  ;;  %v11445_v12 = vrot.slane %v11395_v54, 4  ;;  %v11455_v47 = vrot.slane %v11401_v21, 6  ;;  %v11457_v8 = vrot.slane %v11402_v48, 5  ;;  %v21130_v2 = vld [vmem:[#allocation107_spill] sm:$0xff]  ;;  %v10173_v13 = vpop.permute.xlu1 %10172 }
 0xa58   : > { %v11459_v33 = vrot.slane %v19267_v42, 4  ;;  %v19293_v45 = vadd.f32 %v9692_v26, %v21129_v58  ;;  %v19296_v5 = vadd.f32 %v9698_v53, %v21130_v2  ;;  %v10179_v27 = vpop.permute.xlu0 %10178  ;;  %v10881_v32 = vld [vmem:[#allocation4 + $0x51] sm:$0x1]  ;;  %v19300_v21 = vsel %vm10831_vm9, %v11356_v46, %v19146_v34  ;;  %v21132_v26 = vld [vmem:[#allocation136_spill] sm:$0xff]  ;;  %v10984_v2 = vld [vmem:[#allocation4 + $0x52] sm:$0x1] }
 0xa59   : > { %v11699_v49 = vld [vmem:[#allocation4 + $0x69] sm:$0x1]  ;;  %v11801_v57 = vld [vmem:[#allocation4 + $0x6a] sm:$0x1]  ;;  %v19304_v48 = vsel %vm10834_vm10, %v12259_v60, %v19149_v40  ;;  %v21131_v54 = vld [vmem:[#allocation135_spill] sm:$0xff]  ;;  %v10307_v42 = vadd.f32 %v10179_v27, %v21132_v26  ;;  %v10932_v53 = vrot.slane %v10881_v32, 3  ;;  %v19310_v61 = vsel %vm10834_vm10, %v12273_v18, %v19188_v9 }
 0xa5a   : > { %v10304_v17 = vadd.f32 %v10173_v13, %v21131_v54  ;;  %v11751_v58 = vrot.slane %v11699_v49, 2  ;;  %v11903_v36 = vld [vmem:[#allocation4 + $0x6b] sm:$0x1]  ;;  %v11853_v28 = vrot.slane %v11801_v57, 2  ;;  %v11035_v41 = vrot.slane %v10984_v2, 3  ;;  %v21133_v46 = vld [vmem:[#allocation271_spill] sm:$0xff] }
 0xa5b   : > { %v19314_v34 = vsel %vm10831_vm9, %v11445_v12, %v19238_v25  ;;  %v10595_v60 = vadd.f32 %v21133_v46, %v10307_v42  ;;  %v11456_v13 = vsel %vm10825_vm7, %v11455_v47, %v19163_v59  ;;  %v21134_v27 = vld [vmem:[#allocation125_spill] sm:$0xff]  ;;  %v10205_v57 = vpop.permute.xlu1 %10204  ;;  %v11955_v54 = vrot.slane %v11903_v36, 2  ;;  %v21137_v26 = vld [vmem:[#allocation274_spill] sm:$0xff] }
 0xa5c   : > { %v10592_v40 = vadd.f32 %v21122_v62, %v10304_v17  ;;  %v21135_v49 = vrot.slane %v21134_v27, 6  ;;  %v10211_v9 = vpop.permute.xlu0 %10210  ;;  %v19328_v18 = vsel %vm10837_vm11, %v11751_v58, %v19207_v38  ;;  %v19332_v62 = vsel %vm10834_vm10, %v10932_v53, %v19181_v52 }
 0xa5d   : > { %v10889_v12 = vld [vmem:[#allocation4 + $0xd1] sm:$0x1]  ;;  %v11458_v59 = vsel %vm10828_vm8, %v11457_v8, %v11456_v13  ;;  %v10643_v17 = vmax.f32 %v10595_v60, 0.0  ;;  %v10323_v42 = vadd.f32 %v10211_v9, %v21137_v26  ;;  %v10992_v27 = vld [vmem:[#allocation4 + $0xd2] sm:$0x1]  ;;  %v19339_v58 = vsel %vm10837_vm11, %v11853_v28, %v19223_v39  ;;  %v21138_v60 = vld [vmem:[#allocation106_spill] sm:$0xff] }
 0xa5e   : > { %v19324_v32 = vsel %vm10825_vm7, %v21135_v49, %v19217_v11  ;;  %v11707_v25 = vld [vmem:[#allocation4 + $0xe9] sm:$0x1]  ;;  %v10640_v47 = vmax.f32 %v10592_v40, 0.0  ;;  %v10320_v11 = vadd.f32 %v10205_v57, %v19019_v15  ;;  %v11809_v2 = vld [vmem:[#allocation4 + $0xea] sm:$0x1]  ;;  %v10946_v38 = vrot.slane %v10889_v12, 3 }
 0xa5f   : > { %21136 = vst [vmem:[#allocation138_spill] sm:$0xff] %v19324_v32  ;;  %v11765_v49 = vrot.slane %v11707_v25, 2  ;;  %v19343_v52 = vsel %vm10834_vm10, %v11035_v41, %v19185_v0  ;;  %v11911_v36 = vld [vmem:[#allocation4 + $0xeb] sm:$0x1]  ;;  %v11087_v8 = vld [vmem:[#allocation4 + $0x53] sm:$0x1]  ;;  %v10611_v13 = vadd.f32 %v21138_v60, %v10323_v42  ;;  %v10219_v25 = vpop.permute.xlu1 %10218  ;;  %v19351_v0 = vsel %vm10837_vm11, %v11955_v54, %v19235_v6 }
 0xa60   : > { %v10688_v53 = vmin.f32 %v10640_v47, 6.0  ;;  %v10691_v40 = vmin.f32 %v10643_v17, 6.0  ;;  %v10608_v15 = vadd.f32 %v21125_v35, %v10320_v11  ;;  %v11095_v57 = vld [vmem:[#allocation4 + $0xd3] sm:$0x1]  ;;  %v12005_v9 = vld [vmem:[#allocation4 + $0x6c] sm:$0x1]  ;;  %v19347_v12 = vpop.permute.xlu0 %10573  ;;  %v19354_v47 = vsel %vm10831_vm9, %v11459_v33, %v11458_v59 }
 0xa61   : > { %21139 = vst [vmem:[#allocation278_spill] sm:$0xff] %v19347_v12  ;;  %v11867_v39 = vrot.slane %v11809_v2, 2  ;;  %v11049_v28 = vrot.slane %v10992_v27, 3  ;;  %v11190_v41 = vld [vmem:[#allocation4 + $0x54] sm:$0x1]  ;;  %21140 = vst [vmem:[#allocation139_spill] sm:$0xff] %v19354_v47  ;;  %v10327_v11 = vadd.f32 %v10219_v25, %v19058_v24  ;;  %v19361_v27 = vsel %vm10837_vm11, %v11765_v49, %v19244_v56 }
 0xa62   : > { %10737 = vst.msk [vmem:[#allocation4 + $0x60] sm:$0xff] %vm10724_vm5, %v10688_v53  ;;  %10740 = vst.msk [vmem:[#allocation4 + $0x78] sm:$0xff] %vm10724_vm5, %v10691_v40  ;;  %v10656_v35 = vmax.f32 %v10608_v15, 0.0  ;;  %v10659_v17 = vmax.f32 %v10611_v13, 0.0  ;;  %v11969_v26 = vrot.slane %v11911_v36, 2  ;;  %v11138_v6 = vrot.slane %v11087_v8, 3 }
 0xa63   : > { %v12013_v42 = vld [vmem:[#allocation4 + $0xec] sm:$0x1]  ;;  %v12107_v2 = vld [vmem:[#allocation4 + $0x6d] sm:$0x1]  ;;  %v11152_v54 = vrot.slane %v11095_v57, 3  ;;  %v12057_v12 = vrot.slane %v12005_v9, 2  ;;  %v19366_v40 = vsel %vm10834_vm10, %v10946_v38, %v19211_v55  ;;  %v9684_v15 = vpop.permute.xlu1 %9683  ;;  %v19370_v56 = vsel %vm10837_vm11, %v11867_v39, %v19250_v7 }
 0xa64   : > { %v11198_v33 = vld [vmem:[#allocation4 + $0xd4] sm:$0x1]  ;;  %v10704_v59 = vmin.f32 %v10656_v35, 6.0  ;;  %v10707_v32 = vmin.f32 %v10659_v17, 6.0  ;;  %v21141_v53 = vld [vmem:[#allocation112_spill] sm:$0xff]  ;;  %v9696_v13 = vpop.permute.xlu0 %9695  ;;  %v19374_v49 = vsel %vm10834_vm10, %v11049_v28, %v19231_v14  ;;  %v19378_v8 = vsel %vm10837_vm11, %v11969_v26, %v19254_v44 }
 0xa65   : > { %v10615_v47 = vadd.f32 %v21141_v53, %v10327_v11  ;;  %v12115_v24 = vld [vmem:[#allocation4 + $0xed] sm:$0x1]  ;;  %v11293_v36 = vld [vmem:[#allocation4 + $0x55] sm:$0x1]  ;;  %v12071_v57 = vrot.slane %v12013_v42, 2  ;;  %v19386_v7 = vsel %vm10834_vm10, %v11138_v6, %v19194_v51  ;;  %v19390_v14 = vsel %vm10834_vm10, %v11152_v54, %v19261_v10  ;;  %v21142_v26 = vld [vmem:[#allocation104_spill] sm:$0xff] }
 0xa66   : > { %v11301_v9 = vld [vmem:[#allocation4 + $0xd5] sm:$0x1]  ;;  %v19380_v55 = vld [vmem:[#allocation4 + $0x6e] sm:$0x1]  ;;  %10753 = vst.msk [vmem:[#allocation4 + $0xe0] sm:$0xff] %vm10724_vm5, %v10704_v59  ;;  %10756 = vst.msk [vmem:[#allocation4 + $0xf8] sm:$0xff] %vm10724_vm5, %v10707_v32  ;;  %v19394_v44 = vsel %vm10837_vm11, %v12057_v12, %v19265_v16  ;;  %v19398_v51 = vadd.f32 %v9684_v15, %v21142_v26 }
 0xa67   : > { %v10663_v38 = vmax.f32 %v10615_v47, 0.0  ;;  %v11241_v25 = vrot.slane %v11190_v41, 3  ;;  %v11255_v39 = vrot.slane %v11198_v33, 3  ;;  %v12159_v28 = vrot.slane %v12107_v2, 2  ;;  %v21143_v42 = vld [vmem:[#allocation108_spill] sm:$0xff]  ;;  %v9702_v10 = vpop.permute.xlu1 %9701 }
 0xa68   : > { %v12173_v35 = vrot.slane %v12115_v24, 2  ;;  %v11344_v11 = vrot.slane %v11293_v36, 3  ;;  %v11358_v32 = vrot.slane %v11301_v9, 3  ;;  %v12261_v47 = vrot.slane %v19380_v55, 2  ;;  %v10177_v41 = vpop.permute.xlu0 %10176 }
 0xa69   : > { %v10711_v17 = vmin.f32 %v10663_v38, 6.0  ;;  %v19401_v6 = vadd.f32 %v9696_v13, %v21143_v42  ;;  %v11700_v54 = vld [vmem:[#allocation4 + $0x79] sm:$0x1]  ;;  %v10882_v59 = vld [vmem:[#allocation4 + $0x61] sm:$0x1]  ;;  %v19405_v12 = vsel %vm10837_vm11, %v12071_v57, %v19275_v22  ;;  %v19409_v2 = vsel %vm10834_vm10, %v11241_v25, %v19198_v63 }
 0xa6a   : > { %v11802_v16 = vld [vmem:[#allocation4 + $0x7a] sm:$0x1]  ;;  %v10306_v33 = vadd.f32 %v10177_v41, %v19128_v19  ;;  %v11753_v24 = vrot.slane %v11700_v54, 1  ;;  %v10934_v36 = vrot.slane %v10882_v59, 2  ;;  %v10985_v15 = vld [vmem:[#allocation4 + $0x62] sm:$0x1]  ;;  %v19415_v9 = vsel %vm10834_vm10, %v11255_v39, %v19279_v37 }
 0xa6b   : > { %10760 = vst.msk [vmem:[#allocation4 + $0x118] sm:$0xff] %vm10724_vm5, %v10711_v17  ;;  %v11904_v13 = vld [vmem:[#allocation4 + $0x7b] sm:$0x1]  ;;  %v11855_v55 = vrot.slane %v11802_v16, 1  ;;  %v11037_v38 = vrot.slane %v10985_v15, 2  ;;  %v19421_v63 = vsel %vm10837_vm11, %v12159_v28, %v19283_v23  ;;  %v19425_v57 = vsel %vm10837_vm11, %v12173_v35, %v19287_v50  ;;  %v21144_v39 = vld [vmem:[#allocation109_spill] sm:$0xff]  ;;  %v10209_v42 = vpop.permute.xlu1 %10208 }
 0xa6c   : > { %v19417_v22 = vld [vmem:[#allocation4 + $0x63] sm:$0x1]  ;;  %v10594_v19 = vadd.f32 %v21133_v46, %v10306_v33  ;;  %v11754_v25 = vsel %vm10840_vm12, %v11753_v24, %v19328_v18  ;;  %v11957_v17 = vrot.slane %v11904_v13, 1  ;;  %v19432_v26 = vadd.f32 %v9702_v10, %v21144_v39  ;;  %v10217_v23 = vpop.permute.xlu0 %10216 }
 0xa6d   : > { %v11140_v37 = vrot.slane %v19417_v22, 2  ;;  %11783 = vrot.lane.b32.xlu1 %v11754_v25, %s13289_s16  ;;  %v11708_v28 = vld [vmem:[#allocation4 + $0xf9] sm:$0x1]  ;;  %v19437_v50 = vsel %vm10837_vm11, %v10934_v36, %v19332_v62  ;;  %v10890_v46 = vld [vmem:[#allocation4 + $0xe1] sm:$0x1]  ;;  %v19441_v18 = vsel %vm10834_vm10, %v11344_v11, %v19201_v43  ;;  %v19445_v10 = vsel %vm10834_vm10, %v11358_v32, %v19300_v21 }
 0xa6e   : > { %v11810_v35 = vld [vmem:[#allocation4 + $0xfa] sm:$0x1]  ;;  %v10642_v41 = vmax.f32 %v10594_v19, 0.0  ;;  %v10322_v54 = vadd.f32 %v10209_v42, %v19143_v4  ;;  %v10326_v59 = vadd.f32 %v10217_v23, %v19166_v1  ;;  %v11767_v16 = vrot.slane %v11708_v28, 1  ;;  %v10993_v33 = vld [vmem:[#allocation4 + $0xe2] sm:$0x1] }
 0xa6f   : > { %v11912_v24 = vld [vmem:[#allocation4 + $0xfb] sm:$0x1]  ;;  %v10948_v62 = vrot.slane %v10890_v46, 2  ;;  %v19451_v36 = vsel %vm10840_vm12, %v11855_v55, %v19339_v58  ;;  %v11869_v15 = vrot.slane %v11810_v35, 1  ;;  %v11051_v43 = vrot.slane %v10993_v33, 2  ;;  %v10223_v19 = vpop.permute.xlu1 %10222 }
 0xa70   : > { %v12006_v11 = vld [vmem:[#allocation4 + $0x7c] sm:$0x1]  ;;  %v10690_v13 = vmin.f32 %v10642_v41, 6.0  ;;  %v10610_v21 = vadd.f32 %v21138_v60, %v10322_v54  ;;  %v10614_v32 = vadd.f32 %v21141_v53, %v10326_v59  ;;  %v11768_v4 = vsel %vm10840_vm12, %v11767_v16, %v19361_v27  ;;  %v11096_v1 = vld [vmem:[#allocation4 + $0xe3] sm:$0x1]  ;;  %v19458_v25 = vpop.permute.xlu0 %10577 }
 0xa71   : > { %v12014_v22 = vld [vmem:[#allocation4 + $0xfc] sm:$0x1]  ;;  %11785 = vrot.lane.b32.xlu0 %v11768_v4, %s13289_s16  ;;  %v19462_v58 = vsel %vm10837_vm11, %v11037_v38, %v19343_v52  ;;  %v19466_v55 = vsel %vm10840_vm12, %v11957_v17, %v19351_v0  ;;  %v11971_v60 = vrot.slane %v11912_v24, 1  ;;  %v11191_v53 = vld [vmem:[#allocation4 + $0x64] sm:$0x1]  ;;  %v19470_v27 = vsel %vm10837_vm11, %v12261_v47, %v19304_v48 }
 0xa72   : > { %10739 = vst.msk [vmem:[#allocation4 + $0x70] sm:$0xff] %vm10724_vm5, %v10690_v13  ;;  %v10658_v39 = vmax.f32 %v10610_v21, 0.0  ;;  %v10662_v42 = vmax.f32 %v10614_v32, 0.0  ;;  %v10329_v23 = vadd.f32 %v10223_v19, %v19177_v31  ;;  %v19476_v52 = vsel %vm10837_vm11, %v10948_v62, %v19366_v40  ;;  %v11199_v38 = vld [vmem:[#allocation4 + $0xe4] sm:$0x1]  ;;  %v21145_v59 = vld [vmem:[#allocation124_spill] sm:$0xff] }
 0xa73   : > { %v12108_v28 = vld [vmem:[#allocation4 + $0x7d] sm:$0x1]  ;;  %v19480_v0 = vsel %vm10840_vm12, %v11869_v15, %v19370_v56  ;;  %v11154_v17 = vrot.slane %v11096_v1, 2  ;;  %v12059_v46 = vrot.slane %v12006_v11, 1  ;;  %v12073_v48 = vrot.slane %v12014_v22, 1  ;;  %v9700_v24 = vpop.permute.xlu1 %9699 }
 0xa74   : > { %v12116_v47 = vld [vmem:[#allocation4 + $0xfd] sm:$0x1]  ;;  %v19482_v35 = vld [vmem:[#allocation4 + $0xee] sm:$0x1]  ;;  %v10706_v41 = vmin.f32 %v10658_v39, 6.0  ;;  %v10710_v54 = vmin.f32 %v10662_v42, 6.0  ;;  %v10617_v31 = vadd.f32 %v21145_v59, %v10329_v23  ;;  %v19487_v40 = vsel %vm10837_vm11, %v11051_v43, %v19374_v49  ;;  %v9706_v62 = vpop.permute.xlu0 %9705 }
 0xa75   : > { %v11294_v16 = vld [vmem:[#allocation4 + $0x65] sm:$0x1]  ;;  %v19491_v56 = vsel %vm10840_vm12, %v11971_v60, %v19378_v8  ;;  %v11141_v15 = vsel %vm10837_vm11, %v11140_v37, %v19386_v7  ;;  %v11243_v11 = vrot.slane %v11191_v53, 2  ;;  %v11257_v13 = vrot.slane %v11199_v38, 2  ;;  %v12210_v21 = vld [vmem:[#allocation4 + $0x7e] sm:$0x1] }
 0xa76   : > { %v11302_v33 = vld [vmem:[#allocation4 + $0xe5] sm:$0x1]  ;;  %v19495_v32 = vld [vmem:[#allocation4 + $0xfe] sm:$0x1]  ;;  %10755 = vst.msk [vmem:[#allocation4 + $0xf0] sm:$0xff] %vm10724_vm5, %v10706_v41  ;;  %10759 = vst.msk [vmem:[#allocation4 + $0x110] sm:$0xff] %vm10724_vm5, %v10710_v54  ;;  %v19501_v43 = vsel %vm10837_vm11, %v11154_v17, %v19390_v14  ;;  %v19505_v8 = vsel %vm10840_vm12, %v12059_v46, %v19394_v44  ;;  %v19509_v7 = vsel %vm10840_vm12, %v12073_v48, %v19405_v12 }
 0xa77   : > { %v10665_v49 = vmax.f32 %v10617_v31, 0.0  ;;  %v12161_v37 = vrot.slane %v12108_v28, 1  ;;  %v12175_v4 = vrot.slane %v12116_v47, 1  ;;  %v11346_v1 = vrot.slane %v11294_v16, 2  ;;  %v21146_v14 = vld [vmem:[#allocation110_spill] sm:$0xff]  ;;  %v21147_v23 = vld [vmem:[#allocation111_spill] sm:$0xff]  ;;  %v10215_v38 = vpop.permute.xlu1 %10214 }
 0xa78   : > { %v11360_v22 = vrot.slane %v11302_v33, 2  ;;  %v12263_v60 = vrot.slane %v12210_v21, 1  ;;  %v12275_v53 = vrot.slane %v19482_v35, 2  ;;  %v12277_v39 = vrot.slane %v19495_v32, 1  ;;  %v10221_v17 = vpop.permute.xlu0 %10220  ;;  %v12312_v32 = vld [vmem:[#allocation4 + $0x7f] sm:$0x1] }
 0xa79   : > { %v10713_v19 = vmin.f32 %v10665_v49, 6.0  ;;  %v19514_v42 = vadd.f32 %v9700_v24, %v21146_v14  ;;  %v19517_v44 = vadd.f32 %v9706_v62, %v21147_v23  ;;  %v10883_v12 = vld [vmem:[#allocation4 + $0x71] sm:$0x1]  ;;  %v10986_v46 = vld [vmem:[#allocation4 + $0x72] sm:$0x1]  ;;  %v11244_v48 = vsel %vm10837_vm11, %v11243_v11, %v19409_v2 }
 0xa7a   : > { %v11089_v28 = vld [vmem:[#allocation4 + $0x73] sm:$0x1]  ;;  %v19523_v47 = vsel %vm10837_vm11, %v11257_v13, %v19415_v9  ;;  %v10325_v35 = vadd.f32 %v10215_v38, %v19257_v29  ;;  %v10328_v41 = vadd.f32 %v10221_v17, %v19293_v45  ;;  %v10936_v54 = vrot.slane %v10883_v12, 1  ;;  %v11192_v16 = vld [vmem:[#allocation4 + $0x74] sm:$0x1]  ;;  %v21148_v9 = vld [vmem:[#allocation133_spill] sm:$0xff] }
 0xa7b   : > { %10762 = vst.msk [vmem:[#allocation4 + $0x128] sm:$0xff] %vm10724_vm5, %v10713_v19  ;;  %v11039_v31 = vrot.slane %v10986_v46, 1  ;;  %v11295_v33 = vld [vmem:[#allocation4 + $0x75] sm:$0x1]  ;;  %v11142_v24 = vrot.slane %v11089_v28, 1  ;;  %v11245_v62 = vrot.slane %v11192_v16, 1  ;;  %v19530_v21 = vsel %vm10840_vm12, %v12161_v37, %v19421_v63  ;;  %v10227_v49 = vpop.permute.xlu1 %10226 }
 0xa7c   : > { %v19534_v2 = vsel %vm10840_vm12, %v12175_v4, %v19425_v57  ;;  %v10613_v11 = vadd.f32 %v21148_v9, %v10325_v35  ;;  %v10616_v29 = vadd.f32 %v21145_v59, %v10328_v41  ;;  %v10937_v45 = vsel %vm10840_vm12, %v10936_v54, %v19437_v50  ;;  %v9704_v19 = vpop.permute.xlu0 %9703  ;;  %v21150_v16 = vld [vmem:[#allocation113_spill] sm:$0xff] }
 0xa7d   : > { %v11348_v13 = vrot.slane %v11295_v33, 1  ;;  %10966 = vrot.lane.b32.xlu1 %v10937_v45, %s13289_s16  ;;  %v10891_v14 = vld [vmem:[#allocation4 + $0xf1] sm:$0x1]  ;;  %v11040_v63 = vsel %vm10840_vm12, %v11039_v31, %v19462_v58  ;;  %v10994_v37 = vld [vmem:[#allocation4 + $0xf2] sm:$0x1]  ;;  %v11347_v57 = vsel %vm10837_vm11, %v11346_v1, %v19441_v18  ;;  %v11361_v59 = vsel %vm10837_vm11, %v11360_v22, %v19445_v10  ;;  %v21149_v10 = vld [vmem:[#allocation134_spill] sm:$0xff] }
 0xa7e   : > { %v11097_v23 = vld [vmem:[#allocation4 + $0xf3] sm:$0x1]  ;;  %v19549_v50 = vsel %vm10840_vm12, %v12263_v60, %v19470_v27  ;;  %v10661_v4 = vmax.f32 %v10613_v11, 0.0  ;;  %v10664_v38 = vmax.f32 %v10616_v29, 0.0  ;;  %v10331_v17 = vadd.f32 %v10227_v49, %v19296_v5  ;;  %v11200_v58 = vld [vmem:[#allocation4 + $0xf4] sm:$0x1] }
 0xa7f   : > { %v19553_v12 = vsel %vm10840_vm12, %v11142_v24, %v11141_v15  ;;  %v10950_v46 = vrot.slane %v10891_v14, 1  ;;  %v11053_v28 = vrot.slane %v10994_v37, 1  ;;  %v11156_v35 = vrot.slane %v11097_v23, 1  ;;  %v11303_v18 = vld [vmem:[#allocation4 + $0xf5] sm:$0x1]  ;;  %v9710_v15 = vpop.permute.xlu1 %9709 }
 0xa80   : > { %v11259_v41 = vrot.slane %v11200_v58, 1  ;;  %v10709_v1 = vmin.f32 %v10661_v4, 6.0  ;;  %v10712_v54 = vmin.f32 %v10664_v38, 6.0  ;;  %v10619_v22 = vadd.f32 %v21149_v10, %v10331_v17  ;;  %v11396_v60 = vld [vmem:[#allocation4 + $0x56] sm:$0x1]  ;;  %v10213_v24 = vpop.permute.xlu0 %10212  ;;  %v21151_v4 = vld [vmem:[#allocation114_spill] sm:$0xff] }
 0xa81   : > { %v19557_v27 = vsel %vm10840_vm12, %v11245_v62, %v11244_v48  ;;  %v11397_v31 = vld [vmem:[#allocation4 + $0x66] sm:$0x1]  ;;  %v19560_v5 = vadd.f32 %v9704_v19, %v21150_v16  ;;  %v10951_v33 = vsel %vm10840_vm12, %v10950_v46, %v19476_v52  ;;  %11885 = vrot.lane.b32.xlu1 %v19451_v36, %s13290_s17  ;;  %v19567_v11 = vsel %vm10840_vm12, %v11348_v13, %v11347_v57  ;;  %v11404_v62 = vld [vmem:[#allocation4 + $0xd6] sm:$0x1]  ;;  %v12310_v23 = vld [vmem:[#allocation4 + $0x5f] sm:$0x1] }
 0xa82   : > { %v12276_v48 = vsel %vm10837_vm11, %v12275_v53, %v19310_v61  ;;  %v11405_v29 = vld [vmem:[#allocation4 + $0xe6] sm:$0x1]  ;;  %10758 = vst.msk [vmem:[#allocation4 + $0x108] sm:$0xff] %vm10724_vm5, %v10709_v1  ;;  %10761 = vst.msk [vmem:[#allocation4 + $0x120] sm:$0xff] %vm10724_vm5, %v10712_v54  ;;  %v10667_v45 = vmax.f32 %v10619_v22, 0.0  ;;  %10968 = vrot.lane.b32.xlu0 %v10951_v33, %s13289_s16  ;;  %v10324_v52 = vadd.f32 %v10213_v24, %v19398_v51  ;;  %v11362_v49 = vrot.slane %v11303_v18, 1 }
 0xa83   : > { %v11054_v36 = vsel %vm10840_vm12, %v11053_v28, %v19487_v40  ;;  %v11398_v13 = vld [vmem:[#allocation4 + $0x76] sm:$0x1]  ;;  %v19579_v61 = vsel %vm10840_vm12, %v11156_v35, %v19501_v43  ;;  %v19583_v53 = vsel %vm10840_vm12, %v11259_v41, %v19523_v47  ;;  %v11447_v14 = vrot.slane %v11396_v60, 3  ;;  %v10225_v17 = vpop.permute.xlu1 %10224  ;;  %v12311_v18 = vld [vmem:[#allocation4 + $0x6f] sm:$0x1]  ;;  %v21154_v24 = vld [vmem:[#allocation137_spill] sm:$0xff] }
 0xa84   : > { %v11406_v19 = vld [vmem:[#allocation4 + $0xf6] sm:$0x1]  ;;  %v11449_v37 = vrot.slane %v11397_v31, 2  ;;  %v10715_v57 = vmin.f32 %v10667_v45, 6.0  ;;  %v19586_v51 = vadd.f32 %v9710_v15, %v21151_v4  ;;  %v10612_v40 = vadd.f32 %v21148_v9, %v10324_v52  ;;  %v10231_v58 = vpop.permute.xlu0 %10230  ;;  %v11710_v15 = vld [vmem:[#allocation4 + $0x119] sm:$0x1] }
 0xa85   : > { %v11461_v38 = vrot.slane %v11404_v62, 3  ;;  %11069 = vrot.lane.b32.xlu1 %v11040_v63, %s13290_s17  ;;  %v11448_v43 = vsel %vm10834_vm10, %v11447_v14, %v19314_v34  ;;  %v11451_v46 = vrot.slane %v11398_v13, 1  ;;  %v11463_v47 = vrot.slane %v11405_v29, 2  ;;  %v12317_v29 = vld [vmem:[#allocation4 + $0xcf] sm:$0x1] }
 0xa86   : > { %v11465_v28 = vrot.slane %v11406_v19, 1  ;;  %10764 = vst.msk [vmem:[#allocation4 + $0x138] sm:$0xff] %vm10724_vm5, %v10715_v57  ;;  %v10660_v35 = vmax.f32 %v10612_v40, 0.0  ;;  %v10330_v41 = vadd.f32 %v10225_v17, %v19401_v6  ;;  %11887 = vrot.lane.b32.xlu0 %v19480_v0, %s13290_s17  ;;  %v10333_v9 = vadd.f32 %v10231_v58, %v19432_v26  ;;  %v12316_v0 = vld [vmem:[#allocation4 + $0xbf] sm:$0x1] }
 0xa87   : > { %v12361_v1 = vrot.slane %v12310_v23, 3  ;;  %v19598_v63 = vsel %vm10840_vm12, %v11362_v49, %v11361_v59  ;;  %v19603_v34 = vsel %vm10840_vm12, %v12277_v39, %v12276_v48  ;;  %v11450_v54 = vsel %vm10837_vm11, %v11449_v37, %v11448_v43  ;;  %v21153_v59 = vld [vmem:[#allocation139_spill] sm:$0xff]  ;;  %v9708_v39 = vpop.permute.xlu1 %9707  ;;  %v12318_v45 = vld [vmem:[#allocation4 + $0xdf] sm:$0x1]  ;;  %v12319_v14 = vld [vmem:[#allocation4 + $0xef] sm:$0x1] }
 0xa88   : > { %v21152_v6 = vrot.slane %v19246_v3, 5  ;;  %v10708_v60 = vmin.f32 %v10660_v35, 6.0  ;;  %v10618_v26 = vadd.f32 %v21149_v10, %v10330_v41  ;;  %v10621_v31 = vadd.f32 %v19089_v20, %v10333_v9  ;;  %v9714_v33 = vpop.permute.xlu0 %9713  ;;  %v21156_v37 = vld [vmem:[#allocation115_spill] sm:$0xff]  ;;  %v11711_v4 = vld [vmem:[#allocation4 + $0x129] sm:$0x1]  ;;  %v21157_v43 = vld [vmem:[#allocation116_spill] sm:$0xff] }
 0xa89   : > { %v11462_v16 = vsel %vm10834_vm10, %v11461_v38, %v21153_v59  ;;  %11987 = vrot.lane.b32.xlu1 %v19466_v55, %s13291_s8  ;;  %v19617_v3 = vsel %vm10840_vm12, %v11451_v46, %v11450_v54  ;;  %v21155_v10 = vrot.slane %v21154_v24, 4  ;;  %v12363_v62 = vrot.slane %v12311_v18, 2  ;;  %v11709_v19 = vld [vmem:[#allocation4 + $0x109] sm:$0x1]  ;;  %v10894_v59 = vld [vmem:[#allocation4 + $0x121] sm:$0x1] }
 0xa8a   : > { %v12358_v22 = vsel %vm10828_vm8, %v21152_v6, %v19174_v30  ;;  %v11464_v30 = vsel %vm10837_vm11, %v11463_v47, %v11462_v16  ;;  %10757 = vst.msk [vmem:[#allocation4 + $0x100] sm:$0xff] %vm10724_vm5, %v10708_v60  ;;  %v10666_v52 = vmax.f32 %v10618_v26, 0.0  ;;  %v10669_v49 = vmax.f32 %v10621_v31, 0.0  ;;  %11071 = vrot.lane.b32.xlu0 %v11054_v36, %s13290_s17  ;;  %v12320_v36 = vld [vmem:[#allocation4 + $0xff] sm:$0x1]  ;;  %v21158_v60 = vld [vmem:[#allocation138_spill] sm:$0xff] }
 0xa8b   : > { %v12360_v48 = vsel %vm10831_vm9, %v21155_v10, %v12358_v22  ;;  %v19626_v55 = vsel %vm10840_vm12, %v11465_v28, %v11464_v30  ;;  %v19630_v23 = vadd.f32 %v9708_v39, %v21156_v37  ;;  %v12365_v57 = vrot.slane %v12312_v32, 1  ;;  %v10229_v28 = vpop.permute.xlu1 %10228  ;;  %v11494_v6 = vld [vmem:[#allocation4 + $0x7] sm:$0x1]  ;;  %v10893_v31 = vld [vmem:[#allocation4 + $0x111] sm:$0x1] }
 0xa8c   : > { %v12362_v13 = vsel %vm10834_vm10, %v12361_v1, %v12360_v48  ;;  %v11769_v40 = vrot.slane %v11710_v15, 7  ;;  %v12371_v38 = vrot.slane %v12316_v0, 5  ;;  %v10714_v17 = vmin.f32 %v10666_v52, 6.0  ;;  %v10235_v35 = vpop.permute.xlu0 %10234  ;;  %v21159_v30 = vld [vmem:[#allocation275_spill] sm:$0xff] }
 0xa8d   : > { %v10717_v58 = vmin.f32 %v10669_v49, 6.0  ;;  %v19633_v46 = vadd.f32 %v9714_v33, %v21157_v43  ;;  %v12373_v47 = vrot.slane %v12317_v29, 4  ;;  %11172 = vrot.lane.b32.xlu1 %v19553_v12, %s13291_s8  ;;  %v12364_v41 = vsel %vm10837_vm11, %v12363_v62, %v12362_v13  ;;  %v11712_v9 = vld [vmem:[#allocation4 + $0x139] sm:$0x1]  ;;  %v11496_v33 = vld [vmem:[#allocation4 + $0x27] sm:$0x1] }
 0xa8e   : > { %v11770_v18 = vsel %vm10822_vm6, %v11769_v40, %v11709_v19  ;;  %v12375_v1 = vrot.slane %v12318_v45, 3  ;;  %v12377_v54 = vrot.slane %v12319_v14, 2  ;;  %10763 = vst.msk [vmem:[#allocation4 + $0x130] sm:$0xff] %vm10724_vm5, %v10714_v17  ;;  %v10332_v22 = vadd.f32 %v10229_v28, %v19514_v42  ;;  %11989 = vrot.lane.b32.xlu0 %v19491_v56, %s13291_s8  ;;  %v11497_v10 = vld [vmem:[#allocation4 + $0x37] sm:$0x1] }
 0xa8f   : > { %10766 = vst.msk [vmem:[#allocation4 + $0x148] sm:$0xff] %vm10724_vm5, %v10717_v58  ;;  %v10335_v12 = vadd.f32 %v10235_v35, %v19517_v44  ;;  %v11771_v0 = vrot.slane %v11711_v4, 6  ;;  %v12372_v26 = vsel %vm10828_vm8, %v12371_v38, %v21158_v60  ;;  %v19648_v16 = vsel %vm10840_vm12, %v12365_v57, %v12364_v41  ;;  %v9712_v48 = vpop.permute.xlu1 %9711  ;;  %v11498_v13 = vld [vmem:[#allocation4 + $0x47] sm:$0x1]  ;;  %v11499_v40 = vld [vmem:[#allocation4 + $0x57] sm:$0x1] }
 0xa90   : > { %v11773_v32 = vrot.slane %v11712_v9, 5  ;;  %v12374_v15 = vsel %vm10831_vm9, %v12373_v47, %v12372_v26  ;;  %v12379_v39 = vrot.slane %v12320_v36, 1  ;;  %v10620_v42 = vadd.f32 %v19089_v20, %v10332_v22  ;;  %v10233_v62 = vpop.permute.xlu0 %10232  ;;  %v21160_v20 = vld [vmem:[#allocation130_spill] sm:$0xff]  ;;  %v11502_v36 = vld [vmem:[#allocation4 + $0x87] sm:$0x1] }
 0xa91   : > { %v10623_v56 = vadd.f32 %v21159_v30, %v10335_v12  ;;  %v11772_v44 = vsel %vm10825_vm7, %v11771_v0, %v11770_v18  ;;  %v12376_v24 = vsel %vm10834_vm10, %v12375_v1, %v12374_v15  ;;  %12089 = vrot.lane.b32.xlu1 %v19505_v8, %s13292_s9  ;;  %v10892_v45 = vld [vmem:[#allocation4 + $0x101] sm:$0x1]  ;;  %v10952_v52 = vrot.slane %v10893_v31, 7  ;;  %v19670_v41 = vld [vmem:[#allocation4 + $0x67] sm:$0x1]  ;;  %v21162_v9 = vld [vmem:[#allocation298_spill] sm:$0xff] }
 0xa92   : > { %v12378_v29 = vsel %vm10837_vm11, %v12377_v54, %v12376_v24  ;;  %v10954_v49 = vrot.slane %v10894_v59, 6  ;;  %v21161_v19 = vrot.slane %v21160_v20, 7  ;;  %v10668_v37 = vmax.f32 %v10620_v42, 0.0  ;;  %11174 = vrot.lane.b32.xlu0 %v19579_v61, %s13291_s8  ;;  %v19672_v61 = vld [vmem:[#allocation4 + $0x77] sm:$0x1] }
 0xa93   : > { %v10671_v57 = vmax.f32 %v10623_v56, 0.0  ;;  %v10334_v4 = vadd.f32 %v10233_v62, %v19560_v5  ;;  %v11544_v8 = vrot.slane %v11496_v33, 6  ;;  %v11774_v38 = vsel %vm10828_vm8, %v11773_v32, %v11772_v44  ;;  %v10239_v1 = vpop.permute.xlu1 %10238  ;;  %v11504_v32 = vld [vmem:[#allocation4 + $0xa7] sm:$0x1]  ;;  %v11505_v15 = vld [vmem:[#allocation4 + $0xb7] sm:$0x1] }
 0xa94   : > { %v11543_v14 = vsel %vm10822_vm6, %v21161_v19, %v11494_v6  ;;  %v19666_v17 = vsel %vm10840_vm12, %v12379_v39, %v12378_v29  ;;  %v10953_v58 = vsel %vm10822_vm6, %v10952_v52, %v10892_v45  ;;  %v11546_v43 = vrot.slane %v11497_v10, 5  ;;  %v10237_v54 = vpop.permute.xlu0 %10236  ;;  %v21163_v44 = vld [vmem:[#allocation278_spill] sm:$0xff]  ;;  %v11506_v10 = vld [vmem:[#allocation4 + $0xc7] sm:$0x1] }
 0xa95   : > { %v10716_v47 = vmin.f32 %v10668_v37, 6.0  ;;  %v10719_v28 = vmin.f32 %v10671_v57, 6.0  ;;  %v10622_v35 = vadd.f32 %v21159_v30, %v10334_v4  ;;  %v11545_v5 = vsel %vm10825_vm7, %v11544_v8, %v11543_v14  ;;  %11275 = vrot.lane.b32.xlu1 %v19557_v27, %s13292_s9  ;;  %v10895_v22 = vld [vmem:[#allocation4 + $0x131] sm:$0x1]  ;;  %v11507_v57 = vld [vmem:[#allocation4 + $0xd7] sm:$0x1] }
 0xa96   : > { %v9809_v18 = vadd.f32 %v9712_v48, %v21162_v9  ;;  %v11713_v6 = vld [vmem:[#allocation4 + $0x149] sm:$0x1]  ;;  %v10955_v12 = vsel %vm10825_vm7, %v10954_v49, %v10953_v58  ;;  %v11548_v0 = vrot.slane %v11498_v13, 4  ;;  %v11550_v60 = vrot.slane %v11499_v40, 3  ;;  %12091 = vrot.lane.b32.xlu0 %v19509_v7, %s13292_s9  ;;  %v21164_v48 = vld [vmem:[#allocation131_spill] sm:$0xff] }
 0xa97   : > { %10765 = vst.msk [vmem:[#allocation4 + $0x140] sm:$0xff] %vm10724_vm5, %v10716_v47  ;;  %10768 = vst.msk [vmem:[#allocation4 + $0x158] sm:$0xff] %vm10724_vm5, %v10719_v28  ;;  %v10670_v26 = vmax.f32 %v10622_v35, 0.0  ;;  %v10337_v31 = vadd.f32 %v10239_v1, %v19586_v51  ;;  %v10336_v59 = vadd.f32 %v10237_v54, %v19630_v23  ;;  %v11775_v27 = vrot.slane %v11713_v6, 4  ;;  %v10243_v62 = vpop.permute.xlu1 %10242  ;;  %v11812_v4 = vld [vmem:[#allocation4 + $0x11a] sm:$0x1] }
 0xa98   : > { %v10956_v39 = vrot.slane %v10895_v22, 5  ;;  %v11547_v33 = vsel %vm10828_vm8, %v11546_v43, %v11545_v5  ;;  %v11552_v42 = vrot.slane %v19670_v41, 2  ;;  %v11554_v30 = vrot.slane %v19672_v61, 1  ;;  %v10241_v29 = vpop.permute.xlu0 %10240  ;;  %v19703_v8 = vld [vmem:[#allocation4 + $0xe7] sm:$0x1] }
 0xa99   : > { %v10718_v56 = vmin.f32 %v10670_v26, 6.0  ;;  %v10625_v24 = vadd.f32 %v21163_v44, %v10337_v31  ;;  %v10624_v51 = vadd.f32 %v21163_v44, %v10336_v59  ;;  %v21165_v7 = vrot.slane %v21164_v48, 7  ;;  %12191 = vrot.lane.b32.xlu1 %v19530_v21, %s13293_s13  ;;  %v11813_v43 = vld [vmem:[#allocation4 + $0x12a] sm:$0x1]  ;;  %v11814_v41 = vld [vmem:[#allocation4 + $0x13a] sm:$0x1] }
 0xa9a   : > { %v11776_v45 = vsel %vm10831_vm9, %v11775_v27, %v11774_v38  ;;  %v11549_v52 = vsel %vm10831_vm9, %v11548_v0, %v11547_v33  ;;  %v11558_v49 = vrot.slane %v11504_v32, 6  ;;  %v11560_v13 = vrot.slane %v11505_v15, 5  ;;  %11277 = vrot.lane.b32.xlu0 %v19583_v53, %s13292_s9  ;;  %v19708_v53 = vld [vmem:[#allocation4 + $0xf7] sm:$0x1]  ;;  %v11811_v35 = vld [vmem:[#allocation4 + $0x10a] sm:$0x1] }
 0xa9b   : > { %v11557_v23 = vsel %vm10822_vm6, %v21165_v7, %v11502_v36  ;;  %10767 = vst.msk [vmem:[#allocation4 + $0x150] sm:$0xff] %vm10724_vm5, %v10718_v56  ;;  %v10673_v20 = vmax.f32 %v10625_v24, 0.0  ;;  %v10672_v19 = vmax.f32 %v10624_v51, 0.0  ;;  %v10339_v14 = vadd.f32 %v10243_v62, %v19633_v46  ;;  %v10996_v6 = vld [vmem:[#allocation4 + $0x112] sm:$0x1] }
 0xa9c   : > { %v10338_v37 = vadd.f32 %v10241_v29, %v9809_v18  ;;  %v10957_v21 = vsel %vm10828_vm8, %v10956_v39, %v10955_v12  ;;  %v11551_v40 = vsel %vm10834_vm10, %v11550_v60, %v11549_v52  ;;  %v11559_v38 = vsel %vm10825_vm7, %v11558_v49, %v11557_v23  ;;  %v11815_v0 = vld [vmem:[#allocation4 + $0x14a] sm:$0x1]  ;;  %v10997_v60 = vld [vmem:[#allocation4 + $0x122] sm:$0x1]  ;;  %v10998_v39 = vld [vmem:[#allocation4 + $0x132] sm:$0x1] }
 0xa9d   : > { %v11562_v58 = vrot.slane %v11506_v10, 4  ;;  %v10721_v36 = vmin.f32 %v10673_v20, 6.0  ;;  %v10720_v47 = vmin.f32 %v10672_v19, 6.0  ;;  %v10627_v46 = vadd.f32 %v19458_v25, %v10339_v14  ;;  %11378 = vrot.lane.b32.xlu1 %v19567_v11, %s13293_s13  ;;  %v10995_v15 = vld [vmem:[#allocation4 + $0x102] sm:$0x1] }
 0xa9e   : > { %v10626_v28 = vadd.f32 %v19458_v25, %v10338_v37  ;;  %v11714_v61 = vld [vmem:[#allocation4 + $0x159] sm:$0x1]  ;;  %v10896_v5 = vld [vmem:[#allocation4 + $0x141] sm:$0x1]  ;;  %v11553_v9 = vsel %vm10837_vm11, %v11552_v42, %v11551_v40  ;;  %v11561_v18 = vsel %vm10828_vm8, %v11560_v13, %v11559_v38  ;;  %v11564_v1 = vrot.slane %v11507_v57, 3  ;;  %12193 = vrot.lane.b32.xlu0 %v19534_v2, %s13293_s13 }
 0xa9f   : > { %v11871_v54 = vrot.slane %v11812_v4, 7  ;;  %10770 = vst.msk [vmem:[#allocation4 + $0x168] sm:$0xff] %vm10724_vm5, %v10721_v36  ;;  %10769 = vst.msk [vmem:[#allocation4 + $0x160] sm:$0xff] %vm10724_vm5, %v10720_v47  ;;  %v10675_v25 = vmax.f32 %v10627_v46, 0.0  ;;  %v11777_v12 = vrot.slane %v11714_v61, 3  ;;  %v10958_v11 = vrot.slane %v10896_v5, 4 }
 0xaa0   : > { %v10674_v22 = vmax.f32 %v10626_v28, 0.0  ;;  %v19719_v26 = vsel %vm10840_vm12, %v11554_v30, %v11553_v9  ;;  %v11563_v31 = vsel %vm10831_vm9, %v11562_v58, %v11561_v18  ;;  %v11566_v59 = vrot.slane %v19703_v8, 2  ;;  %v11816_v27 = vld [vmem:[#allocation4 + $0x15a] sm:$0x1]  ;;  %v10999_v44 = vld [vmem:[#allocation4 + $0x142] sm:$0x1] }
 0xaa1   : > { %v11872_v32 = vsel %vm10822_vm6, %v11871_v54, %v11811_v35  ;;  %v10723_v33 = vmin.f32 %v10675_v25, 6.0  ;;  %v11873_v56 = vrot.slane %v11813_v43, 6  ;;  %v11875_v2 = vrot.slane %v11814_v41, 5  ;;  %12293 = vrot.lane.b32.xlu1 %v19549_v50, %s13294_s14  ;;  %v11914_v20 = vld [vmem:[#allocation4 + $0x11b] sm:$0x1] }
 0xaa2   : > { %v10722_v42 = vmin.f32 %v10674_v22, 6.0  ;;  %v11778_v30 = vsel %vm10834_vm10, %v11777_v12, %v11776_v45  ;;  %v10897_v24 = vld [vmem:[#allocation4 + $0x151] sm:$0x1]  ;;  %v11565_v51 = vsel %vm10834_vm10, %v11564_v1, %v11563_v31  ;;  %v11568_v10 = vrot.slane %v19708_v53, 1  ;;  %v11000_v7 = vld [vmem:[#allocation4 + $0x152] sm:$0x1]  ;;  %11380 = vrot.lane.b32.xlu0 %v19598_v63, %s13293_s13 }
 0xaa3   : > { %v11877_v48 = vrot.slane %v11815_v0, 4  ;;  %10772 = vst.msk [vmem:[#allocation4 + $0x178] sm:$0xff] %vm10724_vm5, %v10723_v33  ;;  %v10959_v23 = vsel %vm10831_vm9, %v10958_v11, %v10957_v21  ;;  %v10960_v62 = vrot.slane %v10897_v24, 3  ;;  %v11874_v50 = vsel %vm10825_vm7, %v11873_v56, %v11872_v32  ;;  %v11597_v19 = vld [vmem:[#allocation4 + $0x8] sm:$0x1] }
 0xaa4   : > { %10771 = vst.msk [vmem:[#allocation4 + $0x170] sm:$0xff] %vm10724_vm5, %v10722_v42  ;;  %v11055_v29 = vrot.slane %v10996_v6, 7  ;;  %v11879_v45 = vrot.slane %v11816_v27, 3  ;;  %v11057_v52 = vrot.slane %v10997_v60, 6  ;;  %v11059_v49 = vrot.slane %v10998_v39, 5  ;;  %v21166_v11 = vld [vmem:[#allocation126_spill] sm:$0xff] }
 0xaa5   : > { %v11061_v13 = vrot.slane %v10999_v44, 4  ;;  %v11567_v14 = vsel %vm10837_vm11, %v11566_v59, %v11565_v51  ;;  %v11876_v37 = vsel %vm10828_vm8, %v11875_v2, %v11874_v50  ;;  %v11063_v4 = vrot.slane %v11000_v7, 3  ;;  %v11913_v63 = vld [vmem:[#allocation4 + $0x10b] sm:$0x1]  ;;  %11481 = vrot.lane.b32.xlu1 %v19617_v3, %s13294_s14  ;;  %v11916_v9 = vld [vmem:[#allocation4 + $0x13b] sm:$0x1] }
 0xaa6   : > { %v11056_v57 = vsel %vm10822_vm6, %v11055_v29, %v10995_v15  ;;  %v11915_v40 = vld [vmem:[#allocation4 + $0x12b] sm:$0x1]  ;;  %v11715_v21 = vld [vmem:[#allocation4 + $0x169] sm:$0x1]  ;;  %v10898_v8 = vld [vmem:[#allocation4 + $0x161] sm:$0x1]  ;;  %v10961_v38 = vsel %vm10834_vm10, %v10960_v62, %v10959_v23  ;;  %v19742_v58 = vsel %vm10840_vm12, %v11568_v10, %v11567_v14  ;;  %v11878_v36 = vsel %vm10831_vm9, %v11877_v48, %v11876_v37  ;;  %12295 = vrot.lane.b32.xlu0 %v19603_v34, %s13294_s14 }
 0xaa7   : > { %v11817_v43 = vld [vmem:[#allocation4 + $0x16a] sm:$0x1]  ;;  %v11058_v47 = vsel %vm10825_vm7, %v11057_v52, %v11056_v57  ;;  %v11779_v46 = vrot.slane %v11715_v21, 2  ;;  %v10962_v28 = vrot.slane %v10898_v8, 2  ;;  %v11001_v35 = vld [vmem:[#allocation4 + $0x162] sm:$0x1]  ;;  %v11880_v41 = vsel %vm10834_vm10, %v11879_v45, %v11878_v36 }
 0xaa8   : > { %v11881_v53 = vrot.slane %v11817_v43, 2  ;;  %v11060_v3 = vsel %vm10828_vm8, %v11059_v49, %v11058_v47  ;;  %v11065_v5 = vrot.slane %v11001_v35, 2  ;;  %v11917_v18 = vld [vmem:[#allocation4 + $0x14b] sm:$0x1]  ;;  %v11973_v1 = vrot.slane %v11914_v20, 7 }
 0xaa9   : > { %v11062_v61 = vsel %vm10831_vm9, %v11061_v13, %v11060_v3  ;;  %v11780_v54 = vsel %vm10837_vm11, %v11779_v46, %v11778_v30  ;;  %v11918_v25 = vld [vmem:[#allocation4 + $0x15b] sm:$0x1]  ;;  %v11919_v34 = vld [vmem:[#allocation4 + $0x16b] sm:$0x1]  ;;  %v11975_v22 = vrot.slane %v11915_v40, 6  ;;  %v21167_v0 = vrot.slane %v21166_v11, 7 }
 0xaaa   : > { %v11064_v6 = vsel %vm10834_vm10, %v11063_v4, %v11062_v61  ;;  %v11099_v12 = vld [vmem:[#allocation4 + $0x113] sm:$0x1]  ;;  %v11716_v31 = vld [vmem:[#allocation4 + $0x179] sm:$0x1]  ;;  %v10963_v27 = vsel %vm10837_vm11, %v10962_v28, %v10961_v38  ;;  %v11818_v32 = vld [vmem:[#allocation4 + $0x17a] sm:$0x1]  ;;  %v11882_v15 = vsel %vm10837_vm11, %v11881_v53, %v11880_v41  ;;  %v11974_v33 = vsel %vm10822_vm6, %v11973_v1, %v11913_v63  ;;  %11483 = vrot.lane.b32.xlu0 %v19626_v55, %s13294_s14 }
 0xaab   : > { %v19756_v60 = vsel %vm10822_vm6, %v21167_v0, %v11597_v19  ;;  %v10899_v59 = vld [vmem:[#allocation4 + $0x171] sm:$0x1]  ;;  %v11066_v39 = vsel %vm10837_vm11, %v11065_v5, %v11064_v6  ;;  %v11100_v42 = vld [vmem:[#allocation4 + $0x123] sm:$0x1]  ;;  %v11101_v56 = vld [vmem:[#allocation4 + $0x133] sm:$0x1]  ;;  %v11976_v10 = vsel %vm10825_vm7, %v11975_v22, %v11974_v33 }
 0xaac   : > { %v11102_v2 = vld [vmem:[#allocation4 + $0x143] sm:$0x1]  ;;  %v11781_v44 = vrot.slane %v11716_v31, 1  ;;  %v10964_v30 = vrot.slane %v10899_v59, 1  ;;  %v11883_v24 = vrot.slane %v11818_v32, 1  ;;  %v11977_v62 = vrot.slane %v11916_v9, 5 }
 0xaad   : > { %v11002_v51 = vld [vmem:[#allocation4 + $0x172] sm:$0x1]  ;;  %v11098_v48 = vld [vmem:[#allocation4 + $0x103] sm:$0x1]  ;;  %v11920_v23 = vld [vmem:[#allocation4 + $0x17b] sm:$0x1] }
 0xaae   : > { %v11067_v7 = vrot.slane %v11002_v51, 1  ;;  %v11979_v50 = vrot.slane %v11917_v18, 4  ;;  %v11981_v29 = vrot.slane %v11918_v25, 3  ;;  %v12016_v45 = vld [vmem:[#allocation4 + $0x11c] sm:$0x1]  ;;  %v11782_v52 = vsel %vm10840_vm12, %v11781_v44, %v11780_v54  ;;  %12395 = vrot.lane.b32.xlu0 %v19648_v16, %s13295_s15 }
 0xaaf   : > { %v10965_v49 = vsel %vm10840_vm12, %v10964_v30, %v10963_v27  ;;  %v19768_v13 = vsel %vm10840_vm12, %v11883_v24, %v11882_v15  ;;  %v11983_v55 = vrot.slane %v11919_v34, 2  ;;  %v11103_v20 = vld [vmem:[#allocation4 + $0x153] sm:$0x1]  ;;  %v11104_v19 = vld [vmem:[#allocation4 + $0x163] sm:$0x1]  ;;  %11787 = vrot.lane.b32.xlu1 %v11782_v52, %s13289_s16  ;;  %v11978_v57 = vsel %vm10828_vm8, %v11977_v62, %v11976_v10 }
 0xab0   : > { %v12017_v14 = vld [vmem:[#allocation4 + $0x12c] sm:$0x1]  ;;  %v19772_v37 = vsel %vm10840_vm12, %v11067_v7, %v11066_v39  ;;  %v11985_v4 = vrot.slane %v11920_v23, 1  ;;  %v11105_v63 = vld [vmem:[#allocation4 + $0x173] sm:$0x1]  ;;  %v11158_v40 = vrot.slane %v11099_v12, 7  ;;  %v11980_v8 = vsel %vm10831_vm9, %v11979_v50, %v11978_v57 }
 0xab1   : > { %v12015_v21 = vld [vmem:[#allocation4 + $0x10c] sm:$0x1]  ;;  %v11160_v38 = vrot.slane %v11100_v42, 6  ;;  %v11162_v43 = vrot.slane %v11101_v56, 5  ;;  %v11164_v36 = vrot.slane %v11102_v2, 4  ;;  %v11982_v46 = vsel %vm10834_vm10, %v11981_v29, %v11980_v8 }
 0xab2   : > { %v12018_v47 = vld [vmem:[#allocation4 + $0x13c] sm:$0x1]  ;;  %v11159_v28 = vsel %vm10822_vm6, %v11158_v40, %v11098_v48  ;;  %v11166_v53 = vrot.slane %v11103_v20, 3  ;;  %v11168_v35 = vrot.slane %v11104_v19, 2  ;;  %v12019_v3 = vld [vmem:[#allocation4 + $0x14c] sm:$0x1]  ;;  %v11984_v5 = vsel %vm10837_vm11, %v11983_v55, %v11982_v46  ;;  %10970 = vrot.lane.b32.xlu0 %v10965_v49, %s13289_s16 }
 0xab3   : > { %v12020_v41 = vld [vmem:[#allocation4 + $0x15c] sm:$0x1]  ;;  %v11202_v61 = vld [vmem:[#allocation4 + $0x114] sm:$0x1]  ;;  %v11161_v9 = vsel %vm10825_vm7, %v11160_v38, %v11159_v28  ;;  %v11170_v16 = vrot.slane %v11105_v63, 1  ;;  %v12075_v54 = vrot.slane %v12016_v45, 7  ;;  %12397 = vrot.lane.b32.xlu1 %v19666_v17, %s13295_s15  ;;  %v19785_v6 = vsel %vm10840_vm12, %v11985_v4, %v11984_v5 }
 0xab4   : > { %v12021_v18 = vld [vmem:[#allocation4 + $0x16c] sm:$0x1]  ;;  %v12022_v1 = vld [vmem:[#allocation4 + $0x17c] sm:$0x1]  ;;  %v11163_v25 = vsel %vm10828_vm8, %v11162_v43, %v11161_v9  ;;  %v12077_v34 = vrot.slane %v12017_v14, 6  ;;  %v12079_v22 = vrot.slane %v12018_v47, 5 }
 0xab5   : > { %v11201_v12 = vld [vmem:[#allocation4 + $0x104] sm:$0x1]  ;;  %v11165_v0 = vsel %vm10831_vm9, %v11164_v36, %v11163_v25  ;;  %v12076_v31 = vsel %vm10822_vm6, %v12075_v54, %v12015_v21  ;;  %v12081_v59 = vrot.slane %v12019_v3, 4  ;;  %v12083_v27 = vrot.slane %v12020_v41, 3  ;;  %v11204_v32 = vld [vmem:[#allocation4 + $0x134] sm:$0x1] }
 0xab6   : > { %v11203_v11 = vld [vmem:[#allocation4 + $0x124] sm:$0x1]  ;;  %v12118_v17 = vld [vmem:[#allocation4 + $0x11d] sm:$0x1]  ;;  %v11167_v39 = vsel %vm10834_vm10, %v11166_v53, %v11165_v0  ;;  %v12078_v33 = vsel %vm10825_vm7, %v12077_v34, %v12076_v31  ;;  %v12085_v42 = vrot.slane %v12021_v18, 2  ;;  %v12087_v56 = vrot.slane %v12022_v1, 1  ;;  %11586 = vrot.lane.b32.xlu0 %v19742_v58, %s13295_s15 }
 0xab7   : > { %v11205_v15 = vld [vmem:[#allocation4 + $0x144] sm:$0x1]  ;;  %v11206_v2 = vld [vmem:[#allocation4 + $0x154] sm:$0x1]  ;;  %v11169_v30 = vsel %vm10837_vm11, %v11168_v35, %v11167_v39  ;;  %v12080_v24 = vsel %vm10828_vm8, %v12079_v22, %v12078_v33  ;;  %v11261_v10 = vrot.slane %v11202_v61, 7  ;;  %v11263_v48 = vrot.slane %v11203_v11, 6  ;;  %11584 = vrot.lane.b32.xlu1 %v19719_v26, %s13295_s15 }
 0xab8   : > { %v11207_v44 = vld [vmem:[#allocation4 + $0x164] sm:$0x1]  ;;  %v11208_v51 = vld [vmem:[#allocation4 + $0x174] sm:$0x1]  ;;  %v12119_v7 = vld [vmem:[#allocation4 + $0x12d] sm:$0x1]  ;;  %v11171_v23 = vsel %vm10840_vm12, %v11170_v16, %v11169_v30  ;;  %v12082_v62 = vsel %vm10831_vm9, %v12081_v59, %v12080_v24 }
 0xab9   : > { %v11265_v50 = vrot.slane %v11204_v32, 5  ;;  %v11267_v29 = vrot.slane %v11205_v15, 4  ;;  %v12117_v45 = vld [vmem:[#allocation4 + $0x10d] sm:$0x1]  ;;  %v12120_v52 = vld [vmem:[#allocation4 + $0x13d] sm:$0x1]  ;;  %v12084_v49 = vsel %vm10834_vm10, %v12083_v27, %v12082_v62  ;;  %v11262_v55 = vsel %vm10822_vm6, %v11261_v10, %v11201_v12 }
 0xaba   : > { %v11269_v20 = vrot.slane %v11206_v2, 3  ;;  %v11271_v19 = vrot.slane %v11207_v44, 2  ;;  %v12121_v14 = vld [vmem:[#allocation4 + $0x14d] sm:$0x1]  ;;  %v12122_v57 = vld [vmem:[#allocation4 + $0x15d] sm:$0x1]  ;;  %v12086_v4 = vsel %vm10837_vm11, %v12085_v42, %v12084_v49  ;;  %v11264_v63 = vsel %vm10825_vm7, %v11263_v48, %v11262_v55  ;;  %11073 = vrot.lane.b32.xlu0 %v19772_v37, %s13290_s17 }
 0xabb   : > { %v11305_v26 = vld [vmem:[#allocation4 + $0x115] sm:$0x1]  ;;  %v11273_v40 = vrot.slane %v11208_v51, 1  ;;  %v12123_v21 = vld [vmem:[#allocation4 + $0x16d] sm:$0x1]  ;;  %v12177_v38 = vrot.slane %v12118_v17, 7  ;;  %v12088_v43 = vsel %vm10840_vm12, %v12087_v56, %v12086_v4  ;;  %v11266_v58 = vsel %vm10828_vm8, %v11265_v50, %v11264_v63  ;;  %11889 = vrot.lane.b32.xlu1 %v19768_v13, %s13290_s17 }
 0xabc   : > { %v12124_v8 = vld [vmem:[#allocation4 + $0x17d] sm:$0x1]  ;;  %v12179_v36 = vrot.slane %v12119_v7, 6  ;;  %v12181_v47 = vrot.slane %v12120_v52, 5  ;;  %v11304_v46 = vld [vmem:[#allocation4 + $0x105] sm:$0x1]  ;;  %v11268_v53 = vsel %vm10831_vm9, %v11267_v29, %v11266_v58 }
 0xabd   : > { %v11306_v28 = vld [vmem:[#allocation4 + $0x125] sm:$0x1]  ;;  %v12178_v35 = vsel %vm10822_vm6, %v12177_v38, %v12117_v45  ;;  %v12183_v3 = vrot.slane %v12121_v14, 4  ;;  %v12185_v41 = vrot.slane %v12122_v57, 3  ;;  %v11307_v61 = vld [vmem:[#allocation4 + $0x135] sm:$0x1]  ;;  %v11270_v16 = vsel %vm10834_vm10, %v11269_v20, %v11268_v53 }
 0xabe   : > { %v11308_v5 = vld [vmem:[#allocation4 + $0x145] sm:$0x1]  ;;  %v12220_v9 = vld [vmem:[#allocation4 + $0x11e] sm:$0x1]  ;;  %v12180_v18 = vsel %vm10825_vm7, %v12179_v36, %v12178_v35  ;;  %v12187_v1 = vrot.slane %v12123_v21, 2  ;;  %v12189_v54 = vrot.slane %v12124_v8, 1  ;;  %v11272_v34 = vsel %vm10837_vm11, %v11271_v19, %v11270_v16  ;;  %11176 = vrot.lane.b32.xlu0 %v11171_v23, %s13291_s8 }
 0xabf   : > { %v11309_v25 = vld [vmem:[#allocation4 + $0x155] sm:$0x1]  ;;  %v11310_v13 = vld [vmem:[#allocation4 + $0x165] sm:$0x1]  ;;  %v12182_v22 = vsel %vm10828_vm8, %v12181_v47, %v12180_v18  ;;  %v11364_v11 = vrot.slane %v11305_v26, 7  ;;  %v11366_v0 = vrot.slane %v11306_v28, 6  ;;  %v11274_v59 = vsel %vm10840_vm12, %v11273_v40, %v11272_v34  ;;  %11991 = vrot.lane.b32.xlu1 %v19785_v6, %s13291_s8 }
 0xac0   : > { %v11311_v12 = vld [vmem:[#allocation4 + $0x175] sm:$0x1]  ;;  %v12221_v31 = vld [vmem:[#allocation4 + $0x12e] sm:$0x1]  ;;  %v12184_v37 = vsel %vm10831_vm9, %v12183_v3, %v12182_v22  ;;  %v11368_v27 = vrot.slane %v11307_v61, 5  ;;  %v11370_v32 = vrot.slane %v11308_v5, 4 }
 0xac1   : > { %v12219_v15 = vld [vmem:[#allocation4 + $0x10e] sm:$0x1]  ;;  %v12222_v17 = vld [vmem:[#allocation4 + $0x13e] sm:$0x1]  ;;  %v12186_v39 = vsel %vm10834_vm10, %v12185_v41, %v12184_v37  ;;  %v11365_v33 = vsel %vm10822_vm6, %v11364_v11, %v11304_v46  ;;  %v11372_v42 = vrot.slane %v11309_v25, 3  ;;  %v11374_v56 = vrot.slane %v11310_v13, 2 }
 0xac2   : > { %v12223_v2 = vld [vmem:[#allocation4 + $0x14e] sm:$0x1]  ;;  %v12224_v44 = vld [vmem:[#allocation4 + $0x15e] sm:$0x1]  ;;  %v11408_v30 = vld [vmem:[#allocation4 + $0x116] sm:$0x1]  ;;  %v12188_v24 = vsel %vm10837_vm11, %v12187_v1, %v12186_v39  ;;  %v11367_v51 = vsel %vm10825_vm7, %v11366_v0, %v11365_v33  ;;  %11279 = vrot.lane.b32.xlu0 %v11274_v59, %s13292_s9 }
 0xac3   : > { %v11376_v10 = vrot.slane %v11311_v12, 1  ;;  %v12225_v48 = vld [vmem:[#allocation4 + $0x16e] sm:$0x1]  ;;  %v12226_v7 = vld [vmem:[#allocation4 + $0x17e] sm:$0x1]  ;;  %v12279_v62 = vrot.slane %v12220_v9, 7  ;;  %v12190_v6 = vsel %vm10840_vm12, %v12189_v54, %v12188_v24  ;;  %v11369_v50 = vsel %vm10828_vm8, %v11368_v27, %v11367_v51  ;;  %12093 = vrot.lane.b32.xlu1 %v12088_v43, %s13292_s9 }
 0xac4   : > { %v12281_v29 = vrot.slane %v12221_v31, 6  ;;  %v12283_v45 = vrot.slane %v12222_v17, 5  ;;  %v11407_v52 = vld [vmem:[#allocation4 + $0x106] sm:$0x1]  ;;  %v11371_v55 = vsel %vm10831_vm9, %v11370_v32, %v11369_v50  ;;  %v12285_v20 = vrot.slane %v12223_v2, 4  ;;  %s13028_s16 = sshll.u32 %s13358_s28, 7 }
 0xac5   : > { %v11409_v49 = vld [vmem:[#allocation4 + $0x126] sm:$0x1]  ;;  %v12280_v23 = vsel %vm10822_vm6, %v12279_v62, %v12219_v15  ;;  %v12287_v19 = vrot.slane %v12224_v44, 3  ;;  %v11410_v14 = vld [vmem:[#allocation4 + $0x136] sm:$0x1]  ;;  %v11373_v4 = vsel %vm10834_vm10, %v11372_v42, %v11371_v55  ;;  %v12289_v40 = vrot.slane %v12225_v48, 2 }
 0xac6   : > { %v11411_v57 = vld [vmem:[#allocation4 + $0x146] sm:$0x1]  ;;  %v12322_v26 = vld [vmem:[#allocation4 + $0x11f] sm:$0x1]  ;;  %v12282_v63 = vsel %vm10825_vm7, %v12281_v29, %v12280_v23  ;;  %v12291_v21 = vrot.slane %v12226_v7, 1  ;;  %v11375_v58 = vsel %vm10837_vm11, %v11374_v56, %v11373_v4  ;;  %v11467_v46 = vrot.slane %v11408_v30, 7 }
 0xac7   : > { %v11412_v8 = vld [vmem:[#allocation4 + $0x156] sm:$0x1]  ;;  %v11413_v38 = vld [vmem:[#allocation4 + $0x166] sm:$0x1]  ;;  %v12284_v36 = vsel %vm10828_vm8, %v12283_v45, %v12282_v63  ;;  %v11469_v28 = vrot.slane %v11409_v49, 6  ;;  %v11377_v43 = vsel %vm10840_vm12, %v11376_v10, %v11375_v58  ;;  %v11471_v3 = vrot.slane %v11410_v14, 5  ;;  %12195 = vrot.lane.b32.xlu1 %v12190_v6, %s13293_s13 }
 0xac8   : > { %v11414_v47 = vld [vmem:[#allocation4 + $0x176] sm:$0x1]  ;;  %v12321_v53 = vld [vmem:[#allocation4 + $0x10f] sm:$0x1]  ;;  %v12286_v35 = vsel %vm10831_vm9, %v12285_v20, %v12284_v36  ;;  %v11473_v41 = vrot.slane %v11411_v57, 4  ;;  %v11468_v16 = vsel %vm10822_vm6, %v11467_v46, %v11407_v52  ;;  %v11475_v18 = vrot.slane %v11412_v8, 3  ;;  %11382 = vrot.lane.b32.xlu0 %v11377_v43, %s13293_s13 }
 0xac9   : > { %v12323_v61 = vld [vmem:[#allocation4 + $0x12f] sm:$0x1]  ;;  %v12324_v5 = vld [vmem:[#allocation4 + $0x13f] sm:$0x1]  ;;  %v12288_v9 = vsel %vm10834_vm10, %v12287_v19, %v12286_v35  ;;  %v11477_v1 = vrot.slane %v11413_v38, 2  ;;  %v11470_v34 = vsel %vm10825_vm7, %v11469_v28, %v11468_v16  ;;  %v11479_v22 = vrot.slane %v11414_v47, 1 }
 0xaca   : > { %v12325_v54 = vld [vmem:[#allocation4 + $0x14f] sm:$0x1]  ;;  %v12326_v25 = vld [vmem:[#allocation4 + $0x15f] sm:$0x1]  ;;  %v12290_v13 = vsel %vm10837_vm11, %v12289_v40, %v12288_v9  ;;  %v12381_v0 = vrot.slane %v12322_v26, 7  ;;  %v11472_v59 = vsel %vm10828_vm8, %v11471_v3, %v11470_v34  ;;  %v12383_v37 = vrot.slane %v12323_v61, 6 }
 0xacb   : > { %v12327_v12 = vld [vmem:[#allocation4 + $0x16f] sm:$0x1]  ;;  %v12328_v11 = vld [vmem:[#allocation4 + $0x17f] sm:$0x1]  ;;  %v12292_v31 = vsel %vm10840_vm12, %v12291_v21, %v12290_v13  ;;  %v12385_v27 = vrot.slane %v12324_v5, 5  ;;  %v11474_v17 = vsel %vm10831_vm9, %v11473_v41, %v11472_v59  ;;  %v12387_v33 = vrot.slane %v12325_v54, 4 }
 0xacc   : > { %v11511_v32 = vld [vmem:[#allocation4 + $0x117] sm:$0x1]  ;;  %v11512_v15 = vld [vmem:[#allocation4 + $0x127] sm:$0x1]  ;;  %v12382_v39 = vsel %vm10822_vm6, %v12381_v0, %v12321_v53  ;;  %v12389_v42 = vrot.slane %v12326_v25, 3  ;;  %v11476_v44 = vsel %vm10834_vm10, %v11475_v18, %v11474_v17  ;;  %v12391_v24 = vrot.slane %v12327_v12, 2  ;;  %12297 = vrot.lane.b32.xlu1 %v12292_v31, %s13294_s14 }
 0xacd   : > { %v11513_v56 = vld [vmem:[#allocation4 + $0x137] sm:$0x1]  ;;  %v11514_v2 = vld [vmem:[#allocation4 + $0x147] sm:$0x1]  ;;  %v12384_v30 = vsel %vm10825_vm7, %v12383_v37, %v12382_v39  ;;  %v12393_v51 = vrot.slane %v12328_v11, 1  ;;  %v11478_v6 = vsel %vm10837_vm11, %v11477_v1, %v11476_v44  ;;  %v11570_v52 = vrot.slane %v11511_v32, 7 }
 0xace   : > { %v11510_v10 = vld [vmem:[#allocation4 + $0x107] sm:$0x1]  ;;  %v11515_v48 = vld [vmem:[#allocation4 + $0x157] sm:$0x1]  ;;  %v11600_v7 = vld [vmem:[#allocation4 + $0x38] sm:$0x1]  ;;  %v12386_v50 = vsel %vm10828_vm8, %v12385_v27, %v12384_v30  ;;  %v11480_v55 = vsel %vm10840_vm12, %v11479_v22, %v11478_v6 }
 0xacf   : > { %v11601_v62 = vld [vmem:[#allocation4 + $0x48] sm:$0x1]  ;;  %v11516_v29 = vld [vmem:[#allocation4 + $0x167] sm:$0x1]  ;;  %v11517_v45 = vld [vmem:[#allocation4 + $0x177] sm:$0x1]  ;;  %v12388_v23 = vsel %vm10831_vm9, %v12387_v33, %v12386_v50  ;;  %11485 = vrot.lane.b32.xlu0 %v11480_v55, %s13294_s14  ;;  %v11571_v63 = vsel %vm10822_vm6, %v11570_v52, %v11510_v10  ;;  %s19973_s14 = scalar_lea.hbm %s20022_s7, %s13028_s16 }
 0xad0   : > { %v11572_v49 = vrot.slane %v11512_v15, 6  ;;  %v11574_v20 = vrot.slane %v11513_v56, 5  ;;  %v11576_v19 = vrot.slane %v11514_v2, 4  ;;  %v11602_v14 = vld [vmem:[#allocation4 + $0x58] sm:$0x1]  ;;  %v12390_v4 = vsel %vm10834_vm10, %v12389_v42, %v12388_v23  ;;  %s271_s17 = scalar_lea.vmem [#allocation6], %s12581_s29 }
 0xad1   : > { %v11606_v57 = vld [vmem:[#allocation4 + $0x98] sm:$0x1]  ;;  %v11607_v26 = vld [vmem:[#allocation4 + $0xa8] sm:$0x1]  ;;  %v11578_v40 = vrot.slane %v11515_v48, 3  ;;  %v12392_v47 = vsel %vm10837_vm11, %v12391_v24, %v12390_v4  ;;  %v11580_v28 = vrot.slane %v11516_v29, 2 }
 0xad2   : > { %v11603_v21 = vld [vmem:[#allocation4 + $0x68] sm:$0x1]  ;;  %v21168_v8 = vld [vmem:[#allocation132_spill] sm:$0xff]  ;;  %v11573_v46 = vsel %vm10825_vm7, %v11572_v49, %v11571_v63  ;;  %v11582_v53 = vrot.slane %v11517_v45, 1  ;;  %v12394_v3 = vsel %vm10840_vm12, %v12393_v51, %v12392_v47  ;;  %v12414_v61 = vld [vmem:[%s20021_s6] sm:$0xf] }
 0xad3   : > { %v21169_v38 = vrot.slane %v21168_v8, 6  ;;  %v11604_v36 = vld [vmem:[#allocation4 + $0x78] sm:$0x1]  ;;  %v11605_v43 = vld [vmem:[#allocation4 + $0x88] sm:$0x1]  ;;  %v11575_v41 = vsel %vm10828_vm8, %v11574_v20, %v11573_v46  ;;  %v11649_v5 = vrot.slane %v11600_v7, 5  ;;  %12399 = vrot.lane.b32.xlu1 %v12394_v3, %s13295_s15 }
 0xad4   : > { %v11608_v35 = vld [vmem:[#allocation4 + $0xb8] sm:$0x1]  ;;  %v11651_v9 = vrot.slane %v11601_v62, 4  ;;  %v11577_v18 = vsel %vm10831_vm9, %v11576_v19, %v11575_v41  ;;  %v11653_v1 = vrot.slane %v11602_v14, 3  ;;  %v11655_v54 = vrot.slane %v11603_v21, 2  ;;  %s12518_s8 = sshll.u32 %s271_s17, 4  ;;  %s19975_s8 = int_to_ptr.vmem [resolvable:$true] %s12518_s8 }
 0xad5   : > { %v11648_v58 = vsel %vm10825_vm7, %v21169_v38, %v19756_v60  ;;  %v11609_v60 = vld [vmem:[#allocation4 + $0xc8] sm:$0x1]  ;;  %v11610_v16 = vld [vmem:[#allocation4 + $0xd8] sm:$0x1]  ;;  %v11657_v25 = vrot.slane %v11604_v36, 1  ;;  %v11579_v34 = vsel %vm10834_vm10, %v11578_v40, %v11577_v18  ;;  %v11659_v11 = vrot.slane %v11606_v57, 7 }
 0xad6   : > { %v11611_v13 = vld [vmem:[#allocation4 + $0xe8] sm:$0x1]  ;;  %v11650_v22 = vsel %vm10828_vm8, %v11649_v5, %v11648_v58  ;;  %v11612_v12 = vld [vmem:[#allocation4 + $0xf8] sm:$0x1]  ;;  %v11661_v0 = vrot.slane %v11607_v26, 6  ;;  %v11581_v59 = vsel %vm10837_vm11, %v11580_v28, %v11579_v34  ;;  %v11663_v27 = vrot.slane %v11608_v35, 5 }
 0xad7   : > { %v10774_v31 = vld [vmem:[#allocation4 + $0x10] sm:$0x1]  ;;  %v11652_v37 = vsel %vm10831_vm9, %v11651_v9, %v11650_v22  ;;  %v11665_v32 = vrot.slane %v11609_v60, 4  ;;  %v10773_v15 = vld [vmem:[#allocation4] sm:$0x1]  ;;  %v11583_v33 = vsel %vm10840_vm12, %v11582_v53, %v11581_v59  ;;  %v11660_v56 = vsel %vm10822_vm6, %v11659_v11, %v11605_v43  ;;  %12417 = vperm.xlu1 %13093, %v12414_v61   ;;  %s13296_s28 = smov [#allocation6]  }
 0xad8   : > { %v10775_v17 = vld [vmem:[#allocation4 + $0x20] sm:$0x1]  ;;  %v10776_v39 = vld [vmem:[#allocation4 + $0x30] sm:$0x1]  ;;  %v11654_v42 = vsel %vm10834_vm10, %v11653_v1, %v11652_v37  ;;  %v11667_v2 = vrot.slane %v11610_v16, 3  ;;  %11588 = vrot.lane.b32.xlu0 %v11583_v33, %s13295_s15  ;;  %v11662_v51 = vsel %vm10825_vm7, %v11661_v0, %v11660_v56  ;;  %v11669_v10 = vrot.slane %v11611_v13, 2 }
 0xad9   : > { %v10777_v44 = vld [vmem:[#allocation4 + $0x40] sm:$0x1]  ;;  %v10778_v30 = vld [vmem:[#allocation4 + $0x50] sm:$0x1]  ;;  %v11656_v24 = vsel %vm10837_vm11, %v11655_v54, %v11654_v42  ;;  %v11664_v6 = vsel %vm10828_vm8, %v11663_v27, %v11662_v51  ;;  %v11671_v50 = vrot.slane %v11612_v12, 1  ;;  %v10821_v29 = vrot.slane %v10774_v31, 7 }
 0xada   : > { %v10779_v48 = vld [vmem:[#allocation4 + $0x60] sm:$0x1]  ;;  %v10780_v7 = vld [vmem:[#allocation4 + $0x70] sm:$0x1]  ;;  %v11658_v62 = vsel %vm10840_vm12, %v11657_v25, %v11656_v24  ;;  %v11666_v55 = vsel %vm10831_vm9, %v11665_v32, %v11664_v6  ;;  %v10824_v23 = vrot.slane %v10775_v17, 6  ;;  %v10827_v20 = vrot.slane %v10776_v39, 5 }
 0xadb   : > { %v10781_v45 = vld [vmem:[#allocation4 + $0x80] sm:$0x1]  ;;  %v10782_v52 = vld [vmem:[#allocation4 + $0x90] sm:$0x1]  ;;  %11690 = vst.msk [vmem:[#allocation5 + $0x8] sm:$0xff] %vm10724_vm5, %v11658_v62  ;;  %v10830_v19 = vrot.slane %v10777_v44, 4  ;;  %v11668_v57 = vsel %vm10834_vm10, %v11667_v2, %v11666_v55  ;;  %v10823_v26 = vsel %vm10822_vm6, %v10821_v29, %v10773_v15 }
 0xadc   : > { %v10783_v49 = vld [vmem:[#allocation4 + $0xa0] sm:$0x1]  ;;  %v10784_v14 = vld [vmem:[#allocation4 + $0xb0] sm:$0x1]  ;;  %v10833_v4 = vrot.slane %v10778_v30, 3  ;;  %v10836_v63 = vrot.slane %v10779_v48, 2  ;;  %v11670_v8 = vsel %vm10837_vm11, %v11669_v10, %v11668_v57  ;;  %v10826_v38 = vsel %vm10825_vm7, %v10824_v23, %v10823_v26 }
 0xadd   : > { %v10785_v40 = vld [vmem:[#allocation4 + $0xc0] sm:$0x1]  ;;  %v10786_v21 = vld [vmem:[#allocation4 + $0xd0] sm:$0x1]  ;;  %v10839_v58 = vrot.slane %v10780_v7, 1  ;;  %v10842_v47 = vrot.slane %v10782_v52, 7  ;;  %v11672_v46 = vsel %vm10840_vm12, %v11671_v50, %v11670_v8  ;;  %v10829_v28 = vsel %vm10828_vm8, %v10827_v20, %v10826_v38 }
 0xade   : > { %v10787_v36 = vld [vmem:[#allocation4 + $0xe0] sm:$0x1]  ;;  %v10788_v53 = vld [vmem:[#allocation4 + $0xf0] sm:$0x1]  ;;  %v10844_v43 = vrot.slane %v10783_v49, 6  ;;  %v10846_v35 = vrot.slane %v10784_v14, 5  ;;  %v10832_v3 = vsel %vm10831_vm9, %v10830_v19, %v10829_v28 }
 0xadf   : > { %11691 = vst.msk [vmem:[#allocation5 + $0x18] sm:$0xff] %vm10724_vm5, %v11672_v46  ;;  %v10843_v41 = vsel %vm10822_vm6, %v10842_v47, %v10781_v45  ;;  %v10848_v61 = vrot.slane %v10785_v40, 4  ;;  %v10850_v5 = vrot.slane %v10786_v21, 3  ;;  %v11614_v9 = vld [vmem:[#allocation4 + $0x118] sm:$0x1]  ;;  %v10835_v60 = vsel %vm10834_vm10, %v10833_v4, %v10832_v3  ;;  %v11784_v7 = vpop.permute.xlu1 %11783  ;;  %s12504_s15 = scalar_lea.sflag [#allocation7], %s269_s22 }
 0xae0   : > { %v10845_v16 = vsel %vm10825_vm7, %v10844_v43, %v10843_v41  ;;  %v10852_v18 = vrot.slane %v10787_v36, 2  ;;  %v11613_v1 = vld [vmem:[#allocation4 + $0x108] sm:$0x1]  ;;  %v11616_v25 = vld [vmem:[#allocation4 + $0x138] sm:$0x1]  ;;  %v10838_v13 = vsel %vm10837_vm11, %v10836_v63, %v10835_v60  ;;  %v10854_v22 = vrot.slane %v10788_v53, 1 }
 0xae1   : > { %v11615_v54 = vld [vmem:[#allocation4 + $0x128] sm:$0x1]  ;;  %v10847_v34 = vsel %vm10828_vm8, %v10846_v35, %v10845_v16  ;;  %v10841_v0 = vsel %vm10840_vm12, %v10839_v58, %v10838_v13  ;;  %v11620_v59 = vld [vmem:[#allocation4 + $0x178] sm:$0x1]  ;;  %v10790_v27 = vld [vmem:[#allocation4 + $0x110] sm:$0x1] }
 0xae2   : > { %v11617_v12 = vld [vmem:[#allocation4 + $0x148] sm:$0x1]  ;;  %v10849_v31 = vsel %vm10831_vm9, %v10848_v61, %v10847_v34  ;;  %v11618_v37 = vld [vmem:[#allocation4 + $0x158] sm:$0x1]  ;;  %10873 = vst.msk [vmem:[#allocation5] sm:$0xff] %vm10724_vm5, %v10841_v0  ;;  %v11673_v15 = vrot.slane %v11614_v9, 7 }
 0xae3   : > { %v11619_v11 = vld [vmem:[#allocation4 + $0x168] sm:$0x1]  ;;  %v10851_v32 = vsel %vm10834_vm10, %v10850_v5, %v10849_v31  ;;  %v11677_v17 = vrot.slane %v11616_v25, 5  ;;  %v10791_v39 = vld [vmem:[#allocation4 + $0x120] sm:$0x1]  ;;  %v11675_v56 = vrot.slane %v11615_v54, 6  ;;  %v11786_v40 = vpop.permute.xlu0 %11785 }
 0xae4   : > { %v10792_v33 = vld [vmem:[#allocation4 + $0x130] sm:$0x1]  ;;  %v10853_v42 = vsel %vm10837_vm11, %v10852_v18, %v10851_v32  ;;  %v11679_v2 = vrot.slane %v11617_v12, 4  ;;  %v10793_v44 = vld [vmem:[#allocation4 + $0x140] sm:$0x1]  ;;  %v11674_v24 = vsel %vm10822_vm6, %v11673_v15, %v11613_v1  ;;  %v11681_v51 = vrot.slane %v11618_v37, 3 }
 0xae5   : > { %v10855_v30 = vsel %vm10840_vm12, %v10854_v22, %v10853_v42  ;;  %v10789_v10 = vld [vmem:[#allocation4 + $0x100] sm:$0x1]  ;;  %v10794_v48 = vld [vmem:[#allocation4 + $0x150] sm:$0x1]  ;;  %v11676_v62 = vsel %vm10825_vm7, %v11675_v56, %v11674_v24  ;;  %v11683_v6 = vrot.slane %v11619_v11, 2  ;;  %v10856_v29 = vrot.slane %v10790_v27, 7 }
 0xae6   : > { %10874 = vst.msk [vmem:[#allocation5 + $0x10] sm:$0xff] %vm10724_vm5, %v10855_v30  ;;  %v10795_v50 = vld [vmem:[#allocation4 + $0x160] sm:$0x1]  ;;  %v10860_v45 = vrot.slane %v10792_v33, 5  ;;  %v11678_v52 = vsel %vm10828_vm8, %v11677_v17, %v11676_v62  ;;  %v11685_v49 = vrot.slane %v11620_v59, 1  ;;  %v10858_v23 = vrot.slane %v10791_v39, 6 }
 0xae7   : > { %11792 = vst.msk [vmem:[#allocation5 + $0x8] sm:$0xff] %vm10975_vm13, %v11784_v7  ;;  %v10796_v55 = vld [vmem:[#allocation4 + $0x170] sm:$0x1]  ;;  %v10862_v20 = vrot.slane %v10793_v44, 4  ;;  %v11680_v19 = vsel %vm10831_vm9, %v11679_v2, %v11678_v52  ;;  %v10857_v14 = vsel %vm10822_vm6, %v10856_v29, %v10789_v10  ;;  %v10864_v57 = vrot.slane %v10794_v48, 3  ;;  %11793 = vst.msk [vmem:[#allocation5 + $0x18] sm:$0xff] %vm10975_vm13, %v11786_v40 }
 0xae8   : > { %v11682_v26 = vsel %vm10834_vm10, %v11681_v51, %v11680_v19  ;;  %v10859_v4 = vsel %vm10825_vm7, %v10858_v23, %v10857_v14  ;;  %v10866_v63 = vrot.slane %v10795_v50, 2  ;;  %v10868_v38 = vrot.slane %v10796_v55, 1  ;;  %v12407_v23 = vld [vmem:[%s20020_s5] sm:$0xf]  ;;  %s13216_s18 = sshll.u32 %s13296_s28, 4  ;;  %s13217_s18 = int_to_ptr.vmem [resolvable:$false] %s13216_s18 }
 0xae9   : > { %v11684_v21 = vsel %vm10837_vm11, %v11683_v6, %v11682_v26  ;;  %v10861_v8 = vsel %vm10828_vm8, %v10860_v45, %v10859_v4  ;;  %s13218_s19 = scalar_lea.vmem %s13217_s18, 256  ;;  %p13219_p0 = scmp.lt.s32.totalorder %s19975_s8, %s13217_s18 }
 0xaea   : > { %v11686_v58 = vsel %vm10840_vm12, %v11685_v49, %v11684_v21  ;;  %v10863_v36 = vsel %vm10831_vm9, %v10862_v20, %v10861_v8  ;;  %v21170_v21 = vld [vmem:[#allocation9_spill] sm:$0xff] }
 0xaeb   : > { %11692 = vst.msk [vmem:[#allocation5 + $0x28] sm:$0xff] %vm10724_vm5, %v11686_v58  ;;  %v10865_v47 = vsel %vm10834_vm10, %v10864_v57, %v10863_v36 }
 0xaec   : > { %v10867_v46 = vsel %vm10837_vm11, %v10866_v63, %v10865_v47  ;;  %v13211_v63 = vld [vmem:[%s13401_s23] sm:$0xff]  ;;  %s13212_s23 = scalar_lea.vmem %s19975_s8, 128 }
 0xaed   : > { %v10869_v28 = vsel %vm10840_vm12, %v10868_v38, %v10867_v46  ;;  %p13213_p11 = scmp.ne.s32.totalorder %s19975_s8, %s13212_s23  ;;  %p13220_p1 = scmp.lt.s32.totalorder %s13218_s19, %s13212_s23 }
 0xaee   : > { %10875 = vst.msk [vmem:[#allocation5 + $0x20] sm:$0xff] %vm10724_vm5, %v10869_v28 }
 0xaef   : > { %v10967_v53 = vpop.permute.xlu1 %10966  ;;  %p13214_p12 = pnand %p13213_p11, %p13375_p5  ;;  %p13221_p2 = por %p13220_p1, %p13219_p0 }
 0xaf0   : > { %10976 = vst.msk [vmem:[#allocation5] sm:$0xff] %vm10975_vm13, %v10967_v53 }
 0xaf1   : > { %p13215_p13 = pneg %p13214_p12 }
 0xaf3   : > { %v11886_v43 = vpop.permute.xlu1 %11885  ;;  %p13222_p3 = pnand %p13221_p2, %p13215_p13 }
 0xaf4   : > { %11894 = vst.msk [vmem:[#allocation5 + $0x8] sm:$0xff] %vm11078_vm14, %v11886_v43  ;;  %v10969_v35 = vpop.permute.xlu0 %10968 }
 0xaf5   : > { %10977 = vst.msk [vmem:[#allocation5 + $0x10] sm:$0xff] %vm10975_vm13, %v10969_v35 }
 0xaf7   : > { %v11070_v3 = vpop.permute.xlu1 %11069 }
 0xaf8   : > { %11079 = vst.msk [vmem:[#allocation5] sm:$0xff] %vm11078_vm14, %v11070_v3  ;;  %v11888_v41 = vpop.permute.xlu0 %11887 }
 0xaf9   : > { %11895 = vst.msk [vmem:[#allocation5 + $0x18] sm:$0xff] %vm11078_vm14, %v11888_v41 }
 0xafb   : > { %v11988_v61 = vpop.permute.xlu1 %11987 }
 0xafc   : > { %11996 = vst.msk [vmem:[#allocation5 + $0x8] sm:$0xff] %vm11181_vm15, %v11988_v61  ;;  %v11072_v5 = vpop.permute.xlu0 %11071 }
 0xafd   : > { %11080 = vst.msk [vmem:[#allocation5 + $0x10] sm:$0xff] %vm11078_vm14, %v11072_v5 }
 0xaff   : > { %v11173_v9 = vpop.permute.xlu1 %11172 }
 0xb00   : > { %11182 = vst.msk [vmem:[#allocation5] sm:$0xff] %vm11181_vm15, %v11173_v9  ;;  %v11990_v60 = vpop.permute.xlu0 %11989 }
 0xb01   : > { %11997 = vst.msk [vmem:[#allocation5 + $0x18] sm:$0xff] %vm11181_vm15, %v11990_v60 }
 0xb03   : > { %v12090_v16 = vpop.permute.xlu1 %12089 }
 0xb04   : > { %12098 = vst.msk [vmem:[#allocation5 + $0x8] sm:$0xff] %vm11284_vm0, %v12090_v16  ;;  %v11175_v18 = vpop.permute.xlu0 %11174 }
 0xb05   : > { %11183 = vst.msk [vmem:[#allocation5 + $0x10] sm:$0xff] %vm11181_vm15, %v11175_v18 }
 0xb07   : > { %v11276_v1 = vpop.permute.xlu1 %11275 }
 0xb08   : > { %11285 = vst.msk [vmem:[#allocation5] sm:$0xff] %vm11284_vm0, %v11276_v1  ;;  %v12092_v54 = vpop.permute.xlu0 %12091 }
 0xb09   : > { %12099 = vst.msk [vmem:[#allocation5 + $0x18] sm:$0xff] %vm11284_vm0, %v12092_v54 }
 0xb0b   : > { %v12192_v25 = vpop.permute.xlu1 %12191 }
 0xb0c   : > { %12200 = vst.msk [vmem:[#allocation5 + $0x8] sm:$0xff] %vm11387_vm1, %v12192_v25  ;;  %v11278_v13 = vpop.permute.xlu0 %11277 }
 0xb0d   : > { %11286 = vst.msk [vmem:[#allocation5 + $0x10] sm:$0xff] %vm11284_vm0, %v11278_v13 }
 0xb0f   : > { %v11379_v34 = vpop.permute.xlu1 %11378 }
 0xb10   : > { %11388 = vst.msk [vmem:[#allocation5] sm:$0xff] %vm11387_vm1, %v11379_v34  ;;  %v12194_v22 = vpop.permute.xlu0 %12193 }
 0xb11   : > { %12201 = vst.msk [vmem:[#allocation5 + $0x18] sm:$0xff] %vm11387_vm1, %v12194_v22 }
 0xb13   : > { %v12294_v12 = vpop.permute.xlu1 %12293 }
 0xb14   : > { %12302 = vst.msk [vmem:[#allocation5 + $0x8] sm:$0xff] %vm11490_vm2, %v12294_v12  ;;  %v11381_v11 = vpop.permute.xlu0 %11380 }
 0xb15   : > { %11389 = vst.msk [vmem:[#allocation5 + $0x10] sm:$0xff] %vm11387_vm1, %v11381_v11 }
 0xb17   : > { %v11482_v0 = vpop.permute.xlu1 %11481 }
 0xb18   : > { %11491 = vst.msk [vmem:[#allocation5] sm:$0xff] %vm11490_vm2, %v11482_v0  ;;  %v12296_v31 = vpop.permute.xlu0 %12295 }
 0xb19   : > { %12303 = vst.msk [vmem:[#allocation5 + $0x18] sm:$0xff] %vm11490_vm2, %v12296_v31 }
 0xb1c   : > { %v11484_v59 = vpop.permute.xlu0 %11483 }
 0xb1d   : > { %11492 = vst.msk [vmem:[#allocation5 + $0x10] sm:$0xff] %vm11490_vm2, %v11484_v59 }
 0xb20   : > { %v12396_v27 = vpop.permute.xlu0 %12395 }
 0xb21   : > { %v11788_v37 = vpop.permute.xlu1 %11787  ;;  %12404 = vst.msk [vmem:[#allocation5 + $0x8] sm:$0xff] %vm11593_vm3, %v12396_v27 }
 0xb22   : > { %11794 = vst.msk [vmem:[#allocation5 + $0x28] sm:$0xff] %vm10975_vm13, %v11788_v37 }
 0xb24   : > { %v10971_v15 = vpop.permute.xlu0 %10970 }
 0xb25   : > { %v12398_v32 = vpop.permute.xlu1 %12397  ;;  %10978 = vst.msk [vmem:[#allocation5 + $0x20] sm:$0xff] %vm10975_vm13, %v10971_v15 }
 0xb26   : > { %12405 = vst.msk [vmem:[#allocation5 + $0x18] sm:$0xff] %vm11593_vm3, %v12398_v32 }
 0xb28   : > { %v11587_v39 = vpop.permute.xlu0 %11586  ;;  %v12409_v42 = vld [vmem:[#allocation5 + $0x8] sm:$0xff] }
 0xb29   : > { %v11585_v17 = vpop.permute.xlu1 %11584  ;;  %11595 = vst.msk [vmem:[#allocation5 + $0x10] sm:$0xff] %vm11593_vm3, %v11587_v39 }
 0xb2a   : > { %11594 = vst.msk [vmem:[#allocation5] sm:$0xff] %vm11593_vm3, %v11585_v17 }
 0xb2c   : > { %v11074_v2 = vpop.permute.xlu0 %11073 }
 0xb2d   : > { %v11890_v33 = vpop.permute.xlu1 %11889  ;;  %v12411_v56 = vld [vmem:[#allocation5 + $0x18] sm:$0xff]  ;;  %11081 = vst.msk [vmem:[#allocation5 + $0x20] sm:$0xff] %vm11078_vm14, %v11074_v2 }
 0xb2e   : > { %11896 = vst.msk [vmem:[#allocation5 + $0x28] sm:$0xff] %vm11078_vm14, %v11890_v33  ;;  %v13029_v44 = vpack.c.bf16 %v12411_v56, %v12409_v42 }
 0xb30   : > { %13030 = vmatprep.subr.bf16.mxu1 %v13029_v44  ;;  %v11177_v51 = vpop.permute.xlu0 %11176  ;;  %v12410_v10 = vld [vmem:[#allocation5 + $0x10] sm:$0xff] }
 0xb31   : > { %v11992_v30 = vpop.permute.xlu1 %11991  ;;  %v12408_v24 = vld [vmem:[#allocation5] sm:$0xff]  ;;  %11184 = vst.msk [vmem:[#allocation5 + $0x20] sm:$0xff] %vm11181_vm15, %v11177_v51 }
 0xb32   : > { %11998 = vst.msk [vmem:[#allocation5 + $0x28] sm:$0xff] %vm11181_vm15, %v11992_v30  ;;  %v13031_v48 = vpack.c.bf16 %v12410_v10, %v12408_v24 }
 0xb34   : > { %13032 = vmatpush1.bf16.msra.mxu1 %v13031_v48  ;;  %v11280_v62 = vpop.permute.xlu0 %11279 }
 0xb35   : > { %v12094_v7 = vpop.permute.xlu1 %12093  ;;  %11287 = vst.msk [vmem:[#allocation5 + $0x20] sm:$0xff] %vm11284_vm0, %v11280_v62 }
 0xb36   : > { %12100 = vst.msk [vmem:[#allocation5 + $0x28] sm:$0xff] %vm11284_vm0, %v12094_v7 }
 0xb39   : > { %v12196_v6 = vpop.permute.xlu1 %12195 }
 0xb3a   : > { %12202 = vst.msk [vmem:[#allocation5 + $0x28] sm:$0xff] %vm11387_vm1, %v12196_v6  ;;  %v11383_v50 = vpop.permute.xlu0 %11382 }
 0xb3b   : > { %11390 = vst.msk [vmem:[#allocation5 + $0x20] sm:$0xff] %vm11387_vm1, %v11383_v50 }
 0xb3e   : > { %v12298_v29 = vpop.permute.xlu1 %12297 }
 0xb3f   : > { %12304 = vst.msk [vmem:[#allocation5 + $0x28] sm:$0xff] %vm11490_vm2, %v12298_v29 }
 0xb41   : > { %v11486_v45 = vpop.permute.xlu0 %11485 }
 0xb42   : > { %11493 = vst.msk [vmem:[#allocation5 + $0x20] sm:$0xff] %vm11490_vm2, %v11486_v45 }
 0xb45   : > { %v12400_v52 = vpop.permute.xlu1 %12399 }
 0xb46   : > { %12406 = vst.msk [vmem:[#allocation5 + $0x28] sm:$0xff] %vm11593_vm3, %v12400_v52 }
 0xb4a   : > { %v11589_v49 = vpop.permute.xlu0 %11588 }
 0xb4b   : > { %11596 = vst.msk [vmem:[#allocation5 + $0x20] sm:$0xff] %vm11593_vm3, %v11589_v49 }
 0xb4d   : > { %v12413_v55 = vld [vmem:[#allocation5 + $0x28] sm:$0xff] }
 0xb4e   : > { %12428 = vmatprep.subr.mxu1 %v12413_v55 }
 0xb52   : > { %v12412_v20 = vld [vmem:[#allocation5 + $0x20] sm:$0xff] }
 0xb53   : > { %12429 = vmatpush1.msra.mxu1 %v12412_v20 }
 0xb54   : > { %13021 = vmatmul.mubr.msk.f32.vlgmr.msra.gmra.mrb[0].mxu1 %vm12420_vm4, %v12407_v23 }
 0xb56   : > { %v12418_v19 = vpop.permute.xlu1 %12417 }
 0xc27   : > { %v12490_v14 = vpop.f32.mrb[0].mxu1 }
 0xc28   : > { %v12491_v57 = vadd.f32 %v12490_v14, %v12418_v19  ;;  %v12492_v26 = vpop.f32.mrb[1].mxu1 }
 0xc29   : > { %v12493_v4 = vadd.f32 %v12492_v26, %v12418_v19 }
 0xc2a   : > { %v12496_v40 = vadd.f32 %v13211_v63, %v12491_v57 }
 0xc2b   : > { %v12497_v8 = vadd.f32 %v12493_v4, %v21170_v21 }
 0xc2d   : > { %v12500_v38 = vcombine.low %v12496_v40, %v12497_v8 }
 0xc2f   : > { %12502 = vst [vmem:[%s271_s17] sm:$0xff] %v12500_v38 }
 0xc30   : > { %13225 = shalt.err (!%p13222_p3)
}
 0xc31   : > { %s13226_s20 = scalar_lea.hbm %s19973_s14, 128  ;;  %s13230_s29 = scalar_lea.hbm %s20022_s7, 256 }
 0xc32   : > { %p13227_p4 = scmp.ne.s32.totalorder %s19973_s14, %s13226_s20  ;;  %p13231_p9 = scmp.lt.u32.totalorder %s19973_s14, %s20022_s7 }
 0xc33   : > { %p13232_p10 = scmp.lt.u32.totalorder %s13230_s29, %s13226_s20  ;;  %p13234_p12 = scmp.lt.u32.totalorder %s13226_s20, %s19973_s14 }
 0xc34   : > { %p13228_p7 = pnand %p13227_p4, %p13375_p5 }
 0xc35   : > { %p13233_p11 = por %p13232_p10, %p13231_p9 }
 0xc36   : > { %p13229_p8 = pneg %p13228_p7 }
 0xc37   : > { %p13235_p13 = por %p13234_p12, %p13233_p11 }
 0xc39   : > { %p13236_p0 = pnand %p13235_p13, %p13229_p8 }
 0xc3b   : > { %13239 = shalt.err (!%p13236_p0)
}
 0xc3c   : > { %13033 = dma.vmem_to_hbm [thread:$0]  (%p13375_p5), %s19975_s8, 128, %s19973_s14, %s12504_s15  }
 0xc3d PF: > { %p13039_p1 = scmp.ge.s32.totalorder %s13274_s27, 2  ;;  %s12530_s9 = sand.u32 1, %s13262_s24  }
 0xc3e   : > { %s12531_s13 = scalar_lea.sflag [#allocation7], %s12530_s9 }
 0xc3f   : > { %p13036_p2 = pnand %p13039_p1, %p13379_p6 }
 0xc41   : > { %13257 = dma.done.wait (!%p13036_p2), %s12531_s13, 128  }
 0xc42   : > { %13259 = vsyncadd (!%p13036_p2), %s12531_s13, 4294967168  ;;  %p17_p3 = scmp.ge.s32.totalorder %s13362_s30, 4   ;;  %s21171_s24 = smov %s13266_s25 }
 0xc43   : > { %s21172_s25 = smov %s13270_s26  ;;  %s21173_s26 = smov %s13373_s10 }
 0xc44   : > { %s21174_s27 = smov %s13362_s30  ;;  %19 = sbr.rel (!%p17_p3) target bundleno = 3 (0x3), region = 91 }
 0xc4b   :  { %12536 = vsyncpa [#allocation7], 1 }
 0xc4c   :  { %12538 = vsyncpa [#allocation7 + $0x1], 1 }

</bundles_post_ra>
